<compile_context>
chip_gen: v6e
topology: v6e:2x2x1
jax: 0.10.0
libtpu: 0.0.40
codegen_flags: <defaults>
</compile_context>

<pallas_src>
import functools

import jax
import jax.numpy as jnp
from jax.experimental import pallas as pl
from jax.experimental.pallas import tpu as pltpu


# ---------------------------------------------------------------------------
# Pallas kernel: (patches @ W_scaled) + shift -> ReLU -> 2x2 max pool
# ---------------------------------------------------------------------------
def _conv_bn_relu_pool_kernel(x_ref, w_ref, shift_ref, o_ref, *, width):
    # MXU matmul, f32 accumulation (inputs may be bf16 or f32).
    acc = jnp.dot(x_ref[...], w_ref[...],
                  preferred_element_type=jnp.float32,
                  precision=jax.lax.Precision.HIGHEST)
    # Conv bias + eval-mode BN folded: scale already in w_ref, shift added here.
    y = jnp.maximum(acc + shift_ref[...], 0.0)              # f32 epilogue
    tm, n = y.shape
    # Fused 2x2 / stride-2 max pool.  Rows of this tile are ordered
    # (row-pair, h in {0,1}, w), so expose the two pooling axes and reduce.
    y = y.reshape(tm // (2 * width), 2, width // 2, 2, n)
    y = jnp.max(y, axis=1)                                   # vertical max
    y = jnp.max(y, axis=2)                                   # horizontal max
    o_ref[...] = y.reshape(tm // 4, n).astype(o_ref.dtype)


def _round_up(x, m):
    return (x + m - 1) // m * m


def _pick_row_tile(m, unit, max_rows=1024):
    """Largest row tile that (a) divides m, (b) is a multiple of `unit` (whole
    2-row pool groups per tile), (c) is <= max_rows (VMEM headroom, esp. v7x),
    and (d) leaves >= 2 grid steps when possible (both v7x TensorCores)."""
    assert m % unit == 0
    n_units = m // unit
    divisors = [d for d in range(1, n_units + 1) if n_units % d == 0]
    good = [d for d in divisors
            if d * unit <= max_rows and (n_units // d >= 2 or n_units == 1)]
    if not good:
        good = [d for d in divisors if d * unit <= max_rows] or [1]
    return max(good) * unit


# ---------------------------------------------------------------------------
# Layer wrapper (im2col glue in plain JAX, hot path in Pallas)
# ---------------------------------------------------------------------------
def _im2col(x, k, pad):
    """NHWC -> (B*H*W, k*k*C) patches, 'same' padding, stride 1."""
    B, H, W, C = x.shape
    xp = jnp.pad(x, ((0, 0), (pad, pad), (pad, pad), (0, 0)))
    cols = []
    for di in range(k):
        for dj in range(k):
            cols.append(xp[:, di:di + H, dj:dj + W, :])
    patches = jnp.concatenate(cols, axis=-1)                 # (B, H, W, k*k*C)
    return patches.reshape(B * H * W, k * k * C)


def conv_bn_relu_pool(x_nhwc, w, b, gamma, beta, mean, var, *,
                      eps=1e-5, mxu_dtype=jnp.bfloat16):
    """Conv2d(k=5, pad=2) + BatchNorm2d(eval) + ReLU + MaxPool2d(2), fused."""
    B, H, W, Cin = x_nhwc.shape
    Cout, Cin2, k, _ = w.shape
    assert Cin2 == Cin and H % 2 == 0 and W % 2 == 0
    K = k * k * Cin
    Kp = _round_up(K, 128)              # pad contraction depth for full lanes

    patches = _im2col(x_nhwc, k, pad=k // 2)                 # (B*H*W, K)
    if Kp != K:
        patches = jnp.pad(patches, ((0, 0), (0, Kp - K)))

    # Fold conv bias + eval-mode BN: y = conv(x; w*scale) + shift.
    scale = gamma / jnp.sqrt(var + eps)
    shift = (b - mean) * scale + beta
    w_mat = jnp.transpose(w, (2, 3, 1, 0)).reshape(K, Cout) * scale[None, :]
    if Kp != K:
        w_mat = jnp.pad(w_mat, ((0, Kp - K), (0, 0)))

    patches = patches.astype(mxu_dtype)                      # bf16 MXU inputs
    w_mat = w_mat.astype(mxu_dtype)
    shift = shift.reshape(1, Cout).astype(jnp.float32)       # f32 epilogue

    M = B * H * W
    tm = _pick_row_tile(M, unit=2 * W)                       # whole row pairs
    grid = (M // tm,)

    out = pl.pallas_call(
        functools.partial(_conv_bn_relu_pool_kernel, width=W),
        out_shape=jax.ShapeDtypeStruct((M // 4, Cout), jnp.float32),
        grid_spec=pltpu.PrefetchScalarGridSpec(
            num_scalar_prefetch=0,
            grid=grid,
            in_specs=[
                pl.BlockSpec((tm, Kp), lambda i: (i, 0)),
                pl.BlockSpec((Kp, Cout), lambda i: (0, 0)),
                pl.BlockSpec((1, Cout), lambda i: (0, 0)),
            ],
            out_specs=pl.BlockSpec((tm // 4, Cout), lambda i: (i, 0)),
        ),
        compiler_params=pltpu.CompilerParams(
            dimension_semantics=("parallel",)),
    )(patches, w_mat, shift)
    return out.reshape(B, H // 2, W // 2, Cout)


def cnn2_forward(x_nchw, params, *, mxu_dtype=jnp.bfloat16):
    x = jnp.transpose(x_nchw, (0, 2, 3, 1))                  # NCHW -> NHWC
    x = conv_bn_relu_pool(x, *params["l1"], mxu_dtype=mxu_dtype)
    x = conv_bn_relu_pool(x, *params["l2"], mxu_dtype=mxu_dtype)
    # Flatten in PyTorch (C, H, W) order; the tiny FC stays in XLA (a
    # 2x2048x10 GEMV in its own pallas_call is pure launch overhead).
    B = x.shape[0]
    x = jnp.transpose(x, (0, 3, 1, 2)).reshape(B, -1)        # (B, 32*8*8)
    return jnp.dot(x, params["fc_w"].T,
                   precision=jax.lax.Precision.HIGHEST) + params["fc_b"]


# ---------------------------------------------------------------------------
# Pure-JAX reference (for the correctness check)
# ---------------------------------------------------------------------------
def reference_forward(x_nchw, params, eps=1e-5):
    x = jnp.transpose(x_nchw, (0, 2, 3, 1))
    for (w, b, g, beta, mean, var) in (params["l1"], params["l2"]):
        wh = jnp.transpose(w, (2, 3, 1, 0))
        y = jax.lax.conv_general_dilated(
            x, wh, window_strides=(1, 1), padding="SAME",
            dimension_numbers=("NHWC", "HWIO", "NHWC"),
            precision=jax.lax.Precision.HIGHEST)
        y = y + b
        y = (y - mean) / jnp.sqrt(var + eps) * g + beta
        y = jnp.maximum(y, 0.0)
        B, H, W, C = y.shape
        x = y.reshape(B, H // 2, 2, W // 2, 2, C).max(axis=(2, 4))
    B = x.shape[0]
    x = jnp.transpose(x, (0, 3, 1, 2)).reshape(B, -1)
    return jnp.dot(x, params["fc_w"].T,
                   precision=jax.lax.Precision.HIGHEST) + params["fc_b"]


# ---------------------------------------------------------------------------
# Main
# ---------------------------------------------------------------------------
if __name__ == "__main__":
    key = jax.random.PRNGKey(0)
    num_channels, num_classes = 4, 10
    B, H, W = 2, 32, 32   # fc = Linear(8*8*32, .) implies 32x32 spatial input

    ks = jax.random.split(key, 14)

    def bn_params(kg, kb, km, kv, c):
        gamma = 1.0 + 0.1 * jax.random.normal(kg, (c,), jnp.float32)
        beta = 0.1 * jax.random.normal(kb, (c,), jnp.float32)
        mean = 0.1 * jax.random.normal(km, (c,), jnp.float32)
        var = jax.random.uniform(kv, (c,), jnp.float32, 0.5, 1.5)
        return gamma, beta, mean, var

    params = {
        "l1": (0.1 * jax.random.normal(ks[0], (16, num_channels, 5, 5), jnp.float32),
               0.1 * jax.random.normal(ks[1], (16,), jnp.float32),
               *bn_params(ks[2], ks[3], ks[4], ks[5], 16)),
        "l2": (0.05 * jax.random.normal(ks[6], (32, 16, 5, 5), jnp.float32),
               0.1 * jax.random.normal(ks[7], (32,), jnp.float32),
               *bn_params(ks[8], ks[9], ks[10], ks[11], 32)),   # own keys now
        "fc_w": 0.02 * jax.random.normal(ks[12], (num_classes, 8 * 8 * 32), jnp.float32),
        "fc_b": 0.01 * jnp.arange(num_classes, dtype=jnp.float32),
    }

    x = jax.random.normal(jax.random.PRNGKey(1), (B, num_channels, H, W), jnp.float32)

    ref = jax.block_until_ready(reference_forward(x, params))

    # f32 MXU path: tight check (catches fusion / indexing / pooling bugs).
    out_f32 = jax.block_until_ready(cnn2_forward(x, params, mxu_dtype=jnp.float32))
    assert out_f32.shape == (B, num_classes), out_f32.shape
    assert jnp.allclose(out_f32, ref, rtol=1e-4, atol=1e-4), (
        float(jnp.max(jnp.abs(out_f32 - ref))))

    # bf16 MXU-input path (recommended on v5e/v6e/v7x): f32 accumulation and
    # f32 epilogue, checked at a bf16-appropriate tolerance.
    out_bf16 = jax.block_until_ready(cnn2_forward(x, params, mxu_dtype=jnp.bfloat16))
    assert out_bf16.shape == (B, num_classes), out_bf16.shape
    assert jnp.allclose(out_bf16, ref, rtol=5e-2, atol=5e-2), (
        float(jnp.max(jnp.abs(out_bf16 - ref))))

    print("KERNEL_OK")
</pallas_src>

<mosaic_0001>
module attributes {stable_mosaic.version = 11 : i64} {
  func.func @_conv_bn_relu_pool_kernel(%arg0: i32, %arg1: memref<1024x128xf32, #tpu.memory_space<vmem>>, %arg2: memref<128x16xf32, #tpu.memory_space<vmem>>, %arg3: memref<1x16xf32, #tpu.memory_space<vmem>>, %arg4: memref<256x16xf32, #tpu.memory_space<vmem>>) attributes {dimension_semantics = [#tpu.dimension_semantics<parallel>], iteration_bounds = array<i64: 2>, scalar_prefetch = 0 : i64, scratch_operands = 0 : i64, tpu.core_type = #tpu.core_type<tc>, window_params = [{transform_indices = @transform_0, window_bounds = array<i64: 1024, 128>}, {pipeline_mode = #tpu.pipeline_mode<synchronous>, transform_indices = @transform_1, window_bounds = array<i64: 128, 16>}, {pipeline_mode = #tpu.pipeline_mode<synchronous>, transform_indices = @transform_2, window_bounds = array<i64: 1, 16>}, {transform_indices = @transform_3, window_bounds = array<i64: 256, 16>}]} {
    %c0 = arith.constant 0 : index
    %c0_0 = arith.constant 0 : index
    %0 = vector.load %arg1[%c0, %c0_0] : memref<1024x128xf32, #tpu.memory_space<vmem>>, vector<1024x128xf32>
    %c0_1 = arith.constant 0 : index
    %c0_2 = arith.constant 0 : index
    %1 = vector.load %arg2[%c0_1, %c0_2] : memref<128x16xf32, #tpu.memory_space<vmem>>, vector<128x16xf32>
    %cst = arith.constant dense<0.000000e+00> : vector<1024x16xf32>
    %2 = tpu.matmul %0, %1, %cst {dimension_numbers = #tpu.dot_dimension_numbers<[1], [0], [0], [1], [0, 0, 1, 1], [], []>, precision = #tpu.contract_precision<fp32>} : vector<1024x128xf32>, vector<128x16xf32>, vector<1024x16xf32> -> vector<1024x16xf32>
    %c0_3 = arith.constant 0 : index
    %c0_4 = arith.constant 0 : index
    %3 = vector.load %arg3[%c0_3, %c0_4] : memref<1x16xf32, #tpu.memory_space<vmem>>, vector<1x16xf32>
    %4 = vector.broadcast %3 : vector<1x16xf32> to vector<1024x16xf32>
    %5 = arith.addf %2, %4 : vector<1024x16xf32>
    %cst_5 = arith.constant 0.000000e+00 : f32
    %6 = vector.broadcast %cst_5 : f32 to vector<1024x16xf32>
    %7 = arith.maximumf %5, %6 : vector<1024x16xf32>
    %8 = vector.shape_cast %7 : vector<1024x16xf32> to vector<16x2x16x2x16xf32>
    %cst_6 = arith.constant dense<0xFF800000> : vector<16x16x2x16xf32>
    %9 = vector.multi_reduction <maximumf>, %8, %cst_6 [1] : vector<16x2x16x2x16xf32> to vector<16x16x2x16xf32>
    %cst_7 = arith.constant dense<0xFF800000> : vector<16x16x16xf32>
    %10 = vector.multi_reduction <maximumf>, %9, %cst_7 [2] : vector<16x16x2x16xf32> to vector<16x16x16xf32>
    %11 = vector.shape_cast %10 : vector<16x16x16xf32> to vector<256x16xf32>
    %c0_8 = arith.constant 0 : index
    %c0_9 = arith.constant 0 : index
    %12 = vector.load %arg4[%c0_8, %c0_9] : memref<256x16xf32, #tpu.memory_space<vmem>>, vector<256x16xf32>
    tpu.vector_store %arg4[%c0_8, %c0_9], %11 {strides = array<i32>} : memref<256x16xf32, #tpu.memory_space<vmem>>, vector<256x16xf32>,
    return
  }
  func.func @transform_0(%arg0: i32) -> (i32, i32) {
    %c0_i32 = arith.constant 0 : i32
    %c0_i32_0 = arith.constant 0 : i32
    return %arg0, %c0_i32 : i32, i32
  }
  func.func @transform_1(%arg0: i32) -> (i32, i32) {
    %c0_i32 = arith.constant 0 : i32
    %c0_i32_0 = arith.constant 0 : i32
    %c0_i32_1 = arith.constant 0 : i32
    return %c0_i32, %c0_i32_0 : i32, i32
  }
  func.func @transform_2(%arg0: i32) -> (i32, i32) {
    %c0_i32 = arith.constant 0 : i32
    %c0_i32_0 = arith.constant 0 : i32
    %c0_i32_1 = arith.constant 0 : i32
    return %c0_i32, %c0_i32_0 : i32, i32
  }
  func.func @transform_3(%arg0: i32) -> (i32, i32) {
    %c0_i32 = arith.constant 0 : i32
    %c0_i32_0 = arith.constant 0 : i32
    return %arg0, %c0_i32 : i32, i32
  }
}

</mosaic_0001>

<bundles_post_ra>
// kernel: tpu_custom_call.1
= control target key start
LH: loop header
LB: loop body
LE: loop exit
PB: predicated region body
PF: predicated region fallthrough
CT: control target
= control target key end

     0   :  { %8 = vsyncpa [#allocation3], 0  ;;  %s20742_s0 = inlined_call_operand.hbm [shape: f32[2048,128], index: 0, kind: input, shape index: {}]   ;;  %s20743_s1 = inlined_call_operand.vmem [shape: f32[128,16], index: 1, kind: input, shape index: {}]   ;;  %s20744_s2 = inlined_call_operand.vmem [shape: f32[1,16], index: 2, kind: input, shape index: {}]   ;;  %s20745_s3 = inlined_call_operand.vmem [shape: f32[512,16], index: 3, kind: output, shape index: {}]  }
   0x1   :  { %10 = vsyncpa [#allocation3 + $0x1], 0  ;;  %s14924_s12 = smov 0   ;;  %s14926_s13 = smov 0  }
   0x2   :  { %s14928_s14 = smov 0   ;;  %s14930_s15 = smov 0  }
   0x3 LB: > { %s12570_s16 = sadd.s32 4294967295, %s14898_s15   ;;  %s14944_s17 = sadd.s32 1, %s14898_s15   ;;  %s14898_s15 = sphi %s14930_s15, %s22485_s15   ;;  %s14894_s14 = sphi %s14928_s14, %s22484_s14   ;;  %s14890_s13 = sphi %s14926_s13, %s22483_s13   ;;  %s14886_s12 = sphi %s14924_s12, %s22482_s12  }
   0x4   : > { %s20_s18 = ssub.s32 %s14898_s15, %s14944_s17  ;;  %s23_s19 = sadd.s32 1, %s14894_s14 }
   0x5   : > { %p21_p0 = scmp.eq.s32.totalorder %s20_s18, 0  ;;  %p30_p1 = scmp.ne.s32.totalorder %s14894_s14, %s14890_s13 }
   0x6   : > { %p31_p2 = scmp.eq.s32.totalorder %s14898_s15, 0  ;;  %p36_p3 = scmp.ne.s32.totalorder %s14890_s13, %s14886_s12 }
   0x7   : > { %s14954_s20 = scalar_select %p21_p0, %s14894_s14, %s23_s19  }
   0x8   : > { %p32_p4 = por %p31_p2, %p30_p1  ;;  %p37_p5 = scmp.eq.s32.totalorder %s12570_s16, 0 }
   0x9   : > { %p14799_p6 = scmp.lt.s32.totalorder %s14898_s15, 2  ;;  %s134_s22 = sand.u32 1, %s14894_s14  }
   0xa   : > { %p14959_p7 = por %p37_p5, %p36_p3  ;;  %s12574_s23 = sshll.u32 %s134_s22, 10 }
   0xb   : > { %s12584_s24 = sshll.u32 %s14898_s15, 14  ;;  %s138_s28 = scalar_lea.vmem [#allocation2], %s12574_s23 }
   0xc   : > { %s21286_s21 = scalar_select %p14959_p7, 1, 0 }
   0xd   : > { %s14968_s27 = scalar_lea.hbm %s20742_s0, %s12584_s24  ;;  %s145_s29 = sshll.u32 %s138_s28, 4  ;;  %s14970_s29 = int_to_ptr.vmem [resolvable:$true] %s145_s29 }
   0xe   : > { %p14972_p8 = pnand %p14799_p6, %p32_p4  ;;  %s14977_s4 = scalar_lea.sflag [#allocation3], %s134_s22 }
   0xf   : > { %s14836_s5 = scalar_lea.hbm %s14968_s27, 16384  ;;  %s14841_s8 = scalar_lea.hbm %s20742_s0, 32768 }
  0x10   : > { %p14837_p10 = scmp.ne.s32.totalorder %s14968_s27, %s14836_s5  ;;  %p14838_p11 = pneg %p14972_p8 }
  0x11   : > { %p14842_p0 = scmp.lt.s32.totalorder %s14968_s27, %s20742_s0  ;;  %p14843_p1 = scmp.lt.s32.totalorder %s14841_s8, %s14836_s5 }
  0x12   : > { %p14839_p12 = pnand %p14838_p11, %p14837_p10 }
  0x13   : > { %p14844_p2 = por %p14843_p1, %p14842_p0 }
  0x14   : > { %p14840_p13 = pneg %p14839_p12 }
  0x16   : > { %p14845_p3 = pnand %p14844_p2, %p14840_p13 }
  0x18   : > { %14848 = shalt.err (!%p14845_p3)
}
  0x19   : > { %s14849_s11 = scalar_lea.vmem %s14970_s29, 16384  ;;  %s14900_s12 = smov [#allocation2]  }
  0x1a   : > { %p14850_p4 = scmp.ne.s32.totalorder %s14970_s29, %s14849_s11  ;;  %s14854_s18 = sshll.u32 %s14900_s12, 4  ;;  %s14855_s18 = int_to_ptr.vmem [resolvable:$false] %s14854_s18 }
  0x1b   : > { %s14856_s19 = scalar_lea.vmem %s14855_s18, 32768  ;;  %p14857_p10 = scmp.lt.s32.totalorder %s14970_s29, %s14855_s18 }
  0x1c   : > { %p14852_p5 = pnand %p14850_p4, %p14838_p11  ;;  %p14858_p12 = scmp.lt.s32.totalorder %s14856_s19, %s14849_s11 }
  0x1e   : > { %p14853_p6 = pneg %p14852_p5  ;;  %p14859_p9 = por %p14858_p12, %p14857_p10 }
  0x20   : > { %p14860_p7 = pnand %p14859_p9, %p14853_p6 }
  0x22   : > { %14863 = shalt.err (!%p14860_p7)
}
  0x23   : > { %s14901_s22 = smov 128   ;;  %s14902_s23 = smov 8  }
  0x24   : > { %14798 = dma.hbm_to_vmem [thread:$0]  (!%p14972_p8), %s14968_s27, 16384, %s14970_s29, %s14977_s4, %s14901_s22, %s14901_s22, %s14902_s23  }
  0x25   : > { %p153_p11 = scmp.lt.s32.totalorder %s14898_s15, 3  ;;  %p21288_p13 = scmp.ge.s32.totalorder %s14898_s15, 1 }
  0x27   : > { %p154_p0 = pnand %p21288_p13, %p153_p11 }
  0x29   : > { %157 = sbr.rel (%p154_p0) target bundleno = 1763 (0x6e3), region = 32 }
  0x2e   : > { %s159_s24 = sand.u32 1, %s14890_s13   ;;  %p21289_p7 = scmp.ne.s32.totalorder %s21286_s21, 0 }
  0x2f   : > { %s12578_s25 = sshll.u32 %s159_s24, 10  ;;  %s160_s26 = scalar_lea.sflag [#allocation3], %s159_s24 }
  0x30   : > { %s15002_s28 = scalar_lea.vmem [#allocation2], %s12578_s25 }
  0x31   : > { %14881 = dma.done.wait (%p21289_p7), %s160_s26, 16384  }
  0x32   : > { %14883 = vsyncadd (%p21289_p7), %s160_s26, 4294950912  ;;  %v336_v0 = vld [vmem:[%s20743_s1 + $0x78] sm:$0xff]  ;;  %v335_v1 = vld [vmem:[%s20743_s1 + $0x70] sm:$0xff]  ;;  %vm9390_vm0 = vcmask 123904   ;;  %vm12207_vm1 = vcmask 1041409   ;;  %s18291_s22 = sshll.u32 %s12570_s16, 5 }
  0x33   : > { %v334_v2 = vld [vmem:[%s20743_s1 + $0x68] sm:$0xff]  ;;  %v15017_v3 = vand.u32 4294901760, %v336_v0  ;;  %v15019_v4 = vand.u32 4294901760, %v335_v1  ;;  %v333_v6 = vld [vmem:[%s20743_s1 + $0x60] sm:$0xff]  ;;  %v332_v7 = vld [vmem:[%s20743_s1 + $0x58] sm:$0xff]  ;;  %vm12209_vm2 = vcmask 1042434  }
  0x34   : > { %v15021_v5 = vand.u32 4294901760, %v334_v2  ;;  %v331_v8 = vld [vmem:[%s20743_s1 + $0x50] sm:$0xff]  ;;  %v15032_v9 = vand.u32 4294901760, %v333_v6  ;;  %v15034_v10 = vand.u32 4294901760, %v332_v7  ;;  %v330_v12 = vld [vmem:[%s20743_s1 + $0x48] sm:$0xff]  ;;  %v329_v13 = vld [vmem:[%s20743_s1 + $0x40] sm:$0xff] }
  0x35   : > { %v15036_v11 = vand.u32 4294901760, %v331_v8  ;;  %13449 = vmatprep.subr.mxu0 %v15017_v3  ;;  %v15046_v14 = vsub.f32 %v336_v0, %v15017_v3  ;;  %v15049_v15 = vsub.f32 %v335_v1, %v15019_v4  ;;  %v15051_v16 = vand.u32 4294901760, %v330_v12  ;;  %v328_v18 = vld [vmem:[%s20743_s1 + $0x38] sm:$0xff]  ;;  %v327_v25 = vld [vmem:[%s20743_s1 + $0x30] sm:$0xff]  ;;  %v326_v35 = vld [vmem:[%s20743_s1 + $0x28] sm:$0xff]  ;;  %p188_p8 = scmp.lt.s32.totalorder %s18291_s22, 63 }
  0x36   : > { %v15054_v17 = vsub.f32 %v334_v2, %v15021_v5  ;;  %13450 = vmatpush3.msra.mxu0 %v15017_v3  ;;  %v15061_v19 = vsub.f32 %v333_v6, %v15032_v9  ;;  %v15064_v20 = vsub.f32 %v332_v7, %v15034_v10  ;;  %v15076_v24 = vand.u32 4294901760, %v329_v13  ;;  %v325_v40 = vld [vmem:[%s20743_s1 + $0x20] sm:$0xff]  ;;  %v324_v43 = vld [vmem:[%s20743_s1 + $0x18] sm:$0xff]  ;;  %v194_v51 = vld [vmem:[%s15002_s28 + $0x8] sm:$0xff] }
  0x37   : > { %13451 = vmatprep.subr.mxu0 %v15019_v4  ;;  %v15068_v21 = vand.u32 4294901760, %v15046_v14  ;;  %v15071_v22 = vand.u32 4294901760, %v15049_v15  ;;  %v15085_v27 = vand.u32 4294901760, %v328_v18  ;;  %v15091_v29 = vsub.f32 %v331_v8, %v15036_v11  ;;  %v193_v48 = vld [vmem:[%s15002_s28] sm:$0xff]  ;;  %v323_v60 = vld [vmem:[%s20743_s1 + $0x10] sm:$0xff]  ;;  %v322_v7 = vld [vmem:[%s20743_s1 + $0x8] sm:$0xff] }
  0x38   : > { %v15074_v23 = vand.u32 4294901760, %v15054_v17  ;;  %13452 = vmatpush3.msra.mxu0 %v15019_v4  ;;  %v15083_v26 = vand.u32 4294901760, %v15061_v19  ;;  %v15088_v28 = vand.u32 4294901760, %v15064_v20  ;;  %v15101_v33 = vsub.f32 %v330_v12, %v15051_v16  ;;  %v195_v1 = vld [vmem:[%s15002_s28 + $0x10] sm:$0xff]  ;;  %s22487_s22 = smov (!%p188_p8, %s18291_s22), 63 }
  0x39   : > { %21290 = vst [vmem:[#allocation5_spill] sm:$0xff] %v15068_v21  ;;  %21291 = vst [vmem:[#allocation6_spill] sm:$0xff] %v15071_v22  ;;  %13453 = vmatprep.subr.mxu0 %v15021_v5  ;;  %v1709_v30 = vsub.f32 %v15046_v14, %v15068_v21  ;;  %v1716_v31 = vsub.f32 %v15049_v15, %v15071_v22  ;;  %v15104_v34 = vand.u32 4294901760, %v327_v25  ;;  %v15113_v39 = vand.u32 4294901760, %v15091_v29  ;;  %s12580_s15 = sshll.u32 %s22487_s22, 3 }
  0x3a   : > { %21292 = vst [vmem:[#allocation7_spill] sm:$0xff] %v15074_v23  ;;  %21293 = vst [vmem:[#allocation8_spill] sm:$0xff] %v15083_v26  ;;  %v1723_v32 = vsub.f32 %v15054_v17, %v15074_v23  ;;  %13454 = vmatpush3.msra.mxu0 %v15021_v5  ;;  %v1730_v38 = vsub.f32 %v15061_v19, %v15083_v26  ;;  %v1737_v41 = vsub.f32 %v15064_v20, %v15088_v28  ;;  %v203_v26 = vld [vmem:[%s15002_s28 + $0x50] sm:$0xff]  ;;  %vm12211_vm3 = vcmask 1043459   ;;  %s18362_s24 = scalar_lea.vmem %s20745_s3, %s12580_s15 }
  0x3b   : > { %21294 = vst [vmem:[#allocation9_spill] sm:$0xff] %v15088_v28  ;;  %21295 = vst [vmem:[#allocation10_spill] sm:$0xff] %v15104_v34  ;;  %13455 = vmatprep.subr.mxu0 %v15032_v9  ;;  %v1710_v36 = vand.u32 4294901760, %v1709_v30  ;;  %v1717_v37 = vand.u32 4294901760, %v1716_v31  ;;  %v15122_v42 = vsub.f32 %v329_v13, %v15076_v24  ;;  %v15128_v45 = vand.u32 4294901760, %v326_v35  ;;  %v196_v13 = vld [vmem:[%s15002_s28 + $0x18] sm:$0xff] }
  0x3c   : > { %21296 = vst [vmem:[#allocation11_spill] sm:$0xff] %v15113_v39  ;;  %13456 = vmatpush3.msra.mxu0 %v15032_v9  ;;  %v1724_v44 = vand.u32 4294901760, %v1723_v32  ;;  %v15131_v46 = vand.u32 4294901760, %v15101_v33  ;;  %v15134_v47 = vsub.f32 %v328_v18, %v15085_v27  ;;  %v15138_v49 = vand.u32 4294901760, %v325_v40 }
  0x3d   : > { %13457 = vmatprep.subr.mxu0 %v15034_v10  ;;  %13673 = vmatprep.subr.mxu1 %v1710_v36  ;;  %21297 = vst [vmem:[#allocation12_spill] sm:$0xff] %v15128_v45  ;;  %v15141_v50 = vsub.f32 %v327_v25, %v15104_v34  ;;  %v1731_v52 = vand.u32 4294901760, %v1730_v38  ;;  %v1744_v53 = vsub.f32 %v15091_v29, %v15113_v39  ;;  %v15148_v54 = vand.u32 4294901760, %v15122_v42 }
  0x3e   : > { %21298 = vst [vmem:[#allocation13_spill] sm:$0xff] %v15131_v46  ;;  %13458 = vmatpush3.msra.mxu0 %v15034_v10  ;;  %13674 = vmatpush3.msra.mxu1 %v1710_v36  ;;  %21299 = vst [vmem:[#allocation14_spill] sm:$0xff] %v15138_v49  ;;  %v15150_v55 = vand.u32 4294901760, %v324_v43  ;;  %v1738_v56 = vand.u32 4294901760, %v1737_v41  ;;  %v15154_v57 = vand.u32 4294901760, %v15134_v47  ;;  %v15156_v58 = vand.u32 4294901760, %v193_v48 }
  0x3f   : > { %13459 = vmatprep.subr.mxu0 %v15036_v11  ;;  %13675 = vmatprep.subr.mxu1 %v1717_v37  ;;  %21300 = vst [vmem:[#allocation15_spill] sm:$0xff] %v15148_v54  ;;  %v1751_v59 = vsub.f32 %v15101_v33, %v15131_v46  ;;  %v15165_v61 = vand.u32 4294901760, %v15141_v50  ;;  %v15168_v62 = vsub.f32 %v326_v35, %v15128_v45  ;;  %v15170_v63 = vand.u32 4294901760, %v194_v51  ;;  %v321_v36 = vld [vmem:[%s20743_s1] sm:$0xff] }
  0x40   : > { %21301 = vst [vmem:[#allocation16_spill] sm:$0xff] %v15150_v55  ;;  %13460 = vmatpush3.msra.mxu0 %v15036_v11  ;;  %13676 = vmatpush3.msra.mxu1 %v1717_v37  ;;  %21302 = vst [vmem:[#allocation17_spill] sm:$0xff] %v15154_v57  ;;  %v15174_v0 = vsub.f32 %v325_v40, %v15138_v49  ;;  %v1745_v2 = vand.u32 4294901760, %v1744_v53  ;;  %v1758_v6 = vsub.f32 %v15122_v42, %v15148_v54  ;;  %v198_v53 = vld [vmem:[%s15002_s28 + $0x28] sm:$0xff]  ;;  %vm12213_vm4 = vcmask 1044484  }
  0x41   : > { %21303 = vst [vmem:[#allocation18_spill] sm:$0xff] %v15156_v58  ;;  %13461 = vmatprep.subr.mxu0 %v15051_v16  ;;  %13677 = vmatprep.subr.mxu1 %v1724_v44  ;;  %21304 = vst [vmem:[#allocation19_spill] sm:$0xff] %v15165_v61  ;;  %v15184_v8 = vsub.f32 %v193_v48, %v15156_v58  ;;  %v15187_v12 = vsub.f32 %v324_v43, %v15150_v55  ;;  %v15193_v25 = vand.u32 4294901760, %v323_v60  ;;  %v197_v43 = vld [vmem:[%s15002_s28 + $0x20] sm:$0xff]  ;;  %v199_v48 = vld [vmem:[%s15002_s28 + $0x30] sm:$0xff]  ;;  %vm12215_vm5 = vcmask 1045509  }
  0x42   : > { %21305 = vst [vmem:[#allocation20_spill] sm:$0xff] %v15170_v63  ;;  %13462 = vmatpush3.msra.mxu0 %v15051_v16  ;;  %13678 = vmatpush3.msra.mxu1 %v1724_v44  ;;  %v1765_v18 = vsub.f32 %v15134_v47, %v15154_v57  ;;  %v15196_v30 = vsub.f32 %v194_v51, %v15170_v63  ;;  %v1752_v31 = vand.u32 4294901760, %v1751_v59  ;;  %v15202_v35 = vand.u32 4294901760, %v15168_v62 }
  0x43   : > { %13463 = vmatprep.subr.mxu0 %v15076_v24  ;;  %13679 = vmatprep.subr.mxu1 %v1731_v52  ;;  %21306 = vst [vmem:[#allocation21_spill] sm:$0xff] %v15184_v8  ;;  %21307 = vst [vmem:[#allocation22_spill] sm:$0xff] %v15187_v12  ;;  %v1772_v32 = vsub.f32 %v15141_v50, %v15165_v61  ;;  %v15207_v37 = vand.u32 4294901760, %v195_v1  ;;  %v15210_v38 = vand.u32 4294901760, %v322_v7  ;;  %v15213_v40 = vand.u32 4294901760, %v15174_v0 }
  0x44   : > { %13464 = vmatpush3.msra.mxu0 %v15076_v24  ;;  %13680 = vmatpush3.msra.mxu1 %v1731_v52  ;;  %21308 = vst [vmem:[#allocation23_spill] sm:$0xff] %v15193_v25  ;;  %21309 = vst [vmem:[#allocation24_spill] sm:$0xff] %v15196_v30  ;;  %v15215_v41 = vand.u32 4294901760, %v196_v13  ;;  %v1759_v44 = vand.u32 4294901760, %v1758_v6  ;;  %v15221_v51 = vand.u32 4294901760, %v15187_v12  ;;  %v15228_v59 = vand.u32 4294901760, %v321_v36 }
  0x45   : > { %13465 = vmatprep.subr.mxu0 %v15085_v27  ;;  %13681 = vmatprep.subr.mxu1 %v1738_v56  ;;  %21310 = vst [vmem:[#allocation25_spill] sm:$0xff] %v15202_v35  ;;  %21311 = vst [vmem:[#allocation26_spill] sm:$0xff] %v15207_v37  ;;  %v15224_v52 = vsub.f32 %v195_v1, %v15207_v37  ;;  %v15232_v6 = vsub.f32 %v323_v60, %v15193_v25  ;;  %v1773_v57 = vand.u32 4294901760, %v1772_v32  ;;  %vm12217_vm6 = vcmask 1046534  }
  0x46   : > { %13466 = vmatpush3.msra.mxu0 %v15085_v27  ;;  %13682 = vmatpush3.msra.mxu1 %v1738_v56  ;;  %21312 = vst [vmem:[#allocation27_spill] sm:$0xff] %v15210_v38  ;;  %21313 = vst [vmem:[#allocation28_spill] sm:$0xff] %v15213_v40  ;;  %v1766_v56 = vand.u32 4294901760, %v1765_v18  ;;  %v1779_v1 = vsub.f32 %v15168_v62, %v15202_v35  ;;  %v15239_v54 = vsub.f32 %v196_v13, %v15215_v41  ;;  %v200_v35 = vld [vmem:[%s15002_s28 + $0x38] sm:$0xff]  ;;  %vm12219_vm7 = vcmask 1047559  }
  0x47   : > { %21314 = vst [vmem:[#allocation29_spill] sm:$0xff] %v15215_v41  ;;  %13467 = vmatprep.subr.mxu0 %v15104_v34  ;;  %13683 = vmatprep.subr.mxu1 %v1745_v2  ;;  %21315 = vst [vmem:[#allocation30_spill] sm:$0xff] %v15221_v51  ;;  %v1786_v60 = vsub.f32 %v15174_v0, %v15213_v40  ;;  %v15248_v61 = vsub.f32 %v322_v7, %v15210_v38  ;;  %v15250_v32 = vand.u32 4294901760, %v198_v53  ;;  %vm12470_vm8 = vcmask 130048  }
  0x48   : > { %21316 = vst [vmem:[#allocation31_spill] sm:$0xff] %v15224_v52  ;;  %13468 = vmatpush3.msra.mxu0 %v15104_v34  ;;  %13684 = vmatpush3.msra.mxu1 %v1745_v2  ;;  %21317 = vst [vmem:[#allocation32_spill] sm:$0xff] %v15228_v59  ;;  %v15241_v2 = vand.u32 4294901760, %v197_v43  ;;  %v21322_v13 = vand.u32 4294901760, %v15184_v8  ;;  %v15262_v18 = vand.u32 4294901760, %v199_v48  ;;  %v21325_v7 = vand.u32 4294901760, %v15196_v30 }
  0x49   : > { %21318 = vst [vmem:[#allocation33_spill] sm:$0xff] %v15232_v6  ;;  %13469 = vmatprep.subr.mxu0 %v15128_v45  ;;  %13685 = vmatprep.subr.mxu1 %v1752_v31  ;;  %21319 = vst [vmem:[#allocation34_spill] sm:$0xff] %v15239_v54  ;;  %v15269_v28 = vand.u32 4294901760, %v15232_v6  ;;  %v15280_v23 = vand.u32 4294901760, %v200_v35  ;;  %v1787_v22 = vand.u32 4294901760, %v1786_v60 }
  0x4a   : > { %21320 = vst [vmem:[#allocation35_spill] sm:$0xff] %v15241_v2  ;;  %13470 = vmatpush3.msra.mxu0 %v15128_v45  ;;  %13686 = vmatpush3.msra.mxu1 %v1752_v31  ;;  %21321 = vst [vmem:[#allocation36_spill] sm:$0xff] %v15250_v32  ;;  %v428_v46 = vsub.f32 %v15184_v8, %v21322_v13  ;;  %v1793_v31 = vsub.f32 %v15187_v12, %v15221_v51  ;;  %v201_v51 = vld [vmem:[%s15002_s28 + $0x40] sm:$0xff]  ;;  %v15288_v8 = vand.u32 4294901760, %v15248_v61 }
  0x4b   : > { %13471 = vmatprep.subr.mxu0 %v15138_v49  ;;  %13687 = vmatprep.subr.mxu1 %v1759_v44  ;;  %v15260_v40 = vsub.f32 %v197_v43, %v15241_v2  ;;  %21324 = vst [vmem:[#allocation38_spill] sm:$0xff] %v15262_v18  ;;  %v438_v39 = vsub.f32 %v15196_v30, %v21325_v7  ;;  %21326 = vst [vmem:[#allocation39_spill] sm:$0xff] %v15269_v28  ;;  %v1780_v43 = vand.u32 4294901760, %v1779_v1  ;;  %v202_v7 = vld [vmem:[%s15002_s28 + $0x48] sm:$0xff] }
  0x4c   : > { %13472 = vmatpush3.msra.mxu0 %v15138_v49  ;;  %13688 = vmatpush3.msra.mxu1 %v1759_v44  ;;  %v15272_v13 = vsub.f32 %v321_v36, %v15228_v59  ;;  %v15278_v44 = vsub.f32 %v198_v53, %v15250_v32  ;;  %21327 = vst [vmem:[#allocation40_spill] sm:$0xff] %v15280_v23  ;;  %v21328_v36 = vand.u32 4294901760, %v15224_v52  ;;  %21329 = vst [vmem:[#allocation41_spill] sm:$0xff] %v15288_v8 }
  0x4d   : > { %21323 = vst [vmem:[#allocation37_spill] sm:$0xff] %v15260_v40  ;;  %13473 = vmatprep.subr.mxu0 %v15150_v55  ;;  %13689 = vmatprep.subr.mxu1 %v1766_v56  ;;  %v429_v53 = vand.u32 4294901760, %v428_v46  ;;  %v1794_v21 = vand.u32 4294901760, %v1793_v31  ;;  %v439_v60 = vand.u32 4294901760, %v438_v39  ;;  %v21333_v46 = vand.u32 4294901760, %v15239_v54  ;;  %v205_v31 = vld [vmem:[%s15002_s28 + $0x60] sm:$0xff] }
  0x4e   : > { %13474 = vmatpush3.msra.mxu0 %v15150_v55  ;;  %13690 = vmatpush3.msra.mxu1 %v1766_v56  ;;  %v448_v30 = vsub.f32 %v15224_v52, %v21328_v36  ;;  %v15294_v55 = vsub.f32 %v199_v48, %v15262_v18  ;;  %v15296_v56 = vand.u32 4294901760, %v201_v51  ;;  %v1800_v36 = vsub.f32 %v15232_v6, %v15269_v28  ;;  %v204_v28 = vld [vmem:[%s15002_s28 + $0x58] sm:$0xff] }
  0x4f   : > { %13475 = vmatprep.subr.mxu0 %v15193_v25  ;;  %13691 = vmatprep.subr.mxu1 %v1773_v57  ;;  %v15302_v1 = vand.u32 4294901760, %v15272_v13  ;;  %v15304_v52 = vand.u32 4294901760, %v202_v7  ;;  %v458_v48 = vsub.f32 %v15239_v54, %v21333_v46  ;;  %v15312_v39 = vsub.f32 %v200_v35, %v15280_v23 }
  0x50   : > { %21330 = vst [vmem:[#allocation42_spill] sm:$0xff] %v15296_v56  ;;  %13476 = vmatpush3.msra.mxu0 %v15193_v25  ;;  %13692 = vmatpush3.msra.mxu1 %v1773_v57  ;;  %v15314_v57 = vand.u32 4294901760, %v203_v26  ;;  %v449_v25 = vand.u32 4294901760, %v448_v30  ;;  %v1807_v6 = vsub.f32 %v15248_v61, %v15288_v8  ;;  %v21335_v12 = vand.u32 4294901760, %v15260_v40 }
  0x51   : > { %21331 = vst [vmem:[#allocation43_spill] sm:$0xff] %v15302_v1  ;;  %21332 = vst [vmem:[#allocation44_spill] sm:$0xff] %v15304_v52  ;;  %13477 = vmatprep.subr.mxu0 %v15210_v38  ;;  %13693 = vmatprep.subr.mxu1 %v1780_v43  ;;  %v15324_v46 = vsub.f32 %v201_v51, %v15296_v56  ;;  %v1801_v30 = vand.u32 4294901760, %v1800_v36  ;;  %v15333_v8 = vsub.f32 %v202_v7, %v15304_v52 }
  0x52   : > { %21334 = vst [vmem:[#allocation45_spill] sm:$0xff] %v15314_v57  ;;  %13478 = vmatpush3.msra.mxu0 %v15210_v38  ;;  %13694 = vmatpush3.msra.mxu1 %v1780_v43  ;;  %v468_v49 = vsub.f32 %v15260_v40, %v21335_v12  ;;  %v1814_v43 = vsub.f32 %v15272_v13, %v15302_v1  ;;  %v15335_v12 = vand.u32 4294901760, %v204_v28  ;;  %v459_v51 = vand.u32 4294901760, %v458_v48 }
  0x53   : > { %13479 = vmatprep.subr.mxu0 %v15228_v59  ;;  %13695 = vmatprep.subr.mxu1 %v1787_v22  ;;  %21336 = vst [vmem:[#allocation46_spill] sm:$0xff] %v15333_v8  ;;  %v21338_v35 = vand.u32 4294901760, %v15278_v44  ;;  %v15342_v36 = vsub.f32 %v203_v26, %v15314_v57  ;;  %v1808_v1 = vand.u32 4294901760, %v1807_v6 }
  0x54   : > { %13480 = vmatpush3.msra.mxu0 %v15228_v59  ;;  %13481 = vmatprep.mubr.f32.mxu0 %v429_v53  ;;  %21337 = vst [vmem:[#allocation47_spill] sm:$0xff] %v15335_v12  ;;  %v20801_v53 = vand.u32 4294901760, %v15312_v39  ;;  %v469_v7 = vand.u32 4294901760, %v468_v49  ;;  %v15345_v59 = vand.u32 4294901760, %v205_v31  ;;  %v1815_v26 = vand.u32 4294901760, %v1814_v43 }
  0x55   : > { %13696 = vmatpush3.msra.mxu1 %v1787_v22  ;;  %13482 = vmatmul.mubr.f32.vlgmr.msra.gmra.mxu0 %v439_v60  ;;  %v478_v40 = vsub.f32 %v15278_v44, %v21338_v35  ;;  %21339 = vst [vmem:[#allocation48_spill] sm:$0xff] %v15342_v36  ;;  %v206_v22 = vld [vmem:[%s15002_s28 + $0x68] sm:$0xff]  ;;  %v21341_v60 = vand.u32 4294901760, %v15294_v55  ;;  %v207_v35 = vld [vmem:[%s15002_s28 + $0x70] sm:$0xff]  ;;  %v21344_v43 = vand.u32 4294901760, %v15324_v46 }
  0x56   : > { %13697 = vmatprep.subr.mxu1 %v1794_v21  ;;  %13484 = vmatprep.mubr.f32.mxu0 %v449_v25  ;;  %21340 = vst [vmem:[#allocation49_spill] sm:$0xff] %v15345_v59  ;;  %v15356_v25 = vsub.f32 %v204_v28, %v15335_v12  ;;  %v498_v6 = vsub.f32 %v15312_v39, %v20801_v53  ;;  %v15362_v54 = vand.u32 4294901760, %v206_v22  ;;  %v209_v53 = vld [vmem:[%s15002_s28 + $0x80] sm:$0xff] }
  0x57   : > { %13698 = vmatpush3.msra.mxu1 %v1794_v21  ;;  %13897 = vmatprep.subr.mxu0 %v15046_v14  ;;  %v488_v48 = vsub.f32 %v15294_v55, %v21341_v60  ;;  %v479_v21 = vand.u32 4294901760, %v478_v40  ;;  %v508_v49 = vsub.f32 %v15324_v46, %v21344_v43  ;;  %v15368_v28 = vsub.f32 %v205_v31, %v15345_v59  ;;  %v208_v40 = vld [vmem:[%s15002_s28 + $0x78] sm:$0xff] }
  0x58   : > { %13699 = vmatprep.subr.mxu1 %v1801_v30  ;;  %13705 = vmatprep.mubr.f32.mxu1 %v15156_v58  ;;  %21342 = vst [vmem:[#allocation50_spill] sm:$0xff] %v15356_v25  ;;  %21343 = vst [vmem:[#allocation51_spill] sm:$0xff] %v15362_v54  ;;  %v21346_v60 = vand.u32 4294901760, %v15333_v8  ;;  %v499_v31 = vand.u32 4294901760, %v498_v6  ;;  %v15386_v58 = vand.u32 4294901760, %v208_v40  ;;  %v210_v6 = vld [vmem:[%s15002_s28 + $0x88] sm:$0xff] }
  0x59   : > { %13700 = vmatpush3.msra.mxu1 %v1801_v30  ;;  %13485 = vmatmul.mubr.f32.gmra.mxu0 %v459_v51  ;;  %v15370_v30 = vand.u32 4294901760, %v207_v35  ;;  %v489_v51 = vand.u32 4294901760, %v488_v48  ;;  %v15384_v48 = vsub.f32 %v206_v22, %v15362_v54 }
  0x5a   : > { %13701 = vmatprep.subr.mxu1 %v1808_v1  ;;  %13487 = vmatprep.mubr.f32.mxu0 %v469_v7  ;;  %v518_v7 = vsub.f32 %v15333_v8, %v21346_v60  ;;  %21348 = vst [vmem:[#allocation53_spill] sm:$0xff] %v15386_v58  ;;  %v509_v60 = vand.u32 4294901760, %v508_v49  ;;  %v15407_v43 = vsub.f32 %v208_v40, %v15386_v58  ;;  %v213_v40 = vld [vmem:[%s15002_s28 + $0xa0] sm:$0xff] }
  0x5b   : > { %21345 = vst [vmem:[#allocation52_spill] sm:$0xff] %v15370_v30  ;;  %13702 = vmatpush3.msra.mxu1 %v1808_v1  ;;  %13898 = vmatpush3.msra.mxu0 %v15046_v14  ;;  %v21347_v1 = vand.u32 4294901760, %v15342_v36 }
  0x5c   : > { %13703 = vmatprep.subr.mxu1 %v1815_v26  ;;  %13899 = vmatprep.subr.mxu0 %v15049_v15  ;;  %v519_v22 = vand.u32 4294901760, %v518_v7  ;;  %v212_v7 = vld [vmem:[%s15002_s28 + $0x98] sm:$0xff] }
  0x5d   : > { %13704 = vmatpush3.msra.mxu1 %v1815_v26  ;;  %13488 = vmatmul.mubr.f32.gmra.mxu0 %v479_v21  ;;  %v528_v14 = vsub.f32 %v15342_v36, %v21347_v1  ;;  %v15392_v26 = vsub.f32 %v207_v35, %v15370_v30  ;;  %v15394_v21 = vand.u32 4294901760, %v209_v53  ;;  %v211_v1 = vld [vmem:[%s15002_s28 + $0x90] sm:$0xff]  ;;  %v15409_v36 = vand.u32 4294901760, %v210_v6 }
  0x5e   : > { %13706 = vmatmul.mubr.f32.vlgmr.msra.gmra.mxu1 %v15170_v63  ;;  %14121 = vmatprep.subr.mxu1 %v15017_v3  ;;  %v21351_v63 = vand.u32 4294901760, %v15356_v25  ;;  %v15425_v8 = vand.u32 4294901760, %v212_v7 }
  0x5f   : > { %21349 = vst [vmem:[#allocation54_spill] sm:$0xff] %v15392_v26  ;;  %21350 = vst [vmem:[#allocation55_spill] sm:$0xff] %v15394_v21  ;;  %14122 = vmatpush3.msra.mxu1 %v15017_v3  ;;  %13490 = vmatprep.mubr.f32.mxu0 %v489_v51  ;;  %v15411_v51 = vand.u32 4294901760, %v211_v1 }
  0x60   : > { %13708 = vmatprep.mubr.f32.mxu1 %v15207_v37  ;;  %v538_v49 = vsub.f32 %v15356_v25, %v21351_v63  ;;  %13900 = vmatpush3.msra.mxu0 %v15049_v15  ;;  %21352 = vst [vmem:[#allocation56_spill] sm:$0xff] %v15409_v36  ;;  %v529_v63 = vand.u32 4294901760, %v528_v14  ;;  %v21354_v15 = vand.u32 4294901760, %v15368_v28  ;;  %v15420_v37 = vsub.f32 %v209_v53, %v15394_v21 }
  0x61   : > { %13491 = vmatmul.mubr.f32.gmra.mxu0 %v499_v31  ;;  %14123 = vmatprep.subr.mxu1 %v15019_v4  ;;  %21353 = vst [vmem:[#allocation57_spill] sm:$0xff] %v15411_v51  ;;  %21355 = vst [vmem:[#allocation58_spill] sm:$0xff] %v15425_v8  ;;  %v21356_v14 = vand.u32 4294901760, %v15384_v48  ;;  %v15437_v35 = vsub.f32 %v211_v1, %v15411_v51  ;;  %v15446_v53 = vand.u32 4294901760, %v213_v40 }
  0x62   : > { %13709 = vmatmul.mubr.f32.gmra.mxu1 %v15215_v41  ;;  %13493 = vmatprep.mubr.f32.mxu0 %v509_v60  ;;  %v548_v31 = vsub.f32 %v15368_v28, %v21354_v15  ;;  %v539_v25 = vand.u32 4294901760, %v538_v49  ;;  %v15434_v15 = vsub.f32 %v210_v6, %v15409_v36  ;;  %v214_v49 = vld [vmem:[%s15002_s28 + $0xa8] sm:$0xff]  ;;  %v215_v6 = vld [vmem:[%s15002_s28 + $0xb0] sm:$0xff]  ;;  %v15452_v1 = vsub.f32 %v212_v7, %v15425_v8 }
  0x63   : > { %13711 = vmatprep.mubr.f32.mxu1 %v15241_v2  ;;  %14124 = vmatpush3.msra.mxu1 %v15019_v4  ;;  %v558_v60 = vsub.f32 %v15384_v48, %v21356_v14  ;;  %21358 = vst [vmem:[#allocation60_spill] sm:$0xff] %v15437_v35  ;;  %21360 = vst [vmem:[#allocation61_spill] sm:$0xff] %v15446_v53 }
  0x64   : > { %13901 = vmatprep.subr.mxu0 %v15054_v17  ;;  %14125 = vmatprep.subr.mxu1 %v15021_v5  ;;  %21357 = vst [vmem:[#allocation59_spill] sm:$0xff] %v15434_v15  ;;  %v549_v2 = vand.u32 4294901760, %v548_v31  ;;  %21361 = vst [vmem:[#allocation62_spill] sm:$0xff] %v15452_v1  ;;  %v21363_v31 = vand.u32 4294901760, %v15407_v43 }
  0x65   : > { %13494 = vmatmul.mubr.f32.gmra.mxu0 %v519_v22  ;;  %14126 = vmatpush3.msra.mxu1 %v15021_v5  ;;  %v21359_v22 = vand.u32 4294901760, %v15392_v26 }
  0x66   : > { %13712 = vmatmul.mubr.f32.gmra.mxu1 %v15250_v32  ;;  %13496 = vmatprep.mubr.f32.mxu0 %v529_v63  ;;  %v15454_v32 = vand.u32 4294901760, %v214_v49  ;;  %v559_v63 = vand.u32 4294901760, %v558_v60  ;;  %v15471_v60 = vand.u32 4294901760, %v215_v6 }
  0x67   : > { %v568_v41 = vsub.f32 %v15392_v26, %v21359_v22  ;;  %13714 = vmatprep.mubr.f32.mxu1 %v15262_v18  ;;  %13902 = vmatpush3.msra.mxu0 %v15054_v17  ;;  %v578_v22 = vsub.f32 %v15407_v43, %v21363_v31  ;;  %v21364_v18 = vand.u32 4294901760, %v15420_v37  ;;  %v216_v31 = vld [vmem:[%s15002_s28 + $0xb8] sm:$0xff]  ;;  %v217_v17 = vld [vmem:[%s15002_s28 + $0xc0] sm:$0xff] }
  0x68   : > { %21362 = vst [vmem:[#allocation63_spill] sm:$0xff] %v15454_v32  ;;  %13903 = vmatprep.subr.mxu0 %v15061_v19  ;;  %14127 = vmatprep.subr.mxu1 %v15032_v9  ;;  %21365 = vst [vmem:[#allocation64_spill] sm:$0xff] %v15471_v60  ;;  %v15489_v14 = vand.u32 4294901760, %v216_v31 }
  0x69   : > { %13497 = vmatmul.mubr.f32.gmra.mxu0 %v539_v25  ;;  %14128 = vmatpush3.msra.mxu1 %v15032_v9  ;;  %v569_v7 = vand.u32 4294901760, %v568_v41  ;;  %v588_v26 = vsub.f32 %v15420_v37, %v21364_v18  ;;  %v15469_v25 = vsub.f32 %v213_v40, %v15446_v53  ;;  %v15479_v41 = vsub.f32 %v214_v49, %v15454_v32 }
  0x6a   : > { %13715 = vmatmul.mubr.f32.gmra.mxu1 %v15280_v23  ;;  %13499 = vmatprep.mubr.f32.mxu0 %v549_v2  ;;  %v579_v2 = vand.u32 4294901760, %v578_v22  ;;  %v21366_v18 = vand.u32 4294901760, %v15434_v15  ;;  %21368 = vst [vmem:[#allocation65_spill] sm:$0xff] %v15489_v14  ;;  %v15497_v22 = vand.u32 4294901760, %v217_v17 }
  0x6b   : > { %13717 = vmatprep.mubr.f32.mxu1 %v15296_v56  ;;  %13904 = vmatpush3.msra.mxu0 %v15061_v19  ;;  %v21367_v56 = vand.u32 4294901760, %v15437_v35  ;;  %v589_v49 = vand.u32 4294901760, %v588_v26  ;;  %v21375_v26 = vand.u32 4294901760, %v15469_v25 }
  0x6c   : > { %13905 = vmatprep.subr.mxu0 %v15064_v20  ;;  %14129 = vmatprep.subr.mxu1 %v15034_v10  ;;  %v598_v40 = vsub.f32 %v15434_v15, %v21366_v18  ;;  %21370 = vst [vmem:[#allocation67_spill] sm:$0xff] %v15497_v22  ;;  %v218_v18 = vld [vmem:[%s15002_s28 + $0xc8] sm:$0xff]  ;;  %v219_v15 = vld [vmem:[%s15002_s28 + $0xd0] sm:$0xff] }
  0x6d   : > { %13500 = vmatmul.mubr.f32.gmra.mxu0 %v559_v63  ;;  %v608_v19 = vsub.f32 %v15437_v35, %v21367_v56  ;;  %14130 = vmatpush3.msra.mxu1 %v15034_v10  ;;  %v15495_v63 = vsub.f32 %v215_v6, %v15471_v60  ;;  %v21371_v56 = vand.u32 4294901760, %v15452_v1  ;;  %v15512_v23 = vand.u32 4294901760, %v218_v18 }
  0x6e   : > { %13718 = vmatmul.mubr.f32.gmra.mxu1 %v15304_v52  ;;  %13502 = vmatprep.mubr.f32.mxu0 %v569_v7  ;;  %v599_v6 = vand.u32 4294901760, %v598_v40  ;;  %v15510_v7 = vsub.f32 %v216_v31, %v15489_v14  ;;  %v15524_v31 = vsub.f32 %v217_v17, %v15497_v22  ;;  %v221_v40 = vld [vmem:[%s15002_s28 + $0xe0] sm:$0xff]  ;;  %v21377_v35 = vand.u32 4294901760, %v15479_v41 }
  0x6f   : > { %21369 = vst [vmem:[#allocation66_spill] sm:$0xff] %v15495_v63  ;;  %13720 = vmatprep.mubr.f32.mxu1 %v15314_v57  ;;  %13906 = vmatpush3.msra.mxu0 %v15064_v20  ;;  %v618_v52 = vsub.f32 %v15452_v1, %v21371_v56  ;;  %21373 = vst [vmem:[#allocation69_spill] sm:$0xff] %v15512_v23  ;;  %v15514_v57 = vand.u32 4294901760, %v219_v15  ;;  %v220_v20 = vld [vmem:[%s15002_s28 + $0xd8] sm:$0xff]  ;;  %v609_v56 = vand.u32 4294901760, %v608_v19 }
  0x70   : > { %13907 = vmatprep.subr.mxu0 %v15091_v29  ;;  %14131 = vmatprep.subr.mxu1 %v15036_v11  ;;  %21372 = vst [vmem:[#allocation68_spill] sm:$0xff] %v15510_v7  ;;  %v628_v1 = vsub.f32 %v15469_v25, %v21375_v26  ;;  %21376 = vst [vmem:[#allocation71_spill] sm:$0xff] %v15524_v31  ;;  %v15532_v19 = vand.u32 4294901760, %v220_v20  ;;  %v15538_v26 = vsub.f32 %v218_v18, %v15512_v23  ;;  %v222_v18 = vld [vmem:[%s15002_s28 + $0xe8] sm:$0xff] }
  0x71   : > { %13503 = vmatmul.mubr.f32.gmra.mxu0 %v579_v2  ;;  %21374 = vst [vmem:[#allocation70_spill] sm:$0xff] %v15514_v57  ;;  %14132 = vmatpush3.msra.mxu1 %v15036_v11  ;;  %v20844_v2 = vand.u32 4294901760, %v15495_v63  ;;  %v619_v17 = vand.u32 4294901760, %v618_v52  ;;  %v225_v52 = vld [vmem:[%s15002_s28 + $0x100] sm:$0xff] }
  0x72   : > { %13721 = vmatmul.mubr.f32.gmra.mxu1 %v15335_v12  ;;  %13505 = vmatprep.mubr.f32.mxu0 %v589_v49  ;;  %v638_v12 = vsub.f32 %v15479_v41, %v21377_v35  ;;  %21378 = vst [vmem:[#allocation72_spill] sm:$0xff] %v15532_v19  ;;  %21379 = vst [vmem:[#allocation73_spill] sm:$0xff] %v15538_v26  ;;  %v629_v35 = vand.u32 4294901760, %v628_v1  ;;  %v21383_v1 = vand.u32 4294901760, %v15510_v7 }
  0x73   : > { %13723 = vmatprep.mubr.f32.mxu1 %v15345_v59  ;;  %13908 = vmatpush3.msra.mxu0 %v15091_v29  ;;  %v15541_v29 = vsub.f32 %v219_v15, %v15514_v57  ;;  %v648_v59 = vsub.f32 %v15495_v63, %v20844_v2  ;;  %v223_v15 = vld [vmem:[%s15002_s28 + $0xf0] sm:$0xff] }
  0x74   : > { %13909 = vmatprep.subr.mxu0 %v15101_v33  ;;  %14133 = vmatprep.subr.mxu1 %v15051_v16  ;;  %v639_v49 = vand.u32 4294901760, %v638_v12 }
  0x75   : > { %13506 = vmatmul.mubr.f32.gmra.mxu0 %v599_v6  ;;  %21380 = vst [vmem:[#allocation74_spill] sm:$0xff] %v15541_v29  ;;  %14134 = vmatpush3.msra.mxu1 %v15051_v16  ;;  %v15549_v6 = vand.u32 4294901760, %v221_v40  ;;  %v649_v12 = vand.u32 4294901760, %v648_v59 }
  0x76   : > { %13724 = vmatmul.mubr.f32.gmra.mxu1 %v15362_v54  ;;  %13508 = vmatprep.mubr.f32.mxu0 %v609_v56  ;;  %v15556_v54 = vsub.f32 %v220_v20, %v15532_v19  ;;  %v658_v56 = vsub.f32 %v15510_v7, %v21383_v1  ;;  %v21385_v20 = vand.u32 4294901760, %v15524_v31  ;;  %v15576_v1 = vand.u32 4294901760, %v223_v15 }
  0x77   : > { %21381 = vst [vmem:[#allocation75_spill] sm:$0xff] %v15549_v6  ;;  %13726 = vmatprep.mubr.f32.mxu1 %v15370_v30  ;;  %13910 = vmatpush3.msra.mxu0 %v15101_v33  ;;  %v15565_v30 = vand.u32 4294901760, %v222_v18  ;;  %v224_v33 = vld [vmem:[%s15002_s28 + $0xf8] sm:$0xff]  ;;  %v15574_v63 = vsub.f32 %v221_v40, %v15549_v6  ;;  %v21389_v40 = vand.u32 4294901760, %v15538_v26 }
  0x78   : > { %21382 = vst [vmem:[#allocation76_spill] sm:$0xff] %v15556_v54  ;;  %13911 = vmatprep.subr.mxu0 %v15122_v42  ;;  %14135 = vmatprep.subr.mxu1 %v15076_v24  ;;  %21387 = vst [vmem:[#allocation79_spill] sm:$0xff] %v15576_v1  ;;  %v659_v59 = vand.u32 4294901760, %v658_v56  ;;  %v15599_v56 = vsub.f32 %v223_v15, %v15576_v1 }
  0x79   : > { %13509 = vmatmul.mubr.f32.gmra.mxu0 %v619_v17  ;;  %21384 = vst [vmem:[#allocation77_spill] sm:$0xff] %v15565_v30  ;;  %14136 = vmatpush3.msra.mxu1 %v15076_v24  ;;  %v668_v17 = vsub.f32 %v15524_v31, %v21385_v20  ;;  %21386 = vst [vmem:[#allocation78_spill] sm:$0xff] %v15574_v63  ;;  %v21390_v20 = vand.u32 4294901760, %v15541_v29  ;;  %v15593_v2 = vsub.f32 %v222_v18, %v15565_v30  ;;  %v227_v31 = vld [vmem:[%s15002_s28 + $0x110] sm:$0xff] }
  0x7a   : > { %13727 = vmatmul.mubr.f32.gmra.mxu1 %v15386_v58  ;;  %13511 = vmatprep.mubr.f32.mxu0 %v629_v35  ;;  %v15582_v58 = vand.u32 4294901760, %v224_v33  ;;  %v678_v35 = vsub.f32 %v15538_v26, %v21389_v40  ;;  %21392 = vst [vmem:[#allocation82_spill] sm:$0xff] %v15599_v56  ;;  %v15601_v40 = vand.u32 4294901760, %v225_v52  ;;  %v226_v26 = vld [vmem:[%s15002_s28 + $0x108] sm:$0xff]  ;;  %v21394_v18 = vand.u32 4294901760, %v15556_v54 }
  0x7b   : > { %13729 = vmatprep.mubr.f32.mxu1 %v15394_v21  ;;  %13912 = vmatpush3.msra.mxu0 %v15122_v42  ;;  %v688_v42 = vsub.f32 %v15541_v29, %v21390_v20  ;;  %21391 = vst [vmem:[#allocation81_spill] sm:$0xff] %v15593_v2  ;;  %v669_v21 = vand.u32 4294901760, %v668_v17  ;;  %v229_v17 = vld [vmem:[%s15002_s28 + $0x120] sm:$0xff] }
  0x7c   : > { %21388 = vst [vmem:[#allocation80_spill] sm:$0xff] %v15582_v58  ;;  %13913 = vmatprep.subr.mxu0 %v15134_v47  ;;  %14137 = vmatprep.subr.mxu1 %v15085_v27  ;;  %21393 = vst [vmem:[#allocation83_spill] sm:$0xff] %v15601_v40  ;;  %v698_v20 = vsub.f32 %v15556_v54, %v21394_v18  ;;  %v679_v15 = vand.u32 4294901760, %v678_v35  ;;  %v21398_v18 = vand.u32 4294901760, %v15574_v63 }
  0x7d   : > { %13512 = vmatmul.mubr.f32.gmra.mxu0 %v639_v49  ;;  %14138 = vmatpush3.msra.mxu1 %v15085_v27  ;;  %v15616_v49 = vand.u32 4294901760, %v226_v26  ;;  %v15628_v35 = vsub.f32 %v225_v52, %v15601_v40  ;;  %v21401_v52 = vand.u32 4294901760, %v15593_v2 }
  0x7e   : > { %13730 = vmatmul.mubr.f32.gmra.mxu1 %v15409_v36  ;;  %13514 = vmatprep.mubr.f32.mxu0 %v649_v12  ;;  %v15611_v12 = vsub.f32 %v224_v33, %v15582_v58  ;;  %v689_v33 = vand.u32 4294901760, %v688_v42  ;;  %v708_v36 = vsub.f32 %v15574_v63, %v21398_v18 }
  0x7f   : > { %13732 = vmatprep.mubr.f32.mxu1 %v15411_v51  ;;  %13914 = vmatpush3.msra.mxu0 %v15134_v47  ;;  %21396 = vst [vmem:[#allocation85_spill] sm:$0xff] %v15616_v49  ;;  %v15618_v51 = vand.u32 4294901760, %v227_v31  ;;  %v228_v47 = vld [vmem:[%s15002_s28 + $0x118] sm:$0xff]  ;;  %21399 = vst [vmem:[#allocation87_spill] sm:$0xff] %v15628_v35  ;;  %v718_v42 = vsub.f32 %v15593_v2, %v21401_v52  ;;  %v15642_v18 = vsub.f32 %v226_v26, %v15616_v49  ;;  %v230_v52 = vld [vmem:[%s15002_s28 + $0x128] sm:$0xff] }
  0x80   : > { %21395 = vst [vmem:[#allocation84_spill] sm:$0xff] %v15611_v12  ;;  %13915 = vmatprep.subr.mxu0 %v15141_v50  ;;  %14139 = vmatprep.subr.mxu1 %v15104_v34  ;;  %v709_v54 = vand.u32 4294901760, %v708_v36  ;;  %v231_v26 = vld [vmem:[%s15002_s28 + $0x130] sm:$0xff] }
  0x81   : > { %13515 = vmatmul.mubr.f32.gmra.mxu0 %v659_v59  ;;  %21397 = vst [vmem:[#allocation86_spill] sm:$0xff] %v15618_v51  ;;  %14140 = vmatpush3.msra.mxu1 %v15104_v34  ;;  %v20869_v59 = vand.u32 4294901760, %v15599_v56  ;;  %21402 = vst [vmem:[#allocation89_spill] sm:$0xff] %v15642_v18 }
  0x82   : > { %13733 = vmatmul.mubr.f32.gmra.mxu1 %v15425_v8  ;;  %13517 = vmatprep.mubr.f32.mxu0 %v669_v21  ;;  %v15634_v8 = vand.u32 4294901760, %v228_v47  ;;  %v699_v21 = vand.u32 4294901760, %v698_v20 }
  0x83   : > { %13735 = vmatprep.mubr.f32.mxu1 %v15446_v53  ;;  %13916 = vmatpush3.msra.mxu0 %v15141_v50  ;;  %v15645_v50 = vsub.f32 %v227_v31, %v15618_v51  ;;  %v728_v20 = vsub.f32 %v15599_v56, %v20869_v59  ;;  %v15653_v53 = vand.u32 4294901760, %v229_v17  ;;  %v21405_v31 = vand.u32 4294901760, %v15611_v12 }
  0x84   : > { %21400 = vst [vmem:[#allocation88_spill] sm:$0xff] %v15634_v8  ;;  %13917 = vmatprep.subr.mxu0 %v15168_v62  ;;  %14141 = vmatprep.subr.mxu1 %v15128_v45  ;;  %v15663_v36 = vsub.f32 %v228_v47, %v15634_v8  ;;  %v719_v59 = vand.u32 4294901760, %v718_v42  ;;  %v15679_v42 = vand.u32 4294901760, %v231_v26 }
  0x85   : > { %13518 = vmatmul.mubr.f32.gmra.mxu0 %v679_v15  ;;  %21403 = vst [vmem:[#allocation90_spill] sm:$0xff] %v15645_v50  ;;  %14142 = vmatpush3.msra.mxu1 %v15128_v45  ;;  %21404 = vst [vmem:[#allocation91_spill] sm:$0xff] %v15653_v53  ;;  %v729_v47 = vand.u32 4294901760, %v728_v20  ;;  %v232_v15 = vld [vmem:[%s15002_s28 + $0x138] sm:$0xff]  ;;  %v21412_v20 = vld [vmem:[#allocation22_spill] sm:$0xff] }
  0x86   : > { %13736 = vmatmul.mubr.f32.gmra.mxu1 %v15454_v32  ;;  %13520 = vmatprep.mubr.f32.mxu0 %v689_v33  ;;  %v738_v32 = vsub.f32 %v15611_v12, %v21405_v31  ;;  %21406 = vst [vmem:[#allocation92_spill] sm:$0xff] %v15663_v36  ;;  %v21407_v33 = vld [vmem:[#allocation14_spill] sm:$0xff]  ;;  %v21409_v31 = vand.u32 4294901760, %v15628_v35  ;;  %21411 = vst [vmem:[#allocation95_spill] sm:$0xff] %v15679_v42 }
  0x87   : > { %13738 = vmatprep.mubr.f32.mxu1 %v15471_v60  ;;  %13918 = vmatpush3.msra.mxu0 %v15168_v62  ;;  %v15669_v62 = vand.u32 4294901760, %v230_v52  ;;  %v233_v60 = vld [vmem:[%s15002_s28 + $0x140] sm:$0xff] }
  0x88   : > { %13919 = vmatprep.subr.mxu0 %v15174_v0  ;;  %14143 = vmatprep.subr.mxu1 %v21407_v33  ;;  %v748_v12 = vsub.f32 %v15628_v35, %v21409_v31  ;;  %v739_v56 = vand.u32 4294901760, %v738_v32  ;;  %v21415_v35 = vand.u32 4294901760, %v15645_v50  ;;  %v234_v32 = vld [vmem:[%s15002_s28 + $0x148] sm:$0xff] }
  0x89   : > { %13521 = vmatmul.mubr.f32.gmra.mxu0 %v699_v21  ;;  %21408 = vst [vmem:[#allocation93_spill] sm:$0xff] %v15669_v62  ;;  %14144 = vmatpush3.msra.mxu1 %v21407_v33  ;;  %v15677_v21 = vsub.f32 %v229_v17, %v15653_v53  ;;  %v21414_v17 = vand.u32 4294901760, %v15642_v18  ;;  %v15695_v2 = vsub.f32 %v230_v52, %v15669_v62  ;;  %v21420_v52 = vand.u32 4294901760, %v15663_v36 }
  0x8a   : > { %13739 = vmatmul.mubr.f32.gmra.mxu1 %v15489_v14  ;;  %13523 = vmatprep.mubr.f32.mxu0 %v709_v54  ;;  %v21413_v14 = vld [vmem:[#allocation16_spill] sm:$0xff] }
  0x8b   : > { %21410 = vst [vmem:[#allocation94_spill] sm:$0xff] %v15677_v21  ;;  %13741 = vmatprep.mubr.f32.mxu1 %v15497_v22  ;;  %13920 = vmatpush3.msra.mxu0 %v15174_v0  ;;  %v758_v31 = vsub.f32 %v15642_v18, %v21414_v17  ;;  %v768_v22 = vsub.f32 %v15645_v50, %v21415_v35  ;;  %21416 = vst [vmem:[#allocation22_spill] sm:$0xff] %v15695_v2  ;;  %v15697_v0 = vand.u32 4294901760, %v232_v15  ;;  %v235_v35 = vld [vmem:[%s15002_s28 + $0x150] sm:$0xff] }
  0x8c   : > { %13921 = vmatprep.subr.mxu0 %v21412_v20  ;;  %14145 = vmatprep.subr.mxu1 %v21413_v14  ;;  %v15704_v17 = vsub.f32 %v231_v26, %v15679_v42  ;;  %v15706_v18 = vand.u32 4294901760, %v233_v60  ;;  %v778_v50 = vsub.f32 %v15663_v36, %v21420_v52  ;;  %v21426_v36 = vand.u32 4294901760, %v15677_v21 }
  0x8d   : > { %13524 = vmatmul.mubr.f32.gmra.mxu0 %v719_v59  ;;  %21417 = vst [vmem:[#allocation96_spill] sm:$0xff] %v15697_v0  ;;  %14146 = vmatpush3.msra.mxu1 %v21413_v14  ;;  %v749_v59 = vand.u32 4294901760, %v748_v12  ;;  %v21422_v12 = vld [vmem:[#allocation33_spill] sm:$0xff]  ;;  %v759_v26 = vand.u32 4294901760, %v758_v31  ;;  %v15720_v63 = vsub.f32 %v232_v15, %v15697_v0  ;;  %v769_v52 = vand.u32 4294901760, %v768_v22 }
  0x8e   : > { %13742 = vmatmul.mubr.f32.gmra.mxu1 %v15512_v23  ;;  %13526 = vmatprep.mubr.f32.mxu0 %v729_v47  ;;  %21418 = vst [vmem:[#allocation97_spill] sm:$0xff] %v15704_v17  ;;  %21419 = vst [vmem:[#allocation98_spill] sm:$0xff] %v15706_v18  ;;  %v15714_v23 = vand.u32 4294901760, %v234_v32  ;;  %v21423_v47 = vld [vmem:[#allocation23_spill] sm:$0xff]  ;;  %v788_v14 = vsub.f32 %v15677_v21, %v21426_v36  ;;  %v15732_v31 = vsub.f32 %v233_v60, %v15706_v18  ;;  %v237_v15 = vld [vmem:[%s15002_s28 + $0x160] sm:$0xff] }
  0x8f   : > { %13744 = vmatprep.mubr.f32.mxu1 %v15514_v57  ;;  %13922 = vmatpush3.msra.mxu0 %v21412_v20  ;;  %21424 = vst [vmem:[#allocation33_spill] sm:$0xff] %v15720_v63  ;;  %v15722_v57 = vand.u32 4294901760, %v235_v35  ;;  %v236_v20 = vld [vmem:[%s15002_s28 + $0x158] sm:$0xff]  ;;  %v779_v22 = vand.u32 4294901760, %v778_v50  ;;  %v21430_v60 = vand.u32 4294901760, %v15695_v2  ;;  %v21436_v50 = vand.u32 4294901760, %v15720_v63 }
  0x90   : > { %21421 = vst [vmem:[#allocation99_spill] sm:$0xff] %v15714_v23  ;;  %13923 = vmatprep.subr.mxu0 %v21422_v12  ;;  %14147 = vmatprep.subr.mxu1 %v21423_v47  ;;  %21427 = vst [vmem:[#allocation101_spill] sm:$0xff] %v15732_v31  ;;  %v15738_v54 = vsub.f32 %v234_v32, %v15714_v23  ;;  %v789_v32 = vand.u32 4294901760, %v788_v14  ;;  %v21435_v14 = vld [vmem:[#allocation32_spill] sm:$0xff] }
  0x91   : > { %13527 = vmatmul.mubr.f32.gmra.mxu0 %v739_v56  ;;  %21425 = vst [vmem:[#allocation100_spill] sm:$0xff] %v15722_v57  ;;  %14148 = vmatpush3.msra.mxu1 %v21423_v47  ;;  %v798_v36 = vsub.f32 %v15695_v2, %v21430_v60  ;;  %v238_v60 = vld [vmem:[%s15002_s28 + $0x168] sm:$0xff]  ;;  %v239_v56 = vld [vmem:[%s15002_s28 + $0x170] sm:$0xff] }
  0x92   : > { %13745 = vmatmul.mubr.f32.gmra.mxu1 %v15532_v19  ;;  %13529 = vmatprep.mubr.f32.mxu0 %v749_v59  ;;  %21428 = vst [vmem:[#allocation102_spill] sm:$0xff] %v15738_v54  ;;  %v15740_v59 = vand.u32 4294901760, %v236_v20  ;;  %v15757_v19 = vand.u32 4294901760, %v237_v15  ;;  %v243_v2 = vld [vmem:[%s15002_s28 + $0x190] sm:$0xff] }
  0x93   : > { %13747 = vmatprep.mubr.f32.mxu1 %v15549_v6  ;;  %13924 = vmatpush3.msra.mxu0 %v21422_v12  ;;  %v15749_v12 = vsub.f32 %v235_v35, %v15722_v57  ;;  %v21432_v6 = vand.u32 4294901760, %v15704_v17  ;;  %v21438_v35 = vand.u32 4294901760, %v15732_v31 }
  0x94   : > { %21429 = vst [vmem:[#allocation103_spill] sm:$0xff] %v15740_v59  ;;  %13925 = vmatprep.subr.mxu0 %v15248_v61  ;;  %14149 = vmatprep.subr.mxu1 %v15210_v38  ;;  %21433 = vst [vmem:[#allocation105_spill] sm:$0xff] %v15757_v19 }
  0x95   : > { %13530 = vmatmul.mubr.f32.gmra.mxu0 %v759_v26  ;;  %21431 = vst [vmem:[#allocation104_spill] sm:$0xff] %v15749_v12  ;;  %14150 = vmatpush3.msra.mxu1 %v15210_v38  ;;  %v808_v26 = vsub.f32 %v15704_v17, %v21432_v6  ;;  %v799_v6 = vand.u32 4294901760, %v798_v36  ;;  %v828_v17 = vsub.f32 %v15732_v31, %v21438_v35  ;;  %v15783_v36 = vand.u32 4294901760, %v239_v56  ;;  %v21442_v35 = vld [vmem:[#allocation5_spill] sm:$0xff] }
  0x96   : > { %13748 = vmatmul.mubr.f32.gmra.mxu1 %v15565_v30  ;;  %13532 = vmatprep.mubr.f32.mxu0 %v769_v52  ;;  %v15765_v52 = vsub.f32 %v236_v20, %v15740_v59  ;;  %v241_v30 = vld [vmem:[%s15002_s28 + $0x180] sm:$0xff] }
  0x97   : > { %13750 = vmatprep.mubr.f32.mxu1 %v15576_v1  ;;  %13926 = vmatpush3.msra.mxu0 %v15248_v61  ;;  %v818_v1 = vsub.f32 %v15720_v63, %v21436_v50  ;;  %v15773_v61 = vand.u32 4294901760, %v238_v60  ;;  %v809_v20 = vand.u32 4294901760, %v808_v26  ;;  %21440 = vst [vmem:[#allocation109_spill] sm:$0xff] %v15783_v36  ;;  %v240_v50 = vld [vmem:[%s15002_s28 + $0x178] sm:$0xff]  ;;  %v21441_v63 = vand.u32 4294901760, %v15738_v54 }
  0x98   : > { %21434 = vst [vmem:[#allocation106_spill] sm:$0xff] %v15765_v52  ;;  %13927 = vmatprep.subr.mxu0 %v15272_v13  ;;  %14151 = vmatprep.subr.mxu1 %v21435_v14  ;;  %v15801_v31 = vand.u32 4294901760, %v240_v50  ;;  %v15822_v26 = vand.u32 4294901760, %v243_v2 }
  0x99   : > { %13533 = vmatmul.mubr.f32.gmra.mxu0 %v779_v22  ;;  %21437 = vst [vmem:[#allocation107_spill] sm:$0xff] %v15773_v61  ;;  %14152 = vmatpush3.msra.mxu1 %v21435_v14  ;;  %v15781_v22 = vsub.f32 %v237_v15, %v15757_v19  ;;  %v819_v15 = vand.u32 4294901760, %v818_v1  ;;  %v15808_v1 = vand.u32 4294901760, %v241_v30 }
  0x9a   : > { %13751 = vmatmul.mubr.f32.gmra.mxu1 %v15582_v58  ;;  %13535 = vmatprep.mubr.f32.mxu0 %v789_v32  ;;  %v838_v32 = vsub.f32 %v15738_v54, %v21441_v63  ;;  %v21443_v58 = vand.u32 4294901760, %v15749_v12  ;;  %21445 = vst [vmem:[#allocation110_spill] sm:$0xff] %v15801_v31  ;;  %v829_v63 = vand.u32 4294901760, %v828_v17  ;;  %v15806_v54 = vsub.f32 %v239_v56, %v15783_v36 }
  0x9b   : > { %21439 = vst [vmem:[#allocation108_spill] sm:$0xff] %v15781_v22  ;;  %13753 = vmatprep.mubr.f32.mxu1 %v15601_v40  ;;  %13928 = vmatpush3.msra.mxu0 %v15272_v13  ;;  %v15799_v13 = vsub.f32 %v238_v60, %v15773_v61  ;;  %21447 = vst [vmem:[#allocation112_spill] sm:$0xff] %v15808_v1  ;;  %v21448_v60 = vand.u32 4294901760, %v15765_v52  ;;  %v15831_v17 = vsub.f32 %v241_v30, %v15808_v1 }
  0x9c   : > { %14345 = vmatprep.subr.mxu0 %v21442_v35  ;;  %14569 = vmatprep.subr.mxu1 %v15017_v3  ;;  %v848_v40 = vsub.f32 %v15749_v12, %v21443_v58  ;;  %21446 = vst [vmem:[#allocation111_spill] sm:$0xff] %v15806_v54  ;;  %v839_v58 = vand.u32 4294901760, %v838_v32  ;;  %21451 = vst [vmem:[#allocation115_spill] sm:$0xff] %v15822_v26  ;;  %v244_v12 = vld [vmem:[%s15002_s28 + $0x198] sm:$0xff]  ;;  %v15845_v30 = vsub.f32 %v243_v2, %v15822_v26 }
  0x9d   : > { %13536 = vmatmul.mubr.f32.gmra.mxu0 %v799_v6  ;;  %21444 = vst [vmem:[#allocation5_spill] sm:$0xff] %v15799_v13  ;;  %v242_v6 = vld [vmem:[%s15002_s28 + $0x188] sm:$0xff]  ;;  %21453 = vst [vmem:[#allocation116_spill] sm:$0xff] %v15831_v17  ;;  %v15835_v21 = vand.u32 4294901760, %v244_v12 }
  0x9e   : > { %13754 = vmatmul.mubr.f32.gmra.mxu1 %v15616_v49  ;;  %13538 = vmatprep.mubr.f32.mxu0 %v809_v20  ;;  %v858_v49 = vsub.f32 %v15765_v52, %v21448_v60  ;;  %v15818_v20 = vsub.f32 %v240_v50, %v15801_v31  ;;  %v15820_v56 = vand.u32 4294901760, %v242_v6  ;;  %v849_v32 = vand.u32 4294901760, %v848_v40  ;;  %v245_v50 = vld [vmem:[%s15002_s28 + $0x1a0] sm:$0xff]  ;;  %21457 = vst [vmem:[#allocation119_spill] sm:$0xff] %v15845_v30 }
  0x9f   : > { %13756 = vmatprep.mubr.f32.mxu1 %v15618_v51  ;;  %v21452_v51 = vand.u32 4294901760, %v15781_v22  ;;  %21454 = vst [vmem:[#allocation117_spill] sm:$0xff] %v15835_v21  ;;  %v15858_v2 = vsub.f32 %v244_v12, %v15835_v21 }
  0xa0   : > { %21449 = vst [vmem:[#allocation113_spill] sm:$0xff] %v15818_v20  ;;  %21450 = vst [vmem:[#allocation114_spill] sm:$0xff] %v15820_v56  ;;  %v859_v52 = vand.u32 4294901760, %v858_v49 }
  0xa1   : > { %13539 = vmatmul.mubr.f32.gmra.mxu0 %v819_v15  ;;  %v868_v60 = vsub.f32 %v15781_v22, %v21452_v51  ;;  %v15842_v51 = vsub.f32 %v242_v6, %v15820_v56  ;;  %v246_v15 = vld [vmem:[%s15002_s28 + $0x1a8] sm:$0xff]  ;;  %v247_v6 = vld [vmem:[%s15002_s28 + $0x1b0] sm:$0xff]  ;;  %21460 = vst [vmem:[#allocation121_spill] sm:$0xff] %v15858_v2 }
  0xa2   : > { %13757 = vmatmul.mubr.f32.gmra.mxu1 %v15634_v8  ;;  %13541 = vmatprep.mubr.f32.mxu0 %v829_v63  ;;  %v21455_v63 = vand.u32 4294901760, %v15799_v13  ;;  %v15860_v8 = vand.u32 4294901760, %v246_v15 }
  0xa3   : > { %13759 = vmatprep.mubr.f32.mxu1 %v15653_v53  ;;  %21456 = vst [vmem:[#allocation118_spill] sm:$0xff] %v15842_v51  ;;  %v869_v49 = vand.u32 4294901760, %v868_v60  ;;  %v21458_v53 = vand.u32 4294901760, %v15806_v54  ;;  %v21462_v60 = vand.u32 4294901760, %v15818_v20  ;;  %v20949_v22 = vand.u32 4294901760, %v15842_v51 }
  0xa4   : > { %v878_v40 = vsub.f32 %v15799_v13, %v21455_v63  ;;  %v15853_v63 = vand.u32 4294901760, %v245_v50  ;;  %21461 = vst [vmem:[#allocation122_spill] sm:$0xff] %v15860_v8 }
  0xa5   : > { %13542 = vmatmul.mubr.f32.gmra.mxu0 %v839_v58  ;;  %v888_v58 = vsub.f32 %v15806_v54, %v21458_v53  ;;  %v898_v53 = vsub.f32 %v15818_v20, %v21462_v60  ;;  %v21463_v54 = vand.u32 4294901760, %v15831_v17  ;;  %v249_v60 = vld [vmem:[%s15002_s28 + $0x1c0] sm:$0xff] }
  0xa6   : > { %13760 = vmatmul.mubr.f32.gmra.mxu1 %v15669_v62  ;;  %13544 = vmatprep.mubr.f32.mxu0 %v849_v32  ;;  %21459 = vst [vmem:[#allocation120_spill] sm:$0xff] %v15853_v63  ;;  %v879_v32 = vand.u32 4294901760, %v878_v40  ;;  %v15872_v13 = vsub.f32 %v245_v50, %v15853_v63  ;;  %v248_v40 = vld [vmem:[%s15002_s28 + $0x1b8] sm:$0xff]  ;;  %v21467_v50 = vand.u32 4294901760, %v15845_v30 }
  0xa7   : > { %13762 = vmatprep.mubr.f32.mxu1 %v15679_v42  ;;  %v889_v42 = vand.u32 4294901760, %v888_v58  ;;  %v908_v12 = vsub.f32 %v15831_v17, %v21463_v54  ;;  %v899_v58 = vand.u32 4294901760, %v898_v53  ;;  %v918_v54 = vsub.f32 %v15842_v51, %v20949_v22  ;;  %v251_v22 = vld [vmem:[%s15002_s28 + $0x1d0] sm:$0xff]  ;;  %v252_v51 = vld [vmem:[%s15002_s28 + $0x1d8] sm:$0xff] }
  0xa8   : > { %21464 = vst [vmem:[#allocation123_spill] sm:$0xff] %v15872_v13  ;;  %v15889_v17 = vand.u32 4294901760, %v248_v40  ;;  %v15896_v53 = vand.u32 4294901760, %v249_v60  ;;  %v21475_v20 = vand.u32 4294901760, %v15872_v13 }
  0xa9   : > { %13545 = vmatmul.mubr.f32.gmra.mxu0 %v859_v52  ;;  %v15874_v52 = vand.u32 4294901760, %v247_v6  ;;  %v909_v62 = vand.u32 4294901760, %v908_v12 }
  0xaa   : > { %13763 = vmatmul.mubr.f32.gmra.mxu1 %v15697_v0  ;;  %13547 = vmatprep.mubr.f32.mxu0 %v869_v49  ;;  %v15881_v49 = vsub.f32 %v246_v15, %v15860_v8  ;;  %v928_v0 = vsub.f32 %v15845_v30, %v21467_v50  ;;  %21468 = vst [vmem:[#allocation126_spill] sm:$0xff] %v15889_v17  ;;  %21470 = vst [vmem:[#allocation128_spill] sm:$0xff] %v15896_v53  ;;  %v21471_v50 = vand.u32 4294901760, %v15858_v2 }
  0xab   : > { %21465 = vst [vmem:[#allocation124_spill] sm:$0xff] %v15874_v52  ;;  %13765 = vmatprep.mubr.f32.mxu1 %v15706_v18  ;;  %v250_v18 = vld [vmem:[%s15002_s28 + $0x1c8] sm:$0xff]  ;;  %v15906_v12 = vsub.f32 %v248_v40, %v15889_v17  ;;  %v15910_v15 = vand.u32 4294901760, %v251_v22  ;;  %v253_v40 = vld [vmem:[%s15002_s28 + $0x1e0] sm:$0xff] }
  0xac   : > { %21466 = vst [vmem:[#allocation125_spill] sm:$0xff] %v15881_v49  ;;  %v938_v30 = vsub.f32 %v15858_v2, %v21471_v50  ;;  %v948_v50 = vsub.f32 %v15872_v13, %v21475_v20  ;;  %v254_v20 = vld [vmem:[%s15002_s28 + $0x1e8] sm:$0xff] }
  0xad   : > { %13548 = vmatmul.mubr.f32.gmra.mxu0 %v879_v32  ;;  %v15894_v32 = vsub.f32 %v247_v6, %v15874_v52  ;;  %21472 = vst [vmem:[#allocation129_spill] sm:$0xff] %v15906_v12  ;;  %v15908_v6 = vand.u32 4294901760, %v250_v18  ;;  %21474 = vst [vmem:[#allocation131_spill] sm:$0xff] %v15910_v15 }
  0xae   : > { %13766 = vmatmul.mubr.f32.gmra.mxu1 %v15714_v23  ;;  %13550 = vmatprep.mubr.f32.mxu0 %v889_v42  ;;  %v919_v42 = vand.u32 4294901760, %v918_v54  ;;  %v21477_v54 = vand.u32 4294901760, %v15881_v49 }
  0xaf   : > { %21469 = vst [vmem:[#allocation127_spill] sm:$0xff] %v15894_v32  ;;  %13768 = vmatprep.mubr.f32.mxu1 %v15722_v57  ;;  %21473 = vst [vmem:[#allocation130_spill] sm:$0xff] %v15908_v6  ;;  %v929_v57 = vand.u32 4294901760, %v928_v0  ;;  %v939_v0 = vand.u32 4294901760, %v938_v30  ;;  %v15930_v23 = vsub.f32 %v250_v18, %v15908_v6  ;;  %v21481_v13 = vand.u32 4294901760, %v15894_v32  ;;  %v255_v18 = vld [vmem:[%s15002_s28 + $0x1f0] sm:$0xff] }
  0xb0   : > { %v15940_v30 = vand.u32 4294901760, %v253_v40  ;;  %v15963_v2 = vand.u32 4294901760, %v255_v18 }
  0xb1   : > { %13551 = vmatmul.mubr.f32.gmra.mxu0 %v899_v58  ;;  %v15919_v58 = vsub.f32 %v249_v60, %v15896_v53  ;;  %21479 = vst [vmem:[#allocation134_spill] sm:$0xff] %v15930_v23  ;;  %v15933_v60 = vsub.f32 %v251_v22, %v15910_v15 }
  0xb2   : > { %13769 = vmatmul.mubr.f32.gmra.mxu1 %v15740_v59  ;;  %13553 = vmatprep.mubr.f32.mxu0 %v909_v62  ;;  %v958_v59 = vsub.f32 %v15881_v49, %v21477_v54  ;;  %v15926_v62 = vand.u32 4294901760, %v252_v51  ;;  %v968_v54 = vsub.f32 %v15894_v32, %v21481_v13  ;;  %21482 = vst [vmem:[#allocation136_spill] sm:$0xff] %v15940_v30  ;;  %v256_v32 = vld [vmem:[%s15002_s28 + $0x1f8] sm:$0xff]  ;;  %21488 = vst [vmem:[#allocation140_spill] sm:$0xff] %v15963_v2 }
  0xb3   : > { %21476 = vst [vmem:[#allocation132_spill] sm:$0xff] %v15919_v58  ;;  %13771 = vmatprep.mubr.f32.mxu1 %v15757_v19  ;;  %21480 = vst [vmem:[#allocation135_spill] sm:$0xff] %v15933_v60  ;;  %v949_v19 = vand.u32 4294901760, %v948_v50  ;;  %v15968_v13 = vand.u32 4294901760, %v256_v32 }
  0xb4   : > { %21478 = vst [vmem:[#allocation133_spill] sm:$0xff] %v15926_v62  ;;  %v959_v22 = vand.u32 4294901760, %v958_v59  ;;  %v15946_v49 = vsub.f32 %v252_v51, %v15926_v62  ;;  %v21486_v59 = vand.u32 4294901760, %v15919_v58 }
  0xb5   : > { %13554 = vmatmul.mubr.f32.gmra.mxu0 %v919_v42  ;;  %21489 = vst [vmem:[#allocation141_spill] sm:$0xff] %v15968_v13 }
  0xb6   : > { %13772 = vmatmul.mubr.f32.gmra.mxu1 %v15773_v61  ;;  %13556 = vmatprep.mubr.f32.mxu0 %v929_v57  ;;  %21483 = vst [vmem:[#allocation137_spill] sm:$0xff] %v15946_v49  ;;  %v21484_v57 = vand.u32 4294901760, %v15906_v12  ;;  %v15953_v61 = vand.u32 4294901760, %v254_v20  ;;  %v988_v51 = vsub.f32 %v15919_v58, %v21486_v59 }
  0xb7   : > { %13774 = vmatprep.mubr.f32.mxu1 %v15783_v36  ;;  %v969_v36 = vand.u32 4294901760, %v968_v54  ;;  %v21490_v54 = vand.u32 4294901760, %v15930_v23 }
  0xb8   : > { %v978_v50 = vsub.f32 %v15906_v12, %v21484_v57  ;;  %21485 = vst [vmem:[#allocation138_spill] sm:$0xff] %v15953_v61  ;;  %v257_v57 = vld [vmem:[%s15002_s28 + $0x200] sm:$0xff]  ;;  %v15977_v58 = vsub.f32 %v254_v20, %v15953_v61  ;;  %v989_v42 = vand.u32 4294901760, %v988_v51 }
  0xb9   : > { %13557 = vmatmul.mubr.f32.gmra.mxu0 %v939_v0  ;;  %v15961_v0 = vsub.f32 %v253_v40, %v15940_v30  ;;  %v998_v59 = vsub.f32 %v15930_v23, %v21490_v54  ;;  %v21491_v40 = vand.u32 4294901760, %v15933_v60  ;;  %v258_v54 = vld [vmem:[%s15002_s28 + $0x208] sm:$0xff]  ;;  %v259_v23 = vld [vmem:[%s15002_s28 + $0x210] sm:$0xff] }
  0xba   : > { %13775 = vmatmul.mubr.f32.gmra.mxu1 %v15801_v31  ;;  %13559 = vmatprep.mubr.f32.mxu0 %v949_v19  ;;  %v979_v19 = vand.u32 4294901760, %v978_v50  ;;  %21492 = vst [vmem:[#allocation142_spill] sm:$0xff] %v15977_v58  ;;  %v15984_v50 = vand.u32 4294901760, %v257_v57 }
  0xbb   : > { %21487 = vst [vmem:[#allocation139_spill] sm:$0xff] %v15961_v0  ;;  %13777 = vmatprep.mubr.f32.mxu1 %v15808_v1  ;;  %v1008_v31 = vsub.f32 %v15933_v60, %v21491_v40  ;;  %v21495_v40 = vand.u32 4294901760, %v15946_v49  ;;  %v15998_v1 = vand.u32 4294901760, %v259_v23  ;;  %v260_v60 = vld [vmem:[%s15002_s28 + $0x218] sm:$0xff]  ;;  %v21499_v12 = vand.u32 4294901760, %v15961_v0 }
  0xbc   : > { %21494 = vst [vmem:[#allocation144_spill] sm:$0xff] %v15984_v50 }
  0xbd   : > { %13560 = vmatmul.mubr.f32.gmra.mxu0 %v959_v22  ;;  %v15982_v22 = vsub.f32 %v255_v18, %v15963_v2  ;;  %v1018_v20 = vsub.f32 %v15946_v49, %v21495_v40  ;;  %v15996_v18 = vand.u32 4294901760, %v258_v54  ;;  %21498 = vst [vmem:[#allocation147_spill] sm:$0xff] %v15998_v1  ;;  %v1028_v40 = vsub.f32 %v15961_v0, %v21499_v12  ;;  %v262_v0 = vld [vmem:[%s15002_s28 + $0x228] sm:$0xff] }
  0xbe   : > { %13778 = vmatmul.mubr.f32.gmra.mxu1 %v15820_v56  ;;  %13562 = vmatprep.mubr.f32.mxu0 %v969_v36  ;;  %v15993_v56 = vsub.f32 %v256_v32, %v15968_v13  ;;  %v999_v36 = vand.u32 4294901760, %v998_v59  ;;  %v261_v59 = vld [vmem:[%s15002_s28 + $0x220] sm:$0xff]  ;;  %v16012_v49 = vand.u32 4294901760, %v260_v60 }
  0xbf   : > { %21493 = vst [vmem:[#allocation143_spill] sm:$0xff] %v15982_v22  ;;  %13780 = vmatprep.mubr.f32.mxu1 %v15822_v26  ;;  %21497 = vst [vmem:[#allocation146_spill] sm:$0xff] %v15996_v18  ;;  %v1009_v26 = vand.u32 4294901760, %v1008_v31  ;;  %v1019_v31 = vand.u32 4294901760, %v1018_v20  ;;  %v16018_v32 = vsub.f32 %v258_v54, %v15996_v18  ;;  %v21505_v51 = vand.u32 4294901760, %v15982_v22  ;;  %v263_v54 = vld [vmem:[%s15002_s28 + $0x230] sm:$0xff] }
  0xc0   : > { %21496 = vst [vmem:[#allocation145_spill] sm:$0xff] %v15993_v56  ;;  %21501 = vst [vmem:[#allocation149_spill] sm:$0xff] %v16012_v49  ;;  %v265_v20 = vld [vmem:[%s15002_s28 + $0x240] sm:$0xff] }
  0xc1   : > { %13563 = vmatmul.mubr.f32.gmra.mxu0 %v979_v19  ;;  %v16007_v19 = vsub.f32 %v257_v57, %v15984_v50  ;;  %21503 = vst [vmem:[#allocation150_spill] sm:$0xff] %v16018_v32  ;;  %v16021_v57 = vsub.f32 %v259_v23, %v15998_v1  ;;  %v21507_v23 = vand.u32 4294901760, %v15993_v56 }
  0xc2   : > { %13781 = vmatmul.mubr.f32.gmra.mxu1 %v15835_v21  ;;  %13565 = vmatprep.mubr.f32.mxu0 %v989_v42  ;;  %v21502_v42 = vand.u32 4294901760, %v15977_v58  ;;  %v1048_v21 = vsub.f32 %v15982_v22, %v21505_v51 }
  0xc3   : > { %21500 = vst [vmem:[#allocation148_spill] sm:$0xff] %v16007_v19  ;;  %13783 = vmatprep.mubr.f32.mxu1 %v15853_v63  ;;  %21504 = vst [vmem:[#allocation151_spill] sm:$0xff] %v16021_v57  ;;  %v1029_v63 = vand.u32 4294901760, %v1028_v40  ;;  %v21510_v22 = vand.u32 4294901760, %v16007_v19 }
  0xc4   : > { %v1038_v12 = vsub.f32 %v15977_v58, %v21502_v42  ;;  %v1058_v42 = vsub.f32 %v15993_v56, %v21507_v23 }
  0xc5   : > { %13566 = vmatmul.mubr.f32.gmra.mxu0 %v999_v36  ;;  %v16028_v36 = vand.u32 4294901760, %v261_v59  ;;  %v1068_v23 = vsub.f32 %v16007_v19, %v21510_v22  ;;  %v21514_v22 = vand.u32 4294901760, %v16021_v57 }
  0xc6   : > { %13784 = vmatmul.mubr.f32.gmra.mxu1 %v15860_v8  ;;  %13568 = vmatprep.mubr.f32.mxu0 %v1009_v26  ;;  %v16037_v26 = vsub.f32 %v260_v60, %v16012_v49  ;;  %v1039_v40 = vand.u32 4294901760, %v1038_v12  ;;  %v16041_v8 = vand.u32 4294901760, %v262_v0  ;;  %v264_v12 = vld [vmem:[%s15002_s28 + $0x238] sm:$0xff]  ;;  %v1059_v51 = vand.u32 4294901760, %v1058_v42 }
  0xc7   : > { %21506 = vst [vmem:[#allocation152_spill] sm:$0xff] %v16028_v36  ;;  %13786 = vmatprep.mubr.f32.mxu1 %v15874_v52  ;;  %v1049_v52 = vand.u32 4294901760, %v1048_v21  ;;  %v16048_v60 = vsub.f32 %v261_v59, %v16028_v36  ;;  %v21513_v21 = vand.u32 4294901760, %v16018_v32  ;;  %v1088_v59 = vsub.f32 %v16021_v57, %v21514_v22 }
  0xc8   : > { %21508 = vst [vmem:[#allocation153_spill] sm:$0xff] %v16037_v26  ;;  %21509 = vst [vmem:[#allocation154_spill] sm:$0xff] %v16041_v8  ;;  %v16063_v19 = vsub.f32 %v262_v0, %v16041_v8  ;;  %v16065_v56 = vand.u32 4294901760, %v264_v12  ;;  %v1069_v42 = vand.u32 4294901760, %v1068_v23  ;;  %v21519_v0 = vand.u32 4294901760, %v16037_v26 }
  0xc9   : > { %13569 = vmatmul.mubr.f32.gmra.mxu0 %v1019_v31  ;;  %21511 = vst [vmem:[#allocation155_spill] sm:$0xff] %v16048_v60  ;;  %v16050_v31 = vand.u32 4294901760, %v263_v54  ;;  %v21523_v58 = vand.u32 4294901760, %v16048_v60 }
  0xca   : > { %13787 = vmatmul.mubr.f32.gmra.mxu1 %v15889_v17  ;;  %13571 = vmatprep.mubr.f32.mxu0 %v1029_v63  ;;  %v1078_v63 = vsub.f32 %v16018_v32, %v21513_v21  ;;  %21515 = vst [vmem:[#allocation157_spill] sm:$0xff] %v16063_v19  ;;  %21516 = vst [vmem:[#allocation158_spill] sm:$0xff] %v16065_v56  ;;  %v16073_v21 = vand.u32 4294901760, %v265_v20  ;;  %v267_v32 = vld [vmem:[%s15002_s28 + $0x250] sm:$0xff]  ;;  %v1098_v22 = vsub.f32 %v16037_v26, %v21519_v0 }
  0xcb   : > { %21512 = vst [vmem:[#allocation156_spill] sm:$0xff] %v16050_v31  ;;  %13789 = vmatprep.mubr.f32.mxu1 %v15896_v53  ;;  %v266_v53 = vld [vmem:[%s15002_s28 + $0x248] sm:$0xff]  ;;  %v16071_v17 = vsub.f32 %v263_v54, %v16050_v31  ;;  %v16086_v54 = vand.u32 4294901760, %v267_v32  ;;  %v1108_v0 = vsub.f32 %v16048_v60, %v21523_v58 }
  0xcc   : > { %21518 = vst [vmem:[#allocation160_spill] sm:$0xff] %v16073_v21  ;;  %v16080_v57 = vand.u32 4294901760, %v266_v53  ;;  %v270_v60 = vld [vmem:[%s15002_s28 + $0x268] sm:$0xff] }
  0xcd   : > { %13572 = vmatmul.mubr.f32.gmra.mxu0 %v1039_v40  ;;  %21517 = vst [vmem:[#allocation159_spill] sm:$0xff] %v16071_v17  ;;  %v16084_v40 = vsub.f32 %v264_v12, %v16065_v56  ;;  %21522 = vst [vmem:[#allocation163_spill] sm:$0xff] %v16086_v54  ;;  %v269_v12 = vld [vmem:[%s15002_s28 + $0x260] sm:$0xff] }
  0xce   : > { %13790 = vmatmul.mubr.f32.gmra.mxu1 %v15908_v6  ;;  %13574 = vmatprep.mubr.f32.mxu0 %v1049_v52  ;;  %21520 = vst [vmem:[#allocation161_spill] sm:$0xff] %v16080_v57  ;;  %v1079_v52 = vand.u32 4294901760, %v1078_v63  ;;  %v268_v6 = vld [vmem:[%s15002_s28 + $0x258] sm:$0xff]  ;;  %v16100_v63 = vsub.f32 %v266_v53, %v16080_v57  ;;  %v21529_v53 = vand.u32 4294901760, %v16071_v17 }
  0xcf   : > { %13792 = vmatprep.mubr.f32.mxu1 %v15910_v15  ;;  %21521 = vst [vmem:[#allocation162_spill] sm:$0xff] %v16084_v40  ;;  %v1089_v15 = vand.u32 4294901760, %v1088_v59  ;;  %v16102_v23 = vand.u32 4294901760, %v268_v6  ;;  %v1099_v59 = vand.u32 4294901760, %v1098_v22  ;;  %v16116_v22 = vand.u32 4294901760, %v269_v12 }
  0xd0   : > { %21525 = vst [vmem:[#allocation165_spill] sm:$0xff] %v16100_v63 }
  0xd1   : > { %13575 = vmatmul.mubr.f32.gmra.mxu0 %v1059_v51  ;;  %v16095_v51 = vsub.f32 %v265_v20, %v16073_v21  ;;  %21526 = vst [vmem:[#allocation166_spill] sm:$0xff] %v16102_v23  ;;  %v16109_v20 = vsub.f32 %v267_v32, %v16086_v54  ;;  %21530 = vst [vmem:[#allocation168_spill] sm:$0xff] %v16116_v22  ;;  %v16123_v26 = vsub.f32 %v268_v6, %v16102_v23 }
  0xd2   : > { %13793 = vmatmul.mubr.f32.gmra.mxu1 %v15926_v62  ;;  %13577 = vmatprep.mubr.f32.mxu0 %v1069_v42  ;;  %v21527_v42 = vand.u32 4294901760, %v16063_v19  ;;  %v1128_v62 = vsub.f32 %v16071_v17, %v21529_v53  ;;  %v16136_v6 = vsub.f32 %v269_v12, %v16116_v22 }
  0xd3   : > { %21524 = vst [vmem:[#allocation164_spill] sm:$0xff] %v16095_v51  ;;  %13795 = vmatprep.mubr.f32.mxu1 %v15940_v30  ;;  %21528 = vst [vmem:[#allocation167_spill] sm:$0xff] %v16109_v20  ;;  %v1109_v30 = vand.u32 4294901760, %v1108_v0  ;;  %v21532_v0 = vand.u32 4294901760, %v16084_v40  ;;  %v21534_v17 = vand.u32 4294901760, %v16095_v51 }
  0xd4   : > { %v1118_v58 = vsub.f32 %v16063_v19, %v21527_v42  ;;  %v271_v42 = vld [vmem:[%s15002_s28 + $0x270] sm:$0xff]  ;;  %21531 = vst [vmem:[#allocation169_spill] sm:$0xff] %v16123_v26  ;;  %21535 = vst [vmem:[#allocation171_spill] sm:$0xff] %v16136_v6 }
  0xd5   : > { %13578 = vmatmul.mubr.f32.gmra.mxu0 %v1079_v52  ;;  %v1138_v53 = vsub.f32 %v16084_v40, %v21532_v0  ;;  %v1148_v32 = vsub.f32 %v16095_v51, %v21534_v17  ;;  %v273_v0 = vld [vmem:[%s15002_s28 + $0x280] sm:$0xff]  ;;  %v21537_v52 = vand.u32 4294901760, %v16100_v63  ;;  %v21538_v17 = vand.u32 4294901760, %v16109_v20 }
  0xd6   : > { %13796 = vmatmul.mubr.f32.gmra.mxu1 %v15953_v61  ;;  %13580 = vmatprep.mubr.f32.mxu0 %v1089_v15  ;;  %v1119_v15 = vand.u32 4294901760, %v1118_v58  ;;  %v16129_v61 = vand.u32 4294901760, %v270_v60  ;;  %v272_v58 = vld [vmem:[%s15002_s28 + $0x278] sm:$0xff] }
  0xd7   : > { %13798 = vmatprep.mubr.f32.mxu1 %v15963_v2  ;;  %v1129_v2 = vand.u32 4294901760, %v1128_v62  ;;  %v1168_v12 = vsub.f32 %v16109_v20, %v21538_v17  ;;  %v16153_v40 = vand.u32 4294901760, %v272_v58  ;;  %v21543_v17 = vand.u32 4294901760, %v16123_v26  ;;  %v276_v20 = vld [vmem:[%s15002_s28 + $0x298] sm:$0xff] }
  0xd8   : > { %21533 = vst [vmem:[#allocation170_spill] sm:$0xff] %v16129_v61  ;;  %v16151_v51 = vsub.f32 %v270_v60, %v16129_v61  ;;  %v16187_v19 = vand.u32 4294901760, %v276_v20 }
  0xd9   : > { %13581 = vmatmul.mubr.f32.gmra.mxu0 %v1099_v59  ;;  %v16138_v59 = vand.u32 4294901760, %v271_v42  ;;  %21540 = vst [vmem:[#allocation174_spill] sm:$0xff] %v16153_v40 }
  0xda   : > { %13799 = vmatmul.mubr.f32.gmra.mxu1 %v15968_v13  ;;  %13583 = vmatprep.mubr.f32.mxu0 %v1109_v30  ;;  %v1158_v30 = vsub.f32 %v16100_v63, %v21537_v52  ;;  %v1139_v13 = vand.u32 4294901760, %v1138_v53  ;;  %21539 = vst [vmem:[#allocation173_spill] sm:$0xff] %v16151_v51  ;;  %v274_v53 = vld [vmem:[%s15002_s28 + $0x288] sm:$0xff]  ;;  %v275_v63 = vld [vmem:[%s15002_s28 + $0x290] sm:$0xff]  ;;  %21549 = vst [vmem:[#allocation181_spill] sm:$0xff] %v16187_v19 }
  0xdb   : > { %21536 = vst [vmem:[#allocation172_spill] sm:$0xff] %v16138_v59  ;;  %13801 = vmatprep.mubr.f32.mxu1 %v15984_v50  ;;  %v1149_v50 = vand.u32 4294901760, %v1148_v32  ;;  %v16158_v62 = vsub.f32 %v271_v42, %v16138_v59  ;;  %v16170_v32 = vsub.f32 %v272_v58, %v16153_v40  ;;  %v16172_v42 = vand.u32 4294901760, %v274_v53  ;;  %v277_v58 = vld [vmem:[%s15002_s28 + $0x2a0] sm:$0xff] }
  0xdc   : > { %v1159_v60 = vand.u32 4294901760, %v1158_v30  ;;  %v16174_v52 = vand.u32 4294901760, %v275_v63  ;;  %v1169_v30 = vand.u32 4294901760, %v1168_v12 }
  0xdd   : > { %13584 = vmatmul.mubr.f32.gmra.mxu0 %v1119_v15  ;;  %21541 = vst [vmem:[#allocation175_spill] sm:$0xff] %v16158_v62  ;;  %v16160_v15 = vand.u32 4294901760, %v273_v0  ;;  %21544 = vst [vmem:[#allocation177_spill] sm:$0xff] %v16170_v32 }
  0xde   : > { %13802 = vmatmul.mubr.f32.gmra.mxu1 %v15996_v18  ;;  %13586 = vmatprep.mubr.f32.mxu0 %v1129_v2  ;;  %v1178_v18 = vsub.f32 %v16123_v26, %v21543_v17  ;;  %21545 = vst [vmem:[#allocation178_spill] sm:$0xff] %v16172_v42  ;;  %21546 = vst [vmem:[#allocation179_spill] sm:$0xff] %v16174_v52 }
  0xdf   : > { %21542 = vst [vmem:[#allocation176_spill] sm:$0xff] %v16160_v15  ;;  %13804 = vmatprep.mubr.f32.mxu1 %v15998_v1  ;;  %v21547_v1 = vand.u32 4294901760, %v16136_v6  ;;  %v16183_v2 = vsub.f32 %v273_v0, %v16160_v15  ;;  %v16197_v0 = vsub.f32 %v275_v63, %v16174_v52  ;;  %v16210_v63 = vsub.f32 %v276_v20, %v16187_v19 }
  0xe0   : > { %v1179_v26 = vand.u32 4294901760, %v1178_v18 }
  0xe1   : > { %13587 = vmatmul.mubr.f32.gmra.mxu0 %v1139_v13  ;;  %v1188_v17 = vsub.f32 %v16136_v6, %v21547_v1  ;;  %21548 = vst [vmem:[#allocation180_spill] sm:$0xff] %v16183_v2  ;;  %v16194_v1 = vsub.f32 %v274_v53, %v16172_v42  ;;  %21552 = vst [vmem:[#allocation183_spill] sm:$0xff] %v16197_v0  ;;  %v278_v13 = vld [vmem:[%s15002_s28 + $0x2a8] sm:$0xff]  ;;  %v279_v53 = vld [vmem:[%s15002_s28 + $0x2b0] sm:$0xff] }
  0xe2   : > { %13805 = vmatmul.mubr.f32.gmra.mxu1 %v16012_v49  ;;  %13589 = vmatprep.mubr.f32.mxu0 %v1149_v50  ;;  %v21550_v50 = vand.u32 4294901760, %v16151_v51  ;;  %21555 = vst [vmem:[#allocation185_spill] sm:$0xff] %v16210_v63  ;;  %v16212_v49 = vand.u32 4294901760, %v278_v13 }
  0xe3   : > { %13807 = vmatprep.mubr.f32.mxu1 %v16028_v36  ;;  %21551 = vst [vmem:[#allocation182_spill] sm:$0xff] %v16194_v1  ;;  %v1189_v18 = vand.u32 4294901760, %v1188_v17  ;;  %v21553_v36 = vand.u32 4294901760, %v16158_v62  ;;  %v21557_v17 = vand.u32 4294901760, %v16170_v32  ;;  %v21078_v6 = vand.u32 4294901760, %v16194_v1 }
  0xe4   : > { %v1198_v12 = vsub.f32 %v16151_v51, %v21550_v50  ;;  %v16205_v50 = vand.u32 4294901760, %v277_v58  ;;  %21556 = vst [vmem:[#allocation186_spill] sm:$0xff] %v16212_v49 }
  0xe5   : > { %13590 = vmatmul.mubr.f32.gmra.mxu0 %v1159_v60  ;;  %v1208_v60 = vsub.f32 %v16158_v62, %v21553_v36  ;;  %v1218_v36 = vsub.f32 %v16170_v32, %v21557_v17  ;;  %v21558_v62 = vand.u32 4294901760, %v16183_v2  ;;  %v281_v17 = vld [vmem:[%s15002_s28 + $0x2c0] sm:$0xff] }
  0xe6   : > { %13808 = vmatmul.mubr.f32.gmra.mxu1 %v16041_v8  ;;  %13592 = vmatprep.mubr.f32.mxu0 %v1169_v30  ;;  %21554 = vst [vmem:[#allocation184_spill] sm:$0xff] %v16205_v50  ;;  %v1199_v30 = vand.u32 4294901760, %v1198_v12  ;;  %v16224_v51 = vsub.f32 %v277_v58, %v16205_v50  ;;  %v280_v12 = vld [vmem:[%s15002_s28 + $0x2b8] sm:$0xff]  ;;  %v21562_v58 = vand.u32 4294901760, %v16197_v0 }
  0xe7   : > { %13810 = vmatprep.mubr.f32.mxu1 %v16050_v31  ;;  %v1209_v31 = vand.u32 4294901760, %v1208_v60  ;;  %v1228_v20 = vsub.f32 %v16183_v2, %v21558_v62  ;;  %v1219_v60 = vand.u32 4294901760, %v1218_v36  ;;  %v1238_v62 = vsub.f32 %v16194_v1, %v21078_v6  ;;  %v283_v6 = vld [vmem:[%s15002_s28 + $0x2d0] sm:$0xff]  ;;  %v284_v1 = vld [vmem:[%s15002_s28 + $0x2d8] sm:$0xff] }
  0xe8   : > { %21559 = vst [vmem:[#allocation187_spill] sm:$0xff] %v16224_v51  ;;  %v16241_v2 = vand.u32 4294901760, %v280_v12  ;;  %v16248_v36 = vand.u32 4294901760, %v281_v17  ;;  %v21570_v32 = vand.u32 4294901760, %v16224_v51 }
  0xe9   : > { %13593 = vmatmul.mubr.f32.gmra.mxu0 %v1179_v26  ;;  %v16226_v26 = vand.u32 4294901760, %v279_v53  ;;  %v1229_v8 = vand.u32 4294901760, %v1228_v20 }
  0xea   : > { %13811 = vmatmul.mubr.f32.gmra.mxu1 %v16065_v56  ;;  %13595 = vmatprep.mubr.f32.mxu0 %v1189_v18  ;;  %v16233_v18 = vsub.f32 %v278_v13, %v16212_v49  ;;  %v1248_v56 = vsub.f32 %v16197_v0, %v21562_v58  ;;  %21563 = vst [vmem:[#allocation190_spill] sm:$0xff] %v16241_v2  ;;  %21565 = vst [vmem:[#allocation192_spill] sm:$0xff] %v16248_v36  ;;  %v21566_v58 = vand.u32 4294901760, %v16210_v63 }
  0xeb   : > { %21560 = vst [vmem:[#allocation188_spill] sm:$0xff] %v16226_v26  ;;  %13813 = vmatprep.mubr.f32.mxu1 %v16073_v21  ;;  %v282_v21 = vld [vmem:[%s15002_s28 + $0x2c8] sm:$0xff]  ;;  %v16258_v20 = vsub.f32 %v280_v12, %v16241_v2  ;;  %v16262_v13 = vand.u32 4294901760, %v283_v6  ;;  %v285_v12 = vld [vmem:[%s15002_s28 + $0x2e0] sm:$0xff] }
  0xec   : > { %21561 = vst [vmem:[#allocation189_spill] sm:$0xff] %v16233_v18  ;;  %v1258_v0 = vsub.f32 %v16210_v63, %v21566_v58  ;;  %v1268_v58 = vsub.f32 %v16224_v51, %v21570_v32  ;;  %v286_v32 = vld [vmem:[%s15002_s28 + $0x2e8] sm:$0xff] }
  0xed   : > { %13596 = vmatmul.mubr.f32.gmra.mxu0 %v1199_v30  ;;  %v16246_v30 = vsub.f32 %v279_v53, %v16226_v26  ;;  %21567 = vst [vmem:[#allocation193_spill] sm:$0xff] %v16258_v20  ;;  %v16260_v53 = vand.u32 4294901760, %v282_v21  ;;  %21569 = vst [vmem:[#allocation195_spill] sm:$0xff] %v16262_v13 }
  0xee   : > { %13814 = vmatmul.mubr.f32.gmra.mxu1 %v16080_v57  ;;  %13598 = vmatprep.mubr.f32.mxu0 %v1209_v31  ;;  %v1239_v31 = vand.u32 4294901760, %v1238_v62  ;;  %v21572_v62 = vand.u32 4294901760, %v16233_v18 }
  0xef   : > { %21564 = vst [vmem:[#allocation191_spill] sm:$0xff] %v16246_v30  ;;  %13816 = vmatprep.mubr.f32.mxu1 %v16086_v54  ;;  %21568 = vst [vmem:[#allocation194_spill] sm:$0xff] %v16260_v53  ;;  %v1249_v54 = vand.u32 4294901760, %v1248_v56  ;;  %v1259_v56 = vand.u32 4294901760, %v1258_v0  ;;  %v16282_v57 = vsub.f32 %v282_v21, %v16260_v53  ;;  %v21576_v51 = vand.u32 4294901760, %v16246_v30  ;;  %v287_v21 = vld [vmem:[%s15002_s28 + $0x2f0] sm:$0xff] }
  0xf0   : > { %v16292_v0 = vand.u32 4294901760, %v285_v12  ;;  %v16315_v63 = vand.u32 4294901760, %v287_v21 }
  0xf1   : > { %13599 = vmatmul.mubr.f32.gmra.mxu0 %v1219_v60  ;;  %v16271_v60 = vsub.f32 %v281_v17, %v16248_v36  ;;  %21574 = vst [vmem:[#allocation198_spill] sm:$0xff] %v16282_v57  ;;  %v16285_v17 = vsub.f32 %v283_v6, %v16262_v13 }
  0xf2   : > { %13817 = vmatmul.mubr.f32.gmra.mxu1 %v16102_v23  ;;  %13601 = vmatprep.mubr.f32.mxu0 %v1229_v8  ;;  %v1278_v23 = vsub.f32 %v16233_v18, %v21572_v62  ;;  %v16278_v8 = vand.u32 4294901760, %v284_v1  ;;  %v1288_v62 = vsub.f32 %v16246_v30, %v21576_v51  ;;  %21577 = vst [vmem:[#allocation200_spill] sm:$0xff] %v16292_v0  ;;  %v288_v30 = vld [vmem:[%s15002_s28 + $0x2f8] sm:$0xff]  ;;  %21583 = vst [vmem:[#allocation204_spill] sm:$0xff] %v16315_v63 }
  0xf3   : > { %21571 = vst [vmem:[#allocation196_spill] sm:$0xff] %v16271_v60  ;;  %13819 = vmatprep.mubr.f32.mxu1 %v16116_v22  ;;  %21575 = vst [vmem:[#allocation199_spill] sm:$0xff] %v16285_v17  ;;  %v1269_v22 = vand.u32 4294901760, %v1268_v58  ;;  %v16320_v51 = vand.u32 4294901760, %v288_v30 }
  0xf4   : > { %21573 = vst [vmem:[#allocation197_spill] sm:$0xff] %v16278_v8  ;;  %v1279_v6 = vand.u32 4294901760, %v1278_v23  ;;  %v16298_v18 = vsub.f32 %v284_v1, %v16278_v8  ;;  %v21581_v23 = vand.u32 4294901760, %v16271_v60 }
  0xf5   : > { %13602 = vmatmul.mubr.f32.gmra.mxu0 %v1239_v31  ;;  %21584 = vst [vmem:[#allocation205_spill] sm:$0xff] %v16320_v51 }
  0xf6   : > { %13820 = vmatmul.mubr.f32.gmra.mxu1 %v16129_v61  ;;  %13604 = vmatprep.mubr.f32.mxu0 %v1249_v54  ;;  %21578 = vst [vmem:[#allocation201_spill] sm:$0xff] %v16298_v18  ;;  %v21579_v54 = vand.u32 4294901760, %v16258_v20  ;;  %v16305_v61 = vand.u32 4294901760, %v286_v32  ;;  %v1308_v1 = vsub.f32 %v16271_v60, %v21581_v23 }
  0xf7   : > { %13822 = vmatprep.mubr.f32.mxu1 %v16138_v59  ;;  %v1289_v59 = vand.u32 4294901760, %v1288_v62  ;;  %v21585_v62 = vand.u32 4294901760, %v16282_v57 }
  0xf8   : > { %v1298_v58 = vsub.f32 %v16258_v20, %v21579_v54  ;;  %21580 = vst [vmem:[#allocation202_spill] sm:$0xff] %v16305_v61  ;;  %v289_v54 = vld [vmem:[%s15002_s28 + $0x300] sm:$0xff]  ;;  %v16329_v60 = vsub.f32 %v286_v32, %v16305_v61  ;;  %v1309_v31 = vand.u32 4294901760, %v1308_v1 }
  0xf9   : > { %13605 = vmatmul.mubr.f32.gmra.mxu0 %v1259_v56  ;;  %v16313_v56 = vsub.f32 %v285_v12, %v16292_v0  ;;  %v1318_v23 = vsub.f32 %v16282_v57, %v21585_v62  ;;  %v21586_v12 = vand.u32 4294901760, %v16285_v17  ;;  %v290_v62 = vld [vmem:[%s15002_s28 + $0x308] sm:$0xff]  ;;  %v291_v57 = vld [vmem:[%s15002_s28 + $0x310] sm:$0xff] }
  0xfa   : > { %13823 = vmatmul.mubr.f32.gmra.mxu1 %v16153_v40  ;;  %13607 = vmatprep.mubr.f32.mxu0 %v1269_v22  ;;  %v1299_v22 = vand.u32 4294901760, %v1298_v58  ;;  %21587 = vst [vmem:[#allocation206_spill] sm:$0xff] %v16329_v60  ;;  %v16336_v58 = vand.u32 4294901760, %v289_v54 }
  0xfb   : > { %21582 = vst [vmem:[#allocation203_spill] sm:$0xff] %v16313_v56  ;;  %13825 = vmatprep.mubr.f32.mxu1 %v16160_v15  ;;  %v1328_v40 = vsub.f32 %v16285_v17, %v21586_v12  ;;  %v21590_v12 = vand.u32 4294901760, %v16298_v18  ;;  %v16350_v15 = vand.u32 4294901760, %v291_v57  ;;  %v292_v17 = vld [vmem:[%s15002_s28 + $0x318] sm:$0xff]  ;;  %v21594_v20 = vand.u32 4294901760, %v16313_v56 }
  0xfc   : > { %21589 = vst [vmem:[#allocation208_spill] sm:$0xff] %v16336_v58 }
  0xfd   : > { %13608 = vmatmul.mubr.f32.gmra.mxu0 %v1279_v6  ;;  %v16334_v6 = vsub.f32 %v287_v21, %v16315_v63  ;;  %v1338_v32 = vsub.f32 %v16298_v18, %v21590_v12  ;;  %v16348_v21 = vand.u32 4294901760, %v290_v62  ;;  %21593 = vst [vmem:[#allocation211_spill] sm:$0xff] %v16350_v15  ;;  %v1348_v12 = vsub.f32 %v16313_v56, %v21594_v20  ;;  %v294_v56 = vld [vmem:[%s15002_s28 + $0x328] sm:$0xff] }
  0xfe   : > { %13826 = vmatmul.mubr.f32.gmra.mxu1 %v16172_v42  ;;  %13610 = vmatprep.mubr.f32.mxu0 %v1289_v59  ;;  %v16345_v42 = vsub.f32 %v288_v30, %v16320_v51  ;;  %v1319_v59 = vand.u32 4294901760, %v1318_v23  ;;  %v293_v23 = vld [vmem:[%s15002_s28 + $0x320] sm:$0xff]  ;;  %v16364_v18 = vand.u32 4294901760, %v292_v17 }
  0xff   : > { %21588 = vst [vmem:[#allocation207_spill] sm:$0xff] %v16334_v6  ;;  %13828 = vmatprep.mubr.f32.mxu1 %v16174_v52  ;;  %21592 = vst [vmem:[#allocation210_spill] sm:$0xff] %v16348_v21  ;;  %v1329_v52 = vand.u32 4294901760, %v1328_v40  ;;  %v1339_v40 = vand.u32 4294901760, %v1338_v32  ;;  %v16370_v30 = vsub.f32 %v290_v62, %v16348_v21  ;;  %v21600_v1 = vand.u32 4294901760, %v16334_v6  ;;  %v295_v62 = vld [vmem:[%s15002_s28 + $0x330] sm:$0xff] }
 0x100   : > { %21591 = vst [vmem:[#allocation209_spill] sm:$0xff] %v16345_v42  ;;  %21596 = vst [vmem:[#allocation213_spill] sm:$0xff] %v16364_v18  ;;  %v297_v32 = vld [vmem:[%s15002_s28 + $0x340] sm:$0xff] }
 0x101   : > { %13611 = vmatmul.mubr.f32.gmra.mxu0 %v1299_v22  ;;  %v16359_v22 = vsub.f32 %v289_v54, %v16336_v58  ;;  %21598 = vst [vmem:[#allocation214_spill] sm:$0xff] %v16370_v30  ;;  %v16373_v54 = vsub.f32 %v291_v57, %v16350_v15  ;;  %v21602_v57 = vand.u32 4294901760, %v16345_v42 }
 0x102   : > { %13829 = vmatmul.mubr.f32.gmra.mxu1 %v16187_v19  ;;  %13613 = vmatprep.mubr.f32.mxu0 %v1309_v31  ;;  %v21597_v31 = vand.u32 4294901760, %v16329_v60  ;;  %v1368_v19 = vsub.f32 %v16334_v6, %v21600_v1 }
 0x103   : > { %21595 = vst [vmem:[#allocation212_spill] sm:$0xff] %v16359_v22  ;;  %13831 = vmatprep.mubr.f32.mxu1 %v16205_v50  ;;  %21599 = vst [vmem:[#allocation215_spill] sm:$0xff] %v16373_v54  ;;  %v1349_v50 = vand.u32 4294901760, %v1348_v12  ;;  %v21605_v6 = vand.u32 4294901760, %v16359_v22 }
 0x104   : > { %v1358_v20 = vsub.f32 %v16329_v60, %v21597_v31  ;;  %v1378_v31 = vsub.f32 %v16345_v42, %v21602_v57 }
 0x105   : > { %13614 = vmatmul.mubr.f32.gmra.mxu0 %v1319_v59  ;;  %v16380_v59 = vand.u32 4294901760, %v293_v23  ;;  %v1388_v57 = vsub.f32 %v16359_v22, %v21605_v6  ;;  %v21609_v6 = vand.u32 4294901760, %v16373_v54 }
 0x106   : > { %13832 = vmatmul.mubr.f32.gmra.mxu1 %v16212_v49  ;;  %13616 = vmatprep.mubr.f32.mxu0 %v1329_v52  ;;  %v16389_v52 = vsub.f32 %v292_v17, %v16364_v18  ;;  %v1359_v12 = vand.u32 4294901760, %v1358_v20  ;;  %v16393_v49 = vand.u32 4294901760, %v294_v56  ;;  %v296_v20 = vld [vmem:[%s15002_s28 + $0x338] sm:$0xff]  ;;  %v1379_v1 = vand.u32 4294901760, %v1378_v31 }
 0x107   : > { %21601 = vst [vmem:[#allocation216_spill] sm:$0xff] %v16380_v59  ;;  %13834 = vmatprep.mubr.f32.mxu1 %v16226_v26  ;;  %v1369_v26 = vand.u32 4294901760, %v1368_v19  ;;  %v16400_v17 = vsub.f32 %v293_v23, %v16380_v59  ;;  %v21608_v19 = vand.u32 4294901760, %v16370_v30  ;;  %v1408_v23 = vsub.f32 %v16373_v54, %v21609_v6 }
 0x108   : > { %21603 = vst [vmem:[#allocation217_spill] sm:$0xff] %v16389_v52  ;;  %21604 = vst [vmem:[#allocation218_spill] sm:$0xff] %v16393_v49  ;;  %v16415_v22 = vsub.f32 %v294_v56, %v16393_v49  ;;  %v16417_v42 = vand.u32 4294901760, %v296_v20  ;;  %v1389_v31 = vand.u32 4294901760, %v1388_v57  ;;  %v299_v56 = vld [vmem:[%s15002_s28 + $0x350] sm:$0xff]  ;;  %v21614_v6 = vand.u32 4294901760, %v16389_v52 }
 0x109   : > { %13617 = vmatmul.mubr.f32.gmra.mxu0 %v1339_v40  ;;  %21606 = vst [vmem:[#allocation219_spill] sm:$0xff] %v16400_v17  ;;  %v16402_v40 = vand.u32 4294901760, %v295_v62  ;;  %v1409_v57 = vand.u32 4294901760, %v1408_v23  ;;  %v301_v23 = vld [vmem:[%s15002_s28 + $0x360] sm:$0xff] }
 0x10a   : > { %13835 = vmatmul.mubr.f32.gmra.mxu1 %v16241_v2  ;;  %13619 = vmatprep.mubr.f32.mxu0 %v1349_v50  ;;  %v1398_v50 = vsub.f32 %v16370_v30, %v21608_v19  ;;  %21610 = vst [vmem:[#allocation221_spill] sm:$0xff] %v16415_v22  ;;  %21611 = vst [vmem:[#allocation222_spill] sm:$0xff] %v16417_v42  ;;  %v16425_v19 = vand.u32 4294901760, %v297_v32  ;;  %v1418_v54 = vsub.f32 %v16389_v52, %v21614_v6  ;;  %v302_v52 = vld [vmem:[%s15002_s28 + $0x368] sm:$0xff] }
 0x10b   : > { %21607 = vst [vmem:[#allocation220_spill] sm:$0xff] %v16402_v40  ;;  %13837 = vmatprep.mubr.f32.mxu1 %v16248_v36  ;;  %v298_v36 = vld [vmem:[%s15002_s28 + $0x348] sm:$0xff]  ;;  %v16423_v2 = vsub.f32 %v295_v62, %v16402_v40  ;;  %v16436_v62 = vsub.f32 %v296_v20, %v16417_v42 }
 0x10c   : > { %21613 = vst [vmem:[#allocation224_spill] sm:$0xff] %v16425_v19  ;;  %v16432_v30 = vand.u32 4294901760, %v298_v36 }
 0x10d   : > { %13620 = vmatmul.mubr.f32.gmra.mxu0 %v1359_v12  ;;  %21612 = vst [vmem:[#allocation223_spill] sm:$0xff] %v16423_v2  ;;  %21616 = vst [vmem:[#allocation226_spill] sm:$0xff] %v16436_v62 }
 0x10e   : > { %13838 = vmatmul.mubr.f32.gmra.mxu1 %v16260_v53  ;;  %13622 = vmatprep.mubr.f32.mxu0 %v1369_v26  ;;  %21615 = vst [vmem:[#allocation225_spill] sm:$0xff] %v16432_v30  ;;  %v1399_v26 = vand.u32 4294901760, %v1398_v50  ;;  %v300_v53 = vld [vmem:[%s15002_s28 + $0x358] sm:$0xff]  ;;  %v16447_v50 = vand.u32 4294901760, %v299_v56  ;;  %v16452_v20 = vsub.f32 %v298_v36, %v16432_v30 }
 0x10f   : > { %13840 = vmatprep.mubr.f32.mxu1 %v16262_v13  ;;  %v21617_v13 = vand.u32 4294901760, %v16400_v17  ;;  %v16454_v12 = vand.u32 4294901760, %v300_v53 }
 0x110   : > { %21619 = vst [vmem:[#allocation228_spill] sm:$0xff] %v16447_v50  ;;  %21620 = vst [vmem:[#allocation229_spill] sm:$0xff] %v16452_v20 }
 0x111   : > { %13623 = vmatmul.mubr.f32.gmra.mxu0 %v1379_v1  ;;  %v1428_v60 = vsub.f32 %v16400_v17, %v21617_v13  ;;  %v16445_v1 = vsub.f32 %v297_v32, %v16425_v19  ;;  %21621 = vst [vmem:[#allocation230_spill] sm:$0xff] %v16454_v12  ;;  %v21622_v13 = vand.u32 4294901760, %v16415_v22  ;;  %v16460_v17 = vand.u32 4294901760, %v301_v23  ;;  %v16476_v32 = vld [vmem:[%s20744_s2] ss:$0 sm:$0xff] }
 0x112   : > { %13841 = vmatmul.mubr.f32.gmra.mxu1 %v16278_v8  ;;  %13625 = vmatprep.mubr.f32.mxu0 %v1389_v31  ;;  %v1419_v8 = vand.u32 4294901760, %v1418_v54  ;;  %v16469_v54 = vsub.f32 %v299_v56, %v16447_v50 }
 0x113   : > { %21618 = vst [vmem:[#allocation227_spill] sm:$0xff] %v16445_v1  ;;  %13843 = vmatprep.mubr.f32.mxu1 %v16292_v0  ;;  %v1438_v6 = vsub.f32 %v16415_v22, %v21622_v13  ;;  %21623 = vst [vmem:[#allocation231_spill] sm:$0xff] %v16460_v17  ;;  %v1429_v36 = vand.u32 4294901760, %v1428_v60  ;;  %v21624_v0 = vand.u32 4294901760, %v16423_v2  ;;  %v303_v13 = vld [vmem:[%s15002_s28 + $0x370] sm:$0xff] }
 0x114   : > { %21625 = vst [vmem:[#allocation232_spill] sm:$0xff] %v16469_v54  ;;  %v16495_v29 = vand.u32 4294901760, %v303_v13 }
 0x115   : > { %v13483_v31 = vpop.f32.mrf.mxu0  ;;  %13626 = vmatmul.mubr.f32.gmra.mxu0 %v1399_v26  ;;  %v1448_v14 = vsub.f32 %v16423_v2, %v21624_v0  ;;  %v16482_v0 = vand.u32 4294901760, %v302_v52  ;;  %v1439_v26 = vand.u32 4294901760, %v1438_v6  ;;  %v16488_v2 = vsub.f32 %v301_v23, %v16460_v17 }
 0x116   : > { %13844 = vmatmul.mubr.f32.gmra.mxu1 %v16305_v61  ;;  %13628 = vmatprep.mubr.f32.mxu0 %v1409_v57  ;;  %v16480_v57 = vsub.f32 %v300_v53, %v16454_v12  ;;  %v21630_v53 = vand.u32 4294901760, %v16445_v1  ;;  %21631 = vst [vmem:[#allocation236_spill] sm:$0xff] %v16495_v29  ;;  %v442_v6 = vadd.f32 %v13483_v31, %v16476_v32  ;;  %v21632_v23 = vand.u32 4294901760, %v16452_v20 }
 0x117   : > { %v431_v38 = vpop.f32.mrf.mxu0  ;;  %13846 = vmatprep.mubr.f32.mxu1 %v16315_v63  ;;  %21627 = vst [vmem:[#allocation234_spill] sm:$0xff] %v16482_v0  ;;  %v21628_v63 = vand.u32 4294901760, %v16436_v62  ;;  %21629 = vst [vmem:[#allocation235_spill] sm:$0xff] %v16488_v2  ;;  %v1449_v60 = vand.u32 4294901760, %v1448_v14 }
 0x118   : > { %21626 = vst [vmem:[#allocation233_spill] sm:$0xff] %v16480_v57  ;;  %v1468_v22 = vsub.f32 %v16445_v1, %v21630_v53  ;;  %v1478_v14 = vsub.f32 %v16452_v20, %v21632_v23  ;;  %v16506_v53 = vsub.f32 %v302_v52, %v16482_v0  ;;  %v21635_v23 = vand.u32 4294901760, %v16469_v54 }
 0x119   : > { %v13486_v56 = vpop.f32.mrf.mxu0  ;;  %13629 = vmatmul.mubr.f32.gmra.mxu0 %v1419_v8  ;;  %v1458_v61 = vsub.f32 %v16436_v62, %v21628_v63  ;;  %v304_v8 = vld [vmem:[%s15002_s28 + $0x378] sm:$0xff]  ;;  %v305_v63 = vld [vmem:[%s15002_s28 + $0x380] sm:$0xff]  ;;  %v16516_v52 = vsub.f32 %v303_v13, %v16495_v29 }
 0x11a   : > { %13847 = vmatmul.mubr.f32.gmra.mxu1 %v16320_v51  ;;  %13631 = vmatprep.mubr.f32.mxu0 %v1429_v36  ;;  %21633 = vst [vmem:[#allocation237_spill] sm:$0xff] %v16506_v53  ;;  %v16509_v1 = vand.u32 4294901760, %v304_v8  ;;  %v1469_v62 = vand.u32 4294901760, %v1468_v22  ;;  %v1488_v36 = vsub.f32 %v16469_v54, %v21635_v23  ;;  %v16518_v20 = vand.u32 4294901760, %v305_v63  ;;  %v307_v22 = vld [vmem:[%s15002_s28 + $0x390] sm:$0xff] }
 0x11b   : > { %v451_v33 = vpop.f32.mrf.mxu0  ;;  %13849 = vmatprep.mubr.f32.mxu1 %v16336_v58  ;;  %v1459_v51 = vand.u32 4294901760, %v1458_v61  ;;  %21636 = vst [vmem:[#allocation239_spill] sm:$0xff] %v16516_v52  ;;  %v306_v61 = vld [vmem:[%s15002_s28 + $0x388] sm:$0xff]  ;;  %v462_v31 = vadd.f32 %v13486_v56, %v16476_v32  ;;  %v1479_v7 = vand.u32 4294901760, %v1478_v14  ;;  %v21639_v23 = vand.u32 4294901760, %v16480_v57  ;;  %v308_v14 = vld [vmem:[%s15002_s28 + $0x398] sm:$0xff] }
 0x11c   : > { %21634 = vst [vmem:[#allocation238_spill] sm:$0xff] %v16509_v1  ;;  %21637 = vst [vmem:[#allocation240_spill] sm:$0xff] %v16518_v20  ;;  %v21641_v56 = vand.u32 4294901760, %v16488_v2 }
 0x11d   : > { %v13489_v47 = vpop.f32.mrf.mxu0  ;;  %13632 = vmatmul.mubr.f32.gmra.mxu0 %v1439_v26  ;;  %v432_v26 = vadd.f32 %v16476_v32, %v431_v38  ;;  %v1498_v13 = vsub.f32 %v16480_v57, %v21639_v23  ;;  %v1489_v23 = vand.u32 4294901760, %v1488_v36  ;;  %v16558_v57 = vand.u32 4294901760, %v308_v14 }
 0x11e   : > { %v13707_v58 = vpop.f32.mrf.mxu1  ;;  %13850 = vmatmul.mubr.f32.gmra.mxu1 %v16348_v21  ;;  %13634 = vmatprep.mubr.f32.mxu0 %v1449_v60 }
 0x11f   : > { %v16523_v45 = vadd.f32 %v13707_v58, %v442_v6  ;;  %v471_v21 = vpop.f32.mrf.mxu0  ;;  %13852 = vmatprep.mubr.f32.mxu1 %v16350_v15  ;;  %v1508_v58 = vsub.f32 %v16488_v2, %v21641_v56  ;;  %v16537_v6 = vsub.f32 %v304_v8, %v16509_v1  ;;  %v16539_v15 = vand.u32 4294901760, %v306_v61  ;;  %21648 = vst [vmem:[#allocation248_spill] sm:$0xff] %v16558_v57 }
 0x120   : > { %v1852_v60 = vpop.f32.mrf.mxu1  ;;  %v452_v56 = vadd.f32 %v16476_v32, %v451_v33  ;;  %v482_v8 = vadd.f32 %v13489_v47, %v16476_v32  ;;  %v1499_v36 = vand.u32 4294901760, %v1498_v13  ;;  %v21651_v13 = vand.u32 4294901760, %v16516_v52 }
 0x121   : > { %21638 = vst [vmem:[#allocation241_spill] sm:$0xff] %v16523_v45  ;;  %v16531_v34 = vadd.f32 %v1852_v60, %v432_v26  ;;  %v13492_v38 = vpop.f32.mrf.mxu0  ;;  %13635 = vmatmul.mubr.f32.gmra.mxu0 %v1459_v51  ;;  %21642 = vst [vmem:[#allocation243_spill] sm:$0xff] %v16537_v6  ;;  %v16545_v51 = vsub.f32 %v305_v63, %v16518_v20  ;;  %v16547_v60 = vand.u32 4294901760, %v307_v22  ;;  %v21647_v26 = vand.u32 4294901760, %v16506_v53 }
 0x122   : > { %21643 = vst [vmem:[#allocation244_spill] sm:$0xff] %v16539_v15  ;;  %v13710_v45 = vpop.f32.mrf.mxu1  ;;  %13853 = vmatmul.mubr.f32.gmra.mxu1 %v16364_v18  ;;  %13637 = vmatprep.mubr.f32.mxu0 %v1469_v62  ;;  %v309_v18 = vld [vmem:[%s15002_s28 + $0x3a0] sm:$0xff]  ;;  %v1509_v47 = vand.u32 4294901760, %v1508_v58  ;;  %v311_v58 = vld [vmem:[%s15002_s28 + $0x3b0] sm:$0xff] }
 0x123   : > { %21640 = vst [vmem:[#allocation242_spill] sm:$0xff] %v16531_v34  ;;  %21644 = vst [vmem:[#allocation245_spill] sm:$0xff] %v16545_v51  ;;  %v16551_v54 = vadd.f32 %v13710_v45, %v462_v31  ;;  %v491_v2 = vpop.f32.mrf.mxu0  ;;  %13855 = vmatprep.mubr.f32.mxu1 %v16380_v59  ;;  %v1518_v63 = vsub.f32 %v16506_v53, %v21647_v26  ;;  %v16564_v31 = vsub.f32 %v306_v61, %v16539_v15  ;;  %v310_v59 = vld [vmem:[%s15002_s28 + $0x3a8] sm:$0xff] }
 0x124   : > { %21645 = vst [vmem:[#allocation246_spill] sm:$0xff] %v16547_v60  ;;  %v1864_v62 = vpop.f32.mrf.mxu1  ;;  %v1528_v26 = vsub.f32 %v16516_v52, %v21651_v13  ;;  %v472_v61 = vadd.f32 %v16476_v32, %v471_v21  ;;  %v502_v45 = vadd.f32 %v13492_v38, %v16476_v32  ;;  %v21658_v21 = vand.u32 4294901760, %v16537_v6 }
 0x125   : > { %21646 = vst [vmem:[#allocation247_spill] sm:$0xff] %v16551_v54  ;;  %v16560_v34 = vadd.f32 %v1864_v62, %v452_v56  ;;  %v13495_v33 = vpop.f32.mrf.mxu0  ;;  %13638 = vmatmul.mubr.f32.gmra.mxu0 %v1479_v7  ;;  %21650 = vst [vmem:[#allocation250_spill] sm:$0xff] %v16564_v31  ;;  %v16573_v62 = vsub.f32 %v307_v22, %v16547_v60  ;;  %v16575_v7 = vand.u32 4294901760, %v309_v18  ;;  %v1519_v13 = vand.u32 4294901760, %v1518_v63 }
 0x126   : > { %v13713_v54 = vpop.f32.mrf.mxu1  ;;  %13856 = vmatmul.mubr.f32.gmra.mxu1 %v16393_v49  ;;  %13640 = vmatprep.mubr.f32.mxu0 %v1489_v23  ;;  %v16584_v56 = vsub.f32 %v308_v14, %v16558_v57  ;;  %v16586_v22 = vand.u32 4294901760, %v310_v59  ;;  %v1538_v38 = vsub.f32 %v16537_v6, %v21658_v21  ;;  %v1529_v14 = vand.u32 4294901760, %v1528_v26 }
 0x127   : > { %21649 = vst [vmem:[#allocation249_spill] sm:$0xff] %v16560_v34  ;;  %21652 = vst [vmem:[#allocation251_spill] sm:$0xff] %v16573_v62  ;;  %v16580_v53 = vadd.f32 %v13713_v54, %v482_v8  ;;  %v511_v23 = vpop.f32.mrf.mxu0  ;;  %13858 = vmatprep.mubr.f32.mxu1 %v16402_v40  ;;  %v16594_v8 = vand.u32 4294901760, %v311_v58  ;;  %v312_v40 = vld [vmem:[%s15002_s28 + $0x3b8] sm:$0xff]  ;;  %v492_v21 = vadd.f32 %v16476_v32, %v491_v2 }
 0x128   : > { %21653 = vst [vmem:[#allocation252_spill] sm:$0xff] %v16575_v7  ;;  %v1876_v49 = vpop.f32.mrf.mxu1  ;;  %21655 = vst [vmem:[#allocation254_spill] sm:$0xff] %v16584_v56  ;;  %v522_v54 = vadd.f32 %v13495_v33, %v16476_v32  ;;  %v1539_v33 = vand.u32 4294901760, %v1538_v38 }
 0x129   : > { %21654 = vst [vmem:[#allocation253_spill] sm:$0xff] %v16580_v53  ;;  %21656 = vst [vmem:[#allocation255_spill] sm:$0xff] %v16586_v22  ;;  %v16588_v52 = vadd.f32 %v1876_v49, %v472_v61  ;;  %v13498_v34 = vpop.f32.mrf.mxu0  ;;  %13641 = vmatmul.mubr.f32.gmra.mxu0 %v1499_v36  ;;  %v21660_v49 = vand.u32 4294901760, %v16545_v51  ;;  %v16615_v36 = vand.u32 4294901760, %v312_v40 }
 0x12a   : > { %21659 = vst [vmem:[#allocation257_spill] sm:$0xff] %v16594_v8  ;;  %v13716_v63 = vpop.f32.mrf.mxu1  ;;  %13859 = vmatmul.mubr.f32.gmra.mxu1 %v16417_v42  ;;  %13643 = vmatprep.mubr.f32.mxu0 %v1509_v47  ;;  %v313_v47 = vld [vmem:[%s15002_s28 + $0x3c0] sm:$0xff] }
 0x12b   : > { %21657 = vst [vmem:[#allocation256_spill] sm:$0xff] %v16588_v52  ;;  %v1548_v61 = vsub.f32 %v16545_v51, %v21660_v49  ;;  %v16603_v52 = vsub.f32 %v309_v18, %v16575_v7  ;;  %v16607_v6 = vadd.f32 %v13716_v63, %v502_v45  ;;  %v531_v53 = vpop.f32.mrf.mxu0  ;;  %13861 = vmatprep.mubr.f32.mxu1 %v16425_v19  ;;  %21664 = vst [vmem:[#allocation261_spill] sm:$0xff] %v16615_v36 }
 0x12c   : > { %v1888_v26 = vpop.f32.mrf.mxu1  ;;  %v16613_v49 = vsub.f32 %v310_v59, %v16586_v22  ;;  %v21666_v45 = vand.u32 4294901760, %v16564_v31  ;;  %v16623_v19 = vsub.f32 %v311_v58, %v16594_v8  ;;  %v21668_v51 = vand.u32 4294901760, %v16573_v62 }
 0x12d   : > { %21661 = vst [vmem:[#allocation258_spill] sm:$0xff] %v16603_v52  ;;  %21662 = vst [vmem:[#allocation259_spill] sm:$0xff] %v16607_v6  ;;  %v16617_v18 = vadd.f32 %v1888_v26, %v492_v21  ;;  %v13501_v2 = vpop.f32.mrf.mxu0  ;;  %13644 = vmatmul.mubr.f32.gmra.mxu0 %v1519_v13  ;;  %v1549_v59 = vand.u32 4294901760, %v1548_v61  ;;  %v16630_v38 = vand.u32 4294901760, %v313_v47  ;;  %v314_v26 = vld [vmem:[%s15002_s28 + $0x3c8] sm:$0xff]  ;;  %v542_v58 = vadd.f32 %v13498_v34, %v16476_v32 }
 0x12e   : > { %21663 = vst [vmem:[#allocation260_spill] sm:$0xff] %v16613_v49  ;;  %v1558_v63 = vsub.f32 %v16564_v31, %v21666_v45  ;;  %21667 = vst [vmem:[#allocation263_spill] sm:$0xff] %v16623_v19  ;;  %v13719_v42 = vpop.f32.mrf.mxu1  ;;  %13862 = vmatmul.mubr.f32.gmra.mxu1 %v16432_v30  ;;  %13646 = vmatprep.mubr.f32.mxu0 %v1529_v14  ;;  %v1568_v21 = vsub.f32 %v16573_v62, %v21668_v51  ;;  %v315_v14 = vld [vmem:[%s15002_s28 + $0x3d0] sm:$0xff]  ;;  %v21671_v30 = vand.u32 4294901760, %v16584_v56 }
 0x12f   : > { %21665 = vst [vmem:[#allocation262_spill] sm:$0xff] %v16617_v18  ;;  %21669 = vst [vmem:[#allocation264_spill] sm:$0xff] %v16630_v38  ;;  %v512_v18 = vadd.f32 %v16476_v32, %v511_v23  ;;  %v16635_v45 = vadd.f32 %v13719_v42, %v522_v54  ;;  %v551_v31 = vpop.f32.mrf.mxu0  ;;  %13864 = vmatprep.mubr.f32.mxu1 %v16447_v50  ;;  %v16644_v62 = vsub.f32 %v312_v40, %v16615_v36  ;;  %v316_v50 = vld [vmem:[%s15002_s28 + $0x3d8] sm:$0xff] }
 0x130   : > { %v1900_v61 = vpop.f32.mrf.mxu1  ;;  %v1578_v51 = vsub.f32 %v16584_v56, %v21671_v30  ;;  %v1559_v34 = vand.u32 4294901760, %v1558_v63  ;;  %v16649_v54 = vand.u32 4294901760, %v314_v26  ;;  %v1569_v30 = vand.u32 4294901760, %v1568_v21 }
 0x131   : > { %21670 = vst [vmem:[#allocation265_spill] sm:$0xff] %v16635_v45  ;;  %21672 = vst [vmem:[#allocation266_spill] sm:$0xff] %v16644_v62  ;;  %v16646_v23 = vadd.f32 %v1900_v61, %v512_v18  ;;  %v13504_v6 = vpop.f32.mrf.mxu0  ;;  %13647 = vmatmul.mubr.f32.gmra.mxu0 %v1539_v33  ;;  %v21675_v13 = vand.u32 4294901760, %v16603_v52  ;;  %v16657_v18 = vsub.f32 %v313_v47, %v16630_v38  ;;  %v16659_v33 = vand.u32 4294901760, %v315_v14 }
 0x132   : > { %21674 = vst [vmem:[#allocation268_spill] sm:$0xff] %v16649_v54  ;;  %v13722_v45 = vpop.f32.mrf.mxu1  ;;  %13865 = vmatmul.mubr.f32.gmra.mxu1 %v16454_v12  ;;  %13649 = vmatprep.mubr.f32.mxu0 %v1549_v59  ;;  %v532_v63 = vadd.f32 %v16476_v32, %v531_v53  ;;  %v562_v61 = vadd.f32 %v13501_v2, %v16476_v32  ;;  %v317_v59 = vld [vmem:[%s15002_s28 + $0x3e0] sm:$0xff]  ;;  %v21679_v12 = vand.u32 4294901760, %v16613_v49  ;;  %v1579_v2 = vand.u32 4294901760, %v1578_v51  ;;  %v318_v51 = vld [vmem:[%s15002_s28 + $0x3e8] sm:$0xff] }
 0x133   : > { %21673 = vst [vmem:[#allocation267_spill] sm:$0xff] %v16646_v23  ;;  %v1588_v40 = vsub.f32 %v16603_v52, %v21675_v13  ;;  %21676 = vst [vmem:[#allocation269_spill] sm:$0xff] %v16657_v18  ;;  %v16663_v42 = vadd.f32 %v13722_v45, %v542_v58  ;;  %v571_v56 = vpop.f32.mrf.mxu0  ;;  %13867 = vmatprep.mubr.f32.mxu1 %v16460_v17  ;;  %v16671_v52 = vand.u32 4294901760, %v316_v50  ;;  %v21682_v58 = vand.u32 4294901760, %v16623_v19 }
 0x134   : > { %21677 = vst [vmem:[#allocation270_spill] sm:$0xff] %v16659_v33  ;;  %v1912_v21 = vpop.f32.mrf.mxu1  ;;  %v1598_v13 = vsub.f32 %v16613_v49, %v21679_v12  ;;  %v16679_v17 = vsub.f32 %v314_v26, %v16649_v54  ;;  %v21686_v47 = vand.u32 4294901760, %v16644_v62 }
 0x135   : > { %21678 = vst [vmem:[#allocation271_spill] sm:$0xff] %v16663_v42  ;;  %21680 = vst [vmem:[#allocation272_spill] sm:$0xff] %v16671_v52  ;;  %v16673_v23 = vadd.f32 %v1912_v21, %v532_v63  ;;  %v13507_v53 = vpop.f32.mrf.mxu0  ;;  %13650 = vmatmul.mubr.f32.gmra.mxu0 %v1559_v34  ;;  %v1608_v45 = vsub.f32 %v16623_v19, %v21682_v58  ;;  %v1589_v12 = vand.u32 4294901760, %v1588_v40  ;;  %v16686_v34 = vand.u32 4294901760, %v317_v59 }
 0x136   : > { %v13725_v42 = vpop.f32.mrf.mxu1  ;;  %13868 = vmatmul.mubr.f32.gmra.mxu1 %v16482_v0  ;;  %13652 = vmatprep.mubr.f32.mxu0 %v1569_v30  ;;  %v16684_v63 = vsub.f32 %v315_v14, %v16659_v33  ;;  %v552_v21 = vadd.f32 %v16476_v32, %v551_v31  ;;  %v582_v58 = vadd.f32 %v13504_v6, %v16476_v32  ;;  %v319_v0 = vld [vmem:[%s15002_s28 + $0x3f0] sm:$0xff]  ;;  %v1599_v40 = vand.u32 4294901760, %v1598_v13 }
 0x137   : > { %21681 = vst [vmem:[#allocation273_spill] sm:$0xff] %v16673_v23  ;;  %21684 = vst [vmem:[#allocation275_spill] sm:$0xff] %v16686_v34  ;;  %v16691_v19 = vadd.f32 %v13725_v42, %v562_v61  ;;  %v591_v26 = vpop.f32.mrf.mxu0  ;;  %13870 = vmatprep.mubr.f32.mxu1 %v16495_v29  ;;  %v1618_v14 = vsub.f32 %v16644_v62, %v21686_v47  ;;  %v16699_v49 = vsub.f32 %v316_v50, %v16671_v52 }
 0x138   : > { %21683 = vst [vmem:[#allocation274_spill] sm:$0xff] %v16684_v63  ;;  %v1924_v30 = vpop.f32.mrf.mxu1  ;;  %v1609_v6 = vand.u32 4294901760, %v1608_v45  ;;  %v16704_v61 = vand.u32 4294901760, %v318_v51  ;;  %v21689_v13 = vand.u32 4294901760, %v16657_v18  ;;  %v572_v45 = vadd.f32 %v16476_v32, %v571_v56 }
 0x139   : > { %21685 = vst [vmem:[#allocation276_spill] sm:$0xff] %v16691_v19  ;;  %v16701_v23 = vadd.f32 %v1924_v30, %v552_v21  ;;  %v13510_v31 = vpop.f32.mrf.mxu0  ;;  %13653 = vmatmul.mubr.f32.gmra.mxu0 %v1579_v2  ;;  %v16712_v21 = vsub.f32 %v317_v59, %v16686_v34  ;;  %v16714_v30 = vand.u32 4294901760, %v319_v0  ;;  %v320_v2 = vld [vmem:[%s15002_s28 + $0x3f8] sm:$0xff]  ;;  %v602_v42 = vadd.f32 %v13507_v53, %v16476_v32 }
 0x13a   : > { %21688 = vst [vmem:[#allocation278_spill] sm:$0xff] %v16704_v61  ;;  %v13728_v29 = vpop.f32.mrf.mxu1  ;;  %13871 = vmatmul.mubr.f32.gmra.mxu1 %v16509_v1  ;;  %13655 = vmatprep.mubr.f32.mxu0 %v1589_v12  ;;  %v1628_v47 = vsub.f32 %v16657_v18, %v21689_v13  ;;  %v21691_v18 = vand.u32 4294901760, %v16679_v17  ;;  %v16729_v56 = vsub.f32 %v318_v51, %v16704_v61 }
 0x13b   : > { %21687 = vst [vmem:[#allocation277_spill] sm:$0xff] %v16701_v23  ;;  %21690 = vst [vmem:[#allocation279_spill] sm:$0xff] %v16714_v30  ;;  %v16719_v62 = vadd.f32 %v13728_v29, %v582_v58  ;;  %v611_v1 = vpop.f32.mrf.mxu0  ;;  %13873 = vmatprep.mubr.f32.mxu1 %v16518_v20  ;;  %v1619_v23 = vand.u32 4294901760, %v1618_v14  ;;  %v16731_v29 = vand.u32 4294901760, %v320_v2  ;;  %v21693_v14 = vand.u32 4294901760, %v16684_v63 }
 0x13c   : > { %v1936_v12 = vpop.f32.mrf.mxu1  ;;  %v1638_v19 = vsub.f32 %v16679_v17, %v21691_v18  ;;  %v1629_v58 = vand.u32 4294901760, %v1628_v47  ;;  %v592_v18 = vadd.f32 %v16476_v32, %v591_v26  ;;  %v622_v51 = vadd.f32 %v13510_v31, %v16476_v32 }
 0x13d   : > { %v16723_v50 = vadd.f32 %v1936_v12, %v572_v45  ;;  %v13513_v59 = vpop.f32.mrf.mxu0  ;;  %13656 = vmatmul.mubr.f32.gmra.mxu0 %v1599_v40  ;;  %21692 = vst [vmem:[#allocation280_spill] sm:$0xff] %v16731_v29  ;;  %v1648_v45 = vsub.f32 %v16684_v63, %v21693_v14  ;;  %v16739_v12 = vsub.f32 %v319_v0, %v16714_v30  ;;  %v21694_v47 = vand.u32 4294901760, %v16699_v49 }
 0x13e   : > { %v13731_v53 = vpop.f32.mrf.mxu1  ;;  %13874 = vmatmul.mubr.f32.gmra.mxu1 %v16539_v15  ;;  %13658 = vmatprep.mubr.f32.mxu0 %v1609_v6  ;;  %v1639_v0 = vand.u32 4294901760, %v1638_v19  ;;  %v16753_v26 = vsub.f32 %v320_v2, %v16731_v29  ;;  %v642_v19 = vadd.f32 %v13513_v59, %v16476_v32 }
 0x13f   : > { %v16743_v13 = vadd.f32 %v13731_v53, %v602_v42  ;;  %v631_v20 = vpop.f32.mrf.mxu0  ;;  %13876 = vmatprep.mubr.f32.mxu1 %v16547_v60  ;;  %v1658_v15 = vsub.f32 %v16699_v49, %v21694_v47  ;;  %v1649_v42 = vand.u32 4294901760, %v1648_v45  ;;  %v21695_v53 = vand.u32 4294901760, %v16712_v21 }
 0x140   : > { %v1948_v6 = vpop.f32.mrf.mxu1 }
 0x141   : > { %v16749_v14 = vadd.f32 %v1948_v6, %v592_v18  ;;  %v13516_v40 = vpop.f32.mrf.mxu0  ;;  %13659 = vmatmul.mubr.f32.gmra.mxu0 %v1619_v23  ;;  %v1668_v60 = vsub.f32 %v16712_v21, %v21695_v53  ;;  %v612_v6 = vadd.f32 %v16476_v32, %v611_v1  ;;  %v1659_v45 = vand.u32 4294901760, %v1658_v15 }
 0x142   : > { %v13734_v31 = vpop.f32.mrf.mxu1  ;;  %13877 = vmatmul.mubr.f32.gmra.mxu1 %v16558_v57  ;;  %13661 = vmatprep.mubr.f32.mxu0 %v1629_v58  ;;  %v21696_v57 = vand.u32 4294901760, %v16729_v56 }
 0x143   : > { %v16762_v23 = vadd.f32 %v13734_v31, %v622_v51  ;;  %v651_v47 = vpop.f32.mrf.mxu0  ;;  %13879 = vmatprep.mubr.f32.mxu1 %v16575_v7  ;;  %v1669_v59 = vand.u32 4294901760, %v1668_v60  ;;  %v21697_v51 = vand.u32 4294901760, %v16739_v12  ;;  %v21698_v60 = vand.u32 4294901760, %v16753_v26 }
 0x144   : > { %v1960_v2 = vpop.f32.mrf.mxu1  ;;  %v1678_v53 = vsub.f32 %v16729_v56, %v21696_v57 }
 0x145   : > { %v16765_v63 = vadd.f32 %v1960_v2, %v612_v6  ;;  %v13519_v58 = vpop.f32.mrf.mxu0  ;;  %13662 = vmatmul.mubr.f32.gmra.mxu0 %v1639_v0  ;;  %v1688_v31 = vsub.f32 %v16739_v12, %v21697_v51  ;;  %v632_v6 = vadd.f32 %v16476_v32, %v631_v20  ;;  %v662_v0 = vadd.f32 %v13516_v40, %v16476_v32 }
 0x146   : > { %v13737_v1 = vpop.f32.mrf.mxu1  ;;  %13880 = vmatmul.mubr.f32.gmra.mxu1 %v16586_v22  ;;  %13664 = vmatprep.mubr.f32.mxu0 %v1649_v42  ;;  %v1679_v42 = vand.u32 4294901760, %v1678_v53  ;;  %v1698_v22 = vsub.f32 %v16753_v26, %v21698_v60  ;;  %v652_v40 = vadd.f32 %v16476_v32, %v651_v47 }
 0x147   : > { %v16777_v15 = vadd.f32 %v13737_v1, %v642_v19  ;;  %v671_v2 = vpop.f32.mrf.mxu0  ;;  %13882 = vmatprep.mubr.f32.mxu1 %v16594_v8  ;;  %v1689_v20 = vand.u32 4294901760, %v1688_v31  ;;  %v682_v19 = vadd.f32 %v13519_v58, %v16476_v32 }
 0x148   : > { %v1972_v57 = vpop.f32.mrf.mxu1  ;;  %v1699_v60 = vand.u32 4294901760, %v1698_v22  ;;  %v21699_v22 = vld [vmem:[#allocation21_spill] sm:$0xff] }
 0x149   : > { %v16780_v18 = vadd.f32 %v1972_v57, %v632_v6  ;;  %v13522_v7 = vpop.f32.mrf.mxu0  ;;  %13665 = vmatmul.mubr.f32.gmra.mxu0 %v1659_v45 }
 0x14a   : > { %v13740_v51 = vpop.f32.mrf.mxu1  ;;  %13883 = vmatmul.mubr.f32.gmra.mxu1 %v16615_v36  ;;  %13667 = vmatprep.mubr.f32.mxu0 %v1669_v59  ;;  %v672_v59 = vadd.f32 %v16476_v32, %v671_v2  ;;  %v702_v47 = vadd.f32 %v13522_v7, %v16476_v32 }
 0x14b   : > { %v16788_v1 = vadd.f32 %v13740_v51, %v662_v0  ;;  %v691_v6 = vpop.f32.mrf.mxu0  ;;  %13885 = vmatprep.mubr.f32.mxu1 %v16630_v38 }
 0x14c   : > { %v1984_v45 = vpop.f32.mrf.mxu1 }
 0x14d   : > { %v16791_v53 = vadd.f32 %v1984_v45, %v652_v40  ;;  %v13525_v57 = vpop.f32.mrf.mxu0  ;;  %13668 = vmatmul.mubr.f32.gmra.mxu0 %v1679_v42 }
 0x14e   : > { %v13743_v8 = vpop.f32.mrf.mxu1  ;;  %13886 = vmatmul.mubr.f32.gmra.mxu1 %v16649_v54  ;;  %13670 = vmatprep.mubr.f32.mxu0 %v1689_v20  ;;  %v692_v20 = vadd.f32 %v16476_v32, %v691_v6  ;;  %v722_v2 = vadd.f32 %v13525_v57, %v16476_v32 }
 0x14f   : > { %v16796_v58 = vadd.f32 %v13743_v8, %v682_v19  ;;  %v711_v31 = vpop.f32.mrf.mxu0  ;;  %13888 = vmatprep.mubr.f32.mxu1 %v16659_v33 }
 0x150   : > { %v1996_v0 = vpop.f32.mrf.mxu1  ;;  %v712_v6 = vadd.f32 %v16476_v32, %v711_v31  ;;  %v21704_v31 = vld [vmem:[#allocation37_spill] sm:$0xff] }
 0x151   : > { %v16799_v51 = vadd.f32 %v1996_v0, %v672_v59  ;;  %v13528_v40 = vpop.f32.mrf.mxu0  ;;  %13671 = vmatmul.mubr.f32.gmra.mxu0 %v1699_v60  ;;  %v21700_v0 = vld [vmem:[#allocation24_spill] sm:$0xff] }
 0x152   : > { %v13746_v42 = vpop.f32.mrf.mxu1  ;;  %13889 = vmatmul.mubr.f32.gmra.mxu1 %v16671_v52  ;;  %13929 = vmatprep.mubr.f32.mxu0 %v21699_v22  ;;  %v21701_v52 = vld [vmem:[#allocation31_spill] sm:$0xff]  ;;  %v742_v57 = vadd.f32 %v13528_v40, %v16476_v32 }
 0x153   : > { %v16805_v7 = vadd.f32 %v13746_v42, %v702_v47  ;;  %v731_v8 = vpop.f32.mrf.mxu0  ;;  %13891 = vmatprep.mubr.f32.mxu1 %v16686_v34 }
 0x154   : > { %v2008_v19 = vpop.f32.mrf.mxu1  ;;  %v732_v40 = vadd.f32 %v16476_v32, %v731_v8  ;;  %v21707_v8 = vand.u32 4294901760, %v21700_v0 }
 0x155   : > { %v16808_v45 = vadd.f32 %v2008_v19, %v692_v20  ;;  %v13531_v59 = vpop.f32.mrf.mxu0  ;;  %13930 = vmatmul.mubr.f32.vlgmr.msra.gmra.mxu0 %v21700_v0  ;;  %v21702_v19 = vld [vmem:[#allocation6_spill] sm:$0xff] }
 0x156   : > { %v13749_v60 = vpop.f32.mrf.mxu1  ;;  %13892 = vmatmul.mubr.f32.gmra.mxu1 %v16704_v61  ;;  %13932 = vmatprep.mubr.f32.mxu0 %v21701_v52  ;;  %v21703_v61 = vld [vmem:[#allocation34_spill] sm:$0xff] }
 0x157   : > { %v16815_v47 = vadd.f32 %v13749_v60, %v722_v2  ;;  %v751_v42 = vpop.f32.mrf.mxu0  ;;  %13894 = vmatprep.mubr.f32.mxu1 %v16714_v30  ;;  %14346 = vmatpush3.msra.mxu0 %v21442_v35  ;;  %v762_v2 = vadd.f32 %v13531_v59, %v16476_v32  ;;  %v21705_v30 = vand.u32 4294901760, %v21699_v22 }
 0x158   : > { %v2020_v20 = vpop.f32.mrf.mxu1  ;;  %14347 = vmatprep.subr.mxu0 %v21702_v19 }
 0x159   : > { %v16820_v34 = vadd.f32 %v2020_v20, %v712_v6  ;;  %v13534_v33 = vpop.f32.mrf.mxu0  ;;  %13933 = vmatmul.mubr.f32.gmra.mxu0 %v21703_v61  ;;  %v21706_v20 = vld [vmem:[#allocation7_spill] sm:$0xff] }
 0x15a   : > { %v13752_v54 = vpop.f32.mrf.mxu1  ;;  %13895 = vmatmul.mubr.f32.gmra.mxu1 %v16731_v29  ;;  %13935 = vmatprep.mubr.f32.mxu0 %v21704_v31 }
 0x15b   : > { %v16827_v60 = vadd.f32 %v13752_v54, %v742_v57  ;;  %v771_v35 = vpop.f32.mrf.mxu0  ;;  %14153 = vmatprep.mubr.f32.mxu1 %v21705_v30  ;;  %14348 = vmatpush3.msra.mxu0 %v21702_v19  ;;  %v752_v54 = vadd.f32 %v16476_v32, %v751_v42  ;;  %v782_v30 = vadd.f32 %v13534_v33, %v16476_v32  ;;  %v21708_v57 = vand.u32 4294901760, %v21701_v52 }
 0x15c   : > { %v2032_v6 = vpop.f32.mrf.mxu1  ;;  %14349 = vmatprep.subr.mxu0 %v21706_v20  ;;  %v21709_v33 = vand.u32 4294901760, %v21703_v61 }
 0x15d   : > { %v16833_v38 = vadd.f32 %v2032_v6, %v732_v40  ;;  %v13537_v29 = vpop.f32.mrf.mxu0  ;;  %13936 = vmatmul.mubr.f32.gmra.mxu0 %v15278_v44  ;;  %v21710_v6 = vand.u32 4294901760, %v21704_v31  ;;  %v21714_v31 = vld [vmem:[#allocation48_spill] sm:$0xff] }
 0x15e   : > { %v13755_v36 = vpop.f32.mrf.mxu1  ;;  %14154 = vmatmul.mubr.f32.vlgmr.msra.gmra.mxu1 %v21707_v8  ;;  %13938 = vmatprep.mubr.f32.mxu0 %v15294_v55  ;;  %v802_v52 = vadd.f32 %v13537_v29, %v16476_v32 }
 0x15f   : > { %v16841_v22 = vadd.f32 %v13755_v36, %v762_v2  ;;  %14570 = vmatpush3.msra.mxu1 %v15017_v3  ;;  %v791_v59 = vpop.f32.mrf.mxu0  ;;  %14156 = vmatprep.mubr.f32.mxu1 %v21708_v57  ;;  %v772_v3 = vadd.f32 %v16476_v32, %v771_v35  ;;  %v21713_v35 = vand.u32 4294901760, %v15278_v44 }
 0x160   : > { %v2044_v19 = vpop.f32.mrf.mxu1  ;;  %14571 = vmatprep.subr.mxu1 %v15019_v4  ;;  %14350 = vmatpush3.msra.mxu0 %v21706_v20 }
 0x161   : > { %v16848_v0 = vadd.f32 %v2044_v19, %v752_v54  ;;  %v13540_v40 = vpop.f32.mrf.mxu0  ;;  %13939 = vmatmul.mubr.f32.gmra.mxu0 %v15312_v39  ;;  %14572 = vmatpush3.msra.mxu1 %v15019_v4  ;;  %v21711_v4 = vld [vmem:[#allocation8_spill] sm:$0xff]  ;;  %v21712_v54 = vld [vmem:[#allocation46_spill] sm:$0xff] }
 0x162   : > { %v13758_v36 = vpop.f32.mrf.mxu1  ;;  %14157 = vmatmul.mubr.f32.gmra.mxu1 %v21709_v33  ;;  %13941 = vmatprep.mubr.f32.mxu0 %v15324_v46  ;;  %v822_v57 = vadd.f32 %v13540_v40, %v16476_v32  ;;  %v21718_v40 = vand.u32 4294901760, %v15312_v39 }
 0x163   : > { %v16857_v42 = vadd.f32 %v13758_v36, %v782_v30  ;;  %v811_v2 = vpop.f32.mrf.mxu0  ;;  %14159 = vmatprep.mubr.f32.mxu1 %v21710_v6  ;;  %14573 = vmatprep.subr.mxu1 %v15021_v5  ;;  %v792_v30 = vadd.f32 %v16476_v32, %v791_v59  ;;  %v21715_v36 = vand.u32 4294901760, %v15294_v55 }
 0x164   : > { %v2056_v20 = vpop.f32.mrf.mxu1  ;;  %14574 = vmatpush3.msra.mxu1 %v15021_v5  ;;  %14351 = vmatprep.subr.mxu0 %v21711_v4  ;;  %v812_v55 = vadd.f32 %v16476_v32, %v811_v2 }
 0x165   : > { %v16864_v61 = vadd.f32 %v2056_v20, %v772_v3  ;;  %v13543_v8 = vpop.f32.mrf.mxu0  ;;  %13942 = vmatmul.mubr.f32.gmra.mxu0 %v21712_v54  ;;  %14575 = vmatprep.subr.mxu1 %v15032_v9  ;;  %v21716_v3 = vld [vmem:[#allocation9_spill] sm:$0xff]  ;;  %v21717_v20 = vld [vmem:[#allocation50_spill] sm:$0xff] }
 0x166   : > { %v13761_v29 = vpop.f32.mrf.mxu1  ;;  %14160 = vmatmul.mubr.f32.gmra.mxu1 %v21713_v35  ;;  %13944 = vmatprep.mubr.f32.mxu0 %v21714_v31 }
 0x167   : > { %v16873_v5 = vadd.f32 %v13761_v29, %v802_v52  ;;  %v831_v19 = vpop.f32.mrf.mxu0  ;;  %14162 = vmatprep.mubr.f32.mxu1 %v21715_v36  ;;  %14352 = vmatpush3.msra.mxu0 %v21711_v4  ;;  %v842_v52 = vadd.f32 %v13543_v8, %v16476_v32  ;;  %v21719_v29 = vand.u32 4294901760, %v15324_v46  ;;  %v21721_v8 = vand.u32 4294901760, %v21712_v54  ;;  %v21722_v46 = vld [vmem:[#allocation54_spill] sm:$0xff] }
 0x168   : > { %v2068_v33 = vpop.f32.mrf.mxu1  ;;  %14576 = vmatpush3.msra.mxu1 %v15032_v9  ;;  %14353 = vmatprep.subr.mxu0 %v21716_v3 }
 0x169   : > { %v16880_v44 = vadd.f32 %v2068_v33, %v792_v30  ;;  %v13546_v6 = vpop.f32.mrf.mxu0  ;;  %13945 = vmatmul.mubr.f32.gmra.mxu0 %v21717_v20  ;;  %14577 = vmatprep.subr.mxu1 %v15034_v10  ;;  %v21720_v30 = vld [vmem:[#allocation11_spill] sm:$0xff] }
 0x16a   : > { %v13764_v59 = vpop.f32.mrf.mxu1  ;;  %14163 = vmatmul.mubr.f32.gmra.mxu1 %v21718_v40  ;;  %13947 = vmatprep.mubr.f32.mxu0 %v15368_v28  ;;  %v862_v33 = vadd.f32 %v13546_v6, %v16476_v32  ;;  %v21725_v6 = vand.u32 4294901760, %v21717_v20 }
 0x16b   : > { %v16889_v9 = vadd.f32 %v13764_v59, %v822_v57  ;;  %v851_v4 = vpop.f32.mrf.mxu0  ;;  %14165 = vmatprep.mubr.f32.mxu1 %v21719_v29  ;;  %14354 = vmatpush3.msra.mxu0 %v21716_v3  ;;  %v832_v57 = vadd.f32 %v16476_v32, %v831_v19  ;;  %v21723_v59 = vand.u32 4294901760, %v21714_v31 }
 0x16c   : > { %v2080_v35 = vpop.f32.mrf.mxu1  ;;  %14578 = vmatpush3.msra.mxu1 %v15034_v10  ;;  %14355 = vmatprep.subr.mxu0 %v21720_v30  ;;  %v852_v31 = vadd.f32 %v16476_v32, %v851_v4 }
 0x16d   : > { %v16896_v39 = vadd.f32 %v2080_v35, %v812_v55  ;;  %v13549_v36 = vpop.f32.mrf.mxu0  ;;  %13948 = vmatmul.mubr.f32.gmra.mxu0 %v15384_v48  ;;  %14579 = vmatprep.subr.mxu1 %v15036_v11  ;;  %v21724_v55 = vld [vmem:[#allocation13_spill] sm:$0xff] }
 0x16e   : > { %v13767_v2 = vpop.f32.mrf.mxu1  ;;  %14166 = vmatmul.mubr.f32.gmra.mxu1 %v21721_v8  ;;  %13950 = vmatprep.mubr.f32.mxu0 %v21722_v46  ;;  %v21727_v8 = vld [vmem:[#allocation15_spill] sm:$0xff] }
 0x16f   : > { %v16905_v10 = vadd.f32 %v13767_v2, %v842_v52  ;;  %v871_v3 = vpop.f32.mrf.mxu0  ;;  %14168 = vmatprep.mubr.f32.mxu1 %v21723_v59  ;;  %14356 = vmatpush3.msra.mxu0 %v21720_v30  ;;  %v882_v52 = vadd.f32 %v13549_v36, %v16476_v32  ;;  %v21726_v30 = vand.u32 4294901760, %v15368_v28  ;;  %v21728_v59 = vld [vmem:[#allocation59_spill] sm:$0xff]  ;;  %v21729_v36 = vand.u32 4294901760, %v15384_v48  ;;  %v21730_v28 = vld [vmem:[#allocation60_spill] sm:$0xff] }
 0x170   : > { %v2092_v40 = vpop.f32.mrf.mxu1  ;;  %14580 = vmatpush3.msra.mxu1 %v15036_v11  ;;  %14357 = vmatprep.subr.mxu0 %v21724_v55 }
 0x171   : > { %v16912_v54 = vadd.f32 %v2092_v40, %v832_v57  ;;  %v13552_v29 = vpop.f32.mrf.mxu0  ;;  %13951 = vmatmul.mubr.f32.gmra.mxu0 %v15407_v43  ;;  %14581 = vmatprep.subr.mxu1 %v15051_v16 }
 0x172   : > { %v13770_v19 = vpop.f32.mrf.mxu1  ;;  %14169 = vmatmul.mubr.f32.gmra.mxu1 %v21725_v6  ;;  %13953 = vmatprep.mubr.f32.mxu0 %v15420_v37  ;;  %v902_v40 = vadd.f32 %v13552_v29, %v16476_v32  ;;  %v21734_v29 = vand.u32 4294901760, %v15407_v43 }
 0x173   : > { %v16921_v11 = vadd.f32 %v13770_v19, %v862_v33  ;;  %v891_v35 = vpop.f32.mrf.mxu0  ;;  %14171 = vmatprep.mubr.f32.mxu1 %v21726_v30  ;;  %14358 = vmatpush3.msra.mxu0 %v21724_v55  ;;  %v872_v33 = vadd.f32 %v16476_v32, %v871_v3  ;;  %v21731_v19 = vand.u32 4294901760, %v21722_v46 }
 0x174   : > { %v2104_v2 = vpop.f32.mrf.mxu1  ;;  %14582 = vmatpush3.msra.mxu1 %v15051_v16  ;;  %14359 = vmatprep.subr.mxu0 %v21727_v8  ;;  %v892_v46 = vadd.f32 %v16476_v32, %v891_v35  ;;  %v21739_v35 = vld [vmem:[#allocation10_spill] sm:$0xff] }
 0x175   : > { %v16928_v20 = vadd.f32 %v2104_v2, %v852_v31  ;;  %v13555_v57 = vpop.f32.mrf.mxu0  ;;  %13954 = vmatmul.mubr.f32.gmra.mxu0 %v21728_v59  ;;  %14583 = vmatprep.subr.mxu1 %v15076_v24  ;;  %v21732_v31 = vld [vmem:[#allocation17_spill] sm:$0xff]  ;;  %v21733_v2 = vld [vmem:[#allocation62_spill] sm:$0xff] }
 0x176   : > { %v13773_v4 = vpop.f32.mrf.mxu1  ;;  %14172 = vmatmul.mubr.f32.gmra.mxu1 %v21729_v36  ;;  %13956 = vmatprep.mubr.f32.mxu0 %v21730_v28 }
 0x177   : > { %v16937_v16 = vadd.f32 %v13773_v4, %v882_v52  ;;  %v911_v55 = vpop.f32.mrf.mxu0  ;;  %14174 = vmatprep.mubr.f32.mxu1 %v21731_v19  ;;  %14360 = vmatpush3.msra.mxu0 %v21727_v8  ;;  %v922_v52 = vadd.f32 %v13555_v57, %v16476_v32  ;;  %v21736_v4 = vand.u32 4294901760, %v15420_v37  ;;  %v21741_v37 = vld [vmem:[#allocation66_spill] sm:$0xff] }
 0x178   : > { %v2116_v6 = vpop.f32.mrf.mxu1  ;;  %14584 = vmatpush3.msra.mxu1 %v15076_v24  ;;  %14361 = vmatprep.subr.mxu0 %v21732_v31 }
 0x179   : > { %v16944_v48 = vadd.f32 %v2116_v6, %v872_v33  ;;  %v13558_v30 = vpop.f32.mrf.mxu0  ;;  %13957 = vmatmul.mubr.f32.gmra.mxu0 %v21733_v2  ;;  %14585 = vmatprep.subr.mxu1 %v15085_v27  ;;  %v21737_v33 = vld [vmem:[#allocation19_spill] sm:$0xff]  ;;  %v912_v6 = vadd.f32 %v16476_v32, %v911_v55  ;;  %v21747_v55 = vld [vmem:[#allocation12_spill] sm:$0xff] }
 0x17a   : > { %v13776_v3 = vpop.f32.mrf.mxu1  ;;  %14175 = vmatmul.mubr.f32.gmra.mxu1 %v21734_v29  ;;  %13959 = vmatprep.mubr.f32.mxu0 %v15469_v25  ;;  %v21743_v29 = vand.u32 4294901760, %v21730_v28  ;;  %v21749_v28 = vld [vmem:[#allocation71_spill] sm:$0xff] }
 0x17b   : > { %v16953_v24 = vadd.f32 %v13776_v3, %v902_v40  ;;  %v931_v8 = vpop.f32.mrf.mxu0  ;;  %14177 = vmatprep.mubr.f32.mxu1 %v21736_v4  ;;  %14362 = vmatpush3.msra.mxu0 %v21732_v31  ;;  %v21740_v40 = vand.u32 4294901760, %v21728_v59  ;;  %v942_v31 = vadd.f32 %v13558_v30, %v16476_v32  ;;  %v21744_v4 = vld [vmem:[#allocation25_spill] sm:$0xff] }
 0x17c   : > { %v2128_v36 = vpop.f32.mrf.mxu1  ;;  %14586 = vmatpush3.msra.mxu1 %v15085_v27  ;;  %14363 = vmatprep.subr.mxu0 %v21737_v33 }
 0x17d   : > { %21735 = vst [vmem:[#allocation21_spill] sm:$0xff] %v16953_v24  ;;  %v16960_v43 = vadd.f32 %v2128_v36, %v892_v46  ;;  %v13561_v19 = vpop.f32.mrf.mxu0  ;;  %13960 = vmatmul.mubr.f32.gmra.mxu0 %v15479_v41  ;;  %14587 = vmatprep.subr.mxu1 %v21739_v35 }
 0x17e   : > { %v13779_v57 = vpop.f32.mrf.mxu1  ;;  %14178 = vmatmul.mubr.f32.gmra.mxu1 %v21740_v40  ;;  %13962 = vmatprep.mubr.f32.mxu0 %v21741_v37  ;;  %v21746_v40 = vld [vmem:[#allocation68_spill] sm:$0xff] }
 0x17f   : > { %21738 = vst [vmem:[#allocation24_spill] sm:$0xff] %v16960_v43  ;;  %v16969_v27 = vadd.f32 %v13779_v57, %v922_v52  ;;  %v951_v3 = vpop.f32.mrf.mxu0  ;;  %14180 = vmatprep.mubr.f32.mxu1 %v21743_v29  ;;  %14364 = vmatpush3.msra.mxu0 %v21737_v33  ;;  %v21748_v52 = vand.u32 4294901760, %v21733_v2  ;;  %v932_v33 = vadd.f32 %v16476_v32, %v931_v8  ;;  %v21755_v8 = vld [vmem:[#allocation14_spill] sm:$0xff] }
 0x180   : > { %v2140_v46 = vpop.f32.mrf.mxu1  ;;  %14588 = vmatpush3.msra.mxu1 %v21739_v35  ;;  %14365 = vmatprep.subr.mxu0 %v21744_v4  ;;  %v962_v57 = vadd.f32 %v13561_v19, %v16476_v32 }
 0x181   : > { %21742 = vst [vmem:[#allocation31_spill] sm:$0xff] %v16969_v27  ;;  %v16976_v59 = vadd.f32 %v2140_v46, %v912_v6  ;;  %v13564_v36 = vpop.f32.mrf.mxu0  ;;  %13963 = vmatmul.mubr.f32.gmra.mxu0 %v21746_v40  ;;  %14589 = vmatprep.subr.mxu1 %v21747_v55  ;;  %v21751_v6 = vand.u32 4294901760, %v15469_v25  ;;  %v21754_v27 = vld [vmem:[#allocation73_spill] sm:$0xff]  ;;  %v21757_v25 = vld [vmem:[#allocation74_spill] sm:$0xff] }
 0x182   : > { %v13782_v30 = vpop.f32.mrf.mxu1  ;;  %14181 = vmatmul.mubr.f32.gmra.mxu1 %v21748_v52  ;;  %13965 = vmatprep.mubr.f32.mxu0 %v21749_v28 }
 0x183   : > { %21745 = vst [vmem:[#allocation6_spill] sm:$0xff] %v16976_v59  ;;  %v16985_v35 = vadd.f32 %v13782_v30, %v942_v31  ;;  %v971_v29 = vpop.f32.mrf.mxu0  ;;  %14183 = vmatprep.mubr.f32.mxu1 %v21751_v6  ;;  %14366 = vmatpush3.msra.mxu0 %v21744_v4  ;;  %v21752_v59 = vld [vmem:[#allocation28_spill] sm:$0xff]  ;;  %v21756_v31 = vand.u32 4294901760, %v15479_v41  ;;  %v952_v4 = vadd.f32 %v16476_v32, %v951_v3 }
 0x184   : > { %v2152_v46 = vpop.f32.mrf.mxu1  ;;  %14590 = vmatpush3.msra.mxu1 %v21747_v55  ;;  %14367 = vmatprep.subr.mxu0 %v21752_v59  ;;  %v982_v30 = vadd.f32 %v13564_v36, %v16476_v32  ;;  %v21763_v3 = vld [vmem:[#allocation16_spill] sm:$0xff]  ;;  %v21764_v36 = vand.u32 4294901760, %v21746_v40 }
 0x185   : > { %21750 = vst [vmem:[#allocation34_spill] sm:$0xff] %v16985_v35  ;;  %v16992_v2 = vadd.f32 %v2152_v46, %v932_v33  ;;  %v13567_v52 = vpop.f32.mrf.mxu0  ;;  %13966 = vmatmul.mubr.f32.gmra.mxu0 %v21754_v27  ;;  %14591 = vmatprep.subr.mxu1 %v21755_v8  ;;  %v21759_v33 = vand.u32 4294901760, %v21741_v37  ;;  %v21762_v35 = vld [vmem:[#allocation76_spill] sm:$0xff]  ;;  %v21765_v37 = vld [vmem:[#allocation78_spill] sm:$0xff] }
 0x186   : > { %v13785_v19 = vpop.f32.mrf.mxu1  ;;  %14184 = vmatmul.mubr.f32.gmra.mxu1 %v21756_v31  ;;  %13968 = vmatprep.mubr.f32.mxu0 %v21757_v25 }
 0x187   : > { %21753 = vst [vmem:[#allocation37_spill] sm:$0xff] %v16992_v2  ;;  %v17001_v55 = vadd.f32 %v13785_v19, %v962_v57  ;;  %v991_v6 = vpop.f32.mrf.mxu0  ;;  %14186 = vmatprep.mubr.f32.mxu1 %v21759_v33  ;;  %14368 = vmatpush3.msra.mxu0 %v21752_v59  ;;  %v21760_v2 = vld [vmem:[#allocation30_spill] sm:$0xff]  ;;  %v17018_v59 = vld [vmem:[%s20744_s2] ss:$0 sm:$0xff]  ;;  %v21767_v33 = vand.u32 4294901760, %v21749_v28 }
 0x188   : > { %v2164_v46 = vpop.f32.mrf.mxu1  ;;  %14592 = vmatpush3.msra.mxu1 %v21755_v8  ;;  %14369 = vmatprep.subr.mxu0 %v21760_v2  ;;  %v972_v57 = vadd.f32 %v17018_v59, %v971_v29  ;;  %v1002_v8 = vadd.f32 %v17018_v59, %v13567_v52  ;;  %v21771_v29 = vld [vmem:[#allocation23_spill] sm:$0xff]  ;;  %v21773_v28 = vld [vmem:[#allocation82_spill] sm:$0xff] }
 0x189   : > { %21758 = vst [vmem:[#allocation7_spill] sm:$0xff] %v17001_v55  ;;  %v17008_v41 = vadd.f32 %v2164_v46, %v952_v4  ;;  %v13570_v31 = vpop.f32.mrf.mxu0  ;;  %13969 = vmatmul.mubr.f32.gmra.mxu0 %v21762_v35  ;;  %14593 = vmatprep.subr.mxu1 %v21763_v3  ;;  %v21768_v46 = vld [vmem:[#allocation39_spill] sm:$0xff]  ;;  %v21770_v55 = vld [vmem:[#allocation81_spill] sm:$0xff] }
 0x18a   : > { %v13788_v32 = vpop.f32.mrf.mxu1  ;;  %14187 = vmatmul.mubr.f32.gmra.mxu1 %v21764_v36  ;;  %13971 = vmatprep.mubr.f32.mxu0 %v21765_v37 }
 0x18b   : > { %21761 = vst [vmem:[#allocation8_spill] sm:$0xff] %v17008_v41  ;;  %v17022_v19 = vadd.f32 %v13788_v32, %v982_v30  ;;  %v1011_v4 = vpop.f32.mrf.mxu0  ;;  %14189 = vmatprep.mubr.f32.mxu1 %v21767_v33  ;;  %14370 = vmatpush3.msra.mxu0 %v21760_v2  ;;  %v21772_v30 = vand.u32 4294901760, %v21754_v27  ;;  %v992_v2 = vadd.f32 %v17018_v59, %v991_v6  ;;  %v21779_v6 = vld [vmem:[#allocation27_spill] sm:$0xff] }
 0x18c   : > { %v2176_v40 = vpop.f32.mrf.mxu1  ;;  %14594 = vmatpush3.msra.mxu1 %v21763_v3  ;;  %14371 = vmatprep.subr.mxu0 %v21768_v46  ;;  %v1022_v32 = vadd.f32 %v17018_v59, %v13570_v31 }
 0x18d   : > { %21766 = vst [vmem:[#allocation46_spill] sm:$0xff] %v17022_v19  ;;  %v17029_v36 = vadd.f32 %v2176_v40, %v972_v57  ;;  %v13573_v41 = vpop.f32.mrf.mxu0  ;;  %13972 = vmatmul.mubr.f32.gmra.mxu0 %v21770_v55  ;;  %14595 = vmatprep.subr.mxu1 %v21771_v29  ;;  %v21775_v57 = vand.u32 4294901760, %v21757_v25  ;;  %v21778_v19 = vld [vmem:[#allocation84_spill] sm:$0xff]  ;;  %v21781_v25 = vld [vmem:[#allocation87_spill] sm:$0xff] }
 0x18e   : > { %v13791_v52 = vpop.f32.mrf.mxu1  ;;  %14190 = vmatmul.mubr.f32.gmra.mxu1 %v21772_v30  ;;  %13974 = vmatprep.mubr.f32.mxu0 %v21773_v28 }
 0x18f   : > { %21769 = vst [vmem:[#allocation48_spill] sm:$0xff] %v17029_v36  ;;  %v17038_v3 = vadd.f32 %v13791_v52, %v1002_v8  ;;  %v1031_v33 = vpop.f32.mrf.mxu0  ;;  %14192 = vmatprep.mubr.f32.mxu1 %v21775_v57  ;;  %14372 = vmatpush3.msra.mxu0 %v21768_v46  ;;  %v21776_v36 = vld [vmem:[#allocation41_spill] sm:$0xff]  ;;  %v21780_v8 = vand.u32 4294901760, %v21762_v35  ;;  %v1012_v46 = vadd.f32 %v17018_v59, %v1011_v4  ;;  %v21787_v4 = vld [vmem:[#allocation32_spill] sm:$0xff] }
 0x190   : > { %v2188_v40 = vpop.f32.mrf.mxu1  ;;  %14596 = vmatpush3.msra.mxu1 %v21771_v29  ;;  %14373 = vmatprep.subr.mxu0 %v21776_v36  ;;  %v1042_v52 = vadd.f32 %v17018_v59, %v13573_v41 }
 0x191   : > { %21774 = vst [vmem:[#allocation9_spill] sm:$0xff] %v17038_v3  ;;  %v17045_v27 = vadd.f32 %v2188_v40, %v992_v2  ;;  %v13576_v30 = vpop.f32.mrf.mxu0  ;;  %13975 = vmatmul.mubr.f32.gmra.mxu0 %v21778_v19  ;;  %14597 = vmatprep.subr.mxu1 %v21779_v6  ;;  %v21783_v2 = vand.u32 4294901760, %v21765_v37  ;;  %v21786_v3 = vld [vmem:[#allocation89_spill] sm:$0xff]  ;;  %v21789_v37 = vld [vmem:[#allocation90_spill] sm:$0xff] }
 0x192   : > { %v13794_v31 = vpop.f32.mrf.mxu1  ;;  %14193 = vmatmul.mubr.f32.gmra.mxu1 %v21780_v8  ;;  %13977 = vmatprep.mubr.f32.mxu0 %v21781_v25 }
 0x193   : > { %21777 = vst [vmem:[#allocation50_spill] sm:$0xff] %v17045_v27  ;;  %v17054_v29 = vadd.f32 %v13794_v31, %v1022_v32  ;;  %v1051_v57 = vpop.f32.mrf.mxu0  ;;  %14195 = vmatprep.mubr.f32.mxu1 %v21783_v2  ;;  %14374 = vmatpush3.msra.mxu0 %v21776_v36  ;;  %v21784_v27 = vld [vmem:[#allocation43_spill] sm:$0xff]  ;;  %v21788_v32 = vand.u32 4294901760, %v21770_v55  ;;  %v1032_v36 = vadd.f32 %v17018_v59, %v1031_v33  ;;  %v21794_v33 = vand.u32 4294901760, %v21778_v19 }
 0x194   : > { %v2200_v40 = vpop.f32.mrf.mxu1  ;;  %14598 = vmatpush3.msra.mxu1 %v21779_v6  ;;  %14375 = vmatprep.subr.mxu0 %v21784_v27  ;;  %v1062_v31 = vadd.f32 %v17018_v59, %v13576_v30  ;;  %v21795_v30 = vld [vmem:[#allocation94_spill] sm:$0xff] }
 0x195   : > { %21782 = vst [vmem:[#allocation11_spill] sm:$0xff] %v17054_v29  ;;  %v17061_v35 = vadd.f32 %v2200_v40, %v1012_v46  ;;  %v13579_v8 = vpop.f32.mrf.mxu0  ;;  %13978 = vmatmul.mubr.f32.gmra.mxu0 %v21786_v3  ;;  %14599 = vmatprep.subr.mxu1 %v21787_v4  ;;  %v21791_v46 = vand.u32 4294901760, %v21773_v28 }
 0x196   : > { %v13797_v41 = vpop.f32.mrf.mxu1  ;;  %14196 = vmatmul.mubr.f32.gmra.mxu1 %v21788_v32  ;;  %13980 = vmatprep.mubr.f32.mxu0 %v21789_v37  ;;  %v21793_v32 = vld [vmem:[#allocation92_spill] sm:$0xff]  ;;  %v1082_v28 = vadd.f32 %v17018_v59, %v13579_v8 }
 0x197   : > { %21785 = vst [vmem:[#allocation54_spill] sm:$0xff] %v17061_v35  ;;  %v17070_v6 = vadd.f32 %v13797_v41, %v1042_v52  ;;  %v1071_v2 = vpop.f32.mrf.mxu0  ;;  %14198 = vmatprep.mubr.f32.mxu1 %v21791_v46  ;;  %14376 = vmatpush3.msra.mxu0 %v21784_v27  ;;  %v1052_v52 = vadd.f32 %v17018_v59, %v1051_v57 }
 0x198   : > { %v2212_v40 = vpop.f32.mrf.mxu1  ;;  %14600 = vmatpush3.msra.mxu1 %v21787_v4  ;;  %v21797_v4 = vand.u32 4294901760, %v21781_v25  ;;  %v1072_v57 = vadd.f32 %v17018_v59, %v1071_v2 }
 0x199   : > { %21790 = vst [vmem:[#allocation13_spill] sm:$0xff] %v17070_v6  ;;  %v17076_v35 = vadd.f32 %v2212_v40, %v1032_v36  ;;  %v13582_v55 = vpop.f32.mrf.mxu0  ;;  %13981 = vmatmul.mubr.f32.gmra.mxu0 %v21793_v32  ;;  %v21801_v6 = vld [vmem:[#allocation97_spill] sm:$0xff] }
 0x19a   : > { %v13800_v29 = vpop.f32.mrf.mxu1  ;;  %14199 = vmatmul.mubr.f32.gmra.mxu1 %v21794_v33  ;;  %13983 = vmatprep.mubr.f32.mxu0 %v21795_v30  ;;  %v21800_v33 = vand.u32 4294901760, %v21786_v3 }
 0x19b   : > { %21792 = vst [vmem:[#allocation15_spill] sm:$0xff] %v17076_v35  ;;  %v17084_v41 = vadd.f32 %v13800_v29, %v1062_v31  ;;  %v1091_v27 = vpop.f32.mrf.mxu0  ;;  %14201 = vmatprep.mubr.f32.mxu1 %v21797_v4  ;;  %v21799_v35 = vld [vmem:[#allocation22_spill] sm:$0xff]  ;;  %v1102_v29 = vadd.f32 %v17018_v59, %v13582_v55  ;;  %v21803_v31 = vand.u32 4294901760, %v21789_v37 }
 0x19c   : > { %v2224_v36 = vpop.f32.mrf.mxu1  ;;  %v1092_v2 = vadd.f32 %v17018_v59, %v1091_v27 }
 0x19d   : > { %21796 = vst [vmem:[#allocation59_spill] sm:$0xff] %v17084_v41  ;;  %v17088_v46 = vadd.f32 %v2224_v36, %v1052_v52  ;;  %v13585_v40 = vpop.f32.mrf.mxu0  ;;  %13984 = vmatmul.mubr.f32.gmra.mxu0 %v21799_v35  ;;  %v21807_v41 = vld [vmem:[#allocation101_spill] sm:$0xff] }
 0x19e   : > { %v13803_v19 = vpop.f32.mrf.mxu1  ;;  %14202 = vmatmul.mubr.f32.gmra.mxu1 %v21800_v33  ;;  %13986 = vmatprep.mubr.f32.mxu0 %v21801_v6  ;;  %v21806_v33 = vand.u32 4294901760, %v21793_v32  ;;  %v1122_v55 = vadd.f32 %v17018_v59, %v13585_v40 }
 0x19f   : > { %21798 = vst [vmem:[#allocation60_spill] sm:$0xff] %v17088_v46  ;;  %v17096_v8 = vadd.f32 %v13803_v19, %v1082_v28  ;;  %v1111_v25 = vpop.f32.mrf.mxu0  ;;  %14204 = vmatprep.mubr.f32.mxu1 %v21803_v31  ;;  %v21805_v46 = vld [vmem:[#allocation33_spill] sm:$0xff]  ;;  %v21809_v19 = vand.u32 4294901760, %v21795_v30 }
 0x1a0   : > { %v2236_v52 = vpop.f32.mrf.mxu1  ;;  %v1112_v27 = vadd.f32 %v17018_v59, %v1111_v25 }
 0x1a1   : > { %21802 = vst [vmem:[#allocation17_spill] sm:$0xff] %v17096_v8  ;;  %v17100_v4 = vadd.f32 %v2236_v52, %v1072_v57  ;;  %v13588_v36 = vpop.f32.mrf.mxu0  ;;  %13987 = vmatmul.mubr.f32.gmra.mxu0 %v21805_v46  ;;  %v21813_v8 = vld [vmem:[#allocation104_spill] sm:$0xff] }
 0x1a2   : > { %v13806_v3 = vpop.f32.mrf.mxu1  ;;  %14205 = vmatmul.mubr.f32.gmra.mxu1 %v21806_v33  ;;  %13989 = vmatprep.mubr.f32.mxu0 %v21807_v41  ;;  %v21812_v33 = vand.u32 4294901760, %v21799_v35  ;;  %v1142_v40 = vadd.f32 %v17018_v59, %v13588_v36 }
 0x1a3   : > { %21804 = vst [vmem:[#allocation62_spill] sm:$0xff] %v17100_v4  ;;  %v17108_v28 = vadd.f32 %v13806_v3, %v1102_v29  ;;  %v1131_v37 = vpop.f32.mrf.mxu0  ;;  %14207 = vmatprep.mubr.f32.mxu1 %v21809_v19  ;;  %v21811_v4 = vld [vmem:[#allocation102_spill] sm:$0xff]  ;;  %v21815_v3 = vand.u32 4294901760, %v21801_v6 }
 0x1a4   : > { %v2248_v57 = vpop.f32.mrf.mxu1  ;;  %v1132_v25 = vadd.f32 %v17018_v59, %v1131_v37 }
 0x1a5   : > { %21808 = vst [vmem:[#allocation19_spill] sm:$0xff] %v17108_v28  ;;  %v17112_v31 = vadd.f32 %v2248_v57, %v1092_v2  ;;  %v13591_v52 = vpop.f32.mrf.mxu0  ;;  %13990 = vmatmul.mubr.f32.gmra.mxu0 %v21811_v4  ;;  %v21819_v28 = vld [vmem:[#allocation108_spill] sm:$0xff] }
 0x1a6   : > { %v13809_v32 = vpop.f32.mrf.mxu1  ;;  %14208 = vmatmul.mubr.f32.gmra.mxu1 %v21812_v33  ;;  %13992 = vmatprep.mubr.f32.mxu0 %v21813_v8  ;;  %v21818_v33 = vand.u32 4294901760, %v21805_v46  ;;  %v1162_v36 = vadd.f32 %v17018_v59, %v13591_v52 }
 0x1a7   : > { %21810 = vst [vmem:[#allocation10_spill] sm:$0xff] %v17112_v31  ;;  %v17120_v29 = vadd.f32 %v13809_v32, %v1122_v55  ;;  %v1151_v30 = vpop.f32.mrf.mxu0  ;;  %14210 = vmatprep.mubr.f32.mxu1 %v21815_v3  ;;  %v21817_v31 = vld [vmem:[#allocation106_spill] sm:$0xff]  ;;  %v21821_v32 = vand.u32 4294901760, %v21807_v41 }
 0x1a8   : > { %v2260_v2 = vpop.f32.mrf.mxu1  ;;  %v1152_v37 = vadd.f32 %v17018_v59, %v1151_v30 }
 0x1a9   : > { %21814 = vst [vmem:[#allocation66_spill] sm:$0xff] %v17120_v29  ;;  %v17124_v19 = vadd.f32 %v2260_v2, %v1112_v27  ;;  %v13594_v57 = vpop.f32.mrf.mxu0  ;;  %13993 = vmatmul.mubr.f32.gmra.mxu0 %v21817_v31  ;;  %v21825_v29 = vld [vmem:[#allocation111_spill] sm:$0xff] }
 0x1aa   : > { %v13812_v35 = vpop.f32.mrf.mxu1  ;;  %14211 = vmatmul.mubr.f32.gmra.mxu1 %v21818_v33  ;;  %13995 = vmatprep.mubr.f32.mxu0 %v21819_v28  ;;  %v21824_v33 = vand.u32 4294901760, %v21811_v4  ;;  %v1182_v52 = vadd.f32 %v17018_v59, %v13594_v57 }
 0x1ab   : > { %21816 = vst [vmem:[#allocation25_spill] sm:$0xff] %v17124_v19  ;;  %v17132_v55 = vadd.f32 %v13812_v35, %v1142_v40  ;;  %v1171_v6 = vpop.f32.mrf.mxu0  ;;  %14213 = vmatprep.mubr.f32.mxu1 %v21821_v32  ;;  %v21823_v19 = vld [vmem:[#allocation5_spill] sm:$0xff]  ;;  %v21827_v35 = vand.u32 4294901760, %v21813_v8 }
 0x1ac   : > { %v2272_v27 = vpop.f32.mrf.mxu1  ;;  %v1172_v30 = vadd.f32 %v17018_v59, %v1171_v6 }
 0x1ad   : > { %21820 = vst [vmem:[#allocation68_spill] sm:$0xff] %v17132_v55  ;;  %v17136_v3 = vadd.f32 %v2272_v27, %v1132_v25  ;;  %v13597_v2 = vpop.f32.mrf.mxu0  ;;  %13996 = vmatmul.mubr.f32.gmra.mxu0 %v21823_v19  ;;  %v21831_v55 = vld [vmem:[#allocation116_spill] sm:$0xff] }
 0x1ae   : > { %v13815_v46 = vpop.f32.mrf.mxu1  ;;  %14214 = vmatmul.mubr.f32.gmra.mxu1 %v21824_v33  ;;  %13998 = vmatprep.mubr.f32.mxu0 %v21825_v29  ;;  %v21830_v33 = vand.u32 4294901760, %v21817_v31  ;;  %v1202_v57 = vadd.f32 %v17018_v59, %v13597_v2 }
 0x1af   : > { %21822 = vst [vmem:[#allocation12_spill] sm:$0xff] %v17136_v3  ;;  %v17144_v40 = vadd.f32 %v13815_v46, %v1162_v36  ;;  %v1191_v41 = vpop.f32.mrf.mxu0  ;;  %14216 = vmatprep.mubr.f32.mxu1 %v21827_v35  ;;  %v21829_v3 = vld [vmem:[#allocation113_spill] sm:$0xff]  ;;  %v21833_v46 = vand.u32 4294901760, %v21819_v28 }
 0x1b0   : > { %v2284_v25 = vpop.f32.mrf.mxu1  ;;  %v1192_v6 = vadd.f32 %v17018_v59, %v1191_v41 }
 0x1b1   : > { %21826 = vst [vmem:[#allocation71_spill] sm:$0xff] %v17144_v40  ;;  %v17148_v32 = vadd.f32 %v2284_v25, %v1152_v37  ;;  %v13600_v27 = vpop.f32.mrf.mxu0  ;;  %13999 = vmatmul.mubr.f32.gmra.mxu0 %v21829_v3  ;;  %v21837_v40 = vld [vmem:[#allocation119_spill] sm:$0xff] }
 0x1b2   : > { %v13818_v4 = vpop.f32.mrf.mxu1  ;;  %14217 = vmatmul.mubr.f32.gmra.mxu1 %v21830_v33  ;;  %14001 = vmatprep.mubr.f32.mxu0 %v21831_v55  ;;  %v21836_v33 = vand.u32 4294901760, %v21823_v19  ;;  %v1222_v2 = vadd.f32 %v17018_v59, %v13600_v27 }
 0x1b3   : > { %21828 = vst [vmem:[#allocation28_spill] sm:$0xff] %v17148_v32  ;;  %v17156_v36 = vadd.f32 %v13818_v4, %v1182_v52  ;;  %v1211_v8 = vpop.f32.mrf.mxu0  ;;  %14219 = vmatprep.mubr.f32.mxu1 %v21833_v46  ;;  %v21835_v32 = vld [vmem:[#allocation118_spill] sm:$0xff]  ;;  %v21839_v4 = vand.u32 4294901760, %v21825_v29 }
 0x1b4   : > { %v2296_v37 = vpop.f32.mrf.mxu1  ;;  %v1212_v41 = vadd.f32 %v17018_v59, %v1211_v8 }
 0x1b5   : > { %21832 = vst [vmem:[#allocation73_spill] sm:$0xff] %v17156_v36  ;;  %v17160_v35 = vadd.f32 %v2296_v37, %v1172_v30  ;;  %v13603_v25 = vpop.f32.mrf.mxu0  ;;  %14002 = vmatmul.mubr.f32.gmra.mxu0 %v21835_v32  ;;  %v21843_v36 = vld [vmem:[#allocation123_spill] sm:$0xff] }
 0x1b6   : > { %v13821_v31 = vpop.f32.mrf.mxu1  ;;  %14220 = vmatmul.mubr.f32.gmra.mxu1 %v21836_v33  ;;  %14004 = vmatprep.mubr.f32.mxu0 %v21837_v40  ;;  %v21842_v33 = vand.u32 4294901760, %v21829_v3  ;;  %v1242_v27 = vadd.f32 %v17018_v59, %v13603_v25 }
 0x1b7   : > { %21834 = vst [vmem:[#allocation14_spill] sm:$0xff] %v17160_v35  ;;  %v17168_v52 = vadd.f32 %v13821_v31, %v1202_v57  ;;  %v1231_v28 = vpop.f32.mrf.mxu0  ;;  %14222 = vmatprep.mubr.f32.mxu1 %v21839_v4  ;;  %v21841_v35 = vld [vmem:[#allocation121_spill] sm:$0xff]  ;;  %v21845_v31 = vand.u32 4294901760, %v21831_v55 }
 0x1b8   : > { %v2308_v30 = vpop.f32.mrf.mxu1  ;;  %v1232_v8 = vadd.f32 %v17018_v59, %v1231_v28 }
 0x1b9   : > { %21838 = vst [vmem:[#allocation74_spill] sm:$0xff] %v17168_v52  ;;  %v17172_v46 = vadd.f32 %v2308_v30, %v1192_v6  ;;  %v13606_v37 = vpop.f32.mrf.mxu0  ;;  %14005 = vmatmul.mubr.f32.gmra.mxu0 %v21841_v35  ;;  %v21849_v52 = vld [vmem:[#allocation127_spill] sm:$0xff] }
 0x1ba   : > { %v13824_v19 = vpop.f32.mrf.mxu1  ;;  %14223 = vmatmul.mubr.f32.gmra.mxu1 %v21842_v33  ;;  %14007 = vmatprep.mubr.f32.mxu0 %v21843_v36  ;;  %v21848_v33 = vand.u32 4294901760, %v21835_v32  ;;  %v1262_v25 = vadd.f32 %v17018_v59, %v13606_v37 }
 0x1bb   : > { %21840 = vst [vmem:[#allocation30_spill] sm:$0xff] %v17172_v46  ;;  %v17180_v57 = vadd.f32 %v13824_v19, %v1222_v2  ;;  %v1251_v29 = vpop.f32.mrf.mxu0  ;;  %14225 = vmatprep.mubr.f32.mxu1 %v21845_v31  ;;  %v21847_v46 = vld [vmem:[#allocation125_spill] sm:$0xff]  ;;  %v21851_v19 = vand.u32 4294901760, %v21837_v40 }
 0x1bc   : > { %v2320_v6 = vpop.f32.mrf.mxu1  ;;  %v1252_v28 = vadd.f32 %v17018_v59, %v1251_v29 }
 0x1bd   : > { %21844 = vst [vmem:[#allocation76_spill] sm:$0xff] %v17180_v57  ;;  %v17184_v4 = vadd.f32 %v2320_v6, %v1212_v41  ;;  %v13609_v30 = vpop.f32.mrf.mxu0  ;;  %14008 = vmatmul.mubr.f32.gmra.mxu0 %v21847_v46  ;;  %v21855_v57 = vld [vmem:[#allocation132_spill] sm:$0xff] }
 0x1be   : > { %v13827_v3 = vpop.f32.mrf.mxu1  ;;  %14226 = vmatmul.mubr.f32.gmra.mxu1 %v21848_v33  ;;  %14010 = vmatprep.mubr.f32.mxu0 %v21849_v52  ;;  %v21854_v33 = vand.u32 4294901760, %v21841_v35  ;;  %v1282_v37 = vadd.f32 %v17018_v59, %v13609_v30 }
 0x1bf   : > { %21846 = vst [vmem:[#allocation16_spill] sm:$0xff] %v17184_v4  ;;  %v17192_v2 = vadd.f32 %v13827_v3, %v1242_v27  ;;  %v1271_v55 = vpop.f32.mrf.mxu0  ;;  %14228 = vmatprep.mubr.f32.mxu1 %v21851_v19  ;;  %v21853_v4 = vld [vmem:[#allocation129_spill] sm:$0xff]  ;;  %v21857_v3 = vand.u32 4294901760, %v21843_v36 }
 0x1c0   : > { %v2332_v41 = vpop.f32.mrf.mxu1  ;;  %v1272_v29 = vadd.f32 %v17018_v59, %v1271_v55 }
 0x1c1   : > { %21850 = vst [vmem:[#allocation78_spill] sm:$0xff] %v17192_v2  ;;  %v17196_v31 = vadd.f32 %v2332_v41, %v1232_v8  ;;  %v13612_v6 = vpop.f32.mrf.mxu0  ;;  %14011 = vmatmul.mubr.f32.gmra.mxu0 %v21853_v4  ;;  %v21861_v2 = vld [vmem:[#allocation135_spill] sm:$0xff] }
 0x1c2   : > { %v13830_v32 = vpop.f32.mrf.mxu1  ;;  %14229 = vmatmul.mubr.f32.gmra.mxu1 %v21854_v33  ;;  %14013 = vmatprep.mubr.f32.mxu0 %v21855_v57  ;;  %v21860_v33 = vand.u32 4294901760, %v21847_v46  ;;  %v1302_v30 = vadd.f32 %v17018_v59, %v13612_v6 }
 0x1c3   : > { %21852 = vst [vmem:[#allocation39_spill] sm:$0xff] %v17196_v31  ;;  %v17204_v27 = vadd.f32 %v13830_v32, %v1262_v25  ;;  %v1291_v40 = vpop.f32.mrf.mxu0  ;;  %14231 = vmatprep.mubr.f32.mxu1 %v21857_v3  ;;  %v21859_v31 = vld [vmem:[#allocation134_spill] sm:$0xff]  ;;  %v21863_v32 = vand.u32 4294901760, %v21849_v52 }
 0x1c4   : > { %v2344_v8 = vpop.f32.mrf.mxu1  ;;  %v1292_v55 = vadd.f32 %v17018_v59, %v1291_v40 }
 0x1c5   : > { %21856 = vst [vmem:[#allocation81_spill] sm:$0xff] %v17204_v27  ;;  %v17208_v19 = vadd.f32 %v2344_v8, %v1252_v28  ;;  %v13615_v41 = vpop.f32.mrf.mxu0  ;;  %14014 = vmatmul.mubr.f32.gmra.mxu0 %v21859_v31  ;;  %v21867_v27 = vld [vmem:[#allocation139_spill] sm:$0xff] }
 0x1c6   : > { %v13833_v35 = vpop.f32.mrf.mxu1  ;;  %14232 = vmatmul.mubr.f32.gmra.mxu1 %v21860_v33  ;;  %14016 = vmatprep.mubr.f32.mxu0 %v21861_v2  ;;  %v21866_v33 = vand.u32 4294901760, %v21853_v4  ;;  %v1322_v6 = vadd.f32 %v17018_v59, %v13615_v41 }
 0x1c7   : > { %21858 = vst [vmem:[#allocation23_spill] sm:$0xff] %v17208_v19  ;;  %v17216_v25 = vadd.f32 %v13833_v35, %v1282_v37  ;;  %v1311_v36 = vpop.f32.mrf.mxu0  ;;  %14234 = vmatprep.mubr.f32.mxu1 %v21863_v32  ;;  %v21865_v19 = vld [vmem:[#allocation137_spill] sm:$0xff]  ;;  %v21869_v35 = vand.u32 4294901760, %v21855_v57 }
 0x1c8   : > { %v2356_v28 = vpop.f32.mrf.mxu1  ;;  %v1312_v40 = vadd.f32 %v17018_v59, %v1311_v36 }
 0x1c9   : > { %21862 = vst [vmem:[#allocation82_spill] sm:$0xff] %v17216_v25  ;;  %v17220_v3 = vadd.f32 %v2356_v28, %v1272_v29  ;;  %v13618_v8 = vpop.f32.mrf.mxu0  ;;  %14017 = vmatmul.mubr.f32.gmra.mxu0 %v21865_v19  ;;  %v21873_v25 = vld [vmem:[#allocation143_spill] sm:$0xff] }
 0x1ca   : > { %v13836_v46 = vpop.f32.mrf.mxu1  ;;  %14235 = vmatmul.mubr.f32.gmra.mxu1 %v21866_v33  ;;  %14019 = vmatprep.mubr.f32.mxu0 %v21867_v27  ;;  %v21872_v33 = vand.u32 4294901760, %v21859_v31  ;;  %v1342_v41 = vadd.f32 %v17018_v59, %v13618_v8 }
 0x1cb   : > { %21864 = vst [vmem:[#allocation41_spill] sm:$0xff] %v17220_v3  ;;  %v17228_v37 = vadd.f32 %v13836_v46, %v1302_v30  ;;  %v1331_v52 = vpop.f32.mrf.mxu0  ;;  %14237 = vmatprep.mubr.f32.mxu1 %v21869_v35  ;;  %v21871_v3 = vld [vmem:[#allocation142_spill] sm:$0xff]  ;;  %v21875_v46 = vand.u32 4294901760, %v21861_v2 }
 0x1cc   : > { %v2368_v29 = vpop.f32.mrf.mxu1  ;;  %v1332_v36 = vadd.f32 %v17018_v59, %v1331_v52 }
 0x1cd   : > { %21868 = vst [vmem:[#allocation84_spill] sm:$0xff] %v17228_v37  ;;  %v17232_v32 = vadd.f32 %v2368_v29, %v1292_v55  ;;  %v13621_v28 = vpop.f32.mrf.mxu0  ;;  %14020 = vmatmul.mubr.f32.gmra.mxu0 %v21871_v3  ;;  %v21879_v37 = vld [vmem:[#allocation148_spill] sm:$0xff] }
 0x1ce   : > { %v13839_v4 = vpop.f32.mrf.mxu1  ;;  %14238 = vmatmul.mubr.f32.gmra.mxu1 %v21872_v33  ;;  %14022 = vmatprep.mubr.f32.mxu0 %v21873_v25  ;;  %v21878_v33 = vand.u32 4294901760, %v21865_v19  ;;  %v1362_v8 = vadd.f32 %v17018_v59, %v13621_v28 }
 0x1cf   : > { %21870 = vst [vmem:[#allocation27_spill] sm:$0xff] %v17232_v32  ;;  %v17240_v30 = vadd.f32 %v13839_v4, %v1322_v6  ;;  %v1351_v57 = vpop.f32.mrf.mxu0  ;;  %14240 = vmatprep.mubr.f32.mxu1 %v21875_v46  ;;  %v21877_v32 = vld [vmem:[#allocation145_spill] sm:$0xff]  ;;  %v21881_v4 = vand.u32 4294901760, %v21867_v27 }
 0x1d0   : > { %v2380_v55 = vpop.f32.mrf.mxu1  ;;  %v1352_v52 = vadd.f32 %v17018_v59, %v1351_v57 }
 0x1d1   : > { %21874 = vst [vmem:[#allocation87_spill] sm:$0xff] %v17240_v30  ;;  %v17244_v35 = vadd.f32 %v2380_v55, %v1312_v40  ;;  %v13624_v29 = vpop.f32.mrf.mxu0  ;;  %14023 = vmatmul.mubr.f32.gmra.mxu0 %v21877_v32  ;;  %v21885_v30 = vld [vmem:[#allocation151_spill] sm:$0xff] }
 0x1d2   : > { %v13842_v31 = vpop.f32.mrf.mxu1  ;;  %14241 = vmatmul.mubr.f32.gmra.mxu1 %v21878_v33  ;;  %14025 = vmatprep.mubr.f32.mxu0 %v21879_v37  ;;  %v21884_v33 = vand.u32 4294901760, %v21871_v3  ;;  %v1382_v28 = vadd.f32 %v17018_v59, %v13624_v29 }
 0x1d3   : > { %21876 = vst [vmem:[#allocation43_spill] sm:$0xff] %v17244_v35  ;;  %v17252_v6 = vadd.f32 %v13842_v31, %v1342_v41  ;;  %v1371_v2 = vpop.f32.mrf.mxu0  ;;  %14243 = vmatprep.mubr.f32.mxu1 %v21881_v4  ;;  %v21883_v35 = vld [vmem:[#allocation150_spill] sm:$0xff]  ;;  %v21887_v31 = vand.u32 4294901760, %v21873_v25 }
 0x1d4   : > { %v2392_v40 = vpop.f32.mrf.mxu1  ;;  %v1372_v57 = vadd.f32 %v17018_v59, %v1371_v2 }
 0x1d5   : > { %21880 = vst [vmem:[#allocation89_spill] sm:$0xff] %v17252_v6  ;;  %v17256_v46 = vadd.f32 %v2392_v40, %v1332_v36  ;;  %v13627_v55 = vpop.f32.mrf.mxu0  ;;  %14026 = vmatmul.mubr.f32.gmra.mxu0 %v21883_v35  ;;  %v21891_v6 = vld [vmem:[#allocation155_spill] sm:$0xff] }
 0x1d6   : > { %v13845_v19 = vpop.f32.mrf.mxu1  ;;  %14244 = vmatmul.mubr.f32.gmra.mxu1 %v21884_v33  ;;  %14028 = vmatprep.mubr.f32.mxu0 %v21885_v30  ;;  %v21890_v33 = vand.u32 4294901760, %v21877_v32  ;;  %v1402_v29 = vadd.f32 %v17018_v59, %v13627_v55 }
 0x1d7   : > { %21882 = vst [vmem:[#allocation32_spill] sm:$0xff] %v17256_v46  ;;  %v17264_v41 = vadd.f32 %v13845_v19, %v1362_v8  ;;  %v1391_v27 = vpop.f32.mrf.mxu0  ;;  %14246 = vmatprep.mubr.f32.mxu1 %v21887_v31  ;;  %v21889_v46 = vld [vmem:[#allocation153_spill] sm:$0xff]  ;;  %v21893_v19 = vand.u32 4294901760, %v21879_v37 }
 0x1d8   : > { %v2404_v36 = vpop.f32.mrf.mxu1  ;;  %v1392_v2 = vadd.f32 %v17018_v59, %v1391_v27 }
 0x1d9   : > { %21886 = vst [vmem:[#allocation90_spill] sm:$0xff] %v17264_v41  ;;  %v17268_v4 = vadd.f32 %v2404_v36, %v1352_v52  ;;  %v13630_v40 = vpop.f32.mrf.mxu0  ;;  %14029 = vmatmul.mubr.f32.gmra.mxu0 %v21889_v46  ;;  %v21897_v41 = vld [vmem:[#allocation159_spill] sm:$0xff] }
 0x1da   : > { %v13848_v3 = vpop.f32.mrf.mxu1  ;;  %14247 = vmatmul.mubr.f32.gmra.mxu1 %v21890_v33  ;;  %14031 = vmatprep.mubr.f32.mxu0 %v21891_v6  ;;  %v21896_v33 = vand.u32 4294901760, %v21883_v35  ;;  %v1422_v55 = vadd.f32 %v17018_v59, %v13630_v40 }
 0x1db   : > { %21888 = vst [vmem:[#allocation92_spill] sm:$0xff] %v17268_v4  ;;  %v17276_v8 = vadd.f32 %v13848_v3, %v1382_v28  ;;  %v1411_v25 = vpop.f32.mrf.mxu0  ;;  %14249 = vmatprep.mubr.f32.mxu1 %v21893_v19  ;;  %v21895_v4 = vld [vmem:[#allocation157_spill] sm:$0xff]  ;;  %v21899_v3 = vand.u32 4294901760, %v21885_v30 }
 0x1dc   : > { %v2416_v52 = vpop.f32.mrf.mxu1  ;;  %v1412_v27 = vadd.f32 %v17018_v59, %v1411_v25 }
 0x1dd   : > { %21892 = vst [vmem:[#allocation94_spill] sm:$0xff] %v17276_v8  ;;  %v17280_v31 = vadd.f32 %v2416_v52, %v1372_v57  ;;  %v13633_v36 = vpop.f32.mrf.mxu0  ;;  %14032 = vmatmul.mubr.f32.gmra.mxu0 %v21895_v4  ;;  %v21903_v8 = vld [vmem:[#allocation164_spill] sm:$0xff] }
 0x1de   : > { %v13851_v32 = vpop.f32.mrf.mxu1  ;;  %14250 = vmatmul.mubr.f32.gmra.mxu1 %v21896_v33  ;;  %14034 = vmatprep.mubr.f32.mxu0 %v21897_v41  ;;  %v21902_v33 = vand.u32 4294901760, %v21889_v46  ;;  %v1442_v40 = vadd.f32 %v17018_v59, %v13633_v36 }
 0x1df   : > { %21894 = vst [vmem:[#allocation22_spill] sm:$0xff] %v17280_v31  ;;  %v17288_v28 = vadd.f32 %v13851_v32, %v1402_v29  ;;  %v1431_v37 = vpop.f32.mrf.mxu0  ;;  %14252 = vmatprep.mubr.f32.mxu1 %v21899_v3  ;;  %v21901_v31 = vld [vmem:[#allocation162_spill] sm:$0xff]  ;;  %v21905_v32 = vand.u32 4294901760, %v21891_v6 }
 0x1e0   : > { %v2428_v57 = vpop.f32.mrf.mxu1  ;;  %v1432_v25 = vadd.f32 %v17018_v59, %v1431_v37 }
 0x1e1   : > { %21898 = vst [vmem:[#allocation97_spill] sm:$0xff] %v17288_v28  ;;  %v17292_v19 = vadd.f32 %v2428_v57, %v1392_v2  ;;  %v13636_v52 = vpop.f32.mrf.mxu0  ;;  %14035 = vmatmul.mubr.f32.gmra.mxu0 %v21901_v31  ;;  %v21909_v28 = vld [vmem:[#allocation167_spill] sm:$0xff] }
 0x1e2   : > { %v13854_v35 = vpop.f32.mrf.mxu1  ;;  %14253 = vmatmul.mubr.f32.gmra.mxu1 %v21902_v33  ;;  %14037 = vmatprep.mubr.f32.mxu0 %v21903_v8  ;;  %v21908_v33 = vand.u32 4294901760, %v21895_v4  ;;  %v1462_v36 = vadd.f32 %v17018_v59, %v13636_v52 }
 0x1e3   : > { %21900 = vst [vmem:[#allocation33_spill] sm:$0xff] %v17292_v19  ;;  %v17300_v29 = vadd.f32 %v13854_v35, %v1422_v55  ;;  %v1451_v30 = vpop.f32.mrf.mxu0  ;;  %14255 = vmatprep.mubr.f32.mxu1 %v21905_v32  ;;  %v21907_v19 = vld [vmem:[#allocation165_spill] sm:$0xff]  ;;  %v21911_v35 = vand.u32 4294901760, %v21897_v41 }
 0x1e4   : > { %v2440_v2 = vpop.f32.mrf.mxu1  ;;  %v1452_v37 = vadd.f32 %v17018_v59, %v1451_v30 }
 0x1e5   : > { %21904 = vst [vmem:[#allocation101_spill] sm:$0xff] %v17300_v29  ;;  %v17304_v3 = vadd.f32 %v2440_v2, %v1412_v27  ;;  %v13639_v57 = vpop.f32.mrf.mxu0  ;;  %14038 = vmatmul.mubr.f32.gmra.mxu0 %v21907_v19  ;;  %v21915_v29 = vld [vmem:[#allocation171_spill] sm:$0xff] }
 0x1e6   : > { %v13857_v46 = vpop.f32.mrf.mxu1  ;;  %14256 = vmatmul.mubr.f32.gmra.mxu1 %v21908_v33  ;;  %14040 = vmatprep.mubr.f32.mxu0 %v21909_v28  ;;  %v21914_v33 = vand.u32 4294901760, %v21901_v31  ;;  %v1482_v52 = vadd.f32 %v17018_v59, %v13639_v57 }
 0x1e7   : > { %21906 = vst [vmem:[#allocation102_spill] sm:$0xff] %v17304_v3  ;;  %v17312_v55 = vadd.f32 %v13857_v46, %v1442_v40  ;;  %v1471_v6 = vpop.f32.mrf.mxu0  ;;  %14258 = vmatprep.mubr.f32.mxu1 %v21911_v35  ;;  %v21913_v3 = vld [vmem:[#allocation169_spill] sm:$0xff]  ;;  %v21917_v46 = vand.u32 4294901760, %v21903_v8 }
 0x1e8   : > { %v2452_v27 = vpop.f32.mrf.mxu1  ;;  %v1472_v30 = vadd.f32 %v17018_v59, %v1471_v6 }
 0x1e9   : > { %21910 = vst [vmem:[#allocation104_spill] sm:$0xff] %v17312_v55  ;;  %v17316_v32 = vadd.f32 %v2452_v27, %v1432_v25  ;;  %v13642_v2 = vpop.f32.mrf.mxu0  ;;  %14041 = vmatmul.mubr.f32.gmra.mxu0 %v21913_v3  ;;  %v21921_v55 = vld [vmem:[#allocation175_spill] sm:$0xff] }
 0x1ea   : > { %v13860_v4 = vpop.f32.mrf.mxu1  ;;  %14259 = vmatmul.mubr.f32.gmra.mxu1 %v21914_v33  ;;  %14043 = vmatprep.mubr.f32.mxu0 %v21915_v29  ;;  %v21920_v33 = vand.u32 4294901760, %v21907_v19  ;;  %v1502_v57 = vadd.f32 %v17018_v59, %v13642_v2 }
 0x1eb   : > { %21912 = vst [vmem:[#allocation106_spill] sm:$0xff] %v17316_v32  ;;  %v17324_v40 = vadd.f32 %v13860_v4, %v1462_v36  ;;  %v1491_v41 = vpop.f32.mrf.mxu0  ;;  %14261 = vmatprep.mubr.f32.mxu1 %v21917_v46  ;;  %v21919_v32 = vld [vmem:[#allocation173_spill] sm:$0xff]  ;;  %v21923_v4 = vand.u32 4294901760, %v21909_v28 }
 0x1ec   : > { %v2464_v25 = vpop.f32.mrf.mxu1  ;;  %v1492_v6 = vadd.f32 %v17018_v59, %v1491_v41 }
 0x1ed   : > { %21916 = vst [vmem:[#allocation108_spill] sm:$0xff] %v17324_v40  ;;  %v17328_v35 = vadd.f32 %v2464_v25, %v1452_v37  ;;  %v13645_v27 = vpop.f32.mrf.mxu0  ;;  %14044 = vmatmul.mubr.f32.gmra.mxu0 %v21919_v32  ;;  %v21927_v40 = vld [vmem:[#allocation180_spill] sm:$0xff] }
 0x1ee   : > { %v13863_v31 = vpop.f32.mrf.mxu1  ;;  %14262 = vmatmul.mubr.f32.gmra.mxu1 %v21920_v33  ;;  %14046 = vmatprep.mubr.f32.mxu0 %v21921_v55  ;;  %v21926_v33 = vand.u32 4294901760, %v21913_v3  ;;  %v1522_v2 = vadd.f32 %v17018_v59, %v13645_v27 }
 0x1ef   : > { %21918 = vst [vmem:[#allocation5_spill] sm:$0xff] %v17328_v35  ;;  %v17336_v36 = vadd.f32 %v13863_v31, %v1482_v52  ;;  %v1511_v8 = vpop.f32.mrf.mxu0  ;;  %14264 = vmatprep.mubr.f32.mxu1 %v21923_v4  ;;  %v21925_v35 = vld [vmem:[#allocation177_spill] sm:$0xff]  ;;  %v21929_v31 = vand.u32 4294901760, %v21915_v29 }
 0x1f0   : > { %v2476_v37 = vpop.f32.mrf.mxu1  ;;  %v1512_v41 = vadd.f32 %v17018_v59, %v1511_v8 }
 0x1f1   : > { %21922 = vst [vmem:[#allocation111_spill] sm:$0xff] %v17336_v36  ;;  %v17340_v46 = vadd.f32 %v2476_v37, %v1472_v30  ;;  %v13648_v25 = vpop.f32.mrf.mxu0  ;;  %14047 = vmatmul.mubr.f32.gmra.mxu0 %v21925_v35  ;;  %v21933_v36 = vld [vmem:[#allocation183_spill] sm:$0xff] }
 0x1f2   : > { %v13866_v19 = vpop.f32.mrf.mxu1  ;;  %14265 = vmatmul.mubr.f32.gmra.mxu1 %v21926_v33  ;;  %14049 = vmatprep.mubr.f32.mxu0 %v21927_v40  ;;  %v21932_v33 = vand.u32 4294901760, %v21919_v32  ;;  %v1542_v27 = vadd.f32 %v17018_v59, %v13648_v25 }
 0x1f3   : > { %21924 = vst [vmem:[#allocation113_spill] sm:$0xff] %v17340_v46  ;;  %v17348_v52 = vadd.f32 %v13866_v19, %v1502_v57  ;;  %v1531_v28 = vpop.f32.mrf.mxu0  ;;  %14267 = vmatprep.mubr.f32.mxu1 %v21929_v31  ;;  %v21931_v46 = vld [vmem:[#allocation182_spill] sm:$0xff]  ;;  %v21935_v19 = vand.u32 4294901760, %v21921_v55 }
 0x1f4   : > { %v2488_v30 = vpop.f32.mrf.mxu1  ;;  %v1532_v8 = vadd.f32 %v17018_v59, %v1531_v28 }
 0x1f5   : > { %21928 = vst [vmem:[#allocation116_spill] sm:$0xff] %v17348_v52  ;;  %v17352_v4 = vadd.f32 %v2488_v30, %v1492_v6  ;;  %v13651_v37 = vpop.f32.mrf.mxu0  ;;  %14050 = vmatmul.mubr.f32.gmra.mxu0 %v21931_v46  ;;  %v21939_v52 = vld [vmem:[#allocation187_spill] sm:$0xff] }
 0x1f6   : > { %v13869_v3 = vpop.f32.mrf.mxu1  ;;  %14268 = vmatmul.mubr.f32.gmra.mxu1 %v21932_v33  ;;  %14052 = vmatprep.mubr.f32.mxu0 %v21933_v36  ;;  %v21938_v33 = vand.u32 4294901760, %v21925_v35  ;;  %v1562_v25 = vadd.f32 %v17018_v59, %v13651_v37 }
 0x1f7   : > { %21930 = vst [vmem:[#allocation118_spill] sm:$0xff] %v17352_v4  ;;  %v17360_v57 = vadd.f32 %v13869_v3, %v1522_v2  ;;  %v1551_v29 = vpop.f32.mrf.mxu0  ;;  %14270 = vmatprep.mubr.f32.mxu1 %v21935_v19  ;;  %v21937_v4 = vld [vmem:[#allocation185_spill] sm:$0xff]  ;;  %v21941_v3 = vand.u32 4294901760, %v21927_v40 }
 0x1f8   : > { %v2500_v6 = vpop.f32.mrf.mxu1  ;;  %v1552_v28 = vadd.f32 %v17018_v59, %v1551_v29 }
 0x1f9   : > { %21934 = vst [vmem:[#allocation119_spill] sm:$0xff] %v17360_v57  ;;  %v17364_v31 = vadd.f32 %v2500_v6, %v1512_v41  ;;  %v13654_v30 = vpop.f32.mrf.mxu0  ;;  %14053 = vmatmul.mubr.f32.gmra.mxu0 %v21937_v4  ;;  %v21945_v57 = vld [vmem:[#allocation191_spill] sm:$0xff] }
 0x1fa   : > { %v13872_v32 = vpop.f32.mrf.mxu1  ;;  %14271 = vmatmul.mubr.f32.gmra.mxu1 %v21938_v33  ;;  %14055 = vmatprep.mubr.f32.mxu0 %v21939_v52  ;;  %v21944_v33 = vand.u32 4294901760, %v21931_v46  ;;  %v1582_v37 = vadd.f32 %v17018_v59, %v13654_v30 }
 0x1fb   : > { %21936 = vst [vmem:[#allocation121_spill] sm:$0xff] %v17364_v31  ;;  %v17372_v2 = vadd.f32 %v13872_v32, %v1542_v27  ;;  %v1571_v55 = vpop.f32.mrf.mxu0  ;;  %14273 = vmatprep.mubr.f32.mxu1 %v21941_v3  ;;  %v21943_v31 = vld [vmem:[#allocation189_spill] sm:$0xff]  ;;  %v21947_v32 = vand.u32 4294901760, %v21933_v36 }
 0x1fc   : > { %v2512_v41 = vpop.f32.mrf.mxu1  ;;  %v1572_v29 = vadd.f32 %v17018_v59, %v1571_v55 }
 0x1fd   : > { %21940 = vst [vmem:[#allocation123_spill] sm:$0xff] %v17372_v2  ;;  %v17376_v19 = vadd.f32 %v2512_v41, %v1532_v8  ;;  %v13657_v6 = vpop.f32.mrf.mxu0  ;;  %14056 = vmatmul.mubr.f32.gmra.mxu0 %v21943_v31  ;;  %v21951_v2 = vld [vmem:[#allocation196_spill] sm:$0xff] }
 0x1fe   : > { %v13875_v35 = vpop.f32.mrf.mxu1  ;;  %14274 = vmatmul.mubr.f32.gmra.mxu1 %v21944_v33  ;;  %14058 = vmatprep.mubr.f32.mxu0 %v21945_v57  ;;  %v21950_v33 = vand.u32 4294901760, %v21937_v4  ;;  %v1602_v30 = vadd.f32 %v17018_v59, %v13657_v6 }
 0x1ff   : > { %21942 = vst [vmem:[#allocation125_spill] sm:$0xff] %v17376_v19  ;;  %v17384_v27 = vadd.f32 %v13875_v35, %v1562_v25  ;;  %v1591_v40 = vpop.f32.mrf.mxu0  ;;  %14276 = vmatprep.mubr.f32.mxu1 %v21947_v32  ;;  %v21949_v19 = vld [vmem:[#allocation193_spill] sm:$0xff]  ;;  %v21953_v35 = vand.u32 4294901760, %v21939_v52 }
 0x200   : > { %v2524_v8 = vpop.f32.mrf.mxu1  ;;  %v1592_v55 = vadd.f32 %v17018_v59, %v1591_v40 }
 0x201   : > { %21946 = vst [vmem:[#allocation127_spill] sm:$0xff] %v17384_v27  ;;  %v17388_v3 = vadd.f32 %v2524_v8, %v1552_v28  ;;  %v13660_v41 = vpop.f32.mrf.mxu0  ;;  %14059 = vmatmul.mubr.f32.gmra.mxu0 %v21949_v19  ;;  %v21957_v27 = vld [vmem:[#allocation199_spill] sm:$0xff] }
 0x202   : > { %v13878_v46 = vpop.f32.mrf.mxu1  ;;  %14277 = vmatmul.mubr.f32.gmra.mxu1 %v21950_v33  ;;  %14061 = vmatprep.mubr.f32.mxu0 %v21951_v2  ;;  %v21956_v33 = vand.u32 4294901760, %v21943_v31  ;;  %v1622_v6 = vadd.f32 %v17018_v59, %v13660_v41 }
 0x203   : > { %21948 = vst [vmem:[#allocation129_spill] sm:$0xff] %v17388_v3  ;;  %v17396_v25 = vadd.f32 %v13878_v46, %v1582_v37  ;;  %v1611_v36 = vpop.f32.mrf.mxu0  ;;  %14279 = vmatprep.mubr.f32.mxu1 %v21953_v35  ;;  %v21955_v3 = vld [vmem:[#allocation198_spill] sm:$0xff]  ;;  %v21959_v46 = vand.u32 4294901760, %v21945_v57 }
 0x204   : > { %v2536_v28 = vpop.f32.mrf.mxu1  ;;  %v1612_v40 = vadd.f32 %v17018_v59, %v1611_v36 }
 0x205   : > { %21952 = vst [vmem:[#allocation132_spill] sm:$0xff] %v17396_v25  ;;  %v17400_v32 = vadd.f32 %v2536_v28, %v1572_v29  ;;  %v13663_v8 = vpop.f32.mrf.mxu0  ;;  %14062 = vmatmul.mubr.f32.gmra.mxu0 %v21955_v3  ;;  %v21963_v25 = vld [vmem:[#allocation203_spill] sm:$0xff] }
 0x206   : > { %v13881_v4 = vpop.f32.mrf.mxu1  ;;  %14280 = vmatmul.mubr.f32.gmra.mxu1 %v21956_v33  ;;  %14064 = vmatprep.mubr.f32.mxu0 %v21957_v27  ;;  %v21962_v33 = vand.u32 4294901760, %v21949_v19  ;;  %v1642_v41 = vadd.f32 %v17018_v59, %v13663_v8 }
 0x207   : > { %21954 = vst [vmem:[#allocation134_spill] sm:$0xff] %v17400_v32  ;;  %v17408_v37 = vadd.f32 %v13881_v4, %v1602_v30  ;;  %v1631_v52 = vpop.f32.mrf.mxu0  ;;  %14282 = vmatprep.mubr.f32.mxu1 %v21959_v46  ;;  %v21961_v32 = vld [vmem:[#allocation201_spill] sm:$0xff]  ;;  %v21965_v4 = vand.u32 4294901760, %v21951_v2 }
 0x208   : > { %v2548_v29 = vpop.f32.mrf.mxu1  ;;  %v1632_v36 = vadd.f32 %v17018_v59, %v1631_v52 }
 0x209   : > { %21958 = vst [vmem:[#allocation135_spill] sm:$0xff] %v17408_v37  ;;  %v17412_v35 = vadd.f32 %v2548_v29, %v1592_v55  ;;  %v13666_v28 = vpop.f32.mrf.mxu0  ;;  %14065 = vmatmul.mubr.f32.gmra.mxu0 %v21961_v32  ;;  %v21969_v37 = vld [vmem:[#allocation207_spill] sm:$0xff] }
 0x20a   : > { %v13884_v31 = vpop.f32.mrf.mxu1  ;;  %14283 = vmatmul.mubr.f32.gmra.mxu1 %v21962_v33  ;;  %14067 = vmatprep.mubr.f32.mxu0 %v21963_v25  ;;  %v21968_v33 = vand.u32 4294901760, %v21955_v3  ;;  %v1662_v8 = vadd.f32 %v17018_v59, %v13666_v28 }
 0x20b   : > { %21960 = vst [vmem:[#allocation137_spill] sm:$0xff] %v17412_v35  ;;  %v17420_v30 = vadd.f32 %v13884_v31, %v1622_v6  ;;  %v1651_v57 = vpop.f32.mrf.mxu0  ;;  %14285 = vmatprep.mubr.f32.mxu1 %v21965_v4  ;;  %v21967_v35 = vld [vmem:[#allocation206_spill] sm:$0xff]  ;;  %v21971_v31 = vand.u32 4294901760, %v21957_v27 }
 0x20c   : > { %v2560_v55 = vpop.f32.mrf.mxu1  ;;  %v1652_v52 = vadd.f32 %v17018_v59, %v1651_v57  ;;  %v21981_v43 = vand.u32 4294901760, %v21967_v35  ;;  %v21982_v57 = vld [vmem:[#allocation215_spill] sm:$0xff] }
 0x20d   : > { %21964 = vst [vmem:[#allocation139_spill] sm:$0xff] %v17420_v30  ;;  %v17424_v46 = vadd.f32 %v2560_v55, %v1612_v40  ;;  %v13669_v29 = vpop.f32.mrf.mxu0  ;;  %14068 = vmatmul.mubr.f32.gmra.mxu0 %v21967_v35  ;;  %v21975_v30 = vld [vmem:[#allocation212_spill] sm:$0xff]  ;;  %v21987_v35 = vld [vmem:[#allocation217_spill] sm:$0xff] }
 0x20e   : > { %v13887_v19 = vpop.f32.mrf.mxu1  ;;  %14286 = vmatmul.mubr.f32.gmra.mxu1 %v21968_v33  ;;  %14070 = vmatprep.mubr.f32.mxu0 %v21969_v37  ;;  %v21974_v33 = vand.u32 4294901760, %v21961_v32  ;;  %v1682_v28 = vadd.f32 %v17018_v59, %v13669_v29 }
 0x20f   : > { %21966 = vst [vmem:[#allocation142_spill] sm:$0xff] %v17424_v46  ;;  %v17432_v6 = vadd.f32 %v13887_v19, %v1642_v41  ;;  %v1671_v2 = vpop.f32.mrf.mxu0  ;;  %14288 = vmatprep.mubr.f32.mxu1 %v21971_v31  ;;  %v21973_v46 = vld [vmem:[#allocation209_spill] sm:$0xff]  ;;  %v21977_v19 = vand.u32 4294901760, %v21963_v25 }
 0x210   : > { %v2572_v40 = vpop.f32.mrf.mxu1  ;;  %v1672_v29 = vadd.f32 %v17018_v59, %v1671_v2  ;;  %v21989_v2 = vand.u32 4294901760, %v21973_v46 }
 0x211   : > { %21970 = vst [vmem:[#allocation143_spill] sm:$0xff] %v17432_v6  ;;  %v17436_v4 = vadd.f32 %v2572_v40, %v1632_v36  ;;  %v13672_v55 = vpop.f32.mrf.mxu0  ;;  %14071 = vmatmul.mubr.f32.gmra.mxu0 %v21973_v46  ;;  %v21994_v46 = vld [vmem:[#allocation253_spill] sm:$0xff] }
 0x212   : > { %v13890_v3 = vpop.f32.mrf.mxu1  ;;  %14289 = vmatmul.mubr.f32.gmra.mxu1 %v21974_v33  ;;  %14073 = vmatprep.mubr.f32.mxu0 %v21975_v30  ;;  %v21980_v33 = vld [vmem:[#allocation241_spill] sm:$0xff] }
 0x213   : > { %21972 = vst [vmem:[#allocation145_spill] sm:$0xff] %v17436_v4  ;;  %v17444_v41 = vadd.f32 %v13890_v3, %v1662_v8  ;;  %v1691_v27 = vpop.f32.mrf.mxu0  ;;  %14291 = vmatprep.mubr.f32.mxu1 %v21977_v19  ;;  %v21979_v4 = vld [vmem:[#allocation214_spill] sm:$0xff]  ;;  %v1702_v8 = vadd.f32 %v17018_v59, %v13672_v55  ;;  %v21990_v55 = vld [vmem:[#allocation219_spill] sm:$0xff] }
 0x214   : > { %v2584_v36 = vpop.f32.mrf.mxu1 }
 0x215   : > { %21976 = vst [vmem:[#allocation148_spill] sm:$0xff] %v17444_v41  ;;  %v17448_v31 = vadd.f32 %v2584_v36, %v1652_v52  ;;  %v13931_v40 = vpop.f32.mrf.mxu0  ;;  %14074 = vmatmul.mubr.f32.gmra.mxu0 %v21979_v4  ;;  %v21984_v52 = vand.u32 4294901760, %v21969_v37  ;;  %v21985_v36 = vld [vmem:[#allocation242_spill] sm:$0xff] }
 0x216   : > { %v13893_v32 = vpop.f32.mrf.mxu1  ;;  %v2726_v6 = vadd.f32 %v13931_v40, %v21980_v33  ;;  %14292 = vmatmul.mubr.f32.gmra.mxu1 %v21981_v43  ;;  %14076 = vmatprep.mubr.f32.mxu0 %v21982_v57  ;;  %v21988_v33 = vld [vmem:[#allocation247_spill] sm:$0xff] }
 0x217   : > { %21978 = vst [vmem:[#allocation150_spill] sm:$0xff] %v17448_v31  ;;  %v17457_v25 = vadd.f32 %v13893_v32, %v1682_v28  ;;  %v2718_v3 = vpop.f32.mrf.mxu0  ;;  %14294 = vmatprep.mubr.f32.mxu1 %v21984_v52  ;;  %v1692_v28 = vadd.f32 %v17018_v59, %v1691_v27  ;;  %v21992_v52 = vld [vmem:[#allocation249_spill] sm:$0xff]  ;;  %v21996_v59 = vld [vmem:[#allocation223_spill] sm:$0xff] }
 0x218   : > { %v2596_v19 = vpop.f32.mrf.mxu1  ;;  %v2719_v31 = vadd.f32 %v2718_v3, %v21985_v36  ;;  %v21991_v3 = vand.u32 4294901760, %v21975_v30 }
 0x219   : > { %21983 = vst [vmem:[#allocation151_spill] sm:$0xff] %v17457_v25  ;;  %v17462_v41 = vadd.f32 %v2596_v19, %v1672_v29  ;;  %v13934_v40 = vpop.f32.mrf.mxu0  ;;  %14077 = vmatmul.mubr.f32.gmra.mxu0 %v21987_v35  ;;  %v21995_v25 = vand.u32 4294901760, %v21979_v4 }
 0x21a   : > { %v13896_v43 = vpop.f32.mrf.mxu1  ;;  %v2740_v24 = vadd.f32 %v13934_v40, %v21988_v33  ;;  %14295 = vmatmul.mubr.f32.gmra.mxu1 %v21989_v2  ;;  %14079 = vmatprep.mubr.f32.mxu0 %v21990_v55  ;;  %v21993_v40 = vld [vmem:[#allocation221_spill] sm:$0xff] }
 0x21b   : > { %21986 = vst [vmem:[#allocation153_spill] sm:$0xff] %v17462_v41  ;;  %v17470_v37 = vadd.f32 %v13896_v43, %v1702_v8  ;;  %v2732_v32 = vpop.f32.mrf.mxu0  ;;  %14297 = vmatprep.mubr.f32.mxu1 %v21991_v3  ;;  %v21998_v8 = vand.u32 4294901760, %v21982_v57  ;;  %v21999_v43 = vld [vmem:[#allocation256_spill] sm:$0xff] }
 0x21c   : > { %v2608_v29 = vpop.f32.mrf.mxu1  ;;  %v2733_v19 = vadd.f32 %v2732_v32, %v21992_v52  ;;  %v22001_v52 = vld [vmem:[#allocation226_spill] sm:$0xff] }
 0x21d   : > { %v17475_v36 = vadd.f32 %v2608_v29, %v1692_v28  ;;  %v13937_v41 = vpop.f32.mrf.mxu0  ;;  %14080 = vmatmul.mubr.f32.gmra.mxu0 %v21993_v40 }
 0x21e   : > { %v2754_v33 = vadd.f32 %v13937_v41, %v21994_v46  ;;  %v14155_v2 = vpop.f32.mrf.mxu1  ;;  %14298 = vmatmul.mubr.f32.gmra.mxu1 %v21995_v25  ;;  %14082 = vmatprep.mubr.f32.mxu0 %v21996_v59  ;;  %v22002_v41 = vld [vmem:[#allocation259_spill] sm:$0xff]  ;;  %v22003_v25 = vand.u32 4294901760, %v21987_v35 }
 0x21f   : > { %v17482_v27 = vadd.f32 %v14155_v2, %v2726_v6  ;;  %v2746_v30 = vpop.f32.mrf.mxu0  ;;  %14300 = vmatprep.mubr.f32.mxu1 %v21998_v8  ;;  %v22004_v6 = vld [vmem:[#allocation227_spill] sm:$0xff]  ;;  %v22006_v8 = vand.u32 4294901760, %v21990_v55 }
 0x220   : > { %v2747_v28 = vadd.f32 %v2746_v30, %v21999_v43  ;;  %v3696_v32 = vpop.f32.mrf.mxu1  ;;  %v22007_v30 = vld [vmem:[#allocation262_spill] sm:$0xff] }
 0x221   : > { %21997 = vst [vmem:[#allocation155_spill] sm:$0xff] %v17482_v27  ;;  %v17487_v3 = vadd.f32 %v3696_v32, %v2719_v31  ;;  %v13940_v29 = vpop.f32.mrf.mxu0  ;;  %14083 = vmatmul.mubr.f32.gmra.mxu0 %v22001_v52  ;;  %v22009_v27 = vld [vmem:[#allocation229_spill] sm:$0xff] }
 0x222   : > { %v2768_v46 = vadd.f32 %v13940_v29, %v22002_v41  ;;  %v14158_v4 = vpop.f32.mrf.mxu1  ;;  %14301 = vmatmul.mubr.f32.gmra.mxu1 %v22003_v25  ;;  %14085 = vmatprep.mubr.f32.mxu0 %v22004_v6  ;;  %v22010_v29 = vld [vmem:[#allocation265_spill] sm:$0xff]  ;;  %v22011_v25 = vand.u32 4294901760, %v21993_v40 }
 0x223   : > { %22000 = vst [vmem:[#allocation157_spill] sm:$0xff] %v17487_v3  ;;  %v17494_v2 = vadd.f32 %v14158_v4, %v2740_v24  ;;  %v2760_v57 = vpop.f32.mrf.mxu0  ;;  %14303 = vmatprep.mubr.f32.mxu1 %v22006_v8  ;;  %v22012_v24 = vld [vmem:[#allocation232_spill] sm:$0xff]  ;;  %v22014_v8 = vand.u32 4294901760, %v21996_v59 }
 0x224   : > { %v2761_v31 = vadd.f32 %v2760_v57, %v22007_v30  ;;  %v3712_v43 = vpop.f32.mrf.mxu1  ;;  %v22015_v57 = vld [vmem:[#allocation267_spill] sm:$0xff] }
 0x225   : > { %22005 = vst [vmem:[#allocation159_spill] sm:$0xff] %v17494_v2  ;;  %v17499_v32 = vadd.f32 %v3712_v43, %v2733_v19  ;;  %v13943_v3 = vpop.f32.mrf.mxu0  ;;  %14086 = vmatmul.mubr.f32.gmra.mxu0 %v22009_v27  ;;  %v22017_v2 = vld [vmem:[#allocation233_spill] sm:$0xff] }
 0x226   : > { %v2782_v41 = vadd.f32 %v13943_v3, %v22010_v29  ;;  %v14161_v35 = vpop.f32.mrf.mxu1  ;;  %14304 = vmatmul.mubr.f32.gmra.mxu1 %v22011_v25  ;;  %14088 = vmatprep.mubr.f32.mxu0 %v22012_v24  ;;  %v22018_v3 = vld [vmem:[#allocation271_spill] sm:$0xff]  ;;  %v22019_v25 = vand.u32 4294901760, %v22001_v52 }
 0x227   : > { %22008 = vst [vmem:[#allocation162_spill] sm:$0xff] %v17499_v32  ;;  %v17506_v4 = vadd.f32 %v14161_v35, %v2754_v33  ;;  %v2774_v55 = vpop.f32.mrf.mxu0  ;;  %14306 = vmatprep.mubr.f32.mxu1 %v22014_v8  ;;  %v22020_v33 = vld [vmem:[#allocation235_spill] sm:$0xff]  ;;  %v22022_v8 = vand.u32 4294901760, %v22004_v6 }
 0x228   : > { %v2775_v19 = vadd.f32 %v2774_v55, %v22015_v57  ;;  %v3728_v30 = vpop.f32.mrf.mxu1  ;;  %v22023_v55 = vld [vmem:[#allocation273_spill] sm:$0xff] }
 0x229   : > { %22013 = vst [vmem:[#allocation164_spill] sm:$0xff] %v17506_v4  ;;  %v17511_v43 = vadd.f32 %v3728_v30, %v2747_v28  ;;  %v13946_v32 = vpop.f32.mrf.mxu0  ;;  %14089 = vmatmul.mubr.f32.gmra.mxu0 %v22017_v2  ;;  %v22025_v4 = vld [vmem:[#allocation237_spill] sm:$0xff] }
 0x22a   : > { %v2796_v29 = vadd.f32 %v13946_v32, %v22018_v3  ;;  %v14164_v40 = vpop.f32.mrf.mxu1  ;;  %14307 = vmatmul.mubr.f32.gmra.mxu1 %v22019_v25  ;;  %14091 = vmatprep.mubr.f32.mxu0 %v22020_v33  ;;  %v22026_v32 = vld [vmem:[#allocation276_spill] sm:$0xff]  ;;  %v22027_v25 = vand.u32 4294901760, %v22009_v27 }
 0x22b   : > { %22016 = vst [vmem:[#allocation165_spill] sm:$0xff] %v17511_v43  ;;  %v17518_v35 = vadd.f32 %v14164_v40, %v2768_v46  ;;  %v2788_v59 = vpop.f32.mrf.mxu0  ;;  %14309 = vmatprep.mubr.f32.mxu1 %v22022_v8  ;;  %v22028_v46 = vld [vmem:[#allocation239_spill] sm:$0xff]  ;;  %v22029_v8 = vand.u32 4294901760, %v22012_v24 }
 0x22c   : > { %v2789_v28 = vadd.f32 %v2788_v59, %v22023_v55  ;;  %v3744_v57 = vpop.f32.mrf.mxu1  ;;  %v22030_v59 = vld [vmem:[#allocation277_spill] sm:$0xff] }
 0x22d   : > { %22021 = vst [vmem:[#allocation167_spill] sm:$0xff] %v17518_v35  ;;  %v17523_v30 = vadd.f32 %v3744_v57, %v2761_v31  ;;  %v13949_v43 = vpop.f32.mrf.mxu0  ;;  %14092 = vmatmul.mubr.f32.gmra.mxu0 %v22025_v4  ;;  %v22031_v35 = vld [vmem:[#allocation243_spill] sm:$0xff] }
 0x22e   : > { %v2810_v3 = vadd.f32 %v13949_v43, %v22026_v32  ;;  %v14167_v52 = vpop.f32.mrf.mxu1  ;;  %14310 = vmatmul.mubr.f32.gmra.mxu1 %v22027_v25  ;;  %14094 = vmatprep.mubr.f32.mxu0 %v22028_v46  ;;  %v22032_v32 = vand.u32 4294901760, %v22017_v2  ;;  %v22034_v25 = vand.u32 4294901760, %v22020_v33 }
 0x22f   : > { %22024 = vst [vmem:[#allocation169_spill] sm:$0xff] %v17523_v30  ;;  %v17530_v40 = vadd.f32 %v14167_v52, %v2782_v41  ;;  %v2802_v6 = vpop.f32.mrf.mxu0  ;;  %14312 = vmatprep.mubr.f32.mxu1 %v22029_v8  ;;  %v22033_v41 = vld [vmem:[#allocation245_spill] sm:$0xff] }
 0x230   : > { %v2803_v31 = vadd.f32 %v2802_v6, %v22030_v59  ;;  %v3760_v55 = vpop.f32.mrf.mxu1 }
 0x231   : > { %v17535_v57 = vadd.f32 %v3760_v55, %v2775_v19  ;;  %v13952_v30 = vpop.f32.mrf.mxu0  ;;  %14095 = vmatmul.mubr.f32.gmra.mxu0 %v22031_v35  ;;  %v22035_v55 = vld [vmem:[#allocation250_spill] sm:$0xff] }
 0x232   : > { %v2824_v43 = vadd.f32 %v13952_v30, %v16719_v62  ;;  %v14170_v27 = vpop.f32.mrf.mxu1  ;;  %14313 = vmatmul.mubr.f32.gmra.mxu1 %v22032_v32  ;;  %14097 = vmatprep.mubr.f32.mxu0 %v22033_v41  ;;  %v22036_v30 = vand.u32 4294901760, %v22025_v4  ;;  %v22038_v32 = vand.u32 4294901760, %v22028_v46 }
 0x233   : > { %v17542_v52 = vadd.f32 %v14170_v27, %v2796_v29  ;;  %v2816_v24 = vpop.f32.mrf.mxu0  ;;  %14315 = vmatprep.mubr.f32.mxu1 %v22034_v25  ;;  %v22037_v29 = vld [vmem:[#allocation251_spill] sm:$0xff] }
 0x234   : > { %v2817_v19 = vadd.f32 %v2816_v24, %v16723_v50  ;;  %v3776_v6 = vpop.f32.mrf.mxu1 }
 0x235   : > { %v17547_v8 = vadd.f32 %v3776_v6, %v2789_v28  ;;  %v13955_v59 = vpop.f32.mrf.mxu0  ;;  %14098 = vmatmul.mubr.f32.gmra.mxu0 %v22035_v55  ;;  %v22039_v6 = vld [vmem:[#allocation254_spill] sm:$0xff] }
 0x236   : > { %v2838_v62 = vadd.f32 %v13955_v59, %v16743_v13  ;;  %v14173_v2 = vpop.f32.mrf.mxu1  ;;  %14316 = vmatmul.mubr.f32.gmra.mxu1 %v22036_v30  ;;  %14100 = vmatprep.mubr.f32.mxu0 %v22037_v29  ;;  %v22040_v59 = vand.u32 4294901760, %v22031_v35  ;;  %v22042_v30 = vand.u32 4294901760, %v22033_v41 }
 0x237   : > { %v17554_v27 = vadd.f32 %v14173_v2, %v2810_v3  ;;  %v2830_v33 = vpop.f32.mrf.mxu0  ;;  %14318 = vmatprep.mubr.f32.mxu1 %v22038_v32  ;;  %v22041_v3 = vld [vmem:[#allocation258_spill] sm:$0xff] }
 0x238   : > { %v2831_v50 = vadd.f32 %v2830_v33, %v16749_v14  ;;  %v3792_v28 = vpop.f32.mrf.mxu1 }
 0x239   : > { %v17559_v24 = vadd.f32 %v3792_v28, %v2803_v31  ;;  %v13958_v25 = vpop.f32.mrf.mxu0  ;;  %14101 = vmatmul.mubr.f32.gmra.mxu0 %v22039_v6  ;;  %v22043_v28 = vld [vmem:[#allocation260_spill] sm:$0xff] }
 0x23a   : > { %v2852_v13 = vadd.f32 %v13958_v25, %v16762_v23  ;;  %v14176_v4 = vpop.f32.mrf.mxu1  ;;  %14319 = vmatmul.mubr.f32.gmra.mxu1 %v22040_v59  ;;  %14103 = vmatprep.mubr.f32.mxu0 %v22041_v3  ;;  %v22044_v25 = vand.u32 4294901760, %v22035_v55  ;;  %v22046_v59 = vand.u32 4294901760, %v22037_v29 }
 0x23b   : > { %v17566_v2 = vadd.f32 %v14176_v4, %v2824_v43  ;;  %v2844_v46 = vpop.f32.mrf.mxu0  ;;  %14321 = vmatprep.mubr.f32.mxu1 %v22042_v30  ;;  %v22045_v43 = vld [vmem:[#allocation263_spill] sm:$0xff] }
 0x23c   : > { %v2845_v14 = vadd.f32 %v2844_v46, %v16765_v63  ;;  %v3808_v31 = vpop.f32.mrf.mxu1 }
 0x23d   : > { %v17571_v33 = vadd.f32 %v3808_v31, %v2817_v19  ;;  %v13961_v32 = vpop.f32.mrf.mxu0  ;;  %14104 = vmatmul.mubr.f32.gmra.mxu0 %v22043_v28  ;;  %v22047_v31 = vld [vmem:[#allocation266_spill] sm:$0xff] }
 0x23e   : > { %v2866_v23 = vadd.f32 %v13961_v32, %v16777_v15  ;;  %v14179_v35 = vpop.f32.mrf.mxu1  ;;  %14322 = vmatmul.mubr.f32.gmra.mxu1 %v22044_v25  ;;  %14106 = vmatprep.mubr.f32.mxu0 %v22045_v43  ;;  %v22048_v32 = vand.u32 4294901760, %v22039_v6  ;;  %v22050_v25 = vand.u32 4294901760, %v22041_v3 }
 0x23f   : > { %v17578_v4 = vadd.f32 %v14179_v35, %v2838_v62  ;;  %v2858_v41 = vpop.f32.mrf.mxu0  ;;  %14324 = vmatprep.mubr.f32.mxu1 %v22046_v59  ;;  %v22049_v62 = vld [vmem:[#allocation269_spill] sm:$0xff] }
 0x240   : > { %v2859_v63 = vadd.f32 %v2858_v41, %v16780_v18  ;;  %v3824_v19 = vpop.f32.mrf.mxu1 }
 0x241   : > { %v17583_v46 = vadd.f32 %v3824_v19, %v2831_v50  ;;  %v13964_v30 = vpop.f32.mrf.mxu0  ;;  %14107 = vmatmul.mubr.f32.gmra.mxu0 %v22047_v31  ;;  %v22051_v19 = vand.u32 4294901760, %v22043_v28 }
 0x242   : > { %v2880_v15 = vadd.f32 %v13964_v30, %v16788_v1  ;;  %v14182_v55 = vpop.f32.mrf.mxu1  ;;  %14325 = vmatmul.mubr.f32.gmra.mxu1 %v22048_v32  ;;  %14109 = vmatprep.mubr.f32.mxu0 %v22049_v62 }
 0x243   : > { %v17590_v35 = vadd.f32 %v14182_v55, %v2852_v13  ;;  %v2872_v29 = vpop.f32.mrf.mxu0  ;;  %14327 = vmatprep.mubr.f32.mxu1 %v22050_v25  ;;  %v22052_v13 = vld [vmem:[#allocation274_spill] sm:$0xff]  ;;  %v22053_v55 = vand.u32 4294901760, %v22045_v43  ;;  %v22054_v25 = vand.u32 4294901760, %v22047_v31 }
 0x244   : > { %v2873_v18 = vadd.f32 %v2872_v29, %v16791_v53  ;;  %v3840_v50 = vpop.f32.mrf.mxu1 }
 0x245   : > { %v17595_v41 = vadd.f32 %v3840_v50, %v2845_v14  ;;  %v13967_v59 = vpop.f32.mrf.mxu0  ;;  %14110 = vmatmul.mubr.f32.gmra.mxu0 %v16679_v17  ;;  %v22055_v50 = vand.u32 4294901760, %v22049_v62 }
 0x246   : > { %v2894_v1 = vadd.f32 %v13967_v59, %v16796_v58  ;;  %v14185_v6 = vpop.f32.mrf.mxu1  ;;  %14328 = vmatmul.mubr.f32.gmra.mxu1 %v22051_v19  ;;  %14112 = vmatprep.mubr.f32.mxu0 %v22052_v13  ;;  %v22056_v19 = vand.u32 4294901760, %v16679_v17 }
 0x247   : > { %v17602_v30 = vadd.f32 %v14185_v6, %v2866_v23  ;;  %v2886_v3 = vpop.f32.mrf.mxu0  ;;  %14330 = vmatprep.mubr.f32.mxu1 %v22053_v55 }
 0x248   : > { %v2887_v53 = vadd.f32 %v2886_v3, %v16799_v51  ;;  %v3856_v14 = vpop.f32.mrf.mxu1  ;;  %v22057_v3 = vand.u32 4294901760, %v22052_v13 }
 0x249   : > { %v17607_v32 = vadd.f32 %v3856_v14, %v2859_v63  ;;  %v13970_v29 = vpop.f32.mrf.mxu0  ;;  %14113 = vmatmul.mubr.f32.gmra.mxu0 %v16699_v49 }
 0x24a   : > { %v2908_v58 = vadd.f32 %v13970_v29, %v16805_v7  ;;  %v14188_v28 = vpop.f32.mrf.mxu1  ;;  %14331 = vmatmul.mubr.f32.gmra.mxu1 %v22054_v25  ;;  %14115 = vmatprep.mubr.f32.mxu0 %v16712_v21  ;;  %v22058_v29 = vand.u32 4294901760, %v16699_v49  ;;  %v22060_v25 = vand.u32 4294901760, %v16712_v21 }
 0x24b   : > { %v17614_v23 = vadd.f32 %v14188_v28, %v2880_v15  ;;  %v2900_v43 = vpop.f32.mrf.mxu0  ;;  %14333 = vmatprep.mubr.f32.mxu1 %v22055_v50 }
 0x24c   : > { %v2901_v51 = vadd.f32 %v2900_v43, %v16808_v45  ;;  %v3872_v63 = vpop.f32.mrf.mxu1 }
 0x24d   : > { %v17619_v59 = vadd.f32 %v3872_v63, %v2873_v18  ;;  %v13973_v6 = vpop.f32.mrf.mxu0  ;;  %14116 = vmatmul.mubr.f32.gmra.mxu0 %v16729_v56  ;;  %v22061_v63 = vld [vmem:[#allocation20_spill] sm:$0xff] }
 0x24e   : > { %v2922_v7 = vadd.f32 %v13973_v6, %v16815_v47  ;;  %v14191_v31 = vpop.f32.mrf.mxu1  ;;  %14334 = vmatmul.mubr.f32.gmra.mxu1 %v22056_v19  ;;  %14118 = vmatprep.mubr.f32.mxu0 %v16739_v12  ;;  %v22062_v6 = vand.u32 4294901760, %v16729_v56  ;;  %v22065_v19 = vand.u32 4294901760, %v16739_v12 }
 0x24f   : > { %v17626_v15 = vadd.f32 %v14191_v31, %v2894_v1  ;;  %v2914_v62 = vpop.f32.mrf.mxu0  ;;  %14336 = vmatprep.mubr.f32.mxu1 %v22057_v3  ;;  %v22059_v1 = vld [vmem:[#allocation18_spill] sm:$0xff] }
 0x250   : > { %v2915_v45 = vadd.f32 %v2914_v62, %v16820_v34  ;;  %v3888_v18 = vpop.f32.mrf.mxu1 }
 0x251   : > { %v17631_v55 = vadd.f32 %v3888_v18, %v2887_v53  ;;  %v13976_v14 = vpop.f32.mrf.mxu0  ;;  %14119 = vmatmul.mubr.f32.gmra.mxu0 %v16753_v26  ;;  %v22067_v18 = vld [vmem:[#allocation29_spill] sm:$0xff] }
 0x252   : > { %v2936_v47 = vadd.f32 %v13976_v14, %v16827_v60  ;;  %v14194_v17 = vpop.f32.mrf.mxu1  ;;  %14337 = vmatmul.mubr.f32.gmra.mxu1 %v22058_v29  ;;  %14377 = vmatprep.mubr.f32.mxu0 %v22059_v1  ;;  %v22068_v14 = vand.u32 4294901760, %v16753_v26  ;;  %v22073_v26 = vld [vmem:[#allocation38_spill] sm:$0xff] }
 0x253   : > { %v17638_v28 = vadd.f32 %v14194_v17, %v2908_v58  ;;  %v2928_v13 = vpop.f32.mrf.mxu0  ;;  %14339 = vmatprep.mubr.f32.mxu1 %v22060_v25  ;;  %v22063_v58 = vld [vmem:[#allocation26_spill] sm:$0xff]  ;;  %v22072_v25 = vld [vmem:[#allocation36_spill] sm:$0xff] }
 0x254   : > { %v2929_v34 = vadd.f32 %v2928_v13, %v16833_v38  ;;  %v3904_v53 = vpop.f32.mrf.mxu1 }
 0x255   : > { %v17643_v43 = vadd.f32 %v3904_v53, %v2901_v51  ;;  %v13979_v50 = vpop.f32.mrf.mxu0  ;;  %14378 = vmatmul.mubr.f32.vlgmr.msra.gmra.mxu0 %v22061_v63 }
 0x256   : > { %v2950_v60 = vadd.f32 %v13979_v50, %v16841_v22  ;;  %v14197_v49 = vpop.f32.mrf.mxu1  ;;  %14340 = vmatmul.mubr.f32.gmra.mxu1 %v22062_v6  ;;  %14380 = vmatprep.mubr.f32.mxu0 %v22063_v58  ;;  %v22076_v6 = vld [vmem:[#allocation40_spill] sm:$0xff] }
 0x257   : > { %v17650_v31 = vadd.f32 %v14197_v49, %v2922_v7  ;;  %v2942_v21 = vpop.f32.mrf.mxu0  ;;  %14342 = vmatprep.mubr.f32.mxu1 %v22065_v19  ;;  %v22069_v7 = vld [vmem:[#allocation35_spill] sm:$0xff] }
 0x258   : > { %v2943_v38 = vadd.f32 %v2942_v21, %v16848_v0  ;;  %v3920_v51 = vpop.f32.mrf.mxu1 }
 0x259   : > { %22064 = vst [vmem:[#allocation171_spill] sm:$0xff] %v17650_v31  ;;  %v17655_v62 = vadd.f32 %v3920_v51, %v2915_v45  ;;  %v13982_v3 = vpop.f32.mrf.mxu0  ;;  %14381 = vmatmul.mubr.f32.gmra.mxu0 %v22067_v18 }
 0x25a   : > { %v2964_v22 = vadd.f32 %v13982_v3, %v16857_v42  ;;  %v14200_v56 = vpop.f32.mrf.mxu1  ;;  %14343 = vmatmul.mubr.f32.gmra.mxu1 %v22068_v14  ;;  %14383 = vmatprep.mubr.f32.mxu0 %v22069_v7  ;;  %v22080_v3 = vld [vmem:[#allocation44_spill] sm:$0xff] }
 0x25b   : > { %22066 = vst [vmem:[#allocation173_spill] sm:$0xff] %v17655_v62  ;;  %v17662_v17 = vadd.f32 %v14200_v56, %v2936_v47  ;;  %v2956_v12 = vpop.f32.mrf.mxu0  ;;  %14601 = vmatprep.mubr.f32.mxu1 %v22059_v1 }
 0x25c   : > { %v2957_v0 = vadd.f32 %v2956_v12, %v16864_v61  ;;  %v3936_v45 = vpop.f32.mrf.mxu1 }
 0x25d   : > { %22070 = vst [vmem:[#allocation175_spill] sm:$0xff] %v17662_v17  ;;  %v17666_v29 = vadd.f32 %v3936_v45, %v2929_v34  ;;  %v13985_v13 = vpop.f32.mrf.mxu0  ;;  %14384 = vmatmul.mubr.f32.gmra.mxu0 %v22072_v25  ;;  %v22084_v45 = vld [vmem:[#allocation47_spill] sm:$0xff] }
 0x25e   : > { %v2978_v42 = vadd.f32 %v13985_v13, %v16873_v5  ;;  %v14203_v53 = vpop.f32.mrf.mxu1  ;;  %14602 = vmatmul.mubr.f32.vlgmr.msra.gmra.mxu1 %v22061_v63  ;;  %14386 = vmatprep.mubr.f32.mxu0 %v22073_v26  ;;  %v22077_v63 = vld [vmem:[#allocation42_spill] sm:$0xff] }
 0x25f   : > { %22071 = vst [vmem:[#allocation177_spill] sm:$0xff] %v17666_v29  ;;  %v17672_v47 = vadd.f32 %v14203_v53, %v2950_v60  ;;  %v2970_v50 = vpop.f32.mrf.mxu0  ;;  %14604 = vmatprep.mubr.f32.mxu1 %v22063_v58 }
 0x260   : > { %v2971_v61 = vadd.f32 %v2970_v50, %v16880_v44  ;;  %v3952_v1 = vpop.f32.mrf.mxu1 }
 0x261   : > { %22074 = vst [vmem:[#allocation180_spill] sm:$0xff] %v17672_v47  ;;  %v17676_v34 = vadd.f32 %v3952_v1, %v2943_v38  ;;  %v13988_v49 = vpop.f32.mrf.mxu0  ;;  %14387 = vmatmul.mubr.f32.gmra.mxu0 %v22076_v6  ;;  %v22088_v1 = vld [vmem:[#allocation51_spill] sm:$0xff] }
 0x262   : > { %v2992_v5 = vadd.f32 %v13988_v49, %v16889_v9  ;;  %v14206_v21 = vpop.f32.mrf.mxu1  ;;  %14605 = vmatmul.mubr.f32.gmra.mxu1 %v22067_v18  ;;  %14389 = vmatprep.mubr.f32.mxu0 %v22077_v63  ;;  %v22081_v18 = vld [vmem:[#allocation45_spill] sm:$0xff] }
 0x263   : > { %22075 = vst [vmem:[#allocation182_spill] sm:$0xff] %v17676_v34  ;;  %v17682_v60 = vadd.f32 %v14206_v21, %v2964_v22  ;;  %v2984_v19 = vpop.f32.mrf.mxu0  ;;  %14607 = vmatprep.mubr.f32.mxu1 %v22069_v7 }
 0x264   : > { %v2985_v44 = vadd.f32 %v2984_v19, %v16896_v39  ;;  %v3968_v58 = vpop.f32.mrf.mxu1 }
 0x265   : > { %22078 = vst [vmem:[#allocation183_spill] sm:$0xff] %v17682_v60  ;;  %v17686_v38 = vadd.f32 %v3968_v58, %v2957_v0  ;;  %v13991_v51 = vpop.f32.mrf.mxu0  ;;  %14390 = vmatmul.mubr.f32.gmra.mxu0 %v22080_v3  ;;  %v22092_v58 = vld [vmem:[#allocation53_spill] sm:$0xff] }
 0x266   : > { %v3006_v9 = vadd.f32 %v13991_v51, %v16905_v10  ;;  %v14209_v56 = vpop.f32.mrf.mxu1  ;;  %14608 = vmatmul.mubr.f32.gmra.mxu1 %v22072_v25  ;;  %14392 = vmatprep.mubr.f32.mxu0 %v22081_v18  ;;  %v22085_v25 = vld [vmem:[#allocation49_spill] sm:$0xff] }
 0x267   : > { %22079 = vst [vmem:[#allocation185_spill] sm:$0xff] %v17686_v38  ;;  %v17692_v22 = vadd.f32 %v14209_v56, %v2978_v42  ;;  %v2998_v14 = vpop.f32.mrf.mxu0  ;;  %14610 = vmatprep.mubr.f32.mxu1 %v22073_v26  ;;  %v22093_v51 = vld [vmem:[#allocation21_spill] sm:$0xff] }
 0x268   : > { %v2999_v39 = vadd.f32 %v2998_v14, %v16912_v54  ;;  %v3984_v7 = vpop.f32.mrf.mxu1 }
 0x269   : > { %22082 = vst [vmem:[#allocation187_spill] sm:$0xff] %v17692_v22  ;;  %v17696_v12 = vadd.f32 %v3984_v7, %v2971_v61  ;;  %v13994_v0 = vpop.f32.mrf.mxu0  ;;  %14393 = vmatmul.mubr.f32.gmra.mxu0 %v22084_v45  ;;  %v22361_v22 = vld [vmem:[#allocation236_spill] sm:$0xff] }
 0x26a   : > { %v3020_v10 = vadd.f32 %v13994_v0, %v16921_v11  ;;  %v14212_v13 = vpop.f32.mrf.mxu1  ;;  %14611 = vmatmul.mubr.f32.gmra.mxu1 %v22076_v6  ;;  %14395 = vmatprep.mubr.f32.mxu0 %v22085_v25  ;;  %v22089_v6 = vld [vmem:[#allocation52_spill] sm:$0xff] }
 0x26b   : > { %22083 = vst [vmem:[#allocation189_spill] sm:$0xff] %v17696_v12  ;;  %v17702_v42 = vadd.f32 %v14212_v13, %v2992_v5  ;;  %v3012_v53 = vpop.f32.mrf.mxu0  ;;  %14613 = vmatprep.mubr.f32.mxu1 %v22077_v63  ;;  %v22098_v13 = vld [vmem:[#allocation56_spill] sm:$0xff] }
 0x26c   : > { %v3013_v54 = vadd.f32 %v3012_v53, %v16928_v20  ;;  %v4000_v26 = vpop.f32.mrf.mxu1  ;;  %v22099_v53 = vld [vmem:[#allocation31_spill] sm:$0xff] }
 0x26d   : > { %22086 = vst [vmem:[#allocation191_spill] sm:$0xff] %v17702_v42  ;;  %v17706_v50 = vadd.f32 %v4000_v26, %v2985_v44  ;;  %v13997_v61 = vpop.f32.mrf.mxu0  ;;  %14396 = vmatmul.mubr.f32.gmra.mxu0 %v22088_v1 }
 0x26e   : > { %v3034_v11 = vadd.f32 %v13997_v61, %v16937_v16  ;;  %v14215_v49 = vpop.f32.mrf.mxu1  ;;  %14614 = vmatmul.mubr.f32.gmra.mxu1 %v22080_v3  ;;  %14398 = vmatprep.mubr.f32.mxu0 %v22089_v6  ;;  %v22094_v3 = vld [vmem:[#allocation55_spill] sm:$0xff] }
 0x26f   : > { %22087 = vst [vmem:[#allocation193_spill] sm:$0xff] %v17706_v50  ;;  %v17712_v5 = vadd.f32 %v14215_v49, %v3006_v9  ;;  %v3026_v21 = vpop.f32.mrf.mxu0  ;;  %14616 = vmatprep.mubr.f32.mxu1 %v22081_v18  ;;  %v22096_v18 = vld [vmem:[#allocation24_spill] sm:$0xff]  ;;  %v22357_v50 = vld [vmem:[#allocation169_spill] sm:$0xff] }
 0x270   : > { %v3027_v20 = vadd.f32 %v3026_v21, %v16944_v48  ;;  %v4016_v63 = vpop.f32.mrf.mxu1 }
 0x271   : > { %22090 = vst [vmem:[#allocation196_spill] sm:$0xff] %v17712_v5  ;;  %v17716_v19 = vadd.f32 %v4016_v63, %v2999_v39  ;;  %v14000_v44 = vpop.f32.mrf.mxu0  ;;  %14399 = vmatmul.mubr.f32.gmra.mxu0 %v22092_v58 }
 0x272   : > { %v3048_v16 = vadd.f32 %v14000_v44, %v22093_v51  ;;  %v14218_v56 = vpop.f32.mrf.mxu1  ;;  %14617 = vmatmul.mubr.f32.gmra.mxu1 %v22084_v45  ;;  %14401 = vmatprep.mubr.f32.mxu0 %v22094_v3  ;;  %v22100_v45 = vld [vmem:[#allocation57_spill] sm:$0xff]  ;;  %v22104_v51 = vld [vmem:[#allocation58_spill] sm:$0xff] }
 0x273   : > { %22091 = vst [vmem:[#allocation198_spill] sm:$0xff] %v17716_v19  ;;  %v17722_v9 = vadd.f32 %v14218_v56, %v3020_v10  ;;  %v3040_v14 = vpop.f32.mrf.mxu0  ;;  %14619 = vmatprep.mubr.f32.mxu1 %v22085_v25  ;;  %v22102_v25 = vld [vmem:[#allocation6_spill] sm:$0xff] }
 0x274   : > { %v3041_v48 = vadd.f32 %v3040_v14, %v22096_v18  ;;  %v4032_v7 = vpop.f32.mrf.mxu1  ;;  %v22105_v56 = vld [vmem:[#allocation34_spill] sm:$0xff] }
 0x275   : > { %22095 = vst [vmem:[#allocation199_spill] sm:$0xff] %v17722_v9  ;;  %v17726_v39 = vadd.f32 %v4032_v7, %v3013_v54  ;;  %v14003_v0 = vpop.f32.mrf.mxu0  ;;  %14402 = vmatmul.mubr.f32.gmra.mxu0 %v22098_v13  ;;  %v22356_v9 = vld [vmem:[#allocation167_spill] sm:$0xff] }
 0x276   : > { %v3062_v26 = vadd.f32 %v14003_v0, %v22099_v53  ;;  %v14221_v61 = vpop.f32.mrf.mxu1  ;;  %14620 = vmatmul.mubr.f32.gmra.mxu1 %v22088_v1  ;;  %14404 = vmatprep.mubr.f32.mxu0 %v22100_v45  ;;  %v22106_v1 = vld [vmem:[#allocation61_spill] sm:$0xff] }
 0x277   : > { %22097 = vst [vmem:[#allocation201_spill] sm:$0xff] %v17726_v39  ;;  %v17732_v10 = vadd.f32 %v14221_v61, %v3034_v11  ;;  %v3054_v49 = vpop.f32.mrf.mxu0  ;;  %14622 = vmatprep.mubr.f32.mxu1 %v22089_v6  ;;  %v22108_v6 = vld [vmem:[#allocation37_spill] sm:$0xff] }
 0x278   : > { %v3055_v21 = vadd.f32 %v3054_v49, %v22102_v25  ;;  %v4048_v63 = vpop.f32.mrf.mxu1  ;;  %v22110_v49 = vld [vmem:[#allocation63_spill] sm:$0xff] }
 0x279   : > { %22101 = vst [vmem:[#allocation203_spill] sm:$0xff] %v17732_v10  ;;  %v17736_v54 = vadd.f32 %v4048_v63, %v3027_v20  ;;  %v14006_v44 = vpop.f32.mrf.mxu0  ;;  %14405 = vmatmul.mubr.f32.gmra.mxu0 %v22104_v51  ;;  %v22111_v25 = vld [vmem:[#allocation7_spill] sm:$0xff] }
 0x27a   : > { %v3076_v14 = vadd.f32 %v14006_v44, %v22105_v56  ;;  %v14224_v18 = vpop.f32.mrf.mxu1  ;;  %14623 = vmatmul.mubr.f32.gmra.mxu1 %v22092_v58  ;;  %14407 = vmatprep.mubr.f32.mxu0 %v22106_v1  ;;  %v22112_v58 = vld [vmem:[#allocation64_spill] sm:$0xff] }
 0x27b   : > { %22103 = vst [vmem:[#allocation206_spill] sm:$0xff] %v17736_v54  ;;  %v17742_v11 = vadd.f32 %v14224_v18, %v3048_v16  ;;  %v3068_v7 = vpop.f32.mrf.mxu0  ;;  %14625 = vmatprep.mubr.f32.mxu1 %v22094_v3  ;;  %v22114_v3 = vld [vmem:[#allocation8_spill] sm:$0xff] }
 0x27c   : > { %v3069_v0 = vadd.f32 %v3068_v7, %v22108_v6  ;;  %v4064_v53 = vpop.f32.mrf.mxu1 }
 0x27d   : > { %22107 = vst [vmem:[#allocation207_spill] sm:$0xff] %v17742_v11  ;;  %v17746_v20 = vadd.f32 %v4064_v53, %v3041_v48  ;;  %v14009_v61 = vpop.f32.mrf.mxu0  ;;  %14408 = vmatmul.mubr.f32.gmra.mxu0 %v22110_v49  ;;  %v22116_v53 = vld [vmem:[#allocation65_spill] sm:$0xff] }
 0x27e   : > { %v3090_v63 = vadd.f32 %v14009_v61, %v22111_v25  ;;  %v14227_v44 = vpop.f32.mrf.mxu1  ;;  %14626 = vmatmul.mubr.f32.gmra.mxu1 %v22098_v13  ;;  %14410 = vmatprep.mubr.f32.mxu0 %v22112_v58  ;;  %v22118_v13 = vld [vmem:[#allocation67_spill] sm:$0xff] }
 0x27f   : > { %22109 = vst [vmem:[#allocation209_spill] sm:$0xff] %v17746_v20  ;;  %v17752_v16 = vadd.f32 %v14227_v44, %v3062_v26  ;;  %v3082_v56 = vpop.f32.mrf.mxu0  ;;  %14628 = vmatprep.mubr.f32.mxu1 %v22100_v45  ;;  %v22117_v20 = vld [vmem:[#allocation46_spill] sm:$0xff]  ;;  %v22120_v45 = vld [vmem:[#allocation48_spill] sm:$0xff] }
 0x280   : > { %v3083_v18 = vadd.f32 %v3082_v56, %v22114_v3  ;;  %v4080_v7 = vpop.f32.mrf.mxu1 }
 0x281   : > { %22113 = vst [vmem:[#allocation212_spill] sm:$0xff] %v17752_v16  ;;  %v17756_v48 = vadd.f32 %v4080_v7, %v3055_v21  ;;  %v14012_v6 = vpop.f32.mrf.mxu0  ;;  %14411 = vmatmul.mubr.f32.gmra.mxu0 %v22116_v53  ;;  %v22123_v16 = vld [vmem:[#allocation9_spill] sm:$0xff] }
 0x282   : > { %v3104_v61 = vadd.f32 %v14012_v6, %v22117_v20  ;;  %v14230_v25 = vpop.f32.mrf.mxu1  ;;  %14629 = vmatmul.mubr.f32.gmra.mxu1 %v22104_v51  ;;  %14413 = vmatprep.mubr.f32.mxu0 %v22118_v13  ;;  %v22124_v51 = vld [vmem:[#allocation70_spill] sm:$0xff] }
 0x283   : > { %22115 = vst [vmem:[#allocation214_spill] sm:$0xff] %v17756_v48  ;;  %v17762_v26 = vadd.f32 %v14230_v25, %v3076_v14  ;;  %v3096_v44 = vpop.f32.mrf.mxu0  ;;  %14631 = vmatprep.mubr.f32.mxu1 %v22106_v1  ;;  %v22122_v48 = vld [vmem:[#allocation69_spill] sm:$0xff]  ;;  %v22126_v1 = vld [vmem:[#allocation50_spill] sm:$0xff] }
 0x284   : > { %v3097_v56 = vadd.f32 %v3096_v44, %v22120_v45  ;;  %v4096_v3 = vpop.f32.mrf.mxu1 }
 0x285   : > { %22119 = vst [vmem:[#allocation241_spill] sm:$0xff] %v17762_v26  ;;  %v17766_v21 = vadd.f32 %v4096_v3, %v3069_v0  ;;  %v14015_v7 = vpop.f32.mrf.mxu0  ;;  %14414 = vmatmul.mubr.f32.gmra.mxu0 %v22122_v48  ;;  %v22129_v26 = vld [vmem:[#allocation11_spill] sm:$0xff] }
 0x286   : > { %v3118_v20 = vadd.f32 %v14015_v7, %v22123_v16  ;;  %v14233_v6 = vpop.f32.mrf.mxu1  ;;  %14632 = vmatmul.mubr.f32.gmra.mxu1 %v22110_v49  ;;  %14416 = vmatprep.mubr.f32.mxu0 %v22124_v51  ;;  %v22130_v49 = vld [vmem:[#allocation75_spill] sm:$0xff] }
 0x287   : > { %22121 = vst [vmem:[#allocation215_spill] sm:$0xff] %v17766_v21  ;;  %v17772_v14 = vadd.f32 %v14233_v6, %v3090_v63  ;;  %v3110_v25 = vpop.f32.mrf.mxu0  ;;  %14634 = vmatprep.mubr.f32.mxu1 %v22112_v58  ;;  %v22128_v21 = vld [vmem:[#allocation72_spill] sm:$0xff]  ;;  %v22132_v58 = vld [vmem:[#allocation54_spill] sm:$0xff] }
 0x288   : > { %v3111_v44 = vadd.f32 %v3110_v25, %v22126_v1  ;;  %v4112_v45 = vpop.f32.mrf.mxu1 }
 0x289   : > { %22125 = vst [vmem:[#allocation242_spill] sm:$0xff] %v17772_v14  ;;  %v17776_v0 = vadd.f32 %v4112_v45, %v3083_v18  ;;  %v14018_v3 = vpop.f32.mrf.mxu0  ;;  %14417 = vmatmul.mubr.f32.gmra.mxu0 %v22128_v21  ;;  %v22135_v14 = vld [vmem:[#allocation13_spill] sm:$0xff] }
 0x28a   : > { %v3132_v16 = vadd.f32 %v14018_v3, %v22129_v26  ;;  %v14236_v7 = vpop.f32.mrf.mxu1  ;;  %14635 = vmatmul.mubr.f32.gmra.mxu1 %v22116_v53  ;;  %14419 = vmatprep.mubr.f32.mxu0 %v22130_v49  ;;  %v22136_v53 = vld [vmem:[#allocation79_spill] sm:$0xff] }
 0x28b   : > { %22127 = vst [vmem:[#allocation217_spill] sm:$0xff] %v17776_v0  ;;  %v17782_v63 = vadd.f32 %v14236_v7, %v3104_v61  ;;  %v3124_v6 = vpop.f32.mrf.mxu0  ;;  %14637 = vmatprep.mubr.f32.mxu1 %v22118_v13  ;;  %v22134_v0 = vld [vmem:[#allocation77_spill] sm:$0xff]  ;;  %v22138_v13 = vld [vmem:[#allocation15_spill] sm:$0xff] }
 0x28c   : > { %v3125_v25 = vadd.f32 %v3124_v6, %v22132_v58  ;;  %v4128_v1 = vpop.f32.mrf.mxu1 }
 0x28d   : > { %22131 = vst [vmem:[#allocation247_spill] sm:$0xff] %v17782_v63  ;;  %v17786_v18 = vadd.f32 %v4128_v1, %v3097_v56  ;;  %v14021_v45 = vpop.f32.mrf.mxu0  ;;  %14420 = vmatmul.mubr.f32.gmra.mxu0 %v22134_v0  ;;  %v22141_v63 = vld [vmem:[#allocation59_spill] sm:$0xff] }
 0x28e   : > { %v3146_v26 = vadd.f32 %v14021_v45, %v22135_v14  ;;  %v14239_v3 = vpop.f32.mrf.mxu1  ;;  %14638 = vmatmul.mubr.f32.gmra.mxu1 %v22122_v48  ;;  %14422 = vmatprep.mubr.f32.mxu0 %v22136_v53  ;;  %v22142_v48 = vld [vmem:[#allocation83_spill] sm:$0xff] }
 0x28f   : > { %22133 = vst [vmem:[#allocation219_spill] sm:$0xff] %v17786_v18  ;;  %v17792_v61 = vadd.f32 %v14239_v3, %v3118_v20  ;;  %v3138_v7 = vpop.f32.mrf.mxu0  ;;  %14640 = vmatprep.mubr.f32.mxu1 %v22124_v51  ;;  %v22140_v18 = vld [vmem:[#allocation80_spill] sm:$0xff] }
 0x290   : > { %v3139_v6 = vadd.f32 %v3138_v7, %v22138_v13  ;;  %v4144_v58 = vpop.f32.mrf.mxu1  ;;  %v22144_v51 = vld [vmem:[#allocation60_spill] sm:$0xff] }
 0x291   : > { %22137 = vst [vmem:[#allocation249_spill] sm:$0xff] %v17792_v61  ;;  %v17796_v56 = vadd.f32 %v4144_v58, %v3111_v44  ;;  %v14024_v1 = vpop.f32.mrf.mxu0  ;;  %14423 = vmatmul.mubr.f32.gmra.mxu0 %v22140_v18  ;;  %v22147_v61 = vld [vmem:[#allocation17_spill] sm:$0xff] }
 0x292   : > { %v3160_v14 = vadd.f32 %v14024_v1, %v22141_v63  ;;  %v14242_v45 = vpop.f32.mrf.mxu1  ;;  %14641 = vmatmul.mubr.f32.gmra.mxu1 %v22128_v21  ;;  %14425 = vmatprep.mubr.f32.mxu0 %v22142_v48  ;;  %v22148_v21 = vld [vmem:[#allocation86_spill] sm:$0xff] }
 0x293   : > { %22139 = vst [vmem:[#allocation221_spill] sm:$0xff] %v17796_v56  ;;  %v17802_v20 = vadd.f32 %v14242_v45, %v3132_v16  ;;  %v3152_v3 = vpop.f32.mrf.mxu0  ;;  %14643 = vmatprep.mubr.f32.mxu1 %v22130_v49  ;;  %v22146_v56 = vld [vmem:[#allocation85_spill] sm:$0xff]  ;;  %v22150_v49 = vld [vmem:[#allocation62_spill] sm:$0xff] }
 0x294   : > { %v3153_v7 = vadd.f32 %v3152_v3, %v22144_v51  ;;  %v4160_v13 = vpop.f32.mrf.mxu1 }
 0x295   : > { %22143 = vst [vmem:[#allocation253_spill] sm:$0xff] %v17802_v20  ;;  %v17806_v44 = vadd.f32 %v4160_v13, %v3125_v25  ;;  %v14027_v58 = vpop.f32.mrf.mxu0  ;;  %14426 = vmatmul.mubr.f32.gmra.mxu0 %v22146_v56  ;;  %v22153_v20 = vld [vmem:[#allocation19_spill] sm:$0xff] }
 0x296   : > { %v3174_v63 = vadd.f32 %v14027_v58, %v22147_v61  ;;  %v14245_v1 = vpop.f32.mrf.mxu1  ;;  %14644 = vmatmul.mubr.f32.gmra.mxu1 %v22134_v0  ;;  %14428 = vmatprep.mubr.f32.mxu0 %v22148_v21  ;;  %v22154_v0 = vld [vmem:[#allocation91_spill] sm:$0xff] }
 0x297   : > { %22145 = vst [vmem:[#allocation223_spill] sm:$0xff] %v17806_v44  ;;  %v17812_v16 = vadd.f32 %v14245_v1, %v3146_v26  ;;  %v3166_v45 = vpop.f32.mrf.mxu0  ;;  %14646 = vmatprep.mubr.f32.mxu1 %v22136_v53  ;;  %v22152_v44 = vld [vmem:[#allocation88_spill] sm:$0xff]  ;;  %v22156_v53 = vld [vmem:[#allocation10_spill] sm:$0xff] }
 0x298   : > { %v3167_v3 = vadd.f32 %v3166_v45, %v22150_v49  ;;  %v4176_v51 = vpop.f32.mrf.mxu1 }
 0x299   : > { %22149 = vst [vmem:[#allocation256_spill] sm:$0xff] %v17812_v16  ;;  %v17816_v25 = vadd.f32 %v4176_v51, %v3139_v6  ;;  %v14030_v13 = vpop.f32.mrf.mxu0  ;;  %14429 = vmatmul.mubr.f32.gmra.mxu0 %v22152_v44  ;;  %v22159_v16 = vld [vmem:[#allocation66_spill] sm:$0xff] }
 0x29a   : > { %v3188_v61 = vadd.f32 %v14030_v13, %v22153_v20  ;;  %v14248_v58 = vpop.f32.mrf.mxu1  ;;  %14647 = vmatmul.mubr.f32.gmra.mxu1 %v22140_v18  ;;  %14431 = vmatprep.mubr.f32.mxu0 %v22154_v0  ;;  %v22160_v18 = vld [vmem:[#allocation95_spill] sm:$0xff] }
 0x29b   : > { %22151 = vst [vmem:[#allocation226_spill] sm:$0xff] %v17816_v25  ;;  %v17822_v26 = vadd.f32 %v14248_v58, %v3160_v14  ;;  %v3180_v1 = vpop.f32.mrf.mxu0  ;;  %14649 = vmatprep.mubr.f32.mxu1 %v22142_v48  ;;  %v22158_v25 = vld [vmem:[#allocation93_spill] sm:$0xff] }
 0x29c   : > { %v3181_v45 = vadd.f32 %v3180_v1, %v22156_v53  ;;  %v4192_v49 = vpop.f32.mrf.mxu1  ;;  %v22162_v48 = vld [vmem:[#allocation25_spill] sm:$0xff] }
 0x29d   : > { %22155 = vst [vmem:[#allocation259_spill] sm:$0xff] %v17822_v26  ;;  %v17826_v6 = vadd.f32 %v4192_v49, %v3153_v7  ;;  %v14033_v51 = vpop.f32.mrf.mxu0  ;;  %14432 = vmatmul.mubr.f32.gmra.mxu0 %v22158_v25  ;;  %v22165_v26 = vld [vmem:[#allocation68_spill] sm:$0xff] }
 0x29e   : > { %v3202_v20 = vadd.f32 %v14033_v51, %v22159_v16  ;;  %v14251_v13 = vpop.f32.mrf.mxu1  ;;  %14650 = vmatmul.mubr.f32.gmra.mxu1 %v22146_v56  ;;  %14434 = vmatprep.mubr.f32.mxu0 %v22160_v18  ;;  %v22166_v56 = vld [vmem:[#allocation98_spill] sm:$0xff] }
 0x29f   : > { %22157 = vst [vmem:[#allocation227_spill] sm:$0xff] %v17826_v6  ;;  %v17832_v14 = vadd.f32 %v14251_v13, %v3174_v63  ;;  %v3194_v58 = vpop.f32.mrf.mxu0  ;;  %14652 = vmatprep.mubr.f32.mxu1 %v22148_v21  ;;  %v22164_v6 = vld [vmem:[#allocation96_spill] sm:$0xff] }
 0x2a0   : > { %v3195_v1 = vadd.f32 %v3194_v58, %v22162_v48  ;;  %v4208_v53 = vpop.f32.mrf.mxu1  ;;  %v22168_v21 = vld [vmem:[#allocation12_spill] sm:$0xff] }
 0x2a1   : > { %22161 = vst [vmem:[#allocation262_spill] sm:$0xff] %v17832_v14  ;;  %v17836_v7 = vadd.f32 %v4208_v53, %v3167_v3  ;;  %v14036_v49 = vpop.f32.mrf.mxu0  ;;  %14435 = vmatmul.mubr.f32.gmra.mxu0 %v22164_v6  ;;  %v22171_v14 = vld [vmem:[#allocation71_spill] sm:$0xff] }
 0x2a2   : > { %v3216_v16 = vadd.f32 %v14036_v49, %v22165_v26  ;;  %v14254_v51 = vpop.f32.mrf.mxu1  ;;  %14653 = vmatmul.mubr.f32.gmra.mxu1 %v22152_v44  ;;  %14437 = vmatprep.mubr.f32.mxu0 %v22166_v56  ;;  %v22172_v44 = vld [vmem:[#allocation100_spill] sm:$0xff] }
 0x2a3   : > { %22163 = vst [vmem:[#allocation229_spill] sm:$0xff] %v17836_v7  ;;  %v17842_v63 = vadd.f32 %v14254_v51, %v3188_v61  ;;  %v3208_v13 = vpop.f32.mrf.mxu0  ;;  %14655 = vmatprep.mubr.f32.mxu1 %v22154_v0  ;;  %v22170_v7 = vld [vmem:[#allocation99_spill] sm:$0xff]  ;;  %v22174_v0 = vld [vmem:[#allocation28_spill] sm:$0xff] }
 0x2a4   : > { %v3209_v58 = vadd.f32 %v3208_v13, %v22168_v21  ;;  %v4224_v48 = vpop.f32.mrf.mxu1 }
 0x2a5   : > { %22167 = vst [vmem:[#allocation265_spill] sm:$0xff] %v17842_v63  ;;  %v17846_v3 = vadd.f32 %v4224_v48, %v3181_v45  ;;  %v14039_v53 = vpop.f32.mrf.mxu0  ;;  %14438 = vmatmul.mubr.f32.gmra.mxu0 %v22170_v7  ;;  %v22177_v63 = vld [vmem:[#allocation73_spill] sm:$0xff] }
 0x2a6   : > { %v3230_v26 = vadd.f32 %v14039_v53, %v22171_v14  ;;  %v14257_v49 = vpop.f32.mrf.mxu1  ;;  %14656 = vmatmul.mubr.f32.gmra.mxu1 %v22158_v25  ;;  %14440 = vmatprep.mubr.f32.mxu0 %v22172_v44  ;;  %v22178_v25 = vld [vmem:[#allocation105_spill] sm:$0xff] }
 0x2a7   : > { %22169 = vst [vmem:[#allocation232_spill] sm:$0xff] %v17846_v3  ;;  %v17852_v61 = vadd.f32 %v14257_v49, %v3202_v20  ;;  %v3222_v51 = vpop.f32.mrf.mxu0  ;;  %14658 = vmatprep.mubr.f32.mxu1 %v22160_v18  ;;  %v22176_v3 = vld [vmem:[#allocation103_spill] sm:$0xff]  ;;  %v22180_v18 = vld [vmem:[#allocation14_spill] sm:$0xff] }
 0x2a8   : > { %v3223_v13 = vadd.f32 %v3222_v51, %v22174_v0  ;;  %v4240_v21 = vpop.f32.mrf.mxu1 }
 0x2a9   : > { %22173 = vst [vmem:[#allocation267_spill] sm:$0xff] %v17852_v61  ;;  %v17856_v45 = vadd.f32 %v4240_v21, %v3195_v1  ;;  %v14042_v48 = vpop.f32.mrf.mxu0  ;;  %14441 = vmatmul.mubr.f32.gmra.mxu0 %v22176_v3  ;;  %v22183_v61 = vld [vmem:[#allocation74_spill] sm:$0xff] }
 0x2aa   : > { %v3244_v14 = vadd.f32 %v14042_v48, %v22177_v63  ;;  %v14260_v53 = vpop.f32.mrf.mxu1  ;;  %14659 = vmatmul.mubr.f32.gmra.mxu1 %v22164_v6  ;;  %14443 = vmatprep.mubr.f32.mxu0 %v22178_v25  ;;  %v22184_v6 = vld [vmem:[#allocation109_spill] sm:$0xff] }
 0x2ab   : > { %22175 = vst [vmem:[#allocation233_spill] sm:$0xff] %v17856_v45  ;;  %v17862_v20 = vadd.f32 %v14260_v53, %v3216_v16  ;;  %v3236_v49 = vpop.f32.mrf.mxu0  ;;  %14661 = vmatprep.mubr.f32.mxu1 %v22166_v56  ;;  %v22182_v45 = vld [vmem:[#allocation107_spill] sm:$0xff]  ;;  %v22186_v56 = vld [vmem:[#allocation30_spill] sm:$0xff] }
 0x2ac   : > { %v3237_v51 = vadd.f32 %v3236_v49, %v22180_v18  ;;  %v4256_v0 = vpop.f32.mrf.mxu1 }
 0x2ad   : > { %22179 = vst [vmem:[#allocation271_spill] sm:$0xff] %v17862_v20  ;;  %v17866_v1 = vadd.f32 %v4256_v0, %v3209_v58  ;;  %v14045_v21 = vpop.f32.mrf.mxu0  ;;  %14444 = vmatmul.mubr.f32.gmra.mxu0 %v22182_v45  ;;  %v22189_v20 = vld [vmem:[#allocation76_spill] sm:$0xff] }
 0x2ae   : > { %v3258_v63 = vadd.f32 %v14045_v21, %v22183_v61  ;;  %v14263_v48 = vpop.f32.mrf.mxu1  ;;  %14662 = vmatmul.mubr.f32.gmra.mxu1 %v22170_v7  ;;  %14446 = vmatprep.mubr.f32.mxu0 %v22184_v6  ;;  %v22190_v7 = vld [vmem:[#allocation112_spill] sm:$0xff] }
 0x2af   : > { %22181 = vst [vmem:[#allocation235_spill] sm:$0xff] %v17866_v1  ;;  %v17872_v16 = vadd.f32 %v14263_v48, %v3230_v26  ;;  %v3250_v53 = vpop.f32.mrf.mxu0  ;;  %14664 = vmatprep.mubr.f32.mxu1 %v22172_v44  ;;  %v22188_v1 = vld [vmem:[#allocation110_spill] sm:$0xff]  ;;  %v22192_v44 = vld [vmem:[#allocation16_spill] sm:$0xff] }
 0x2b0   : > { %v3251_v49 = vadd.f32 %v3250_v53, %v22186_v56  ;;  %v4272_v18 = vpop.f32.mrf.mxu1 }
 0x2b1   : > { %22185 = vst [vmem:[#allocation273_spill] sm:$0xff] %v17872_v16  ;;  %v17876_v58 = vadd.f32 %v4272_v18, %v3223_v13  ;;  %v14048_v0 = vpop.f32.mrf.mxu0  ;;  %14447 = vmatmul.mubr.f32.gmra.mxu0 %v22188_v1  ;;  %v22195_v16 = vld [vmem:[#allocation78_spill] sm:$0xff] }
 0x2b2   : > { %v3272_v61 = vadd.f32 %v14048_v0, %v22189_v20  ;;  %v14266_v21 = vpop.f32.mrf.mxu1  ;;  %14665 = vmatmul.mubr.f32.gmra.mxu1 %v22176_v3  ;;  %14449 = vmatprep.mubr.f32.mxu0 %v22190_v7  ;;  %v22196_v3 = vld [vmem:[#allocation115_spill] sm:$0xff] }
 0x2b3   : > { %22187 = vst [vmem:[#allocation237_spill] sm:$0xff] %v17876_v58  ;;  %v17882_v26 = vadd.f32 %v14266_v21, %v3244_v14  ;;  %v3264_v48 = vpop.f32.mrf.mxu0  ;;  %14667 = vmatprep.mubr.f32.mxu1 %v22178_v25  ;;  %v22194_v58 = vld [vmem:[#allocation114_spill] sm:$0xff]  ;;  %v22198_v25 = vld [vmem:[#allocation39_spill] sm:$0xff] }
 0x2b4   : > { %v3265_v53 = vadd.f32 %v3264_v48, %v22192_v44  ;;  %v4288_v56 = vpop.f32.mrf.mxu1 }
 0x2b5   : > { %22191 = vst [vmem:[#allocation276_spill] sm:$0xff] %v17882_v26  ;;  %v17886_v13 = vadd.f32 %v4288_v56, %v3237_v51  ;;  %v14051_v18 = vpop.f32.mrf.mxu0  ;;  %14450 = vmatmul.mubr.f32.gmra.mxu0 %v22194_v58  ;;  %v22201_v26 = vld [vmem:[#allocation81_spill] sm:$0xff] }
 0x2b6   : > { %v3286_v20 = vadd.f32 %v14051_v18, %v22195_v16  ;;  %v14269_v0 = vpop.f32.mrf.mxu1  ;;  %14668 = vmatmul.mubr.f32.gmra.mxu1 %v22182_v45  ;;  %14452 = vmatprep.mubr.f32.mxu0 %v22196_v3  ;;  %v22202_v45 = vld [vmem:[#allocation120_spill] sm:$0xff] }
 0x2b7   : > { %22193 = vst [vmem:[#allocation239_spill] sm:$0xff] %v17886_v13  ;;  %v17892_v14 = vadd.f32 %v14269_v0, %v3258_v63  ;;  %v3278_v21 = vpop.f32.mrf.mxu0  ;;  %14670 = vmatprep.mubr.f32.mxu1 %v22184_v6  ;;  %v22200_v13 = vld [vmem:[#allocation117_spill] sm:$0xff]  ;;  %v22204_v6 = vld [vmem:[#allocation23_spill] sm:$0xff] }
 0x2b8   : > { %v3279_v48 = vadd.f32 %v3278_v21, %v22198_v25  ;;  %v4304_v44 = vpop.f32.mrf.mxu1 }
 0x2b9   : > { %22197 = vst [vmem:[#allocation277_spill] sm:$0xff] %v17892_v14  ;;  %v17896_v51 = vadd.f32 %v4304_v44, %v3251_v49  ;;  %v14054_v56 = vpop.f32.mrf.mxu0  ;;  %14453 = vmatmul.mubr.f32.gmra.mxu0 %v22200_v13  ;;  %v22207_v14 = vld [vmem:[#allocation82_spill] sm:$0xff] }
 0x2ba   : > { %v3300_v16 = vadd.f32 %v14054_v56, %v22201_v26  ;;  %v14272_v18 = vpop.f32.mrf.mxu1  ;;  %14671 = vmatmul.mubr.f32.gmra.mxu1 %v22188_v1  ;;  %14455 = vmatprep.mubr.f32.mxu0 %v22202_v45  ;;  %v22208_v1 = vld [vmem:[#allocation124_spill] sm:$0xff] }
 0x2bb   : > { %22199 = vst [vmem:[#allocation243_spill] sm:$0xff] %v17896_v51  ;;  %v17902_v63 = vadd.f32 %v14272_v18, %v3272_v61  ;;  %v3292_v0 = vpop.f32.mrf.mxu0  ;;  %14673 = vmatprep.mubr.f32.mxu1 %v22190_v7  ;;  %v22206_v51 = vld [vmem:[#allocation122_spill] sm:$0xff]  ;;  %v22210_v7 = vld [vmem:[#allocation41_spill] sm:$0xff] }
 0x2bc   : > { %v3293_v21 = vadd.f32 %v3292_v0, %v22204_v6  ;;  %v4320_v25 = vpop.f32.mrf.mxu1 }
 0x2bd   : > { %22203 = vst [vmem:[#allocation245_spill] sm:$0xff] %v17902_v63  ;;  %v17906_v49 = vadd.f32 %v4320_v25, %v3265_v53  ;;  %v14057_v44 = vpop.f32.mrf.mxu0  ;;  %14456 = vmatmul.mubr.f32.gmra.mxu0 %v22206_v51  ;;  %v22213_v63 = vld [vmem:[#allocation84_spill] sm:$0xff] }
 0x2be   : > { %v3314_v26 = vadd.f32 %v14057_v44, %v22207_v14  ;;  %v14275_v56 = vpop.f32.mrf.mxu1  ;;  %14674 = vmatmul.mubr.f32.gmra.mxu1 %v22194_v58  ;;  %14458 = vmatprep.mubr.f32.mxu0 %v22208_v1  ;;  %v22214_v58 = vld [vmem:[#allocation128_spill] sm:$0xff] }
 0x2bf   : > { %22205 = vst [vmem:[#allocation250_spill] sm:$0xff] %v17906_v49  ;;  %v17912_v61 = vadd.f32 %v14275_v56, %v3286_v20  ;;  %v3306_v18 = vpop.f32.mrf.mxu0  ;;  %14676 = vmatprep.mubr.f32.mxu1 %v22196_v3  ;;  %v22212_v49 = vld [vmem:[#allocation126_spill] sm:$0xff]  ;;  %v22216_v3 = vld [vmem:[#allocation27_spill] sm:$0xff] }
 0x2c0   : > { %v3307_v0 = vadd.f32 %v3306_v18, %v22210_v7  ;;  %v4336_v6 = vpop.f32.mrf.mxu1 }
 0x2c1   : > { %22209 = vst [vmem:[#allocation251_spill] sm:$0xff] %v17912_v61  ;;  %v17916_v53 = vadd.f32 %v4336_v6, %v3279_v48  ;;  %v14060_v25 = vpop.f32.mrf.mxu0  ;;  %14459 = vmatmul.mubr.f32.gmra.mxu0 %v22212_v49  ;;  %v22219_v61 = vld [vmem:[#allocation87_spill] sm:$0xff] }
 0x2c2   : > { %v3328_v14 = vadd.f32 %v14060_v25, %v22213_v63  ;;  %v14278_v44 = vpop.f32.mrf.mxu1  ;;  %14677 = vmatmul.mubr.f32.gmra.mxu1 %v22200_v13  ;;  %14461 = vmatprep.mubr.f32.mxu0 %v22214_v58  ;;  %v22220_v13 = vld [vmem:[#allocation131_spill] sm:$0xff] }
 0x2c3   : > { %22211 = vst [vmem:[#allocation254_spill] sm:$0xff] %v17916_v53  ;;  %v17922_v20 = vadd.f32 %v14278_v44, %v3300_v16  ;;  %v3320_v56 = vpop.f32.mrf.mxu0  ;;  %14679 = vmatprep.mubr.f32.mxu1 %v22202_v45  ;;  %v22218_v53 = vld [vmem:[#allocation130_spill] sm:$0xff]  ;;  %v22222_v45 = vld [vmem:[#allocation43_spill] sm:$0xff] }
 0x2c4   : > { %v3321_v18 = vadd.f32 %v3320_v56, %v22216_v3  ;;  %v4352_v7 = vpop.f32.mrf.mxu1 }
 0x2c5   : > { %22215 = vst [vmem:[#allocation258_spill] sm:$0xff] %v17922_v20  ;;  %v17926_v48 = vadd.f32 %v4352_v7, %v3293_v21  ;;  %v14063_v6 = vpop.f32.mrf.mxu0  ;;  %14462 = vmatmul.mubr.f32.gmra.mxu0 %v22218_v53  ;;  %v22225_v20 = vld [vmem:[#allocation89_spill] sm:$0xff] }
 0x2c6   : > { %v3342_v63 = vadd.f32 %v14063_v6, %v22219_v61  ;;  %v14281_v25 = vpop.f32.mrf.mxu1  ;;  %14680 = vmatmul.mubr.f32.gmra.mxu1 %v22206_v51  ;;  %14464 = vmatprep.mubr.f32.mxu0 %v22220_v13  ;;  %v22226_v51 = vld [vmem:[#allocation136_spill] sm:$0xff] }
 0x2c7   : > { %22217 = vst [vmem:[#allocation260_spill] sm:$0xff] %v17926_v48  ;;  %v17932_v16 = vadd.f32 %v14281_v25, %v3314_v26  ;;  %v3334_v44 = vpop.f32.mrf.mxu0  ;;  %14682 = vmatprep.mubr.f32.mxu1 %v22208_v1  ;;  %v22224_v48 = vld [vmem:[#allocation133_spill] sm:$0xff]  ;;  %v22228_v1 = vld [vmem:[#allocation32_spill] sm:$0xff] }
 0x2c8   : > { %v3335_v56 = vadd.f32 %v3334_v44, %v22222_v45  ;;  %v4368_v3 = vpop.f32.mrf.mxu1 }
 0x2c9   : > { %22221 = vst [vmem:[#allocation263_spill] sm:$0xff] %v17932_v16  ;;  %v17936_v21 = vadd.f32 %v4368_v3, %v3307_v0  ;;  %v14066_v7 = vpop.f32.mrf.mxu0  ;;  %14465 = vmatmul.mubr.f32.gmra.mxu0 %v22224_v48  ;;  %v22231_v16 = vld [vmem:[#allocation90_spill] sm:$0xff] }
 0x2ca   : > { %v3356_v61 = vadd.f32 %v14066_v7, %v22225_v20  ;;  %v14284_v6 = vpop.f32.mrf.mxu1  ;;  %14683 = vmatmul.mubr.f32.gmra.mxu1 %v22212_v49  ;;  %14467 = vmatprep.mubr.f32.mxu0 %v22226_v51  ;;  %v22232_v49 = vld [vmem:[#allocation140_spill] sm:$0xff] }
 0x2cb   : > { %22223 = vst [vmem:[#allocation266_spill] sm:$0xff] %v17936_v21  ;;  %v17942_v26 = vadd.f32 %v14284_v6, %v3328_v14  ;;  %v3348_v25 = vpop.f32.mrf.mxu0  ;;  %14685 = vmatprep.mubr.f32.mxu1 %v22214_v58  ;;  %v22230_v21 = vld [vmem:[#allocation138_spill] sm:$0xff]  ;;  %v22234_v58 = vld [vmem:[#allocation92_spill] sm:$0xff] }
 0x2cc   : > { %v3349_v44 = vadd.f32 %v3348_v25, %v22228_v1  ;;  %v4384_v45 = vpop.f32.mrf.mxu1 }
 0x2cd   : > { %22227 = vst [vmem:[#allocation269_spill] sm:$0xff] %v17942_v26  ;;  %v17946_v0 = vadd.f32 %v4384_v45, %v3321_v18  ;;  %v14069_v3 = vpop.f32.mrf.mxu0  ;;  %14468 = vmatmul.mubr.f32.gmra.mxu0 %v22230_v21  ;;  %v22237_v26 = vld [vmem:[#allocation94_spill] sm:$0xff] }
 0x2ce   : > { %v3370_v20 = vadd.f32 %v14069_v3, %v22231_v16  ;;  %v14287_v7 = vpop.f32.mrf.mxu1  ;;  %14686 = vmatmul.mubr.f32.gmra.mxu1 %v22218_v53  ;;  %14470 = vmatprep.mubr.f32.mxu0 %v22232_v49  ;;  %v22238_v53 = vld [vmem:[#allocation144_spill] sm:$0xff] }
 0x2cf   : > { %22229 = vst [vmem:[#allocation274_spill] sm:$0xff] %v17946_v0  ;;  %v17952_v14 = vadd.f32 %v14287_v7, %v3342_v63  ;;  %v3362_v6 = vpop.f32.mrf.mxu0  ;;  %14688 = vmatprep.mubr.f32.mxu1 %v22220_v13  ;;  %v22236_v0 = vld [vmem:[#allocation141_spill] sm:$0xff]  ;;  %v22240_v13 = vld [vmem:[#allocation22_spill] sm:$0xff] }
 0x2d0   : > { %v3363_v25 = vadd.f32 %v3362_v6, %v22234_v58  ;;  %v4400_v1 = vpop.f32.mrf.mxu1 }
 0x2d1   : > { %22233 = vst [vmem:[#allocation18_spill] sm:$0xff] %v17952_v14  ;;  %v17956_v18 = vadd.f32 %v4400_v1, %v3335_v56  ;;  %v14072_v45 = vpop.f32.mrf.mxu0  ;;  %14471 = vmatmul.mubr.f32.gmra.mxu0 %v22236_v0  ;;  %v22243_v14 = vld [vmem:[#allocation97_spill] sm:$0xff] }
 0x2d2   : > { %v3384_v16 = vadd.f32 %v14072_v45, %v22237_v26  ;;  %v14290_v3 = vpop.f32.mrf.mxu1  ;;  %14689 = vmatmul.mubr.f32.gmra.mxu1 %v22224_v48  ;;  %14473 = vmatprep.mubr.f32.mxu0 %v22238_v53  ;;  %v22244_v48 = vld [vmem:[#allocation147_spill] sm:$0xff] }
 0x2d3   : > { %22235 = vst [vmem:[#allocation20_spill] sm:$0xff] %v17956_v18  ;;  %v17962_v63 = vadd.f32 %v14290_v3, %v3356_v61  ;;  %v3376_v7 = vpop.f32.mrf.mxu0  ;;  %14691 = vmatprep.mubr.f32.mxu1 %v22226_v51  ;;  %v22242_v18 = vld [vmem:[#allocation146_spill] sm:$0xff]  ;;  %v22246_v51 = vld [vmem:[#allocation33_spill] sm:$0xff] }
 0x2d4   : > { %v3377_v6 = vadd.f32 %v3376_v7, %v22240_v13  ;;  %v4416_v58 = vpop.f32.mrf.mxu1 }
 0x2d5   : > { %22239 = vst [vmem:[#allocation26_spill] sm:$0xff] %v17962_v63  ;;  %v17966_v56 = vadd.f32 %v4416_v58, %v3349_v44  ;;  %v14075_v1 = vpop.f32.mrf.mxu0  ;;  %14474 = vmatmul.mubr.f32.gmra.mxu0 %v22242_v18  ;;  %v22249_v63 = vld [vmem:[#allocation101_spill] sm:$0xff] }
 0x2d6   : > { %v3398_v26 = vadd.f32 %v14075_v1, %v22243_v14  ;;  %v14293_v45 = vpop.f32.mrf.mxu1  ;;  %14692 = vmatmul.mubr.f32.gmra.mxu1 %v22230_v21  ;;  %14476 = vmatprep.mubr.f32.mxu0 %v22244_v48  ;;  %v22250_v21 = vld [vmem:[#allocation152_spill] sm:$0xff] }
 0x2d7   : > { %22241 = vst [vmem:[#allocation29_spill] sm:$0xff] %v17966_v56  ;;  %v17972_v61 = vadd.f32 %v14293_v45, %v3370_v20  ;;  %v3390_v3 = vpop.f32.mrf.mxu0  ;;  %14694 = vmatprep.mubr.f32.mxu1 %v22232_v49  ;;  %v22248_v56 = vld [vmem:[#allocation149_spill] sm:$0xff]  ;;  %v22252_v49 = vld [vmem:[#allocation102_spill] sm:$0xff] }
 0x2d8   : > { %v3391_v7 = vadd.f32 %v3390_v3, %v22246_v51  ;;  %v4432_v13 = vpop.f32.mrf.mxu1 }
 0x2d9   : > { %22245 = vst [vmem:[#allocation35_spill] sm:$0xff] %v17972_v61  ;;  %v17976_v44 = vadd.f32 %v4432_v13, %v3363_v25  ;;  %v14078_v58 = vpop.f32.mrf.mxu0  ;;  %14477 = vmatmul.mubr.f32.gmra.mxu0 %v22248_v56  ;;  %v22255_v61 = vld [vmem:[#allocation104_spill] sm:$0xff] }
 0x2da   : > { %v3412_v14 = vadd.f32 %v14078_v58, %v22249_v63  ;;  %v14296_v1 = vpop.f32.mrf.mxu1  ;;  %14695 = vmatmul.mubr.f32.gmra.mxu1 %v22236_v0  ;;  %14479 = vmatprep.mubr.f32.mxu0 %v22250_v21  ;;  %v22256_v0 = vld [vmem:[#allocation156_spill] sm:$0xff] }
 0x2db   : > { %22247 = vst [vmem:[#allocation36_spill] sm:$0xff] %v17976_v44  ;;  %v17982_v20 = vadd.f32 %v14296_v1, %v3384_v16  ;;  %v3404_v45 = vpop.f32.mrf.mxu0  ;;  %14697 = vmatprep.mubr.f32.mxu1 %v22238_v53  ;;  %v22254_v44 = vld [vmem:[#allocation154_spill] sm:$0xff] }
 0x2dc   : > { %v3405_v3 = vadd.f32 %v3404_v45, %v22252_v49  ;;  %v4448_v51 = vpop.f32.mrf.mxu1  ;;  %v22258_v53 = vld [vmem:[#allocation106_spill] sm:$0xff] }
 0x2dd   : > { %22251 = vst [vmem:[#allocation38_spill] sm:$0xff] %v17982_v20  ;;  %v17986_v25 = vadd.f32 %v4448_v51, %v3377_v6  ;;  %v14081_v13 = vpop.f32.mrf.mxu0  ;;  %14480 = vmatmul.mubr.f32.gmra.mxu0 %v22254_v44  ;;  %v22261_v20 = vld [vmem:[#allocation108_spill] sm:$0xff] }
 0x2de   : > { %v3426_v63 = vadd.f32 %v14081_v13, %v22255_v61  ;;  %v14299_v58 = vpop.f32.mrf.mxu1  ;;  %14698 = vmatmul.mubr.f32.gmra.mxu1 %v22242_v18  ;;  %14482 = vmatprep.mubr.f32.mxu0 %v22256_v0  ;;  %v22262_v18 = vld [vmem:[#allocation160_spill] sm:$0xff] }
 0x2df   : > { %22253 = vst [vmem:[#allocation40_spill] sm:$0xff] %v17986_v25  ;;  %v17992_v16 = vadd.f32 %v14299_v58, %v3398_v26  ;;  %v3418_v1 = vpop.f32.mrf.mxu0  ;;  %14700 = vmatprep.mubr.f32.mxu1 %v22244_v48  ;;  %v22260_v25 = vld [vmem:[#allocation158_spill] sm:$0xff]  ;;  %v22264_v48 = vld [vmem:[#allocation5_spill] sm:$0xff] }
 0x2e0   : > { %v3419_v45 = vadd.f32 %v3418_v1, %v22258_v53  ;;  %v4464_v49 = vpop.f32.mrf.mxu1 }
 0x2e1   : > { %22257 = vst [vmem:[#allocation42_spill] sm:$0xff] %v17992_v16  ;;  %v17996_v6 = vadd.f32 %v4464_v49, %v3391_v7  ;;  %v14084_v51 = vpop.f32.mrf.mxu0  ;;  %14483 = vmatmul.mubr.f32.gmra.mxu0 %v22260_v25  ;;  %v22267_v16 = vld [vmem:[#allocation111_spill] sm:$0xff] }
 0x2e2   : > { %v3440_v61 = vadd.f32 %v14084_v51, %v22261_v20  ;;  %v14302_v13 = vpop.f32.mrf.mxu1  ;;  %14701 = vmatmul.mubr.f32.gmra.mxu1 %v22248_v56  ;;  %14485 = vmatprep.mubr.f32.mxu0 %v22262_v18  ;;  %v22268_v56 = vld [vmem:[#allocation163_spill] sm:$0xff] }
 0x2e3   : > { %22259 = vst [vmem:[#allocation44_spill] sm:$0xff] %v17996_v6  ;;  %v18002_v26 = vadd.f32 %v14302_v13, %v3412_v14  ;;  %v3432_v58 = vpop.f32.mrf.mxu0  ;;  %14703 = vmatprep.mubr.f32.mxu1 %v22250_v21  ;;  %v22266_v6 = vld [vmem:[#allocation161_spill] sm:$0xff] }
 0x2e4   : > { %v3433_v1 = vadd.f32 %v3432_v58, %v22264_v48  ;;  %v4480_v53 = vpop.f32.mrf.mxu1  ;;  %v22270_v21 = vld [vmem:[#allocation113_spill] sm:$0xff] }
 0x2e5   : > { %22263 = vst [vmem:[#allocation45_spill] sm:$0xff] %v18002_v26  ;;  %v18006_v7 = vadd.f32 %v4480_v53, %v3405_v3  ;;  %v14087_v49 = vpop.f32.mrf.mxu0  ;;  %14486 = vmatmul.mubr.f32.gmra.mxu0 %v22266_v6  ;;  %v22273_v26 = vld [vmem:[#allocation116_spill] sm:$0xff] }
 0x2e6   : > { %v3454_v20 = vadd.f32 %v14087_v49, %v22267_v16  ;;  %v14305_v51 = vpop.f32.mrf.mxu1  ;;  %14704 = vmatmul.mubr.f32.gmra.mxu1 %v22254_v44  ;;  %14488 = vmatprep.mubr.f32.mxu0 %v22268_v56  ;;  %v22274_v44 = vld [vmem:[#allocation168_spill] sm:$0xff] }
 0x2e7   : > { %22265 = vst [vmem:[#allocation47_spill] sm:$0xff] %v18006_v7  ;;  %v18012_v14 = vadd.f32 %v14305_v51, %v3426_v63  ;;  %v3446_v13 = vpop.f32.mrf.mxu0  ;;  %14706 = vmatprep.mubr.f32.mxu1 %v22256_v0  ;;  %v22272_v7 = vld [vmem:[#allocation166_spill] sm:$0xff] }
 0x2e8   : > { %v3447_v58 = vadd.f32 %v3446_v13, %v22270_v21  ;;  %v4496_v48 = vpop.f32.mrf.mxu1  ;;  %v22276_v0 = vld [vmem:[#allocation118_spill] sm:$0xff] }
 0x2e9   : > { %22269 = vst [vmem:[#allocation49_spill] sm:$0xff] %v18012_v14  ;;  %v18016_v3 = vadd.f32 %v4496_v48, %v3419_v45  ;;  %v14090_v53 = vpop.f32.mrf.mxu0  ;;  %14489 = vmatmul.mubr.f32.gmra.mxu0 %v22272_v7  ;;  %v22279_v14 = vld [vmem:[#allocation119_spill] sm:$0xff] }
 0x2ea   : > { %v3468_v16 = vadd.f32 %v14090_v53, %v22273_v26  ;;  %v14308_v49 = vpop.f32.mrf.mxu1  ;;  %14707 = vmatmul.mubr.f32.gmra.mxu1 %v22260_v25  ;;  %14491 = vmatprep.mubr.f32.mxu0 %v22274_v44  ;;  %v22280_v25 = vld [vmem:[#allocation172_spill] sm:$0xff] }
 0x2eb   : > { %22271 = vst [vmem:[#allocation51_spill] sm:$0xff] %v18016_v3  ;;  %v18022_v63 = vadd.f32 %v14308_v49, %v3440_v61  ;;  %v3460_v51 = vpop.f32.mrf.mxu0  ;;  %14709 = vmatprep.mubr.f32.mxu1 %v22262_v18  ;;  %v22278_v3 = vld [vmem:[#allocation170_spill] sm:$0xff]  ;;  %v22282_v18 = vld [vmem:[#allocation121_spill] sm:$0xff] }
 0x2ec   : > { %v3461_v13 = vadd.f32 %v3460_v51, %v22276_v0  ;;  %v4512_v21 = vpop.f32.mrf.mxu1 }
 0x2ed   : > { %22275 = vst [vmem:[#allocation52_spill] sm:$0xff] %v18022_v63  ;;  %v18026_v45 = vadd.f32 %v4512_v21, %v3433_v1  ;;  %v14093_v48 = vpop.f32.mrf.mxu0  ;;  %14492 = vmatmul.mubr.f32.gmra.mxu0 %v22278_v3  ;;  %v22285_v63 = vld [vmem:[#allocation123_spill] sm:$0xff] }
 0x2ee   : > { %v3482_v26 = vadd.f32 %v14093_v48, %v22279_v14  ;;  %v14311_v53 = vpop.f32.mrf.mxu1  ;;  %14710 = vmatmul.mubr.f32.gmra.mxu1 %v22266_v6  ;;  %14494 = vmatprep.mubr.f32.mxu0 %v22280_v25  ;;  %v22286_v6 = vld [vmem:[#allocation176_spill] sm:$0xff] }
 0x2ef   : > { %22277 = vst [vmem:[#allocation53_spill] sm:$0xff] %v18026_v45  ;;  %v18032_v61 = vadd.f32 %v14311_v53, %v3454_v20  ;;  %v3474_v49 = vpop.f32.mrf.mxu0  ;;  %14712 = vmatprep.mubr.f32.mxu1 %v22268_v56  ;;  %v22284_v45 = vld [vmem:[#allocation174_spill] sm:$0xff]  ;;  %v22288_v56 = vld [vmem:[#allocation125_spill] sm:$0xff] }
 0x2f0   : > { %v3475_v51 = vadd.f32 %v3474_v49, %v22282_v18  ;;  %v4528_v0 = vpop.f32.mrf.mxu1 }
 0x2f1   : > { %22281 = vst [vmem:[#allocation21_spill] sm:$0xff] %v18032_v61  ;;  %v18036_v1 = vadd.f32 %v4528_v0, %v3447_v58  ;;  %v14096_v21 = vpop.f32.mrf.mxu0  ;;  %14495 = vmatmul.mubr.f32.gmra.mxu0 %v22284_v45  ;;  %v22291_v61 = vld [vmem:[#allocation127_spill] sm:$0xff] }
 0x2f2   : > { %v3496_v14 = vadd.f32 %v14096_v21, %v22285_v63  ;;  %v14314_v48 = vpop.f32.mrf.mxu1  ;;  %14713 = vmatmul.mubr.f32.gmra.mxu1 %v22272_v7  ;;  %14497 = vmatprep.mubr.f32.mxu0 %v22286_v6  ;;  %v22292_v7 = vld [vmem:[#allocation179_spill] sm:$0xff] }
 0x2f3   : > { %22283 = vst [vmem:[#allocation55_spill] sm:$0xff] %v18036_v1  ;;  %v18042_v20 = vadd.f32 %v14314_v48, %v3468_v16  ;;  %v3488_v53 = vpop.f32.mrf.mxu0  ;;  %14715 = vmatprep.mubr.f32.mxu1 %v22274_v44  ;;  %v22290_v1 = vld [vmem:[#allocation178_spill] sm:$0xff]  ;;  %v22294_v44 = vld [vmem:[#allocation129_spill] sm:$0xff] }
 0x2f4   : > { %v3489_v49 = vadd.f32 %v3488_v53, %v22288_v56  ;;  %v4544_v18 = vpop.f32.mrf.mxu1 }
 0x2f5   : > { %22287 = vst [vmem:[#allocation24_spill] sm:$0xff] %v18042_v20  ;;  %v18046_v58 = vadd.f32 %v4544_v18, %v3461_v13  ;;  %v14099_v0 = vpop.f32.mrf.mxu0  ;;  %14498 = vmatmul.mubr.f32.gmra.mxu0 %v22290_v1  ;;  %v22297_v20 = vld [vmem:[#allocation132_spill] sm:$0xff] }
 0x2f6   : > { %v3510_v63 = vadd.f32 %v14099_v0, %v22291_v61  ;;  %v14317_v21 = vpop.f32.mrf.mxu1  ;;  %14716 = vmatmul.mubr.f32.gmra.mxu1 %v22278_v3  ;;  %14500 = vmatprep.mubr.f32.mxu0 %v22292_v7  ;;  %v22298_v3 = vld [vmem:[#allocation184_spill] sm:$0xff] }
 0x2f7   : > { %22289 = vst [vmem:[#allocation56_spill] sm:$0xff] %v18046_v58  ;;  %v18052_v16 = vadd.f32 %v14317_v21, %v3482_v26  ;;  %v3502_v48 = vpop.f32.mrf.mxu0  ;;  %14718 = vmatprep.mubr.f32.mxu1 %v22280_v25  ;;  %v22296_v58 = vld [vmem:[#allocation181_spill] sm:$0xff]  ;;  %v22300_v25 = vld [vmem:[#allocation134_spill] sm:$0xff] }
 0x2f8   : > { %v3503_v53 = vadd.f32 %v3502_v48, %v22294_v44  ;;  %v4560_v56 = vpop.f32.mrf.mxu1 }
 0x2f9   : > { %22293 = vst [vmem:[#allocation31_spill] sm:$0xff] %v18052_v16  ;;  %v18056_v13 = vadd.f32 %v4560_v56, %v3475_v51  ;;  %v14102_v18 = vpop.f32.mrf.mxu0  ;;  %14501 = vmatmul.mubr.f32.gmra.mxu0 %v22296_v58  ;;  %v22303_v16 = vld [vmem:[#allocation135_spill] sm:$0xff] }
 0x2fa   : > { %v3524_v61 = vadd.f32 %v14102_v18, %v22297_v20  ;;  %v14320_v0 = vpop.f32.mrf.mxu1  ;;  %14719 = vmatmul.mubr.f32.gmra.mxu1 %v22284_v45  ;;  %14503 = vmatprep.mubr.f32.mxu0 %v22298_v3  ;;  %v22304_v45 = vld [vmem:[#allocation188_spill] sm:$0xff] }
 0x2fb   : > { %22295 = vst [vmem:[#allocation57_spill] sm:$0xff] %v18056_v13  ;;  %v18062_v26 = vadd.f32 %v14320_v0, %v3496_v14  ;;  %v3516_v21 = vpop.f32.mrf.mxu0  ;;  %14721 = vmatprep.mubr.f32.mxu1 %v22286_v6  ;;  %v22302_v13 = vld [vmem:[#allocation186_spill] sm:$0xff]  ;;  %v22306_v6 = vld [vmem:[#allocation137_spill] sm:$0xff] }
 0x2fc   : > { %v3517_v48 = vadd.f32 %v3516_v21, %v22300_v25  ;;  %v4576_v44 = vpop.f32.mrf.mxu1 }
 0x2fd   : > { %22299 = vst [vmem:[#allocation6_spill] sm:$0xff] %v18062_v26  ;;  %v18066_v51 = vadd.f32 %v4576_v44, %v3489_v49  ;;  %v14105_v56 = vpop.f32.mrf.mxu0  ;;  %14504 = vmatmul.mubr.f32.gmra.mxu0 %v22302_v13  ;;  %v22309_v26 = vld [vmem:[#allocation139_spill] sm:$0xff] }
 0x2fe   : > { %v3538_v20 = vadd.f32 %v14105_v56, %v22303_v16  ;;  %v14323_v18 = vpop.f32.mrf.mxu1  ;;  %14722 = vmatmul.mubr.f32.gmra.mxu1 %v22290_v1  ;;  %14506 = vmatprep.mubr.f32.mxu0 %v22304_v45  ;;  %v22310_v1 = vld [vmem:[#allocation192_spill] sm:$0xff] }
 0x2ff   : > { %22301 = vst [vmem:[#allocation58_spill] sm:$0xff] %v18066_v51  ;;  %v18072_v14 = vadd.f32 %v14323_v18, %v3510_v63  ;;  %v3530_v0 = vpop.f32.mrf.mxu0  ;;  %14724 = vmatprep.mubr.f32.mxu1 %v22292_v7  ;;  %v22308_v51 = vld [vmem:[#allocation190_spill] sm:$0xff] }
 0x300   : > { %v3531_v21 = vadd.f32 %v3530_v0, %v22306_v6  ;;  %v4592_v25 = vpop.f32.mrf.mxu1  ;;  %v22312_v7 = vld [vmem:[#allocation142_spill] sm:$0xff] }
 0x301   : > { %22305 = vst [vmem:[#allocation34_spill] sm:$0xff] %v18072_v14  ;;  %v18076_v49 = vadd.f32 %v4592_v25, %v3503_v53  ;;  %v14108_v44 = vpop.f32.mrf.mxu0  ;;  %14507 = vmatmul.mubr.f32.gmra.mxu0 %v22308_v51  ;;  %v22315_v14 = vld [vmem:[#allocation143_spill] sm:$0xff] }
 0x302   : > { %v3552_v16 = vadd.f32 %v14108_v44, %v22309_v26  ;;  %v14326_v56 = vpop.f32.mrf.mxu1  ;;  %14725 = vmatmul.mubr.f32.gmra.mxu1 %v22296_v58  ;;  %14509 = vmatprep.mubr.f32.mxu0 %v22310_v1  ;;  %v22316_v58 = vld [vmem:[#allocation195_spill] sm:$0xff] }
 0x303   : > { %22307 = vst [vmem:[#allocation61_spill] sm:$0xff] %v18076_v49  ;;  %v18082_v63 = vadd.f32 %v14326_v56, %v3524_v61  ;;  %v3544_v18 = vpop.f32.mrf.mxu0  ;;  %14727 = vmatprep.mubr.f32.mxu1 %v22298_v3  ;;  %v22314_v49 = vld [vmem:[#allocation194_spill] sm:$0xff]  ;;  %v22318_v3 = vld [vmem:[#allocation145_spill] sm:$0xff] }
 0x304   : > { %v3545_v0 = vadd.f32 %v3544_v18, %v22312_v7  ;;  %v4608_v6 = vpop.f32.mrf.mxu1 }
 0x305   : > { %22311 = vst [vmem:[#allocation37_spill] sm:$0xff] %v18082_v63  ;;  %v18086_v53 = vadd.f32 %v4608_v6, %v3517_v48  ;;  %v14111_v25 = vpop.f32.mrf.mxu0  ;;  %14510 = vmatmul.mubr.f32.gmra.mxu0 %v22314_v49  ;;  %v22321_v63 = vld [vmem:[#allocation148_spill] sm:$0xff] }
 0x306   : > { %v3566_v26 = vadd.f32 %v14111_v25, %v22315_v14  ;;  %v14329_v44 = vpop.f32.mrf.mxu1  ;;  %14728 = vmatmul.mubr.f32.gmra.mxu1 %v22302_v13  ;;  %14512 = vmatprep.mubr.f32.mxu0 %v22316_v58  ;;  %v22322_v13 = vld [vmem:[#allocation200_spill] sm:$0xff] }
 0x307   : > { %22313 = vst [vmem:[#allocation63_spill] sm:$0xff] %v18086_v53  ;;  %v18092_v61 = vadd.f32 %v14329_v44, %v3538_v20  ;;  %v3558_v56 = vpop.f32.mrf.mxu0  ;;  %14730 = vmatprep.mubr.f32.mxu1 %v22304_v45  ;;  %v22320_v53 = vld [vmem:[#allocation197_spill] sm:$0xff]  ;;  %v22324_v45 = vld [vmem:[#allocation150_spill] sm:$0xff] }
 0x308   : > { %v3559_v18 = vadd.f32 %v3558_v56, %v22318_v3  ;;  %v4624_v7 = vpop.f32.mrf.mxu1 }
 0x309   : > { %22317 = vst [vmem:[#allocation7_spill] sm:$0xff] %v18092_v61  ;;  %v18096_v48 = vadd.f32 %v4624_v7, %v3531_v21  ;;  %v14114_v6 = vpop.f32.mrf.mxu0  ;;  %14513 = vmatmul.mubr.f32.gmra.mxu0 %v22320_v53  ;;  %v22327_v61 = vld [vmem:[#allocation151_spill] sm:$0xff] }
 0x30a   : > { %v3580_v14 = vadd.f32 %v14114_v6, %v22321_v63  ;;  %v14332_v25 = vpop.f32.mrf.mxu1  ;;  %14731 = vmatmul.mubr.f32.gmra.mxu1 %v22308_v51  ;;  %14515 = vmatprep.mubr.f32.mxu0 %v22322_v13  ;;  %v22328_v51 = vld [vmem:[#allocation204_spill] sm:$0xff] }
 0x30b   : > { %22319 = vst [vmem:[#allocation64_spill] sm:$0xff] %v18096_v48  ;;  %v18102_v20 = vadd.f32 %v14332_v25, %v3552_v16  ;;  %v3572_v44 = vpop.f32.mrf.mxu0  ;;  %14733 = vmatprep.mubr.f32.mxu1 %v22310_v1  ;;  %v22326_v48 = vld [vmem:[#allocation202_spill] sm:$0xff]  ;;  %v22330_v1 = vld [vmem:[#allocation153_spill] sm:$0xff] }
 0x30c   : > { %v3573_v56 = vadd.f32 %v3572_v44, %v22324_v45  ;;  %v4640_v3 = vpop.f32.mrf.mxu1 }
 0x30d   : > { %22323 = vst [vmem:[#allocation8_spill] sm:$0xff] %v18102_v20  ;;  %v18106_v21 = vadd.f32 %v4640_v3, %v3545_v0  ;;  %v14117_v7 = vpop.f32.mrf.mxu0  ;;  %14516 = vmatmul.mubr.f32.gmra.mxu0 %v22326_v48 }
 0x30e   : > { %v3594_v63 = vadd.f32 %v14117_v7, %v22327_v61  ;;  %v14335_v6 = vpop.f32.mrf.mxu1  ;;  %14734 = vmatmul.mubr.f32.gmra.mxu1 %v22314_v49  ;;  %14518 = vmatprep.mubr.f32.mxu0 %v22328_v51  ;;  %v22333_v49 = vld [vmem:[#allocation208_spill] sm:$0xff] }
 0x30f   : > { %22325 = vst [vmem:[#allocation65_spill] sm:$0xff] %v18106_v21  ;;  %v18112_v16 = vadd.f32 %v14335_v6, %v3566_v26  ;;  %v3586_v25 = vpop.f32.mrf.mxu0  ;;  %14736 = vmatprep.mubr.f32.mxu1 %v22316_v58  ;;  %v22332_v21 = vld [vmem:[#allocation205_spill] sm:$0xff] }
 0x310   : > { %v3587_v44 = vadd.f32 %v3586_v25, %v22330_v1  ;;  %v4656_v45 = vpop.f32.mrf.mxu1 }
 0x311   : > { %22329 = vst [vmem:[#allocation46_spill] sm:$0xff] %v18112_v16  ;;  %v18116_v0 = vadd.f32 %v4656_v45, %v3559_v18  ;;  %v14120_v3 = vpop.f32.mrf.mxu0  ;;  %14519 = vmatmul.mubr.f32.gmra.mxu0 %v22332_v21  ;;  %v22336_v45 = vld [vmem:[#allocation210_spill] sm:$0xff] }
 0x312   : > { %v3608_v61 = vadd.f32 %v14120_v3, %v17470_v37  ;;  %v14338_v7 = vpop.f32.mrf.mxu1  ;;  %14737 = vmatmul.mubr.f32.gmra.mxu1 %v22320_v53  ;;  %14521 = vmatprep.mubr.f32.mxu0 %v22333_v49  ;;  %v22337_v37 = vld [vmem:[#allocation211_spill] sm:$0xff]  ;;  %v14903_v3 = vmov 1983009808  }
 0x313   : > { %22331 = vst [vmem:[#allocation67_spill] sm:$0xff] %v18116_v0  ;;  %v18122_v26 = vadd.f32 %v14338_v7, %v3580_v14  ;;  %v3600_v6 = vpop.f32.mrf.mxu0  ;;  %14739 = vmatprep.mubr.f32.mxu1 %v22322_v13  ;;  %v6704_v13 = vunpack.c.l.s4 %v14903_v3  ;;  %v6706_v7 = vlaneseq }
 0x314   : > { %v3601_v58 = vadd.f32 %v3600_v6, %v17475_v36  ;;  %v4672_v25 = vpop.f32.mrf.mxu1 }
 0x315   : > { %22334 = vst [vmem:[#allocation48_spill] sm:$0xff] %v18122_v26  ;;  %v18126_v18 = vadd.f32 %v4672_v25, %v3573_v56  ;;  %v14379_v1 = vpop.f32.mrf.mxu0  ;;  %14522 = vmatmul.mubr.f32.gmra.mxu0 %v22336_v45  ;;  %v22340_v25 = vld [vmem:[#allocation213_spill] sm:$0xff] }
 0x316   : > { %v14341_v0 = vpop.f32.mrf.mxu1  ;;  %14740 = vmatmul.mubr.f32.gmra.mxu1 %v22326_v48  ;;  %14524 = vmatprep.mubr.f32.mxu0 %v22337_v37  ;;  %v22341_v48 = vld [vmem:[#allocation216_spill] sm:$0xff] }
 0x317   : > { %22335 = vst [vmem:[#allocation69_spill] sm:$0xff] %v18126_v18  ;;  %v18131_v53 = vadd.f32 %v14341_v0, %v3594_v63  ;;  %v4831_v14 = vpop.f32.mrf.mxu0  ;;  %14742 = vmatprep.mubr.f32.mxu1 %v22328_v51  ;;  %v6705_v51 = vunpack.c.0.s8 %v6704_v13  ;;  %v6707_v0 = vshrl.u32 %v6706_v7, 7 }
 0x318   : > { %v4688_v36 = vpop.f32.mrf.mxu1 }
 0x319   : > { %22338 = vst [vmem:[#allocation9_spill] sm:$0xff] %v18131_v53  ;;  %v18134_v6 = vadd.f32 %v4688_v36, %v3587_v44  ;;  %v14382_v56 = vpop.f32.mrf.mxu0  ;;  %14525 = vmatmul.mubr.f32.gmra.mxu0 %v22340_v25  ;;  %v22343_v53 = vld [vmem:[#allocation155_spill] sm:$0xff]  ;;  %v18149_v11 = vsub.s32 %v6705_v51, %v6707_v0 }
 0x31a   : > { %v14344_v18 = vpop.f32.mrf.mxu1  ;;  %14743 = vmatmul.mubr.f32.gmra.mxu1 %v22332_v21  ;;  %14527 = vmatprep.mubr.f32.mxu0 %v22341_v48  ;;  %v4838_v16 = vadd.f32 %v14379_v1, %v22343_v53  ;;  %v22346_v21 = vld [vmem:[#allocation220_spill] sm:$0xff]  ;;  %v22348_v1 = vld [vmem:[#allocation159_spill] sm:$0xff] }
 0x31b   : > { %22339 = vst [vmem:[#allocation70_spill] sm:$0xff] %v18134_v6  ;;  %v18139_v26 = vadd.f32 %v14344_v18, %v3608_v61  ;;  %v4843_v63 = vpop.f32.mrf.mxu0  ;;  %14745 = vmatprep.mubr.f32.mxu1 %v22333_v49  ;;  %v22345_v6 = vld [vmem:[#allocation218_spill] sm:$0xff]  ;;  %v22347_v61 = vld [vmem:[#allocation157_spill] sm:$0xff] }
 0x31c   : > { %v4704_v3 = vpop.f32.mrf.mxu1  ;;  %v4832_v18 = vadd.f32 %v4831_v14, %v22347_v61 }
 0x31d   : > { %22342 = vst [vmem:[#allocation50_spill] sm:$0xff] %v18139_v26  ;;  %v18143_v44 = vadd.f32 %v4704_v3, %v3601_v58  ;;  %v14385_v36 = vpop.f32.mrf.mxu0  ;;  %14528 = vmatmul.mubr.f32.gmra.mxu0 %v22345_v6  ;;  %v4850_v58 = vadd.f32 %v14382_v56, %v22348_v1 }
 0x31e   : > { %v14603_v20 = vpop.f32.mrf.mxu1  ;;  %14746 = vmatmul.mubr.f32.gmra.mxu1 %v22336_v45  ;;  %14530 = vmatprep.mubr.f32.mxu0 %v22346_v21  ;;  %v22350_v45 = vld [vmem:[#allocation224_spill] sm:$0xff] }
 0x31f   : > { %22344 = vst [vmem:[#allocation72_spill] sm:$0xff] %v18143_v44  ;;  %v5687_v26 = vadd.f32 %v14603_v20, %v4838_v16  ;;  %v4855_v49 = vpop.f32.mrf.mxu0  ;;  %14748 = vmatprep.mubr.f32.mxu1 %v22337_v37  ;;  %v22349_v44 = vld [vmem:[#allocation222_spill] sm:$0xff] }
 0x320   : > { %v5680_v13 = vpop.f32.mrf.mxu1  ;;  %v22351_v37 = vld [vmem:[#allocation162_spill] sm:$0xff] }
 0x321   : > { %v6447_v53 = vmax.f32 %v5687_v26, 0.0  ;;  %v5681_v7 = vadd.f32 %v5680_v13, %v4832_v18  ;;  %v14388_v3 = vpop.f32.mrf.mxu0  ;;  %14531 = vmatmul.mubr.f32.gmra.mxu0 %v22349_v44  ;;  %v4844_v56 = vadd.f32 %v4843_v63, %v22351_v37  ;;  %v22352_v13 = vld [vmem:[#allocation225_spill] sm:$0xff] }
 0x322   : > { %v14606_v54 = vpop.f32.mrf.mxu1  ;;  %14749 = vmatmul.mubr.f32.gmra.mxu1 %v22340_v25  ;;  %14533 = vmatprep.mubr.f32.mxu0 %v22350_v45  ;;  %v4874_v19 = vadd.f32 %v14388_v3, %v22356_v9 }
 0x323   : > { %v6719_v14 = vcombine.high %v6447_v53, %v6447_v53  ;;  %v6726_v20 = vrot.slane %v6447_v53, %v18149_v11  ;;  %v6446_v16 = vmax.f32 %v5681_v7, 0.0  ;;  %v5699_v51 = vadd.f32 %v14606_v54, %v4850_v58  ;;  %v4867_v0 = vpop.f32.mrf.mxu0  ;;  %14751 = vmatprep.mubr.f32.mxu1 %v22341_v48  ;;  %v22353_v54 = vld [vmem:[#allocation228_spill] sm:$0xff]  ;;  %v22355_v58 = vld [vmem:[#allocation165_spill] sm:$0xff] }
 0x324   : > { %v5692_v26 = vpop.f32.mrf.mxu1  ;;  %v22354_v48 = vld [vmem:[#allocation164_spill] sm:$0xff]  ;;  %v4856_v37 = vadd.f32 %v4855_v49, %v22355_v58  ;;  %v4868_v42 = vadd.f32 %v4867_v0, %v22357_v50 }
 0x325   : > { %v6733_v61 = vrot.slane %v6719_v14, %v18149_v11  ;;  %v6702_v18 = vcombine.high %v6446_v16, %v6446_v16  ;;  %14534 = vmatmul.mubr.f32.gmra.mxu0 %v22352_v13  ;;  %v6734_v25 = vcombine.high %v6726_v20, %v6726_v20  ;;  %v6709_v1 = vrot.slane %v6446_v16, %v18149_v11  ;;  %v14391_v53 = vpop.f32.mrf.mxu0 }
 0x326   : > { %v6449_v10 = vmax.f32 %v5699_v51, 0.0  ;;  %v5693_v39 = vadd.f32 %v5692_v26, %v4844_v56  ;;  %v14609_v7 = vpop.f32.mrf.mxu1  ;;  %14752 = vmatmul.mubr.f32.gmra.mxu1 %v22345_v6  ;;  %14536 = vmatprep.mubr.f32.mxu0 %v22353_v54  ;;  %v4862_v63 = vadd.f32 %v14385_v36, %v22354_v48  ;;  %v18171_v6 = vsel %vm9390_vm0, %v6726_v20, -inf  ;;  %v22359_v20 = vld [vmem:[#allocation231_spill] sm:$0xff] }
 0x327   : > { %v6716_v14 = vrot.slane %v6702_v18, %v18149_v11  ;;  %14754 = vmatprep.mubr.f32.mxu1 %v22346_v21  ;;  %v6735_v5 = vcombine.high %v6733_v61, %v6733_v61  ;;  %v6717_v16 = vcombine.high %v6709_v1, %v6709_v1  ;;  %v18175_v49 = vadd.f32 %v14391_v53, %v17530_v40  ;;  %v22358_v18 = vld [vmem:[#allocation230_spill] sm:$0xff] }
 0x328   : > { %v6753_v51 = vcombine.high %v6449_v10, %v6449_v10  ;;  %v6760_v56 = vrot.slane %v6449_v10, %v18149_v11  ;;  %v5704_v26 = vpop.f32.mrf.mxu1  ;;  %v6448_v36 = vmax.f32 %v5693_v39, 0.0  ;;  %v18179_v9 = vsel %vm9390_vm0, %v6734_v25, -inf }
 0x329   : > { %14537 = vmatmul.mubr.f32.gmra.mxu0 %v22358_v18  ;;  %v6718_v21 = vcombine.high %v6716_v14, %v6716_v14  ;;  %v9409_v50 = vsel %vm9390_vm0, %v6733_v61, -inf  ;;  %v5711_v0 = vadd.f32 %v14609_v7, %v4862_v63  ;;  %v18190_v25 = vsel %vm9390_vm0, %v6735_v5, -inf  ;;  %v4879_v61 = vpop.f32.mrf.mxu0  ;;  %v22360_v5 = vld [vmem:[#allocation234_spill] sm:$0xff] }
 0x32a   : > { %v6767_v3 = vrot.slane %v6753_v51, %v18149_v11  ;;  %v6768_v48 = vcombine.high %v6760_v56, %v6760_v56  ;;  %v14612_v10 = vpop.f32.mrf.mxu1  ;;  %14755 = vmatmul.mubr.f32.gmra.mxu1 %v22349_v44  ;;  %14539 = vmatprep.mubr.f32.mxu0 %v22359_v20  ;;  %v6736_v39 = vcombine.high %v6448_v36, %v6448_v36  ;;  %v18193_v53 = vsel %vm9390_vm0, %v6709_v1, -inf }
 0x32b   : > { %v18186_v40 = vrot.slane %v6448_v36, %v18149_v11  ;;  %14757 = vmatprep.mubr.f32.mxu1 %v22350_v45  ;;  %v18196_v58 = vsel %vm9390_vm0, %v6717_v16, -inf  ;;  %v18199_v44 = vsel %vm9390_vm0, %v6716_v14, -inf  ;;  %v18202_v36 = vsel %vm9390_vm0, %v6760_v56, -inf }
 0x32c   : > { %v6769_v51 = vcombine.high %v6767_v3, %v6767_v3  ;;  %v18205_v7 = vrot.slane %v6736_v39, %v18149_v11  ;;  %v6451_v45 = vmax.f32 %v5711_v0, 0.0  ;;  %v18209_v1 = vsel %vm9390_vm0, %v6718_v21, -inf  ;;  %v5716_v12 = vpop.f32.mrf.mxu1 }
 0x32d   : > { %14540 = vmatmul.mubr.f32.gmra.mxu0 %v22360_v5  ;;  %v18212_v63 = vsel %vm9390_vm0, %v6768_v48, -inf  ;;  %v5705_v16 = vadd.f32 %v5704_v26, %v4856_v37  ;;  %v5723_v14 = vadd.f32 %v14612_v10, %v4874_v19  ;;  %v18217_v56 = vsel %vm9390_vm0, %v6767_v3, -inf }
 0x32e   : > { %14758 = vmatmul.mubr.f32.gmra.mxu1 %v22352_v13  ;;  %14542 = vmatprep.mubr.f32.mxu0 %v22361_v22  ;;  %v6787_v0 = vcombine.high %v6451_v45, %v6451_v45  ;;  %v18222_v21 = vadd.f32 %v4879_v61, %v17535_v57  ;;  %v18227_v19 = vsel %vm9390_vm0, %v18186_v40, -inf  ;;  %v6794_v13 = vrot.slane %v6451_v45, %v18149_v11 }
 0x32f   : > { %14760 = vmatprep.mubr.f32.mxu1 %v22353_v54  ;;  %v6450_v37 = vmax.f32 %v5705_v16, 0.0  ;;  %v18230_v26 = vmax.f32 %v5723_v14, 0.0  ;;  %v18233_v3 = vsel %vm9390_vm0, %v6769_v51, -inf  ;;  %v18238_v10 = vadd.f32 %v5716_v12, %v4868_v42  ;;  %v22362_v54 = vld [vmem:[#allocation238_spill] sm:$0xff]  ;;  %v22363_v16 = vld [vmem:[#allocation240_spill] sm:$0xff] }
 0x330   : > { %v6801_v57 = vrot.slane %v6787_v0, %v18149_v11  ;;  %v6802_v61 = vcombine.high %v6794_v13, %v6794_v13  ;;  %v9404_v39 = vsel %vm9390_vm0, %v6794_v13, -inf }
 0x331   : > { %14543 = vmatmul.mubr.f32.gmra.mxu0 %v22362_v54  ;;  %v6770_v38 = vcombine.high %v6450_v37, %v6450_v37  ;;  %v6777_v45 = vrot.slane %v6450_v37, %v18149_v11  ;;  %v9405_v14 = vmax.f32 %v18171_v6, %v9404_v39  ;;  %v22364_v39 = vld [vmem:[#allocation244_spill] sm:$0xff] }
 0x332   : > { %14761 = vmatmul.mubr.f32.gmra.mxu1 %v22358_v18  ;;  %14545 = vmatprep.mubr.f32.mxu0 %v22363_v16  ;;  %v6803_v51 = vcombine.high %v6801_v57, %v6801_v57  ;;  %v9410_v48 = vsel %vm9390_vm0, %v6801_v57, -inf  ;;  %v9407_v42 = vsel %vm9390_vm0, %v6802_v61, -inf }
 0x333   : > { %14763 = vmatprep.mubr.f32.mxu1 %v22359_v20  ;;  %v9411_v0 = vmax.f32 %v9409_v50, %v9410_v48  ;;  %v6784_v13 = vrot.slane %v6770_v38, %v18149_v11  ;;  %v6785_v37 = vcombine.high %v6777_v45, %v6777_v45  ;;  %v9408_v18 = vmax.f32 %v18179_v9, %v9407_v42  ;;  %v22365_v38 = vld [vmem:[#allocation246_spill] sm:$0xff] }
 0x334   : > { %v9413_v60 = vsel %vm9390_vm0, %v6803_v51, -inf  ;;  %v10187_v34 = vsel %vm9390_vm0, %v9405_v14, -inf  ;;  %v9392_v6 = vsel %vm9390_vm0, %v6777_v45, -inf }
 0x335   : > { %14546 = vmatmul.mubr.f32.gmra.mxu0 %v22364_v39  ;;  %v9414_v57 = vmax.f32 %v18190_v25, %v9413_v60  ;;  %v10188_v12 = vrot.slane %v10187_v34, 4  ;;  %v10201_v20 = vsel %vm9390_vm0, %v9411_v0, -inf  ;;  %v6786_v61 = vcombine.high %v6784_v13, %v6784_v13 }
 0x336   : > { %14764 = vmatmul.mubr.f32.gmra.mxu1 %v22360_v5  ;;  %14548 = vmatprep.mubr.f32.mxu0 %v22365_v38  ;;  %v10194_v9 = vsel %vm9390_vm0, %v9408_v18, -inf  ;;  %v10202_v50 = vrot.slane %v10201_v20, 4  ;;  %v9393_v48 = vmax.f32 %v18193_v53, %v9392_v6  ;;  %v9395_v51 = vsel %vm9390_vm0, %v6785_v37, -inf  ;;  %v22366_v18 = vld [vmem:[#allocation248_spill] sm:$0xff] }
 0x337   : > { %14766 = vmatprep.mubr.f32.mxu1 %v22361_v22  ;;  %v10189_v45 = vmax.f32 %v10187_v34, %v10188_v12  ;;  %v10195_v14 = vrot.slane %v10194_v9, 4  ;;  %v10208_v60 = vsel %vm9390_vm0, %v9414_v57, -inf  ;;  %v9396_v25 = vmax.f32 %v18196_v58, %v9395_v51  ;;  %v22367_v34 = vld [vmem:[#allocation252_spill] sm:$0xff]  ;;  %v22368_v51 = vld [vmem:[#allocation255_spill] sm:$0xff] }
 0x338   : > { %v10203_v42 = vmax.f32 %v10201_v20, %v10202_v50  ;;  %v10209_v0 = vrot.slane %v10208_v60, 4  ;;  %v9398_v5 = vsel %vm9390_vm0, %v6784_v13, -inf  ;;  %v9401_v47 = vsel %vm9390_vm0, %v6786_v61, -inf }
 0x339   : > { %14549 = vmatmul.mubr.f32.gmra.mxu0 %v22366_v18  ;;  %v10190_v29 = vrot.slane %v10189_v45, 2  ;;  %v10196_v53 = vmax.f32 %v10194_v9, %v10195_v14  ;;  %v9399_v37 = vmax.f32 %v18199_v44, %v9398_v5  ;;  %v9402_v22 = vmax.f32 %v18209_v1, %v9401_v47 }
 0x33a   : > { %14767 = vmatmul.mubr.f32.gmra.mxu1 %v22362_v54  ;;  %14551 = vmatprep.mubr.f32.mxu0 %v22367_v34  ;;  %v10204_v12 = vrot.slane %v10203_v42, 2  ;;  %v10210_v58 = vmax.f32 %v10208_v60, %v10209_v0  ;;  %v10159_v6 = vsel %vm9390_vm0, %v9393_v48, -inf  ;;  %v10166_v13 = vsel %vm9390_vm0, %v9396_v25, -inf  ;;  %v18279_v54 = vpop.f32.mrf.mxu0 }
 0x33b   : > { %14769 = vmatprep.mubr.f32.mxu1 %v22363_v16  ;;  %v10191_v57 = vmax.f32 %v10189_v45, %v10190_v29  ;;  %v10197_v20 = vrot.slane %v10196_v53, 2  ;;  %v10160_v61 = vrot.slane %v10159_v6, 4  ;;  %v10167_v9 = vrot.slane %v10166_v13, 4  ;;  %v18282_v29 = vpop.f32.mrf.mxu1  ;;  %v22369_v45 = vld [vmem:[#allocation257_spill] sm:$0xff] }
 0x33c   : > { %v10205_v50 = vmax.f32 %v10203_v42, %v10204_v12  ;;  %v10211_v44 = vrot.slane %v10210_v58, 2  ;;  %v10173_v47 = vsel %vm9390_vm0, %v9399_v37, -inf  ;;  %v10180_v1 = vsel %vm9390_vm0, %v9402_v22, -inf }
 0x33d   : > { %14552 = vmatmul.mubr.f32.gmra.mxu0 %v22368_v51  ;;  %v10192_v48 = vrot.slane %v10191_v57, 1  ;;  %v10198_v14 = vmax.f32 %v10196_v53, %v10197_v20  ;;  %v10161_v60 = vmax.f32 %v10159_v6, %v10160_v61  ;;  %v10168_v16 = vmax.f32 %v10166_v13, %v10167_v9  ;;  %v22370_v61 = vld [vmem:[#allocation261_spill] sm:$0xff] }
 0x33e   : > { %14770 = vmatmul.mubr.f32.gmra.mxu1 %v22364_v39  ;;  %14554 = vmatprep.mubr.f32.mxu0 %v22369_v45  ;;  %v10206_v25 = vrot.slane %v10205_v50, 1  ;;  %v10212_v42 = vmax.f32 %v10210_v58, %v10211_v44  ;;  %v10174_v0 = vrot.slane %v10173_v47, 4  ;;  %v10181_v5 = vrot.slane %v10180_v1, 4  ;;  %v18295_v58 = vpop.f32.mrf.mxu0 }
 0x33f   : > { %14772 = vmatprep.mubr.f32.mxu1 %v22365_v38  ;;  %v18287_v37 = vmax.f32 %v10191_v57, %v10192_v48  ;;  %v10199_v22 = vrot.slane %v10198_v14, 1  ;;  %v10162_v53 = vrot.slane %v10161_v60, 2  ;;  %v10169_v12 = vrot.slane %v10168_v16, 2  ;;  %v18302_v48 = vpop.f32.mrf.mxu1 }
 0x340   : > { %v18293_v6 = vmax.f32 %v10205_v50, %v10206_v25  ;;  %v10213_v39 = vrot.slane %v10212_v42, 1  ;;  %v10175_v13 = vmax.f32 %v10173_v47, %v10174_v0  ;;  %v10182_v20 = vmax.f32 %v10180_v1, %v10181_v5 }
 0x341   : > { %14555 = vmatmul.mubr.f32.gmra.mxu0 %v22370_v61  ;;  %v18298_v38 = vmax.f32 %v10198_v14, %v10199_v22  ;;  %v10163_v57 = vmax.f32 %v10161_v60, %v10162_v53  ;;  %v10170_v9 = vmax.f32 %v10168_v16, %v10169_v12  ;;  %v6828_v44 = vrot.slane %v18230_v26, %v18149_v11  ;;  %v22372_v16 = vld [vmem:[#allocation264_spill] sm:$0xff] }
 0x342   : > { %14773 = vmatmul.mubr.f32.gmra.mxu1 %v22366_v18  ;;  %v18305_v50 = vmax.f32 %v10212_v42, %v10213_v39  ;;  %v10176_v47 = vrot.slane %v10175_v13, 2  ;;  %v10183_v1 = vrot.slane %v10182_v20, 2  ;;  %v22371_v14 = vcombine.high %v18230_v26, %v18230_v26  ;;  %14557 = vmatprep.mubr.f32.mxu0 %v22372_v16  ;;  %v18316_v26 = vpop.f32.mrf.mxu0  ;;  %v22373_v39 = vld [vmem:[#allocation268_spill] sm:$0xff] }
 0x343   : > { %14775 = vmatprep.mubr.f32.mxu1 %v22367_v34  ;;  %v10164_v25 = vrot.slane %v10163_v57, 1  ;;  %v10171_v0 = vrot.slane %v10170_v9, 1  ;;  %v6836_v5 = vcombine.high %v6828_v44, %v6828_v44  ;;  %v9428_v18 = vsel %vm9390_vm0, %v6828_v44, -inf  ;;  %v18321_v44 = vpop.f32.mrf.mxu1 }
 0x344   : > { %v6835_v60 = vrot.slane %v22371_v14, %v18149_v11  ;;  %v10177_v42 = vmax.f32 %v10175_v13, %v10176_v47  ;;  %v10184_v22 = vmax.f32 %v10182_v20, %v10183_v1  ;;  %v9429_v12 = vmax.f32 %v18202_v36, %v9428_v18  ;;  %v22374_v13 = vld [vmem:[#allocation270_spill] sm:$0xff]  ;;  %v18338_v31 = vpop.f32.mrf.mxu0 }
 0x345   : > { %14558 = vmatmul.mubr.f32.gmra.mxu0 %v22373_v39  ;;  %v10165_v14 = vmax.f32 %v10163_v57, %v10164_v25  ;;  %v10172_v34 = vmax.f32 %v10170_v9, %v10171_v0  ;;  %v9431_v17 = vsel %vm9390_vm0, %v6836_v5, -inf }
 0x346   : > { %v6837_v53 = vcombine.high %v6835_v60, %v6835_v60  ;;  %v9434_v62 = vsel %vm9390_vm0, %v6835_v60, -inf  ;;  %14776 = vmatmul.mubr.f32.gmra.mxu1 %v22368_v51  ;;  %14560 = vmatprep.mubr.f32.mxu0 %v22374_v13  ;;  %v10178_v36 = vrot.slane %v10177_v42, 1  ;;  %v10185_v20 = vrot.slane %v10184_v22, 1 }
 0x347   : > { %v9432_v47 = vmax.f32 %v18212_v63, %v9431_v17  ;;  %v9435_v57 = vmax.f32 %v18217_v56, %v9434_v62  ;;  %14778 = vmatprep.mubr.f32.mxu1 %v22369_v45  ;;  %v12208_v9 = vsel %vm12207_vm1, %v10172_v34, %v10165_v14  ;;  %v10243_v51 = vsel %vm9390_vm0, %v9429_v12, -inf  ;;  %v22375_v17 = vld [vmem:[#allocation272_spill] sm:$0xff] }
 0x348   : > { %v9437_v1 = vsel %vm9390_vm0, %v6837_v53, -inf  ;;  %v6452_v60 = vmax.f32 %v18238_v10, 0.0  ;;  %v10179_v25 = vmax.f32 %v10177_v42, %v10178_v36  ;;  %v10186_v0 = vmax.f32 %v10184_v22, %v10185_v20  ;;  %v18344_v53 = vpop.f32.mrf.mxu1  ;;  %v22376_v10 = vld [vmem:[#allocation275_spill] sm:$0xff] }
 0x349   : > { %v9438_v5 = vmax.f32 %v18233_v3, %v9437_v1  ;;  %v10244_v18 = vrot.slane %v10243_v51, 4  ;;  %14561 = vmatmul.mubr.f32.gmra.mxu0 %v22375_v17  ;;  %v10250_v62 = vsel %vm9390_vm0, %v9432_v47, -inf  ;;  %v10257_v63 = vsel %vm9390_vm0, %v9435_v57, -inf }
 0x34a   : > { %v6804_v56 = vcombine.high %v6452_v60, %v6452_v60  ;;  %v6811_v45 = vrot.slane %v6452_v60, %v18149_v11  ;;  %14779 = vmatmul.mubr.f32.gmra.mxu1 %v22370_v61  ;;  %14563 = vmatprep.mubr.f32.mxu0 %v22376_v10  ;;  %v12210_v3 = vsel %vm12209_vm2, %v10179_v25, %v12208_v9  ;;  %v10251_v22 = vrot.slane %v10250_v62, 4  ;;  %v18356_v60 = vpop.f32.mrf.mxu0  ;;  %v22377_v9 = vld [vmem:[#allocation278_spill] sm:$0xff] }
 0x34b   : > { %v10245_v42 = vmax.f32 %v10243_v51, %v10244_v18  ;;  %v10258_v12 = vrot.slane %v10257_v63, 4  ;;  %14781 = vmatprep.mubr.f32.mxu1 %v22372_v16  ;;  %v12212_v14 = vsel %vm12211_vm3, %v10186_v0, %v12210_v3  ;;  %v10264_v34 = vsel %vm9390_vm0, %v9438_v5, -inf  ;;  %v18367_v0 = vpop.f32.mrf.mxu1  ;;  %v22378_v5 = vld [vmem:[#allocation279_spill] sm:$0xff] }
 0x34c   : > { %v6818_v36 = vrot.slane %v6804_v56, %v18149_v11  ;;  %v6819_v20 = vcombine.high %v6811_v45, %v6811_v45  ;;  %v12214_v61 = vsel %vm12213_vm4, %v18287_v37, %v12212_v14  ;;  %v10252_v57 = vmax.f32 %v10250_v62, %v10251_v22  ;;  %v22380_v14 = vld [vmem:[#allocation280_spill] sm:$0xff] }
 0x34d   : > { %v10246_v47 = vrot.slane %v10245_v42, 2  ;;  %v10259_v1 = vmax.f32 %v10257_v63, %v10258_v12  ;;  %14564 = vmatmul.mubr.f32.gmra.mxu0 %v22377_v9  ;;  %v12216_v16 = vsel %vm12215_vm5, %v18298_v38, %v12214_v61  ;;  %v10265_v51 = vrot.slane %v10264_v34, 4  ;;  %v18396_v61 = vpop.f32.mrf.mxu1 }
 0x34e   : > { %v6820_v25 = vcombine.high %v6818_v36, %v6818_v36  ;;  %v9416_v37 = vsel %vm9390_vm0, %v6811_v45, -inf  ;;  %14782 = vmatmul.mubr.f32.gmra.mxu1 %v22373_v39  ;;  %14566 = vmatprep.mubr.f32.mxu0 %v22378_v5  ;;  %v22379_v18 = vcombine.high %v18186_v40, %v18186_v40  ;;  %v12218_v63 = vsel %vm12217_vm6, %v18293_v6, %v12216_v16 }
 0x34f   : > { %v10247_v38 = vmax.f32 %v10245_v42, %v10246_v47  ;;  %v10253_v56 = vrot.slane %v10252_v57, 2  ;;  %14784 = vmatprep.mubr.f32.mxu1 %v22374_v13  ;;  %v12220_v45 = vsel %vm12219_vm7, %v18305_v50, %v12218_v63  ;;  %v10266_v3 = vmax.f32 %v10264_v34, %v10265_v51  ;;  %v18390_v13 = vpop.f32.mrf.mxu0 }
 0x350   : > { %v9418_v62 = vsel %vm9390_vm0, %v22379_v18, -inf  ;;  %v9417_v39 = vmax.f32 %v18227_v19, %v9416_v37  ;;  %v9419_v22 = vsel %vm9390_vm0, %v6819_v20, -inf  ;;  %v9421_v40 = vsel %vm9390_vm0, %v18205_v7, -inf  ;;  %12471 = vst.msk [vmem:[%s18362_s24] sm:$0xff] %vm12470_vm8, %v12220_v45  ;;  %v18415_v45 = vpop.f32.mrf.mxu1 }
 0x351   : > { %v18388_v6 = vadd.f32 %v18279_v54, %v17542_v52  ;;  %v10260_v42 = vrot.slane %v10259_v1, 2  ;;  %v9420_v12 = vmax.f32 %v9418_v62, %v9419_v22  ;;  %14567 = vmatmul.mubr.f32.gmra.mxu0 %v22380_v14  ;;  %v10254_v50 = vmax.f32 %v10252_v57, %v10253_v56 }
 0x352   : > { %v9422_v19 = vsel %vm9390_vm0, %v6818_v36, -inf  ;;  %v9425_v34 = vsel %vm9390_vm0, %v6820_v25, -inf  ;;  %v10215_v20 = vsel %vm9390_vm0, %v9417_v39, -inf  ;;  %14785 = vmatmul.mubr.f32.gmra.mxu1 %v22375_v17  ;;  %v22381_v52 = vcombine.high %v18205_v7, %v18205_v7 }
 0x353   : > { %v10248_v47 = vrot.slane %v10247_v38, 1  ;;  %v18405_v16 = vadd.f32 %v18295_v58, %v17547_v8  ;;  %v9423_v57 = vmax.f32 %v9421_v40, %v9422_v19  ;;  %14787 = vmatprep.mubr.f32.mxu1 %v22376_v10  ;;  %v10267_v36 = vrot.slane %v10266_v3, 2 }
 0x354   : > { %v9424_v54 = vsel %vm9390_vm0, %v22381_v52, -inf  ;;  %v10216_v25 = vrot.slane %v10215_v20, 4  ;;  %v10222_v37 = vsel %vm9390_vm0, %v9420_v12, -inf  ;;  %v10261_v18 = vmax.f32 %v10259_v1, %v10260_v42 }
 0x355   : > { %v9426_v51 = vmax.f32 %v9424_v54, %v9425_v34  ;;  %v10223_v17 = vrot.slane %v10222_v37, 4  ;;  %v10229_v62 = vsel %vm9390_vm0, %v9423_v57, -inf  ;;  %v18412_v7 = vadd.f32 %v18316_v26, %v17554_v27 }
 0x356   : > { %v10255_v63 = vrot.slane %v10254_v50, 1  ;;  %v10217_v56 = vmax.f32 %v10215_v20, %v10216_v25  ;;  %v10230_v8 = vrot.slane %v10229_v62, 4  ;;  %14788 = vmatmul.mubr.f32.gmra.mxu1 %v22377_v9  ;;  %v10249_v10 = vmax.f32 %v10247_v38, %v10248_v47  ;;  %v18423_v47 = vpop.f32.mrf.mxu1 }
 0x357   : > { %v10236_v58 = vsel %vm9390_vm0, %v9426_v51, -inf  ;;  %v10224_v39 = vmax.f32 %v10222_v37, %v10223_v17  ;;  %v5735_v1 = vadd.f32 %v18282_v29, %v18175_v49  ;;  %14790 = vmatprep.mubr.f32.mxu1 %v22378_v5  ;;  %v10268_v40 = vmax.f32 %v10266_v3, %v10267_v36 }
 0x358   : > { %v10237_v22 = vrot.slane %v10236_v58, 4  ;;  %v10218_v27 = vrot.slane %v10217_v56, 2  ;;  %v10231_v26 = vmax.f32 %v10229_v62, %v10230_v8  ;;  %v5729_v42 = vadd.f32 %v18302_v48, %v18222_v21 }
 0x359   : > { %v10262_v12 = vrot.slane %v10261_v18, 1  ;;  %v10225_v19 = vrot.slane %v10224_v39, 2  ;;  %v6455_v20 = vmax.f32 %v5735_v1, 0.0  ;;  %v10256_v52 = vmax.f32 %v10254_v50, %v10255_v63 }
 0x35a   : > { %v10238_v34 = vmax.f32 %v10236_v58, %v10237_v22  ;;  %v10219_v9 = vmax.f32 %v10217_v56, %v10218_v27  ;;  %v10232_v38 = vrot.slane %v10231_v26, 2  ;;  %v6454_v54 = vmax.f32 %v5729_v42, 0.0  ;;  %14791 = vmatmul.mubr.f32.gmra.mxu1 %v22380_v14 }
 0x35b   : > { %v10226_v49 = vmax.f32 %v10224_v39, %v10225_v19  ;;  %v6855_v5 = vcombine.high %v6455_v20, %v6455_v20  ;;  %v6862_v3 = vrot.slane %v6455_v20, %v18149_v11  ;;  %v10269_v57 = vrot.slane %v10268_v40, 1 }
 0x35c   : > { %v10239_v29 = vrot.slane %v10238_v34, 2  ;;  %v10220_v36 = vrot.slane %v10219_v9, 1  ;;  %v10233_v21 = vmax.f32 %v10231_v26, %v10232_v38  ;;  %v6838_v48 = vcombine.high %v6454_v54, %v6454_v54 }
 0x35d   : > { %v10263_v51 = vmax.f32 %v10261_v18, %v10262_v12  ;;  %v10227_v25 = vrot.slane %v10226_v49, 1  ;;  %v6869_v50 = vrot.slane %v6855_v5, %v18149_v11  ;;  %v6870_v62 = vcombine.high %v6862_v3, %v6862_v3 }
 0x35e   : > { %v10240_v37 = vmax.f32 %v10238_v34, %v10239_v29  ;;  %v10234_v17 = vrot.slane %v10233_v21, 1  ;;  %v6845_v63 = vrot.slane %v6454_v54, %v18149_v11  ;;  %v5747_v14 = vadd.f32 %v18321_v44, %v18388_v6 }
 0x35f   : > { %v10221_v56 = vmax.f32 %v10219_v9, %v10220_v36  ;;  %v10228_v8 = vmax.f32 %v10226_v49, %v10227_v25  ;;  %v6852_v39 = vrot.slane %v6838_v48, %v18149_v11  ;;  %v10270_v22 = vmax.f32 %v10268_v40, %v10269_v57 }
 0x360   : > { %v10241_v58 = vrot.slane %v10240_v37, 1  ;;  %v10235_v1 = vmax.f32 %v10233_v21, %v10234_v17  ;;  %v6871_v27 = vcombine.high %v6869_v50, %v6869_v50  ;;  %v4904_v18 = vadd.f32 %v18338_v31, %v17559_v24 }
 0x361   : > { %v12221_v42 = vsel %vm12207_vm1, %v10228_v8, %v10221_v56  ;;  %v9451_v12 = vsel %vm9390_vm0, %v6862_v3, -inf  ;;  %v18438_v19 = vadd.f32 %v18356_v60, %v17566_v2  ;;  %v9454_v6 = vsel %vm9390_vm0, %v6870_v62, -inf }
 0x362   : > { %v10242_v26 = vmax.f32 %v10240_v37, %v10241_v58  ;;  %v12222_v44 = vsel %vm12209_vm2, %v10235_v1, %v12221_v42  ;;  %v9457_v40 = vsel %vm9390_vm0, %v6869_v50, -inf  ;;  %v6853_v34 = vcombine.high %v6845_v63, %v6845_v63 }
 0x363   : > { %v6854_v9 = vcombine.high %v6852_v39, %v6852_v39  ;;  %v6457_v24 = vmax.f32 %v5747_v14, 0.0  ;;  %v5741_v31 = vadd.f32 %v18344_v53, %v18405_v16  ;;  %v9460_v54 = vsel %vm9390_vm0, %v6871_v27, -inf  ;;  %v14403_v16 = vpop.f32.mrf.mxu0 }
 0x364   : > { %v12223_v20 = vsel %vm12211_vm3, %v10242_v26, %v12222_v44  ;;  %v18449_v2 = vsel %vm9390_vm0, %v6845_v63, -inf  ;;  %v5759_v60 = vadd.f32 %v18367_v0, %v18412_v7  ;;  %v18457_v53 = vsel %vm9390_vm0, %v6853_v34, -inf }
 0x365   : > { %v12224_v38 = vsel %vm12213_vm4, %v10249_v10, %v12223_v20  ;;  %v6889_v29 = vcombine.high %v6457_v24, %v6457_v24  ;;  %v6896_v5 = vrot.slane %v6457_v24, %v18149_v11  ;;  %v6456_v3 = vmax.f32 %v5741_v31, 0.0 }
 0x366   : > { %v12225_v49 = vsel %vm12215_vm5, %v10256_v52, %v12224_v38  ;;  %v6459_v10 = vmax.f32 %v5759_v60, 0.0  ;;  %v5753_v36 = vadd.f32 %v18396_v61, %v4904_v18  ;;  %v18462_v48 = vsel %vm9390_vm0, %v6852_v39, -inf }
 0x367   : > { %v12226_v57 = vsel %vm12217_vm6, %v10263_v51, %v12225_v49  ;;  %v6903_v0 = vrot.slane %v6889_v29, %v18149_v11  ;;  %v6904_v7 = vcombine.high %v6896_v5, %v6896_v5  ;;  %v6872_v52 = vcombine.high %v6456_v3, %v6456_v3 }
 0x368   : > { %v12227_v21 = vsel %vm12219_vm7, %v10270_v22, %v12226_v57  ;;  %v18468_v51 = vrot.slane %v6456_v3, %v18149_v11  ;;  %v6923_v25 = vcombine.high %v6459_v10, %v6459_v10  ;;  %v6930_v37 = vrot.slane %v6459_v10, %v18149_v11 }
 0x369   : > { %12472 = vst.msk [vmem:[%s18362_s24 + $0x8] sm:$0xff] %vm12470_vm8, %v12227_v21  ;;  %v18472_v50 = vsel %vm9390_vm0, %v6854_v9, -inf  ;;  %v18476_v61 = vadd.f32 %v18390_v13, %v17571_v33  ;;  %v18479_v17 = vadd.f32 %v14403_v16, %v17578_v4  ;;  %v6458_v62 = vmax.f32 %v5753_v36, 0.0 }
 0x36a   : > { %v6905_v63 = vcombine.high %v6903_v0, %v6903_v0  ;;  %v18482_v14 = vsel %vm9390_vm0, %v6896_v5, -inf  ;;  %v18485_v56 = vsel %vm9390_vm0, %v6904_v7, -inf  ;;  %v6937_v8 = vrot.slane %v6923_v25, %v18149_v11 }
 0x36b   : > { %v18489_v58 = vsel %vm9390_vm0, %v6903_v0, -inf  ;;  %v6938_v39 = vcombine.high %v6930_v37, %v6930_v37  ;;  %v9452_v33 = vsel %vm9390_vm0, %v6930_v37, -inf  ;;  %v6906_v13 = vcombine.high %v6458_v62, %v6458_v62 }
 0x36c   : > { %v18493_v4 = vrot.slane %v6872_v52, %v18149_v11  ;;  %v6887_v22 = vcombine.high %v18468_v51, %v18468_v51  ;;  %v18499_v1 = vsel %vm9390_vm0, %v18468_v51, -inf  ;;  %v6939_v27 = vcombine.high %v6937_v8, %v6937_v8 }
 0x36d   : > { %v9453_v18 = vmax.f32 %v9451_v12, %v9452_v33  ;;  %v9455_v26 = vsel %vm9390_vm0, %v6938_v39, -inf  ;;  %v9458_v42 = vsel %vm9390_vm0, %v6937_v8, -inf  ;;  %v6913_v44 = vrot.slane %v6458_v62, %v18149_v11 }
 0x36e   : > { %v18505_v34 = vsel %vm9390_vm0, %v6905_v63, -inf  ;;  %v9456_v20 = vmax.f32 %v9454_v6, %v9455_v26  ;;  %v9459_v9 = vmax.f32 %v9457_v40, %v9458_v42  ;;  %v9461_v24 = vsel %vm9390_vm0, %v6939_v27, -inf }
 0x36f   : > { %v9462_v31 = vmax.f32 %v9460_v54, %v9461_v24  ;;  %v10299_v38 = vsel %vm9390_vm0, %v9453_v18, -inf  ;;  %v6920_v60 = vrot.slane %v6906_v13, %v18149_v11  ;;  %v6921_v49 = vcombine.high %v6913_v44, %v6913_v44 }
 0x370   : > { %v10300_v12 = vrot.slane %v10299_v38, 4  ;;  %v10306_v29 = vsel %vm9390_vm0, %v9456_v20, -inf  ;;  %v10313_v5 = vsel %vm9390_vm0, %v9459_v9, -inf  ;;  %v9440_v3 = vsel %vm9390_vm0, %v6913_v44, -inf }
 0x371   : > { %v10307_v57 = vrot.slane %v10306_v29, 4  ;;  %v10314_v16 = vrot.slane %v10313_v5, 4  ;;  %v10320_v6 = vsel %vm9390_vm0, %v9462_v31, -inf  ;;  %v6922_v40 = vcombine.high %v6920_v60, %v6920_v60 }
 0x372   : > { %v10301_v10 = vmax.f32 %v10299_v38, %v10300_v12  ;;  %v10321_v36 = vrot.slane %v10320_v6, 4  ;;  %v9441_v54 = vmax.f32 %v18449_v2, %v9440_v3  ;;  %v9443_v21 = vsel %vm9390_vm0, %v6921_v49, -inf }
 0x373   : > { %v10308_v0 = vmax.f32 %v10306_v29, %v10307_v57  ;;  %v10315_v7 = vmax.f32 %v10313_v5, %v10314_v16  ;;  %v9444_v52 = vmax.f32 %v18457_v53, %v9443_v21  ;;  %v9446_v51 = vsel %vm9390_vm0, %v6920_v60, -inf }
 0x374   : > { %v10302_v25 = vrot.slane %v10301_v10, 2  ;;  %v10322_v37 = vmax.f32 %v10320_v6, %v10321_v36  ;;  %v9447_v62 = vmax.f32 %v18462_v48, %v9446_v51  ;;  %v9449_v63 = vsel %vm9390_vm0, %v6922_v40, -inf }
 0x375   : > { %v10309_v8 = vrot.slane %v10308_v0, 2  ;;  %v10316_v39 = vrot.slane %v10315_v7, 2  ;;  %v9450_v33 = vmax.f32 %v18472_v50, %v9449_v63  ;;  %v10271_v2 = vsel %vm9390_vm0, %v9441_v54, -inf }
 0x376   : > { %v10303_v13 = vmax.f32 %v10301_v10, %v10302_v25  ;;  %v10323_v27 = vrot.slane %v10322_v37, 2  ;;  %v10272_v18 = vrot.slane %v10271_v2, 4  ;;  %v10278_v26 = vsel %vm9390_vm0, %v9444_v52, -inf }
 0x377   : > { %v10310_v53 = vmax.f32 %v10308_v0, %v10309_v8  ;;  %v10317_v42 = vmax.f32 %v10315_v7, %v10316_v39  ;;  %v10279_v44 = vrot.slane %v10278_v26, 4  ;;  %v10285_v20 = vsel %vm9390_vm0, %v9447_v62, -inf }
 0x378   : > { %v10304_v9 = vrot.slane %v10303_v13, 1  ;;  %v10324_v48 = vmax.f32 %v10322_v37, %v10323_v27  ;;  %v10273_v24 = vmax.f32 %v10271_v2, %v10272_v18  ;;  %v10286_v31 = vrot.slane %v10285_v20, 4 }
 0x379   : > { %v6888_v38 = vcombine.high %v18493_v4, %v18493_v4  ;;  %v10311_v50 = vrot.slane %v10310_v53, 1  ;;  %v10280_v60 = vmax.f32 %v10278_v26, %v10279_v44  ;;  %v10292_v49 = vsel %vm9390_vm0, %v9450_v33, -inf }
 0x37a   : > { %v18528_v12 = vsel %vm9390_vm0, %v6887_v22, -inf  ;;  %v10318_v29 = vrot.slane %v10317_v42, 1  ;;  %v10274_v5 = vrot.slane %v10273_v24, 2  ;;  %v10287_v3 = vmax.f32 %v10285_v20, %v10286_v31  ;;  %v4927_v20 = vpop.f32.mrf.mxu0 }
 0x37b   : > { %v18532_v57 = vsel %vm9390_vm0, %v18493_v4, -inf  ;;  %v10325_v16 = vrot.slane %v10324_v48, 1  ;;  %v10281_v6 = vrot.slane %v10280_v60, 2  ;;  %v10293_v40 = vrot.slane %v10292_v49, 4 }
 0x37c   : > { %v10305_v10 = vmax.f32 %v10303_v13, %v10304_v9  ;;  %v10275_v36 = vmax.f32 %v10273_v24, %v10274_v5  ;;  %v10288_v54 = vrot.slane %v10287_v3, 2  ;;  %v5771_v21 = vadd.f32 %v18415_v45, %v18438_v19 }
 0x37d   : > { %v10312_v0 = vmax.f32 %v10310_v53, %v10311_v50  ;;  %v10282_v7 = vmax.f32 %v10280_v60, %v10281_v6  ;;  %v10294_v22 = vmax.f32 %v10292_v49, %v10293_v40  ;;  %v5765_v52 = vadd.f32 %v18423_v47, %v18476_v61 }
 0x37e   : > { %v10319_v51 = vmax.f32 %v10317_v42, %v10318_v29  ;;  %v10276_v25 = vrot.slane %v10275_v36, 1  ;;  %v10289_v37 = vmax.f32 %v10287_v3, %v10288_v54  ;;  %v6461_v62 = vmax.f32 %v5771_v21, 0.0 }
 0x37f   : > { %v10326_v63 = vmax.f32 %v10324_v48, %v10325_v16  ;;  %v10283_v8 = vrot.slane %v10282_v7, 1  ;;  %v10295_v39 = vrot.slane %v10294_v22, 2  ;;  %v6460_v33 = vmax.f32 %v5765_v52, 0.0 }
 0x380   : > { %v10277_v2 = vmax.f32 %v10275_v36, %v10276_v25  ;;  %v10290_v13 = vrot.slane %v10289_v37, 1  ;;  %v6957_v27 = vcombine.high %v6461_v62, %v6461_v62  ;;  %v6964_v18 = vrot.slane %v6461_v62, %v18149_v11 }
 0x381   : > { %v10284_v45 = vmax.f32 %v10282_v7, %v10283_v8  ;;  %v10296_v19 = vmax.f32 %v10294_v22, %v10295_v39  ;;  %v6940_v26 = vcombine.high %v6460_v33, %v6460_v33  ;;  %v6947_v53 = vrot.slane %v6460_v33, %v18149_v11  ;;  %v14406_v7 = vpop.f32.mrf.mxu0 }
 0x382   : > { %v10291_v44 = vmax.f32 %v10289_v37, %v10290_v13  ;;  %v6971_v47 = vrot.slane %v6957_v27, %v18149_v11  ;;  %v6972_v61 = vcombine.high %v6964_v18, %v6964_v18  ;;  %v9476_v42 = vsel %vm9390_vm0, %v6964_v18, -inf  ;;  %v14627_v13 = vpop.f32.mrf.mxu1 }
 0x383   : > { %v10297_v9 = vrot.slane %v10296_v19, 1  ;;  %v12228_v48 = vsel %vm12207_vm1, %v10284_v45, %v10277_v2  ;;  %v9477_v24 = vmax.f32 %v18482_v14, %v9476_v42  ;;  %v6954_v31 = vrot.slane %v6940_v26, %v18149_v11  ;;  %v4939_v26 = vpop.f32.mrf.mxu0 }
 0x384   : > { %v12229_v50 = vsel %vm12209_vm2, %v10291_v44, %v12228_v48  ;;  %v6973_v60 = vcombine.high %v6971_v47, %v6971_v47  ;;  %v9479_v49 = vsel %vm9390_vm0, %v6972_v61, -inf  ;;  %v9482_v29 = vsel %vm9390_vm0, %v6971_v47, -inf  ;;  %v5776_v48 = vpop.f32.mrf.mxu1 }
 0x385   : > { %v10298_v5 = vmax.f32 %v10296_v19, %v10297_v9  ;;  %v9480_v3 = vmax.f32 %v18485_v56, %v9479_v49  ;;  %v9483_v16 = vmax.f32 %v18489_v58, %v9482_v29  ;;  %v10355_v6 = vsel %vm9390_vm0, %v9477_v24, -inf }
 0x386   : > { %v9485_v40 = vsel %vm9390_vm0, %v6973_v60, -inf  ;;  %v10356_v36 = vrot.slane %v10355_v6, 4  ;;  %v6955_v14 = vcombine.high %v6947_v53, %v6947_v53  ;;  %v6956_v54 = vcombine.high %v6954_v31, %v6954_v31 }
 0x387   : > { %v12230_v21 = vsel %vm12211_vm3, %v10298_v5, %v12229_v50  ;;  %v9486_v22 = vmax.f32 %v18505_v34, %v9485_v40  ;;  %v10362_v52 = vsel %vm9390_vm0, %v9480_v3, -inf  ;;  %v10369_v25 = vsel %vm9390_vm0, %v9483_v16, -inf }
 0x388   : > { %v12231_v56 = vsel %vm12213_vm4, %v10305_v10, %v12230_v21  ;;  %v10357_v37 = vmax.f32 %v10355_v6, %v10356_v36  ;;  %v10363_v58 = vrot.slane %v10362_v52, 4  ;;  %v10370_v62 = vrot.slane %v10369_v25, 4 }
 0x389   : > { %v12232_v8 = vsel %vm12215_vm5, %v10312_v0, %v12231_v56  ;;  %v10376_v39 = vsel %vm9390_vm0, %v9486_v22, -inf  ;;  %v9464_v33 = vsel %vm9390_vm0, %v6947_v53, -inf  ;;  %v9467_v2 = vsel %vm9390_vm0, %v6955_v14, -inf }
 0x38a   : > { %v12233_v34 = vsel %vm12217_vm6, %v10319_v51, %v12232_v8  ;;  %v10358_v27 = vrot.slane %v10357_v37, 2  ;;  %v10364_v18 = vmax.f32 %v10362_v52, %v10363_v58  ;;  %v10371_v45 = vmax.f32 %v10369_v25, %v10370_v62 }
 0x38b   : > { %v12234_v10 = vsel %vm12219_vm7, %v10326_v63, %v12233_v34  ;;  %v10377_v19 = vrot.slane %v10376_v39, 4  ;;  %v9465_v44 = vmax.f32 %v18499_v1, %v9464_v33  ;;  %v9468_v0 = vmax.f32 %v18528_v12, %v9467_v2 }
 0x38c   : > { %v9472_v53 = vsel %vm9390_vm0, %v6888_v38, -inf  ;;  %12473 = vst.msk [vmem:[%s18362_s24 + $0x10] sm:$0xff] %vm12470_vm8, %v12234_v10  ;;  %v10365_v47 = vrot.slane %v10364_v18, 2  ;;  %v10372_v51 = vrot.slane %v10371_v45, 2  ;;  %v9470_v61 = vsel %vm9390_vm0, %v6954_v31, -inf  ;;  %v14409_v31 = vpop.f32.mrf.mxu0 }
 0x38d   : > { %v10378_v42 = vmax.f32 %v10376_v39, %v10377_v19  ;;  %v9471_v63 = vmax.f32 %v18532_v57, %v9470_v61  ;;  %v9473_v9 = vsel %vm9390_vm0, %v6956_v54, -inf  ;;  %v10327_v1 = vsel %vm9390_vm0, %v9465_v44, -inf  ;;  %v14630_v54 = vpop.f32.mrf.mxu1 }
 0x38e   : > { %v10359_v12 = vmax.f32 %v10357_v37, %v10358_v27  ;;  %v10366_v24 = vmax.f32 %v10364_v18, %v10365_v47  ;;  %v9474_v50 = vmax.f32 %v9472_v53, %v9473_v9  ;;  %v5783_v4 = vadd.f32 %v14627_v13, %v18479_v17 }
 0x38f   : > { %v10379_v38 = vrot.slane %v10378_v42, 2  ;;  %v10328_v60 = vrot.slane %v10327_v1, 4  ;;  %v10334_v49 = vsel %vm9390_vm0, %v9468_v0, -inf  ;;  %v10341_v29 = vsel %vm9390_vm0, %v9471_v63, -inf  ;;  %v5788_v13 = vpop.f32.mrf.mxu1 }
 0x390   : > { %v4928_v5 = vadd.f32 %v4927_v20, %v17583_v46  ;;  %v4946_v57 = vadd.f32 %v14406_v7, %v17590_v35  ;;  %v10373_v3 = vmax.f32 %v10371_v45, %v10372_v51  ;;  %v10335_v16 = vrot.slane %v10334_v49, 4  ;;  %v4951_v46 = vpop.f32.mrf.mxu0 }
 0x391   : > { %v10380_v6 = vmax.f32 %v10378_v42, %v10379_v38  ;;  %v10329_v40 = vmax.f32 %v10327_v1, %v10328_v60  ;;  %v10342_v36 = vrot.slane %v10341_v29, 4  ;;  %v10348_v14 = vsel %vm9390_vm0, %v9474_v50, -inf  ;;  %v14633_v1 = vpop.f32.mrf.mxu1 }
 0x392   : > { %v10360_v17 = vrot.slane %v10359_v12, 1  ;;  %v4940_v21 = vadd.f32 %v4939_v26, %v17595_v41  ;;  %v10336_v22 = vmax.f32 %v10334_v49, %v10335_v16  ;;  %v10349_v52 = vrot.slane %v10348_v14, 4  ;;  %v14412_v44 = vpop.f32.mrf.mxu0 }
 0x393   : > { %v10367_v25 = vrot.slane %v10366_v24, 1  ;;  %v10330_v56 = vrot.slane %v10329_v40, 2  ;;  %v10343_v37 = vmax.f32 %v10341_v29, %v10342_v36  ;;  %v6463_v58 = vmax.f32 %v5783_v4, 0.0  ;;  %v5800_v36 = vpop.f32.mrf.mxu1 }
 0x394   : > { %v10374_v20 = vrot.slane %v10373_v3, 1  ;;  %v10337_v35 = vrot.slane %v10336_v22, 2  ;;  %v10350_v7 = vmax.f32 %v10348_v14, %v10349_v52  ;;  %v5777_v62 = vadd.f32 %v5776_v48, %v4928_v5 }
 0x395   : > { %v10381_v8 = vrot.slane %v10380_v6, 1  ;;  %v10331_v39 = vmax.f32 %v10329_v40, %v10330_v56  ;;  %v10344_v33 = vrot.slane %v10343_v37, 2  ;;  %v6991_v2 = vcombine.high %v6463_v58, %v6463_v58 }
 0x396   : > { %v10338_v34 = vmax.f32 %v10336_v22, %v10337_v35  ;;  %v10351_v27 = vrot.slane %v10350_v7, 2  ;;  %v4958_v41 = vadd.f32 %v14409_v31, %v17602_v30  ;;  %v6462_v18 = vmax.f32 %v5777_v62, 0.0 }
 0x397   : > { %v10361_v45 = vmax.f32 %v10359_v12, %v10360_v17  ;;  %v10332_v10 = vrot.slane %v10331_v39, 1  ;;  %v10345_v19 = vmax.f32 %v10343_v37, %v10344_v33  ;;  %v6998_v26 = vrot.slane %v6463_v58, %v18149_v11 }
 0x398   : > { %v10368_v0 = vmax.f32 %v10366_v24, %v10367_v25  ;;  %v10339_v53 = vrot.slane %v10338_v34, 1  ;;  %v10352_v47 = vmax.f32 %v10350_v7, %v10351_v27  ;;  %v7005_v51 = vrot.slane %v6991_v2, %v18149_v11  ;;  %v4963_v24 = vpop.f32.mrf.mxu0 }
 0x399   : > { %v10375_v61 = vmax.f32 %v10373_v3, %v10374_v20  ;;  %v10382_v42 = vmax.f32 %v10380_v6, %v10381_v8  ;;  %v10346_v63 = vrot.slane %v10345_v19, 1  ;;  %v4952_v9 = vadd.f32 %v4951_v46, %v17607_v32  ;;  %v14636_v8 = vpop.f32.mrf.mxu1 }
 0x39a   : > { %v10333_v48 = vmax.f32 %v10331_v39, %v10332_v10  ;;  %v10340_v30 = vmax.f32 %v10338_v34, %v10339_v53  ;;  %v10353_v50 = vrot.slane %v10352_v47, 1  ;;  %v6974_v12 = vcombine.high %v6462_v18, %v6462_v18  ;;  %v14415_v37 = vpop.f32.mrf.mxu0 }
 0x39b   : > { %v10347_v4 = vmax.f32 %v10345_v19, %v10346_v63  ;;  %v7006_v38 = vcombine.high %v6998_v26, %v6998_v26  ;;  %v6981_v60 = vrot.slane %v6462_v18, %v18149_v11  ;;  %v5795_v49 = vadd.f32 %v14630_v54, %v4946_v57 }
 0x39c   : > { %v10354_v29 = vmax.f32 %v10352_v47, %v10353_v50  ;;  %v12235_v31 = vsel %vm12207_vm1, %v10340_v30, %v10333_v48  ;;  %v7007_v5 = vcombine.high %v7005_v51, %v7005_v51  ;;  %v6988_v3 = vrot.slane %v6974_v12, %v18149_v11 }
 0x39d   : > { %v12236_v16 = vsel %vm12209_vm2, %v10347_v4, %v12235_v31  ;;  %v18591_v32 = vsel %vm9390_vm0, %v6998_v26, -inf  ;;  %v4970_v6 = vadd.f32 %v14412_v44, %v17614_v23  ;;  %v6465_v40 = vmax.f32 %v5795_v49, 0.0 }
 0x39e   : > { %v12237_v14 = vsel %vm12211_vm3, %v10354_v29, %v12236_v16  ;;  %v18596_v57 = vsel %vm9390_vm0, %v7005_v51, -inf  ;;  %v6989_v54 = vcombine.high %v6981_v60, %v6981_v60  ;;  %v5789_v17 = vadd.f32 %v5788_v13, %v4940_v21  ;;  %v5812_v51 = vpop.f32.mrf.mxu1 }
 0x39f   : > { %v12238_v22 = vsel %vm12213_vm4, %v10361_v45, %v12237_v14  ;;  %v6990_v52 = vcombine.high %v6988_v3, %v6988_v3  ;;  %v7025_v25 = vcombine.high %v6465_v40, %v6465_v40  ;;  %v7032_v56 = vrot.slane %v6465_v40, %v18149_v11  ;;  %v4975_v45 = vpop.f32.mrf.mxu0 }
 0x3a0   : > { %v12239_v58 = vsel %vm12215_vm5, %v10368_v0, %v12238_v22  ;;  %v9502_v23 = vsel %vm9390_vm0, %v7006_v38, -inf  ;;  %v18603_v46 = vsel %vm9390_vm0, %v7007_v5, -inf  ;;  %v6464_v20 = vmax.f32 %v5789_v17, 0.0 }
 0x3a1   : > { %v12240_v35 = vsel %vm12217_vm6, %v10375_v61, %v12239_v58  ;;  %v7039_v21 = vrot.slane %v7025_v25, %v18149_v11  ;;  %v7040_v7 = vcombine.high %v7032_v56, %v7032_v56  ;;  %v4964_v62 = vadd.f32 %v4963_v24, %v17619_v59 }
 0x3a2   : > { %v12241_v39 = vsel %vm12219_vm7, %v10382_v42, %v12240_v35  ;;  %v7008_v33 = vcombine.high %v6464_v20, %v6464_v20  ;;  %v18610_v2 = vrot.slane %v6464_v20, %v18149_v11  ;;  %v5807_v13 = vadd.f32 %v14633_v1, %v4958_v41 }
 0x3a3   : > { %12474 = vst.msk [vmem:[%s18362_s24 + $0x18] sm:$0xff] %vm12470_vm8, %v12241_v39  ;;  %v18615_v34 = vsel %vm9390_vm0, %v6981_v60, -inf  ;;  %v18618_v27 = vsel %vm9390_vm0, %v6989_v54, -inf  ;;  %v18621_v18 = vsel %vm9390_vm0, %v6988_v3, -inf  ;;  %v18624_v59 = vsel %vm9390_vm0, %v6990_v52, -inf }
 0x3a4   : > { %v7041_v10 = vcombine.high %v7039_v21, %v7039_v21  ;;  %v18627_v19 = vrot.slane %v7008_v33, %v18149_v11  ;;  %v18630_v41 = vadd.f32 %v14415_v37, %v17626_v15  ;;  %v6467_v26 = vmax.f32 %v5807_v13, 0.0 }
 0x3a5   : > { %v18633_v44 = vsel %vm9390_vm0, %v7032_v56, -inf  ;;  %v18636_v0 = vsel %vm9390_vm0, %v7040_v7, -inf  ;;  %v5801_v53 = vadd.f32 %v5800_v36, %v4952_v9  ;;  %v5819_v47 = vadd.f32 %v14636_v8, %v4970_v6 }
 0x3a6   : > { %v18639_v61 = vsel %vm9390_vm0, %v7039_v21, -inf  ;;  %v7023_v42 = vcombine.high %v18610_v2, %v18610_v2  ;;  %v7059_v63 = vcombine.high %v6467_v26, %v6467_v26  ;;  %v18644_v15 = vadd.f32 %v4975_v45, %v17631_v55 }
 0x3a7   : > { %v18648_v1 = vsel %vm9390_vm0, %v18610_v2, -inf  ;;  %v7066_v48 = vrot.slane %v6467_v26, %v18149_v11  ;;  %v6466_v30 = vmax.f32 %v5801_v53, 0.0  ;;  %v18651_v9 = vmax.f32 %v5819_v47, 0.0 }
 0x3a8   : > { %v18654_v50 = vsel %vm9390_vm0, %v7041_v10, -inf  ;;  %v7024_v12 = vcombine.high %v18627_v19, %v18627_v19  ;;  %v7073_v4 = vrot.slane %v7059_v63, %v18149_v11  ;;  %v18659_v38 = vadd.f32 %v5812_v51, %v4964_v62 }
 0x3a9   : > { %v7074_v55 = vcombine.high %v7066_v48, %v7066_v48  ;;  %v9500_v60 = vsel %vm9390_vm0, %v7066_v48, -inf  ;;  %v7042_v49 = vcombine.high %v6466_v30, %v6466_v30  ;;  %v7049_v24 = vrot.slane %v6466_v30, %v18149_v11 }
 0x3aa   : > { %v7075_v29 = vcombine.high %v7073_v4, %v7073_v4  ;;  %v9501_v31 = vmax.f32 %v18591_v32, %v9500_v60  ;;  %v9506_v5 = vsel %vm9390_vm0, %v7073_v4, -inf  ;;  %v7093_v3 = vcombine.high %v18651_v9, %v18651_v9 }
 0x3ab   : > { %v9503_v16 = vsel %vm9390_vm0, %v7074_v55, -inf  ;;  %v9507_v6 = vmax.f32 %v18596_v57, %v9506_v5  ;;  %v7056_v40 = vrot.slane %v7042_v49, %v18149_v11  ;;  %v7057_v36 = vcombine.high %v7049_v24, %v7049_v24 }
 0x3ac   : > { %v9504_v14 = vmax.f32 %v9502_v23, %v9503_v16  ;;  %v9509_v54 = vsel %vm9390_vm0, %v7075_v29, -inf  ;;  %v10411_v17 = vsel %vm9390_vm0, %v9501_v31, -inf  ;;  %v9488_v22 = vsel %vm9390_vm0, %v7049_v24, -inf }
 0x3ad   : > { %v9510_v32 = vmax.f32 %v18603_v46, %v9509_v54  ;;  %v10412_v52 = vrot.slane %v10411_v17, 4  ;;  %v10425_v25 = vsel %vm9390_vm0, %v9507_v6, -inf  ;;  %v7058_v56 = vcombine.high %v7056_v40, %v7056_v40 }
 0x3ae   : > { %v10418_v37 = vsel %vm9390_vm0, %v9504_v14, -inf  ;;  %v10426_v58 = vrot.slane %v10425_v25, 4  ;;  %v9489_v57 = vmax.f32 %v18615_v34, %v9488_v22  ;;  %v9491_v20 = vsel %vm9390_vm0, %v7057_v36, -inf }
 0x3af   : > { %v10413_v23 = vmax.f32 %v10411_v17, %v10412_v52  ;;  %v10419_v35 = vrot.slane %v10418_v37, 4  ;;  %v10432_v21 = vsel %vm9390_vm0, %v9510_v32, -inf  ;;  %v9492_v7 = vmax.f32 %v18618_v27, %v9491_v20 }
 0x3b0   : > { %v10427_v62 = vmax.f32 %v10425_v25, %v10426_v58  ;;  %v10433_v8 = vrot.slane %v10432_v21, 4  ;;  %v9494_v46 = vsel %vm9390_vm0, %v7056_v40, -inf  ;;  %v9497_v39 = vsel %vm9390_vm0, %v7058_v56, -inf }
 0x3b1   : > { %v10414_v33 = vrot.slane %v10413_v23, 2  ;;  %v10420_v13 = vmax.f32 %v10418_v37, %v10419_v35  ;;  %v9495_v45 = vmax.f32 %v18621_v18, %v9494_v46  ;;  %v9498_v34 = vmax.f32 %v18624_v59, %v9497_v39 }
 0x3b2   : > { %v10428_v10 = vrot.slane %v10427_v62, 2  ;;  %v10434_v26 = vmax.f32 %v10432_v21, %v10433_v8  ;;  %v10383_v53 = vsel %vm9390_vm0, %v9489_v57, -inf  ;;  %v10390_v47 = vsel %vm9390_vm0, %v9492_v7, -inf }
 0x3b3   : > { %v10415_v51 = vmax.f32 %v10413_v23, %v10414_v33  ;;  %v10421_v27 = vrot.slane %v10420_v13, 2  ;;  %v10384_v63 = vrot.slane %v10383_v53, 4  ;;  %v10391_v48 = vrot.slane %v10390_v47, 4 }
 0x3b4   : > { %v10429_v30 = vmax.f32 %v10427_v62, %v10428_v10  ;;  %v10435_v4 = vrot.slane %v10434_v26, 2  ;;  %v10397_v55 = vsel %vm9390_vm0, %v9495_v45, -inf  ;;  %v10404_v60 = vsel %vm9390_vm0, %v9498_v34, -inf }
 0x3b5   : > { %v10416_v49 = vrot.slane %v10415_v51, 1  ;;  %v10422_v18 = vmax.f32 %v10420_v13, %v10421_v27  ;;  %v10385_v24 = vmax.f32 %v10383_v53, %v10384_v63  ;;  %v10392_v59 = vmax.f32 %v10390_v47, %v10391_v48 }
 0x3b6   : > { %v10430_v29 = vrot.slane %v10429_v30, 1  ;;  %v10436_v31 = vmax.f32 %v10434_v26, %v10435_v4  ;;  %v10398_v5 = vrot.slane %v10397_v55, 4  ;;  %v10405_v16 = vrot.slane %v10404_v60, 4 }
 0x3b7   : > { %v10417_v6 = vmax.f32 %v10415_v51, %v10416_v49  ;;  %v10423_v40 = vrot.slane %v10422_v18, 1  ;;  %v10386_v36 = vrot.slane %v10385_v24, 2  ;;  %v10393_v14 = vrot.slane %v10392_v59, 2 }
 0x3b8   : > { %v10431_v54 = vmax.f32 %v10429_v30, %v10430_v29  ;;  %v10437_v17 = vrot.slane %v10436_v31, 1  ;;  %v10399_v22 = vmax.f32 %v10397_v55, %v10398_v5  ;;  %v10406_v32 = vmax.f32 %v10404_v60, %v10405_v16  ;;  %v14418_v55 = vpop.f32.mrf.mxu0 }
 0x3b9   : > { %v10424_v52 = vmax.f32 %v10422_v18, %v10423_v40  ;;  %v10387_v25 = vmax.f32 %v10385_v24, %v10386_v36  ;;  %v10394_v56 = vmax.f32 %v10392_v59, %v10393_v14  ;;  %v7100_v37 = vrot.slane %v18651_v9, %v18149_v11 }
 0x3ba   : > { %v10438_v58 = vmax.f32 %v10436_v31, %v10437_v17  ;;  %v10400_v57 = vrot.slane %v10399_v22, 2  ;;  %v10407_v20 = vrot.slane %v10406_v32, 2  ;;  %v7107_v23 = vrot.slane %v7093_v3, %v18149_v11 }
 0x3bb   : > { %v10388_v35 = vrot.slane %v10387_v25, 1  ;;  %v10395_v21 = vrot.slane %v10394_v56, 1  ;;  %v7108_v7 = vcombine.high %v7100_v37, %v7100_v37  ;;  %v9524_v62 = vsel %vm9390_vm0, %v7100_v37, -inf }
 0x3bc   : > { %v10401_v8 = vmax.f32 %v10399_v22, %v10400_v57  ;;  %v10408_v46 = vmax.f32 %v10406_v32, %v10407_v20  ;;  %v7109_v39 = vcombine.high %v7107_v23, %v7107_v23  ;;  %v9525_v33 = vmax.f32 %v18633_v44, %v9524_v62  ;;  %v4987_v32 = vpop.f32.mrf.mxu0 }
 0x3bd   : > { %v10389_v13 = vmax.f32 %v10387_v25, %v10388_v35  ;;  %v10396_v45 = vmax.f32 %v10394_v56, %v10395_v21  ;;  %v9527_v34 = vsel %vm9390_vm0, %v7108_v7, -inf  ;;  %v9530_v10 = vsel %vm9390_vm0, %v7107_v23, -inf  ;;  %v14639_v23 = vpop.f32.mrf.mxu1 }
 0x3be   : > { %v10402_v26 = vrot.slane %v10401_v8, 1  ;;  %v10409_v53 = vrot.slane %v10408_v46, 1  ;;  %v9528_v9 = vmax.f32 %v18636_v0, %v9527_v34  ;;  %v9531_v3 = vmax.f32 %v18639_v61, %v9530_v10 }
 0x3bf   : > { %v12242_v47 = vsel %vm12207_vm1, %v10396_v45, %v10389_v13  ;;  %v9533_v51 = vsel %vm9390_vm0, %v7109_v39, -inf  ;;  %v10467_v27 = vsel %vm9390_vm0, %v9525_v33, -inf  ;;  %v6468_v44 = vmax.f32 %v18659_v38, 0.0  ;;  %v14421_v33 = vpop.f32.mrf.mxu0  ;;  %v5824_v34 = vpop.f32.mrf.mxu1 }
 0x3c0   : > { %v10403_v63 = vmax.f32 %v10401_v8, %v10402_v26  ;;  %v10410_v48 = vmax.f32 %v10408_v46, %v10409_v53  ;;  %v9534_v30 = vmax.f32 %v18654_v50, %v9533_v51  ;;  %v10468_v4 = vrot.slane %v10467_v27, 4 }
 0x3c1   : > { %v10474_v60 = vsel %vm9390_vm0, %v9528_v9, -inf  ;;  %v10481_v0 = vsel %vm9390_vm0, %v9531_v3, -inf  ;;  %v7076_v49 = vcombine.high %v6468_v44, %v6468_v44  ;;  %v7083_v61 = vrot.slane %v6468_v44, %v18149_v11 }
 0x3c2   : > { %v12243_v18 = vsel %vm12209_vm2, %v10403_v63, %v12242_v47  ;;  %v10469_v24 = vmax.f32 %v10467_v27, %v10468_v4  ;;  %v10475_v59 = vrot.slane %v10474_v60, 4  ;;  %v10482_v29 = vrot.slane %v10481_v0, 4  ;;  %v22382_v27 = vld [vmem:[#allocation171_spill] sm:$0xff] }
 0x3c3   : > { %v12244_v38 = vsel %vm12211_vm3, %v10410_v48, %v12243_v18  ;;  %v10488_v31 = vsel %vm9390_vm0, %v9534_v30, -inf  ;;  %v7090_v50 = vrot.slane %v7076_v49, %v18149_v11  ;;  %v7091_v5 = vcombine.high %v7083_v61, %v7083_v61 }
 0x3c4   : > { %v12245_v16 = vsel %vm12213_vm4, %v10417_v6, %v12244_v38  ;;  %v10470_v40 = vrot.slane %v10469_v24, 2  ;;  %v10476_v36 = vmax.f32 %v10474_v60, %v10475_v59  ;;  %v10483_v14 = vmax.f32 %v10481_v0, %v10482_v29  ;;  %v14642_v60 = vpop.f32.mrf.mxu1 }
 0x3c5   : > { %v12246_v17 = vsel %vm12215_vm5, %v10424_v52, %v12245_v16  ;;  %v10489_v22 = vrot.slane %v10488_v31, 4  ;;  %v7092_v25 = vcombine.high %v7090_v50, %v7090_v50  ;;  %v9512_v56 = vsel %vm9390_vm0, %v7083_v61, -inf  ;;  %v4999_v16 = vpop.f32.mrf.mxu0 }
 0x3c6   : > { %v9514_v37 = vsel %vm9390_vm0, %v7023_v42, -inf  ;;  %v12247_v57 = vsel %vm12217_vm6, %v10431_v54, %v12246_v17  ;;  %v10471_v20 = vmax.f32 %v10469_v24, %v10470_v40  ;;  %v10477_v6 = vrot.slane %v10476_v36, 2 }
 0x3c7   : > { %v12248_v35 = vsel %vm12219_vm7, %v10438_v58, %v12247_v57  ;;  %v10490_v21 = vmax.f32 %v10488_v31, %v10489_v22  ;;  %v9513_v52 = vmax.f32 %v18648_v1, %v9512_v56  ;;  %v9515_v7 = vsel %vm9390_vm0, %v7091_v5, -inf  ;;  %v5836_v22 = vpop.f32.mrf.mxu1 }
 0x3c8   : > { %v9517_v62 = vsel %vm9390_vm0, %v18627_v19, -inf  ;;  %12475 = vst.msk [vmem:[%s18362_s24 + $0x20] sm:$0xff] %vm12470_vm8, %v12248_v35  ;;  %v4994_v2 = vadd.f32 %v14418_v55, %v17638_v28  ;;  %v10484_v42 = vrot.slane %v10483_v14, 2  ;;  %v9516_v8 = vmax.f32 %v9514_v37, %v9515_v7 }
 0x3c9   : > { %v10478_v54 = vmax.f32 %v10476_v36, %v10477_v6  ;;  %v9518_v46 = vsel %vm9390_vm0, %v7090_v50, -inf  ;;  %v9521_v39 = vsel %vm9390_vm0, %v7092_v25, -inf  ;;  %v10439_v58 = vsel %vm9390_vm0, %v9513_v52, -inf  ;;  %v14424_v52 = vpop.f32.mrf.mxu0 }
 0x3ca   : > { %v9520_v1 = vsel %vm9390_vm0, %v7024_v12, -inf  ;;  %v10472_v13 = vrot.slane %v10471_v20, 1  ;;  %v18736_v45 = vadd.f32 %v4987_v32, %v17643_v43  ;;  %v9519_v28 = vmax.f32 %v9517_v62, %v9518_v46  ;;  %v14645_v46 = vpop.f32.mrf.mxu1 }
 0x3cb   : > { %v10491_v10 = vrot.slane %v10490_v21, 2  ;;  %v9522_v26 = vmax.f32 %v9520_v1, %v9521_v39  ;;  %v10440_v53 = vrot.slane %v10439_v58, 4  ;;  %v10446_v9 = vsel %vm9390_vm0, %v9516_v8, -inf  ;;  %v22383_v1 = vld [vmem:[#allocation173_spill] sm:$0xff] }
 0x3cc   : > { %v10485_v3 = vmax.f32 %v10483_v14, %v10484_v42  ;;  %v10447_v47 = vrot.slane %v10446_v9, 4  ;;  %v10453_v51 = vsel %vm9390_vm0, %v9519_v28, -inf  ;;  %v18741_v44 = vadd.f32 %v14421_v33, %v22382_v27 }
 0x3cd   : > { %v10479_v19 = vrot.slane %v10478_v54, 1  ;;  %v10441_v12 = vmax.f32 %v10439_v58, %v10440_v53  ;;  %v10454_v63 = vrot.slane %v10453_v51, 4  ;;  %v10460_v43 = vsel %vm9390_vm0, %v9522_v26, -inf  ;;  %v22384_v26 = vld [vmem:[#allocation175_spill] sm:$0xff] }
 0x3ce   : > { %v10473_v48 = vmax.f32 %v10471_v20, %v10472_v13  ;;  %v10448_v30 = vmax.f32 %v10446_v9, %v10447_v47  ;;  %v10461_v4 = vrot.slane %v10460_v43, 4  ;;  %v5831_v55 = vadd.f32 %v14639_v23, %v18630_v41 }
 0x3cf   : > { %v10492_v0 = vmax.f32 %v10490_v21, %v10491_v10  ;;  %v10442_v49 = vrot.slane %v10441_v12, 2  ;;  %v10455_v61 = vmax.f32 %v10453_v51, %v10454_v63  ;;  %v5825_v18 = vadd.f32 %v5824_v34, %v18644_v15  ;;  %v5011_v51 = vpop.f32.mrf.mxu0 }
 0x3d0   : > { %v10486_v24 = vrot.slane %v10485_v3, 1  ;;  %v10449_v59 = vrot.slane %v10448_v30, 2  ;;  %v10462_v29 = vmax.f32 %v10460_v43, %v10461_v4  ;;  %v6471_v38 = vmax.f32 %v5831_v55, 0.0  ;;  %v5848_v43 = vpop.f32.mrf.mxu1 }
 0x3d1   : > { %v10480_v31 = vmax.f32 %v10478_v54, %v10479_v19  ;;  %v10443_v50 = vmax.f32 %v10441_v12, %v10442_v49  ;;  %v10456_v5 = vrot.slane %v10455_v61, 2  ;;  %v6470_v40 = vmax.f32 %v5825_v18, 0.0 }
 0x3d2   : > { %v10450_v36 = vmax.f32 %v10448_v30, %v10449_v59  ;;  %v10463_v14 = vrot.slane %v10462_v29, 2  ;;  %v7127_v17 = vcombine.high %v6471_v38, %v6471_v38  ;;  %v7134_v41 = vrot.slane %v6471_v38, %v18149_v11 }
 0x3d3   : > { %v10493_v32 = vrot.slane %v10492_v0, 1  ;;  %v10444_v25 = vrot.slane %v10443_v50, 1  ;;  %v10457_v56 = vmax.f32 %v10455_v61, %v10456_v5  ;;  %v7110_v37 = vcombine.high %v6470_v40, %v6470_v40 }
 0x3d4   : > { %v10487_v15 = vmax.f32 %v10485_v3, %v10486_v24  ;;  %v10451_v57 = vrot.slane %v10450_v36, 1  ;;  %v10464_v20 = vmax.f32 %v10462_v29, %v10463_v14  ;;  %v7141_v6 = vrot.slane %v7127_v17, %v18149_v11  ;;  %v22385_v17 = vld [vmem:[#allocation177_spill] sm:$0xff] }
 0x3d5   : > { %v10458_v23 = vrot.slane %v10457_v56, 1  ;;  %v7142_v35 = vcombine.high %v7134_v41, %v7134_v41  ;;  %v7117_v21 = vrot.slane %v6470_v40, %v18149_v11  ;;  %v5843_v7 = vadd.f32 %v14642_v60, %v4994_v2 }
 0x3d6   : > { %v10445_v62 = vmax.f32 %v10443_v50, %v10444_v25  ;;  %v10452_v42 = vmax.f32 %v10450_v36, %v10451_v57  ;;  %v10465_v8 = vrot.slane %v10464_v20, 1  ;;  %v7124_v54 = vrot.slane %v7110_v37, %v18149_v11 }
 0x3d7   : > { %v10494_v39 = vmax.f32 %v10492_v0, %v10493_v32  ;;  %v10459_v58 = vmax.f32 %v10457_v56, %v10458_v23  ;;  %v7143_v33 = vcombine.high %v7141_v6, %v7141_v6  ;;  %v5000_v13 = vadd.f32 %v4999_v16, %v22383_v1 }
 0x3d8   : > { %v10466_v28 = vmax.f32 %v10464_v20, %v10465_v8  ;;  %v12249_v34 = vsel %vm12207_vm1, %v10452_v42, %v10445_v62  ;;  %v9547_v10 = vsel %vm9390_vm0, %v7134_v41, -inf  ;;  %v18754_v53 = vadd.f32 %v14424_v52, %v22384_v26 }
 0x3d9   : > { %v12250_v2 = vsel %vm12209_vm2, %v10459_v58, %v12249_v34  ;;  %v9550_v9 = vsel %vm9390_vm0, %v7142_v35, -inf  ;;  %v9553_v3 = vsel %vm9390_vm0, %v7141_v6, -inf  ;;  %v7125_v47 = vcombine.high %v7117_v21, %v7117_v21 }
 0x3da   : > { %v12251_v27 = vsel %vm12211_vm3, %v10466_v28, %v12250_v2  ;;  %v7126_v19 = vcombine.high %v7124_v54, %v7124_v54  ;;  %v6473_v12 = vmax.f32 %v5843_v7, 0.0  ;;  %v5837_v63 = vadd.f32 %v5836_v22, %v18736_v45  ;;  %v22386_v22 = vld [vmem:[#allocation180_spill] sm:$0xff] }
 0x3db   : > { %v12252_v30 = vsel %vm12213_vm4, %v10473_v48, %v12251_v27  ;;  %v9556_v4 = vsel %vm9390_vm0, %v7143_v33, -inf  ;;  %v18764_v55 = vsel %vm9390_vm0, %v7117_v21, -inf  ;;  %v5855_v60 = vadd.f32 %v14645_v46, %v18741_v44  ;;  %v14427_v48 = vpop.f32.mrf.mxu0 }
 0x3dc   : > { %v12253_v0 = vsel %vm12215_vm5, %v10480_v31, %v12252_v30  ;;  %v7161_v49 = vcombine.high %v6473_v12, %v6473_v12  ;;  %v7168_v61 = vrot.slane %v6473_v12, %v18149_v11  ;;  %v6472_v18 = vmax.f32 %v5837_v63, 0.0 }
 0x3dd   : > { %v12254_v24 = vsel %vm12217_vm6, %v10487_v15, %v12253_v0  ;;  %v18771_v45 = vsel %vm9390_vm0, %v7125_v47, -inf  ;;  %v6475_v59 = vmax.f32 %v5855_v60, 0.0  ;;  %v5849_v29 = vadd.f32 %v5848_v43, %v5000_v13 }
 0x3de   : > { %v12255_v38 = vsel %vm12219_vm7, %v10494_v39, %v12254_v24  ;;  %v18775_v50 = vsel %vm9390_vm0, %v7124_v54, -inf  ;;  %v7175_v44 = vrot.slane %v7161_v49, %v18149_v11  ;;  %v7176_v31 = vcombine.high %v7168_v61, %v7168_v61 }
 0x3df   : > { %12476 = vst.msk [vmem:[%s18362_s24 + $0x28] sm:$0xff] %vm12470_vm8, %v12255_v38  ;;  %v7144_v5 = vcombine.high %v6472_v18, %v6472_v18  ;;  %v18781_v16 = vrot.slane %v6472_v18, %v18149_v11  ;;  %v7195_v40 = vcombine.high %v6475_v59, %v6475_v59  ;;  %v7202_v36 = vrot.slane %v6475_v59, %v18149_v11 }
 0x3e0   : > { %v18785_v14 = vsel %vm9390_vm0, %v7126_v19, -inf  ;;  %v18788_v41 = vadd.f32 %v5011_v51, %v22385_v17  ;;  %v18791_v32 = vadd.f32 %v14427_v48, %v22386_v22  ;;  %v6474_v25 = vmax.f32 %v5849_v29, 0.0 }
 0x3e1   : > { %v7177_v56 = vcombine.high %v7175_v44, %v7175_v44  ;;  %v18794_v37 = vsel %vm9390_vm0, %v7168_v61, -inf  ;;  %v18797_v15 = vsel %vm9390_vm0, %v7176_v31, -inf  ;;  %v7209_v57 = vrot.slane %v7195_v40, %v18149_v11 }
 0x3e2   : > { %v18801_v20 = vsel %vm9390_vm0, %v7175_v44, -inf  ;;  %v7210_v6 = vcombine.high %v7202_v36, %v7202_v36  ;;  %v9548_v23 = vsel %vm9390_vm0, %v7202_v36, -inf  ;;  %v7178_v35 = vcombine.high %v6474_v25, %v6474_v25 }
 0x3e3   : > { %v18805_v21 = vrot.slane %v7144_v5, %v18149_v11  ;;  %v7159_v52 = vcombine.high %v18781_v16, %v18781_v16  ;;  %v18811_v7 = vsel %vm9390_vm0, %v18781_v16, -inf  ;;  %v7211_v62 = vcombine.high %v7209_v57, %v7209_v57 }
 0x3e4   : > { %v9549_v42 = vmax.f32 %v9547_v10, %v9548_v23  ;;  %v9551_v8 = vsel %vm9390_vm0, %v7210_v6, -inf  ;;  %v9554_v54 = vsel %vm9390_vm0, %v7209_v57, -inf  ;;  %v7185_v46 = vrot.slane %v6474_v25, %v18149_v11 }
 0x3e5   : > { %v18817_v39 = vsel %vm9390_vm0, %v7177_v56, -inf  ;;  %v9552_v58 = vmax.f32 %v9550_v9, %v9551_v8  ;;  %v9555_v33 = vmax.f32 %v9553_v3, %v9554_v54  ;;  %v9557_v1 = vsel %vm9390_vm0, %v7211_v62, -inf }
 0x3e6   : > { %v9558_v13 = vmax.f32 %v9556_v4, %v9557_v1  ;;  %v10523_v28 = vsel %vm9390_vm0, %v9549_v42, -inf  ;;  %v7192_v34 = vrot.slane %v7178_v35, %v18149_v11  ;;  %v7193_v26 = vcombine.high %v7185_v46, %v7185_v46 }
 0x3e7   : > { %v10524_v10 = vrot.slane %v10523_v28, 4  ;;  %v10530_v2 = vsel %vm9390_vm0, %v9552_v58, -inf  ;;  %v10537_v47 = vsel %vm9390_vm0, %v9555_v33, -inf  ;;  %v9536_v51 = vsel %vm9390_vm0, %v7185_v46, -inf }
 0x3e8   : > { %v10531_v27 = vrot.slane %v10530_v2, 4  ;;  %v10538_v19 = vrot.slane %v10537_v47, 4  ;;  %v10544_v9 = vsel %vm9390_vm0, %v9558_v13, -inf  ;;  %v7194_v3 = vcombine.high %v7192_v34, %v7192_v34 }
 0x3e9   : > { %v10525_v12 = vmax.f32 %v10523_v28, %v10524_v10  ;;  %v10545_v63 = vrot.slane %v10544_v9, 4  ;;  %v9537_v43 = vmax.f32 %v18764_v55, %v9536_v51  ;;  %v9539_v30 = vsel %vm9390_vm0, %v7193_v26, -inf }
 0x3ea   : > { %v10532_v4 = vmax.f32 %v10530_v2, %v10531_v27  ;;  %v10539_v60 = vmax.f32 %v10537_v47, %v10538_v19  ;;  %v9540_v0 = vmax.f32 %v18771_v45, %v9539_v30  ;;  %v9542_v49 = vsel %vm9390_vm0, %v7192_v34, -inf  ;;  %v14648_v45 = vpop.f32.mrf.mxu1 }
 0x3eb   : > { %v10526_v61 = vrot.slane %v10525_v12, 2  ;;  %v10546_v18 = vmax.f32 %v10544_v9, %v10545_v63  ;;  %v9543_v24 = vmax.f32 %v18775_v50, %v9542_v49  ;;  %v9545_v48 = vsel %vm9390_vm0, %v7194_v3, -inf }
 0x3ec   : > { %v10533_v59 = vrot.slane %v10532_v4, 2  ;;  %v10540_v29 = vrot.slane %v10539_v60, 2  ;;  %v9546_v38 = vmax.f32 %v18785_v14, %v9545_v48  ;;  %v10495_v55 = vsel %vm9390_vm0, %v9537_v43, -inf  ;;  %v5860_v46 = vpop.f32.mrf.mxu1 }
 0x3ed   : > { %v10527_v44 = vmax.f32 %v10525_v12, %v10526_v61  ;;  %v10547_v31 = vrot.slane %v10546_v18, 2  ;;  %v10496_v5 = vrot.slane %v10495_v55, 4  ;;  %v10502_v16 = vsel %vm9390_vm0, %v9540_v0, -inf }
 0x3ee   : > { %v10534_v40 = vmax.f32 %v10532_v4, %v10533_v59  ;;  %v10541_v36 = vmax.f32 %v10539_v60, %v10540_v29  ;;  %v10503_v17 = vrot.slane %v10502_v16, 4  ;;  %v10509_v22 = vsel %vm9390_vm0, %v9543_v24, -inf }
 0x3ef   : > { %v10528_v50 = vrot.slane %v10527_v44, 1  ;;  %v10548_v25 = vmax.f32 %v10546_v18, %v10547_v31  ;;  %v10497_v56 = vmax.f32 %v10495_v55, %v10496_v5  ;;  %v10510_v57 = vrot.slane %v10509_v22, 4 }
 0x3f0   : > { %v7160_v14 = vcombine.high %v18805_v21, %v18805_v21  ;;  %v10535_v6 = vrot.slane %v10534_v40, 1  ;;  %v10504_v23 = vmax.f32 %v10502_v16, %v10503_v17  ;;  %v10516_v35 = vsel %vm9390_vm0, %v9546_v38, -inf  ;;  %v5023_v38 = vpop.f32.mrf.mxu0 }
 0x3f1   : > { %v18840_v62 = vsel %vm9390_vm0, %v7159_v52, -inf  ;;  %v10542_v42 = vrot.slane %v10541_v36, 1  ;;  %v10498_v8 = vrot.slane %v10497_v56, 2  ;;  %v10511_v54 = vmax.f32 %v10509_v22, %v10510_v57 }
 0x3f2   : > { %v18844_v58 = vsel %vm9390_vm0, %v18805_v21, -inf  ;;  %v10549_v33 = vrot.slane %v10548_v25, 1  ;;  %v10505_v1 = vrot.slane %v10504_v23, 2  ;;  %v10517_v13 = vrot.slane %v10516_v35, 4 }
 0x3f3   : > { %v10529_v28 = vmax.f32 %v10527_v44, %v10528_v50  ;;  %v10499_v34 = vmax.f32 %v10497_v56, %v10498_v8  ;;  %v10512_v26 = vrot.slane %v10511_v54, 2  ;;  %v5867_v10 = vadd.f32 %v14648_v45, %v18754_v53 }
 0x3f4   : > { %v10536_v2 = vmax.f32 %v10534_v40, %v10535_v6  ;;  %v10506_v47 = vmax.f32 %v10504_v23, %v10505_v1  ;;  %v10518_v52 = vmax.f32 %v10516_v35, %v10517_v13  ;;  %v5861_v51 = vadd.f32 %v5860_v46, %v18788_v41  ;;  %v14430_v35 = vpop.f32.mrf.mxu0 }
 0x3f5   : > { %v10543_v27 = vmax.f32 %v10541_v36, %v10542_v42  ;;  %v10500_v19 = vrot.slane %v10499_v34, 1  ;;  %v10513_v9 = vmax.f32 %v10511_v54, %v10512_v26  ;;  %v6477_v3 = vmax.f32 %v5867_v10, 0.0  ;;  %v14651_v10 = vpop.f32.mrf.mxu1 }
 0x3f6   : > { %v10550_v12 = vmax.f32 %v10548_v25, %v10549_v33  ;;  %v10507_v63 = vrot.slane %v10506_v47, 1  ;;  %v10519_v43 = vrot.slane %v10518_v52, 2  ;;  %v6476_v30 = vmax.f32 %v5861_v51, 0.0 }
 0x3f7   : > { %v10501_v4 = vmax.f32 %v10499_v34, %v10500_v19  ;;  %v10514_v60 = vrot.slane %v10513_v9, 1  ;;  %v7229_v0 = vcombine.high %v6477_v3, %v6477_v3  ;;  %v7236_v49 = vrot.slane %v6477_v3, %v18149_v11 }
 0x3f8   : > { %v10508_v61 = vmax.f32 %v10506_v47, %v10507_v63  ;;  %v10520_v53 = vmax.f32 %v10518_v52, %v10519_v43  ;;  %v7212_v18 = vcombine.high %v6476_v30, %v6476_v30  ;;  %v7219_v24 = vrot.slane %v6476_v30, %v18149_v11 }
 0x3f9   : > { %v10515_v48 = vmax.f32 %v10513_v9, %v10514_v60  ;;  %v7243_v41 = vrot.slane %v7229_v0, %v18149_v11  ;;  %v7244_v59 = vcombine.high %v7236_v49, %v7236_v49  ;;  %v9572_v29 = vsel %vm9390_vm0, %v7236_v49, -inf  ;;  %v5035_v9 = vpop.f32.mrf.mxu0  ;;  %v5872_v0 = vpop.f32.mrf.mxu1 }
 0x3fa   : > { %v10521_v55 = vrot.slane %v10520_v53, 1  ;;  %v12256_v44 = vsel %vm12207_vm1, %v10508_v61, %v10501_v4  ;;  %v9573_v31 = vmax.f32 %v18794_v37, %v9572_v29  ;;  %v7226_v5 = vrot.slane %v7212_v18, %v18149_v11 }
 0x3fb   : > { %v12257_v16 = vsel %vm12209_vm2, %v10515_v48, %v12256_v44  ;;  %v7245_v45 = vcombine.high %v7243_v41, %v7243_v41  ;;  %v9575_v40 = vsel %vm9390_vm0, %v7244_v59, -inf  ;;  %v9578_v36 = vsel %vm9390_vm0, %v7243_v41, -inf  ;;  %v14433_v48 = vpop.f32.mrf.mxu0  ;;  %v22387_v41 = vld [vmem:[#allocation182_spill] sm:$0xff] }
 0x3fc   : > { %v10522_v17 = vmax.f32 %v10520_v53, %v10521_v55  ;;  %v9576_v22 = vmax.f32 %v18797_v15, %v9575_v40  ;;  %v9579_v50 = vmax.f32 %v18801_v20, %v9578_v36  ;;  %v10579_v25 = vsel %vm9390_vm0, %v9573_v31, -inf  ;;  %v14654_v40 = vpop.f32.mrf.mxu1  ;;  %v22389_v36 = vld [vmem:[#allocation185_spill] sm:$0xff] }
 0x3fd   : > { %v9581_v56 = vsel %vm9390_vm0, %v7245_v45, -inf  ;;  %v10580_v57 = vrot.slane %v10579_v25, 4  ;;  %v7227_v37 = vcombine.high %v7219_v24, %v7219_v24  ;;  %v7228_v6 = vcombine.high %v7226_v5, %v7226_v5 }
 0x3fe   : > { %v12258_v23 = vsel %vm12211_vm3, %v10522_v17, %v12257_v16  ;;  %v9582_v42 = vmax.f32 %v18817_v39, %v9581_v56  ;;  %v10586_v8 = vsel %vm9390_vm0, %v9576_v22, -inf  ;;  %v10593_v54 = vsel %vm9390_vm0, %v9579_v50, -inf }
 0x3ff   : > { %v12259_v15 = vsel %vm12213_vm4, %v10529_v28, %v12258_v23  ;;  %v10581_v46 = vmax.f32 %v10579_v25, %v10580_v57  ;;  %v10587_v20 = vrot.slane %v10586_v8, 4  ;;  %v10594_v33 = vrot.slane %v10593_v54, 4 }
 0x400   : > { %v12260_v1 = vsel %vm12215_vm5, %v10536_v2, %v12259_v15  ;;  %v10600_v13 = vsel %vm9390_vm0, %v9582_v42, -inf  ;;  %v9560_v34 = vsel %vm9390_vm0, %v7219_v24, -inf  ;;  %v9563_v26 = vsel %vm9390_vm0, %v7227_v37, -inf }
 0x401   : > { %v12261_v39 = vsel %vm12217_vm6, %v10543_v27, %v12260_v1  ;;  %v10582_v47 = vrot.slane %v10581_v46, 2  ;;  %v10588_v52 = vmax.f32 %v10586_v8, %v10587_v20  ;;  %v10595_v51 = vmax.f32 %v10593_v54, %v10594_v33  ;;  %v5884_v20 = vpop.f32.mrf.mxu1 }
 0x402   : > { %v12262_v28 = vsel %vm12219_vm7, %v10550_v12, %v12261_v39  ;;  %v10601_v19 = vrot.slane %v10600_v13, 4  ;;  %v9561_v3 = vmax.f32 %v18811_v7, %v9560_v34  ;;  %v9564_v2 = vmax.f32 %v18840_v62, %v9563_v26 }
 0x403   : > { %v9568_v63 = vsel %vm9390_vm0, %v7160_v14, -inf  ;;  %12477 = vst.msk [vmem:[%s18362_s24 + $0x30] sm:$0xff] %vm12470_vm8, %v12262_v28  ;;  %v10589_v43 = vrot.slane %v10588_v52, 2  ;;  %v10596_v27 = vrot.slane %v10595_v51, 2  ;;  %v9566_v30 = vsel %vm9390_vm0, %v7226_v5, -inf }
 0x404   : > { %v10602_v4 = vmax.f32 %v10600_v13, %v10601_v19  ;;  %v9567_v12 = vmax.f32 %v18844_v58, %v9566_v30  ;;  %v9569_v60 = vsel %vm9390_vm0, %v7228_v6, -inf  ;;  %v10551_v7 = vsel %vm9390_vm0, %v9561_v3, -inf  ;;  %v22388_v58 = vld [vmem:[#allocation183_spill] sm:$0xff] }
 0x405   : > { %v10583_v62 = vmax.f32 %v10581_v46, %v10582_v47  ;;  %v10590_v49 = vmax.f32 %v10588_v52, %v10589_v43  ;;  %v9570_v61 = vmax.f32 %v9568_v63, %v9569_v60  ;;  %v5879_v21 = vadd.f32 %v14651_v10, %v18791_v32  ;;  %v22390_v13 = vld [vmem:[#allocation187_spill] sm:$0xff] }
 0x406   : > { %v10603_v14 = vrot.slane %v10602_v4, 2  ;;  %v10552_v53 = vrot.slane %v10551_v7, 4  ;;  %v10558_v18 = vsel %vm9390_vm0, %v9564_v2, -inf  ;;  %v10565_v24 = vsel %vm9390_vm0, %v9567_v12, -inf }
 0x407   : > { %v5024_v59 = vadd.f32 %v5023_v38, %v22387_v41  ;;  %v5042_v29 = vadd.f32 %v14430_v35, %v22388_v58  ;;  %v10597_v55 = vmax.f32 %v10595_v51, %v10596_v27  ;;  %v10559_v44 = vrot.slane %v10558_v18, 4  ;;  %v5047_v38 = vpop.f32.mrf.mxu0  ;;  %v22391_v27 = vld [vmem:[#allocation189_spill] sm:$0xff]  ;;  %v22392_v58 = vld [vmem:[#allocation191_spill] sm:$0xff] }
 0x408   : > { %v10604_v31 = vmax.f32 %v10602_v4, %v10603_v14  ;;  %v10553_v5 = vmax.f32 %v10551_v7, %v10552_v53  ;;  %v10566_v16 = vrot.slane %v10565_v24, 4  ;;  %v10572_v45 = vsel %vm9390_vm0, %v9570_v61, -inf  ;;  %v14657_v4 = vpop.f32.mrf.mxu1 }
 0x409   : > { %v10584_v32 = vrot.slane %v10583_v62, 1  ;;  %v5036_v17 = vadd.f32 %v5035_v9, %v22389_v36  ;;  %v10560_v22 = vmax.f32 %v10558_v18, %v10559_v44  ;;  %v10573_v50 = vrot.slane %v10572_v45, 4  ;;  %v14436_v51 = vpop.f32.mrf.mxu0 }
 0x40a   : > { %v10591_v25 = vrot.slane %v10590_v49, 1  ;;  %v10554_v56 = vrot.slane %v10553_v5, 2  ;;  %v10567_v57 = vmax.f32 %v10565_v24, %v10566_v16  ;;  %v6479_v37 = vmax.f32 %v5879_v21, 0.0 }
 0x40b   : > { %v10598_v6 = vrot.slane %v10597_v55, 1  ;;  %v10561_v23 = vrot.slane %v10560_v22, 2  ;;  %v10574_v35 = vmax.f32 %v10572_v45, %v10573_v50  ;;  %v5873_v42 = vadd.f32 %v5872_v0, %v5024_v59 }
 0x40c   : > { %v10605_v8 = vrot.slane %v10604_v31, 1  ;;  %v10555_v54 = vmax.f32 %v10553_v5, %v10554_v56  ;;  %v10568_v15 = vrot.slane %v10567_v57, 2  ;;  %v7263_v46 = vcombine.high %v6479_v37, %v6479_v37 }
 0x40d   : > { %v10562_v33 = vmax.f32 %v10560_v22, %v10561_v23  ;;  %v10575_v1 = vrot.slane %v10574_v35, 2  ;;  %v5054_v34 = vadd.f32 %v14433_v48, %v22390_v13  ;;  %v6478_v26 = vmax.f32 %v5873_v42, 0.0  ;;  %v22393_v23 = vld [vmem:[#allocation193_spill] sm:$0xff] }
 0x40e   : > { %v10585_v10 = vmax.f32 %v10583_v62, %v10584_v32  ;;  %v10556_v39 = vrot.slane %v10555_v54, 1  ;;  %v10569_v47 = vmax.f32 %v10567_v57, %v10568_v15  ;;  %v7270_v52 = vrot.slane %v6479_v37, %v18149_v11 }
 0x40f   : > { %v10592_v28 = vmax.f32 %v10590_v49, %v10591_v25  ;;  %v10563_v19 = vrot.slane %v10562_v33, 1  ;;  %v10576_v9 = vmax.f32 %v10574_v35, %v10575_v1  ;;  %v7277_v3 = vrot.slane %v7263_v46, %v18149_v11  ;;  %v5059_v49 = vpop.f32.mrf.mxu0 }
 0x410   : > { %v10599_v2 = vmax.f32 %v10597_v55, %v10598_v6  ;;  %v10606_v63 = vmax.f32 %v10604_v31, %v10605_v8  ;;  %v10570_v43 = vrot.slane %v10569_v47, 1  ;;  %v5048_v30 = vadd.f32 %v5047_v38, %v22391_v27  ;;  %v5896_v31 = vpop.f32.mrf.mxu1  ;;  %v22395_v27 = vld [vmem:[#allocation198_spill] sm:$0xff] }
 0x411   : > { %v10557_v12 = vmax.f32 %v10555_v54, %v10556_v39  ;;  %v10564_v60 = vmax.f32 %v10562_v33, %v10563_v19  ;;  %v10577_v7 = vrot.slane %v10576_v9, 1  ;;  %v7246_v0 = vcombine.high %v6478_v26, %v6478_v26  ;;  %v14439_v50 = vpop.f32.mrf.mxu0 }
 0x412   : > { %v10571_v62 = vmax.f32 %v10569_v47, %v10570_v43  ;;  %v7278_v61 = vcombine.high %v7270_v52, %v7270_v52  ;;  %v7253_v21 = vrot.slane %v6478_v26, %v18149_v11  ;;  %v5891_v14 = vadd.f32 %v14654_v40, %v5042_v29  ;;  %v14660_v42 = vpop.f32.mrf.mxu1 }
 0x413   : > { %v10578_v53 = vmax.f32 %v10576_v9, %v10577_v7  ;;  %v12263_v18 = vsel %vm12207_vm1, %v10564_v60, %v10557_v12  ;;  %v7279_v24 = vcombine.high %v7277_v3, %v7277_v3  ;;  %v7260_v48 = vrot.slane %v7246_v0, %v18149_v11  ;;  %v5071_v26 = vpop.f32.mrf.mxu0 }
 0x414   : > { %v12264_v41 = vsel %vm12209_vm2, %v10571_v62, %v12263_v18  ;;  %v18901_v59 = vsel %vm9390_vm0, %v7270_v52, -inf  ;;  %v5066_v55 = vadd.f32 %v14436_v51, %v22392_v58  ;;  %v6481_v44 = vmax.f32 %v5891_v14, 0.0 }
 0x415   : > { %v12265_v5 = vsel %vm12211_vm3, %v10578_v53, %v12264_v41  ;;  %v18906_v29 = vsel %vm9390_vm0, %v7277_v3, -inf  ;;  %v7261_v16 = vcombine.high %v7253_v21, %v7253_v21  ;;  %v5885_v45 = vadd.f32 %v5884_v20, %v5036_v17  ;;  %v5908_v3 = vpop.f32.mrf.mxu1 }
 0x416   : > { %v12266_v40 = vsel %vm12213_vm4, %v10585_v10, %v12265_v5  ;;  %v7262_v32 = vcombine.high %v7260_v48, %v7260_v48  ;;  %v7297_v36 = vcombine.high %v6481_v44, %v6481_v44  ;;  %v7304_v22 = vrot.slane %v6481_v44, %v18149_v11 }
 0x417   : > { %v12267_v25 = vsel %vm12215_vm5, %v10592_v28, %v12266_v40  ;;  %v9598_v56 = vsel %vm9390_vm0, %v7278_v61, -inf  ;;  %v18913_v57 = vsel %vm9390_vm0, %v7279_v24, -inf  ;;  %v6480_v37 = vmax.f32 %v5885_v45, 0.0 }
 0x418   : > { %v12268_v38 = vsel %vm12217_vm6, %v10599_v2, %v12267_v25  ;;  %v7311_v17 = vrot.slane %v7297_v36, %v18149_v11  ;;  %v7312_v6 = vcombine.high %v7304_v22, %v7304_v22  ;;  %v5060_v35 = vadd.f32 %v5059_v49, %v22393_v23 }
 0x419   : > { %v12269_v8 = vsel %vm12219_vm7, %v10606_v63, %v12268_v38  ;;  %v7280_v54 = vcombine.high %v6480_v37, %v6480_v37  ;;  %v18920_v15 = vrot.slane %v6480_v37, %v18149_v11  ;;  %v5903_v46 = vadd.f32 %v14657_v4, %v5054_v34  ;;  %v22394_v34 = vld [vmem:[#allocation196_spill] sm:$0xff] }
 0x41a   : > { %12478 = vst.msk [vmem:[%s18362_s24 + $0x38] sm:$0xff] %vm12470_vm8, %v12269_v8  ;;  %v18925_v20 = vsel %vm9390_vm0, %v7253_v21, -inf  ;;  %v18928_v33 = vsel %vm9390_vm0, %v7261_v16, -inf  ;;  %v18931_v1 = vsel %vm9390_vm0, %v7260_v48, -inf  ;;  %v18934_v13 = vsel %vm9390_vm0, %v7262_v32, -inf }
 0x41b   : > { %v7313_v10 = vcombine.high %v7311_v17, %v7311_v17  ;;  %v18937_v39 = vrot.slane %v7280_v54, %v18149_v11  ;;  %v18940_v47 = vadd.f32 %v14439_v50, %v22394_v34  ;;  %v6483_v52 = vmax.f32 %v5903_v46, 0.0 }
 0x41c   : > { %v18943_v51 = vsel %vm9390_vm0, %v7304_v22, -inf  ;;  %v18946_v28 = vsel %vm9390_vm0, %v7312_v6, -inf  ;;  %v5897_v19 = vadd.f32 %v5896_v31, %v5048_v30  ;;  %v5915_v9 = vadd.f32 %v14660_v42, %v5066_v55 }
 0x41d   : > { %v18949_v2 = vsel %vm9390_vm0, %v7311_v17, -inf  ;;  %v7295_v63 = vcombine.high %v18920_v15, %v18920_v15  ;;  %v7331_v43 = vcombine.high %v6483_v52, %v6483_v52  ;;  %v18954_v4 = vadd.f32 %v5071_v26, %v22395_v27 }
 0x41e   : > { %v18958_v12 = vsel %vm9390_vm0, %v18920_v15, -inf  ;;  %v7338_v60 = vrot.slane %v6483_v52, %v18149_v11  ;;  %v6482_v7 = vmax.f32 %v5897_v19, 0.0  ;;  %v18961_v30 = vmax.f32 %v5915_v9, 0.0  ;;  %v22396_v15 = vld [vmem:[#allocation199_spill] sm:$0xff] }
 0x41f   : > { %v18964_v0 = vsel %vm9390_vm0, %v7313_v10, -inf  ;;  %v7296_v62 = vcombine.high %v18937_v39, %v18937_v39  ;;  %v7345_v61 = vrot.slane %v7331_v43, %v18149_v11  ;;  %v18969_v21 = vadd.f32 %v5908_v3, %v5060_v35 }
 0x420   : > { %v7346_v14 = vcombine.high %v7338_v60, %v7338_v60  ;;  %v9596_v49 = vsel %vm9390_vm0, %v7338_v60, -inf  ;;  %v7314_v53 = vcombine.high %v6482_v7, %v6482_v7  ;;  %v7321_v18 = vrot.slane %v6482_v7, %v18149_v11 }
 0x421   : > { %v7347_v24 = vcombine.high %v7345_v61, %v7345_v61  ;;  %v9597_v48 = vmax.f32 %v18901_v59, %v9596_v49  ;;  %v9602_v41 = vsel %vm9390_vm0, %v7345_v61, -inf  ;;  %v7365_v58 = vcombine.high %v18961_v30, %v18961_v30 }
 0x422   : > { %v9599_v55 = vsel %vm9390_vm0, %v7346_v14, -inf  ;;  %v9603_v44 = vmax.f32 %v18906_v29, %v9602_v41  ;;  %v7328_v31 = vrot.slane %v7314_v53, %v18149_v11  ;;  %v7329_v5 = vcombine.high %v7321_v18, %v7321_v18 }
 0x423   : > { %v9600_v16 = vmax.f32 %v9598_v56, %v9599_v55  ;;  %v9605_v45 = vsel %vm9390_vm0, %v7347_v24, -inf  ;;  %v10635_v40 = vsel %vm9390_vm0, %v9597_v48, -inf  ;;  %v9584_v32 = vsel %vm9390_vm0, %v7321_v18, -inf }
 0x424   : > { %v9606_v59 = vmax.f32 %v18913_v57, %v9605_v45  ;;  %v10636_v36 = vrot.slane %v10635_v40, 4  ;;  %v10649_v22 = vsel %vm9390_vm0, %v9603_v44, -inf  ;;  %v7330_v50 = vcombine.high %v7328_v31, %v7328_v31 }
 0x425   : > { %v10642_v25 = vsel %vm9390_vm0, %v9600_v16, -inf  ;;  %v10650_v37 = vrot.slane %v10649_v22, 4  ;;  %v9585_v29 = vmax.f32 %v18925_v20, %v9584_v32  ;;  %v9587_v38 = vsel %vm9390_vm0, %v7329_v5, -inf }
 0x426   : > { %v10637_v56 = vmax.f32 %v10635_v40, %v10636_v36  ;;  %v10643_v17 = vrot.slane %v10642_v25, 4  ;;  %v10656_v6 = vsel %vm9390_vm0, %v9606_v59, -inf  ;;  %v9588_v23 = vmax.f32 %v18928_v33, %v9587_v38 }
 0x427   : > { %v10651_v35 = vmax.f32 %v10649_v22, %v10650_v37  ;;  %v10657_v42 = vrot.slane %v10656_v6, 4  ;;  %v9590_v57 = vsel %vm9390_vm0, %v7328_v31, -inf  ;;  %v9593_v8 = vsel %vm9390_vm0, %v7330_v50, -inf }
 0x428   : > { %v10638_v54 = vrot.slane %v10637_v56, 2  ;;  %v10644_v46 = vmax.f32 %v10642_v25, %v10643_v17  ;;  %v9591_v26 = vmax.f32 %v18931_v1, %v9590_v57  ;;  %v9594_v20 = vmax.f32 %v18934_v13, %v9593_v8 }
 0x429   : > { %v10652_v10 = vrot.slane %v10651_v35, 2  ;;  %v10658_v34 = vmax.f32 %v10656_v6, %v10657_v42  ;;  %v10607_v52 = vsel %vm9390_vm0, %v9585_v29, -inf  ;;  %v10614_v19 = vsel %vm9390_vm0, %v9588_v23, -inf }
 0x42a   : > { %v10639_v9 = vmax.f32 %v10637_v56, %v10638_v54  ;;  %v10645_v33 = vrot.slane %v10644_v46, 2  ;;  %v10608_v3 = vrot.slane %v10607_v52, 4  ;;  %v10615_v43 = vrot.slane %v10614_v19, 4 }
 0x42b   : > { %v10653_v27 = vmax.f32 %v10651_v35, %v10652_v10  ;;  %v10659_v60 = vrot.slane %v10658_v34, 2  ;;  %v10621_v7 = vsel %vm9390_vm0, %v9591_v26, -inf  ;;  %v10628_v61 = vsel %vm9390_vm0, %v9594_v20, -inf }
 0x42c   : > { %v10640_v14 = vrot.slane %v10639_v9, 1  ;;  %v10646_v1 = vmax.f32 %v10644_v46, %v10645_v33  ;;  %v10609_v49 = vmax.f32 %v10607_v52, %v10608_v3  ;;  %v10616_v13 = vmax.f32 %v10614_v19, %v10615_v43 }
 0x42d   : > { %v10654_v53 = vrot.slane %v10653_v27, 1  ;;  %v10660_v18 = vmax.f32 %v10658_v34, %v10659_v60  ;;  %v10622_v24 = vrot.slane %v10621_v7, 4  ;;  %v10629_v48 = vrot.slane %v10628_v61, 4 }
 0x42e   : > { %v10641_v41 = vmax.f32 %v10639_v9, %v10640_v14  ;;  %v10647_v55 = vrot.slane %v10646_v1, 1  ;;  %v10610_v44 = vrot.slane %v10609_v49, 2  ;;  %v10617_v31 = vrot.slane %v10616_v13, 2 }
 0x42f   : > { %v10655_v5 = vmax.f32 %v10653_v27, %v10654_v53  ;;  %v10661_v16 = vrot.slane %v10660_v18, 1  ;;  %v10623_v45 = vmax.f32 %v10621_v7, %v10622_v24  ;;  %v10630_v40 = vmax.f32 %v10628_v61, %v10629_v48  ;;  %v14442_v27 = vpop.f32.mrf.mxu0 }
 0x430   : > { %v10648_v32 = vmax.f32 %v10646_v1, %v10647_v55  ;;  %v10611_v59 = vmax.f32 %v10609_v49, %v10610_v44  ;;  %v10618_v36 = vmax.f32 %v10616_v13, %v10617_v31  ;;  %v7372_v22 = vrot.slane %v18961_v30, %v18149_v11 }
 0x431   : > { %v10662_v50 = vmax.f32 %v10660_v18, %v10661_v16  ;;  %v10624_v25 = vrot.slane %v10623_v45, 2  ;;  %v10631_v37 = vrot.slane %v10630_v40, 2  ;;  %v7379_v29 = vrot.slane %v7365_v58, %v18149_v11  ;;  %v5083_v16 = vpop.f32.mrf.mxu0 }
 0x432   : > { %v10612_v38 = vrot.slane %v10611_v59, 1  ;;  %v10619_v56 = vrot.slane %v10618_v36, 1  ;;  %v7380_v17 = vcombine.high %v7372_v22, %v7372_v22  ;;  %v9620_v6 = vsel %vm9390_vm0, %v7372_v22, -inf }
 0x433   : > { %v10625_v23 = vmax.f32 %v10623_v45, %v10624_v25  ;;  %v10632_v35 = vmax.f32 %v10630_v40, %v10631_v37  ;;  %v7381_v42 = vcombine.high %v7379_v29, %v7379_v29  ;;  %v9621_v57 = vmax.f32 %v18943_v51, %v9620_v6  ;;  %v14663_v25 = vpop.f32.mrf.mxu1 }
 0x434   : > { %v10613_v8 = vmax.f32 %v10611_v59, %v10612_v38  ;;  %v10620_v54 = vmax.f32 %v10618_v36, %v10619_v56  ;;  %v9623_v46 = vsel %vm9390_vm0, %v7380_v17, -inf  ;;  %v9626_v26 = vsel %vm9390_vm0, %v7379_v29, -inf }
 0x435   : > { %v10626_v20 = vrot.slane %v10625_v23, 1  ;;  %v10633_v10 = vrot.slane %v10632_v35, 1  ;;  %v9624_v30 = vmax.f32 %v18946_v28, %v9623_v46  ;;  %v9627_v58 = vmax.f32 %v18949_v2, %v9626_v26  ;;  %v5920_v26 = vpop.f32.mrf.mxu1 }
 0x436   : > { %v12270_v34 = vsel %vm12207_vm1, %v10620_v54, %v10613_v8  ;;  %v9629_v52 = vsel %vm9390_vm0, %v7381_v42, -inf  ;;  %v10691_v19 = vsel %vm9390_vm0, %v9621_v57, -inf  ;;  %v6484_v51 = vmax.f32 %v18969_v21, 0.0  ;;  %v14445_v42 = vpop.f32.mrf.mxu0  ;;  %v22397_v8 = vld [vmem:[#allocation201_spill] sm:$0xff] }
 0x437   : > { %v10627_v9 = vmax.f32 %v10625_v23, %v10626_v20  ;;  %v10634_v33 = vmax.f32 %v10632_v35, %v10633_v10  ;;  %v9630_v3 = vmax.f32 %v18964_v0, %v9629_v52  ;;  %v10692_v43 = vrot.slane %v10691_v19, 4 }
 0x438   : > { %v10698_v60 = vsel %vm9390_vm0, %v9624_v30, -inf  ;;  %v10705_v28 = vsel %vm9390_vm0, %v9627_v58, -inf  ;;  %v7348_v7 = vcombine.high %v6484_v51, %v6484_v51  ;;  %v7355_v2 = vrot.slane %v6484_v51, %v18149_v11  ;;  %v22398_v51 = vld [vmem:[#allocation203_spill] sm:$0xff] }
 0x439   : > { %v12271_v61 = vsel %vm12209_vm2, %v10627_v9, %v12270_v34  ;;  %v10693_v14 = vmax.f32 %v10691_v19, %v10692_v43  ;;  %v10699_v1 = vrot.slane %v10698_v60, 4  ;;  %v10706_v49 = vrot.slane %v10705_v28, 4 }
 0x43a   : > { %v12272_v21 = vsel %vm12211_vm3, %v10634_v33, %v12271_v61  ;;  %v10712_v13 = vsel %vm9390_vm0, %v9630_v3, -inf  ;;  %v7362_v0 = vrot.slane %v7348_v7, %v18149_v11  ;;  %v7363_v53 = vcombine.high %v7355_v2, %v7355_v2  ;;  %v14666_v7 = vpop.f32.mrf.mxu1 }
 0x43b   : > { %v12273_v18 = vsel %vm12213_vm4, %v10641_v41, %v12272_v21  ;;  %v10694_v24 = vrot.slane %v10693_v14, 2  ;;  %v10700_v48 = vmax.f32 %v10698_v60, %v10699_v1  ;;  %v10707_v55 = vmax.f32 %v10705_v28, %v10706_v49 }
 0x43c   : > { %v12274_v44 = vsel %vm12215_vm5, %v10648_v32, %v12273_v18  ;;  %v10713_v31 = vrot.slane %v10712_v13, 4  ;;  %v7364_v45 = vcombine.high %v7362_v0, %v7362_v0  ;;  %v9608_v40 = vsel %vm9390_vm0, %v7355_v2, -inf }
 0x43d   : > { %v9610_v59 = vsel %vm9390_vm0, %v7295_v63, -inf  ;;  %v12275_v36 = vsel %vm12217_vm6, %v10655_v5, %v12274_v44  ;;  %v10695_v22 = vmax.f32 %v10693_v14, %v10694_v24  ;;  %v10701_v41 = vrot.slane %v10700_v48, 2 }
 0x43e   : > { %v12276_v37 = vsel %vm12219_vm7, %v10662_v50, %v12275_v36  ;;  %v10714_v29 = vmax.f32 %v10712_v13, %v10713_v31  ;;  %v9609_v32 = vmax.f32 %v18958_v12, %v9608_v40  ;;  %v9611_v38 = vsel %vm9390_vm0, %v7363_v53, -inf }
 0x43f   : > { %v9613_v56 = vsel %vm9390_vm0, %v18937_v39, -inf  ;;  %12479 = vst.msk [vmem:[%s18362_s24 + $0x40] sm:$0xff] %vm12470_vm8, %v12276_v37  ;;  %v5090_v17 = vadd.f32 %v14442_v27, %v22396_v15  ;;  %v10708_v63 = vrot.slane %v10707_v55, 2  ;;  %v9612_v6 = vmax.f32 %v9610_v59, %v9611_v38 }
 0x440   : > { %v10702_v5 = vmax.f32 %v10700_v48, %v10701_v41  ;;  %v9614_v23 = vsel %vm9390_vm0, %v7362_v0, -inf  ;;  %v9617_v35 = vsel %vm9390_vm0, %v7364_v45, -inf  ;;  %v10663_v50 = vsel %vm9390_vm0, %v9609_v32, -inf  ;;  %v5095_v48 = vpop.f32.mrf.mxu0  ;;  %v5932_v45 = vpop.f32.mrf.mxu1 }
 0x441   : > { %v9616_v12 = vsel %vm9390_vm0, %v7296_v62, -inf  ;;  %v10696_v57 = vrot.slane %v10695_v22, 1  ;;  %v19046_v54 = vadd.f32 %v5083_v16, %v22397_v8  ;;  %v9615_v46 = vmax.f32 %v9613_v56, %v9614_v23 }
 0x442   : > { %v10715_v20 = vrot.slane %v10714_v29, 2  ;;  %v9618_v10 = vmax.f32 %v9616_v12, %v9617_v35  ;;  %v10664_v30 = vrot.slane %v10663_v50, 4  ;;  %v10670_v58 = vsel %vm9390_vm0, %v9612_v6, -inf  ;;  %v14448_v56 = vpop.f32.mrf.mxu0  ;;  %v14669_v35 = vpop.f32.mrf.mxu1 }
 0x443   : > { %v10709_v34 = vmax.f32 %v10707_v55, %v10708_v63  ;;  %v10671_v52 = vrot.slane %v10670_v58, 4  ;;  %v10677_v19 = vsel %vm9390_vm0, %v9615_v46, -inf  ;;  %v19051_v9 = vadd.f32 %v14445_v42, %v22398_v51 }
 0x444   : > { %v10703_v39 = vrot.slane %v10702_v5, 1  ;;  %v10665_v62 = vmax.f32 %v10663_v50, %v10664_v30  ;;  %v10678_v33 = vrot.slane %v10677_v19, 4  ;;  %v10684_v3 = vsel %vm9390_vm0, %v9618_v10, -inf  ;;  %v22400_v10 = vld [vmem:[#allocation207_spill] sm:$0xff] }
 0x445   : > { %v10697_v43 = vmax.f32 %v10695_v22, %v10696_v57  ;;  %v10672_v27 = vmax.f32 %v10670_v58, %v10671_v52  ;;  %v10685_v60 = vrot.slane %v10684_v3, 4  ;;  %v5927_v28 = vadd.f32 %v14663_v25, %v18940_v47  ;;  %v22399_v57 = vld [vmem:[#allocation206_spill] sm:$0xff] }
 0x446   : > { %v10716_v2 = vmax.f32 %v10714_v29, %v10715_v20  ;;  %v10666_v61 = vrot.slane %v10665_v62, 2  ;;  %v10679_v14 = vmax.f32 %v10677_v19, %v10678_v33  ;;  %v5921_v1 = vadd.f32 %v5920_v26, %v18954_v4  ;;  %v5107_v19 = vpop.f32.mrf.mxu0 }
 0x447   : > { %v10710_v49 = vrot.slane %v10709_v34, 1  ;;  %v10673_v21 = vrot.slane %v10672_v27, 2  ;;  %v10686_v13 = vmax.f32 %v10684_v3, %v10685_v60  ;;  %v6487_v0 = vmax.f32 %v5927_v28, 0.0  ;;  %v5944_v3 = vpop.f32.mrf.mxu1 }
 0x448   : > { %v10704_v53 = vmax.f32 %v10702_v5, %v10703_v39  ;;  %v10667_v18 = vmax.f32 %v10665_v62, %v10666_v61  ;;  %v10680_v24 = vrot.slane %v10679_v14, 2  ;;  %v6486_v55 = vmax.f32 %v5921_v1, 0.0 }
 0x449   : > { %v10674_v44 = vmax.f32 %v10672_v27, %v10673_v21  ;;  %v10687_v31 = vrot.slane %v10686_v13, 2  ;;  %v7399_v16 = vcombine.high %v6487_v0, %v6487_v0  ;;  %v7406_v47 = vrot.slane %v6487_v0, %v18149_v11 }
 0x44a   : > { %v10717_v40 = vrot.slane %v10716_v2, 1  ;;  %v10668_v59 = vrot.slane %v10667_v18, 1  ;;  %v10681_v36 = vmax.f32 %v10679_v14, %v10680_v24  ;;  %v7382_v22 = vcombine.high %v6486_v55, %v6486_v55 }
 0x44b   : > { %v10711_v4 = vmax.f32 %v10709_v34, %v10710_v49  ;;  %v10675_v41 = vrot.slane %v10674_v44, 1  ;;  %v10688_v25 = vmax.f32 %v10686_v13, %v10687_v31  ;;  %v7413_v37 = vrot.slane %v7399_v16, %v18149_v11  ;;  %v22401_v16 = vld [vmem:[#allocation209_spill] sm:$0xff] }
 0x44c   : > { %v10682_v29 = vrot.slane %v10681_v36, 1  ;;  %v7414_v32 = vcombine.high %v7406_v47, %v7406_v47  ;;  %v7389_v38 = vrot.slane %v6486_v55, %v18149_v11  ;;  %v5939_v15 = vadd.f32 %v14666_v7, %v5090_v17 }
 0x44d   : > { %v10669_v63 = vmax.f32 %v10667_v18, %v10668_v59  ;;  %v10676_v6 = vmax.f32 %v10674_v44, %v10675_v41  ;;  %v10689_v5 = vrot.slane %v10688_v25, 1  ;;  %v7396_v23 = vrot.slane %v7382_v22, %v18149_v11 }
 0x44e   : > { %v10718_v50 = vmax.f32 %v10716_v2, %v10717_v40  ;;  %v10683_v42 = vmax.f32 %v10681_v36, %v10682_v29  ;;  %v7415_v12 = vcombine.high %v7413_v37, %v7413_v37  ;;  %v5096_v8 = vadd.f32 %v5095_v48, %v22399_v57 }
 0x44f   : > { %v10690_v46 = vmax.f32 %v10688_v25, %v10689_v5  ;;  %v12277_v26 = vsel %vm12207_vm1, %v10676_v6, %v10669_v63  ;;  %v9643_v20 = vsel %vm9390_vm0, %v7406_v47, -inf  ;;  %v19064_v30 = vadd.f32 %v14448_v56, %v22400_v10 }
 0x450   : > { %v12278_v17 = vsel %vm12209_vm2, %v10683_v42, %v12277_v26  ;;  %v9646_v58 = vsel %vm9390_vm0, %v7414_v32, -inf  ;;  %v9649_v34 = vsel %vm9390_vm0, %v7413_v37, -inf  ;;  %v7397_v52 = vcombine.high %v7389_v38, %v7389_v38 }
 0x451   : > { %v12279_v51 = vsel %vm12211_vm3, %v10690_v46, %v12278_v17  ;;  %v7398_v39 = vcombine.high %v7396_v23, %v7396_v23  ;;  %v6489_v62 = vmax.f32 %v5939_v15, 0.0  ;;  %v5933_v33 = vadd.f32 %v5932_v45, %v19046_v54  ;;  %v22402_v45 = vld [vmem:[#allocation212_spill] sm:$0xff] }
 0x452   : > { %v12280_v27 = vsel %vm12213_vm4, %v10697_v43, %v12279_v51  ;;  %v9652_v60 = vsel %vm9390_vm0, %v7415_v12, -inf  ;;  %v19074_v28 = vsel %vm9390_vm0, %v7389_v38, -inf  ;;  %v5951_v7 = vadd.f32 %v14669_v35, %v19051_v9  ;;  %v14451_v43 = vpop.f32.mrf.mxu0 }
 0x453   : > { %v12281_v2 = vsel %vm12215_vm5, %v10704_v53, %v12280_v27  ;;  %v7433_v61 = vcombine.high %v6489_v62, %v6489_v62  ;;  %v7440_v14 = vrot.slane %v6489_v62, %v18149_v11  ;;  %v6488_v1 = vmax.f32 %v5933_v33, 0.0 }
 0x454   : > { %v12282_v49 = vsel %vm12217_vm6, %v10711_v4, %v12281_v2  ;;  %v19081_v54 = vsel %vm9390_vm0, %v7397_v52, -inf  ;;  %v6491_v21 = vmax.f32 %v5951_v7, 0.0  ;;  %v5945_v13 = vadd.f32 %v5944_v3, %v5096_v8 }
 0x455   : > { %v12283_v0 = vsel %vm12219_vm7, %v10718_v50, %v12282_v49  ;;  %v19085_v18 = vsel %vm9390_vm0, %v7396_v23, -inf  ;;  %v7447_v9 = vrot.slane %v7433_v61, %v18149_v11  ;;  %v7448_v53 = vcombine.high %v7440_v14, %v7440_v14 }
 0x456   : > { %12480 = vst.msk [vmem:[%s18362_s24 + $0x48] sm:$0xff] %vm12470_vm8, %v12283_v0  ;;  %v7416_v24 = vcombine.high %v6488_v1, %v6488_v1  ;;  %v19091_v48 = vrot.slane %v6488_v1, %v18149_v11  ;;  %v7467_v55 = vcombine.high %v6491_v21, %v6491_v21  ;;  %v7474_v44 = vrot.slane %v6491_v21, %v18149_v11 }
 0x457   : > { %v19095_v31 = vsel %vm9390_vm0, %v7398_v39, -inf  ;;  %v19098_v47 = vadd.f32 %v5107_v19, %v22401_v16  ;;  %v19101_v40 = vadd.f32 %v14451_v43, %v22402_v45  ;;  %v6490_v59 = vmax.f32 %v5945_v13, 0.0 }
 0x458   : > { %v7449_v36 = vcombine.high %v7447_v9, %v7447_v9  ;;  %v19104_v22 = vsel %vm9390_vm0, %v7440_v14, -inf  ;;  %v19107_v4 = vsel %vm9390_vm0, %v7448_v53, -inf  ;;  %v7481_v41 = vrot.slane %v7467_v55, %v18149_v11 }
 0x459   : > { %v19111_v25 = vsel %vm9390_vm0, %v7447_v9, -inf  ;;  %v7482_v37 = vcombine.high %v7474_v44, %v7474_v44  ;;  %v9644_v29 = vsel %vm9390_vm0, %v7474_v44, -inf  ;;  %v7450_v32 = vcombine.high %v6490_v59, %v6490_v59 }
 0x45a   : > { %v19115_v38 = vrot.slane %v7416_v24, %v18149_v11  ;;  %v7431_v56 = vcombine.high %v19091_v48, %v19091_v48  ;;  %v19121_v15 = vsel %vm9390_vm0, %v19091_v48, -inf  ;;  %v7483_v63 = vcombine.high %v7481_v41, %v7481_v41 }
 0x45b   : > { %v9645_v6 = vmax.f32 %v9643_v20, %v9644_v29  ;;  %v9647_v5 = vsel %vm9390_vm0, %v7482_v37, -inf  ;;  %v9650_v23 = vsel %vm9390_vm0, %v7481_v41, -inf  ;;  %v7457_v35 = vrot.slane %v6490_v59, %v18149_v11 }
 0x45c   : > { %v19127_v50 = vsel %vm9390_vm0, %v7449_v36, -inf  ;;  %v9648_v42 = vmax.f32 %v9646_v58, %v9647_v5  ;;  %v9651_v12 = vmax.f32 %v9649_v34, %v9650_v23  ;;  %v9653_v57 = vsel %vm9390_vm0, %v7483_v63, -inf }
 0x45d   : > { %v9654_v8 = vmax.f32 %v9652_v60, %v9653_v57  ;;  %v10747_v46 = vsel %vm9390_vm0, %v9645_v6, -inf  ;;  %v7464_v26 = vrot.slane %v7450_v32, %v18149_v11  ;;  %v7465_v10 = vcombine.high %v7457_v35, %v7457_v35 }
 0x45e   : > { %v10748_v20 = vrot.slane %v10747_v46, 4  ;;  %v10754_v17 = vsel %vm9390_vm0, %v9648_v42, -inf  ;;  %v10761_v52 = vsel %vm9390_vm0, %v9651_v12, -inf  ;;  %v9632_v19 = vsel %vm9390_vm0, %v7457_v35, -inf }
 0x45f   : > { %v10755_v51 = vrot.slane %v10754_v17, 4  ;;  %v10762_v39 = vrot.slane %v10761_v52, 4  ;;  %v10768_v58 = vsel %vm9390_vm0, %v9654_v8, -inf  ;;  %v7466_v34 = vcombine.high %v7464_v26, %v7464_v26 }
 0x460   : > { %v10749_v62 = vmax.f32 %v10747_v46, %v10748_v20  ;;  %v10769_v33 = vrot.slane %v10768_v58, 4  ;;  %v9633_v3 = vmax.f32 %v19074_v28, %v9632_v19  ;;  %v9635_v27 = vsel %vm9390_vm0, %v7465_v10, -inf }
 0x461   : > { %v10756_v60 = vmax.f32 %v10754_v17, %v10755_v51  ;;  %v10763_v7 = vmax.f32 %v10761_v52, %v10762_v39  ;;  %v9636_v2 = vmax.f32 %v19081_v54, %v9635_v27  ;;  %v9638_v61 = vsel %vm9390_vm0, %v7464_v26, -inf  ;;  %v14672_v54 = vpop.f32.mrf.mxu1 }
 0x462   : > { %v10750_v14 = vrot.slane %v10749_v62, 2  ;;  %v10770_v1 = vmax.f32 %v10768_v58, %v10769_v33  ;;  %v9639_v49 = vmax.f32 %v19085_v18, %v9638_v61  ;;  %v9641_v43 = vsel %vm9390_vm0, %v7466_v34, -inf }
 0x463   : > { %v10757_v21 = vrot.slane %v10756_v60, 2  ;;  %v10764_v13 = vrot.slane %v10763_v7, 2  ;;  %v9642_v0 = vmax.f32 %v19095_v31, %v9641_v43  ;;  %v10719_v28 = vsel %vm9390_vm0, %v9633_v3, -inf  ;;  %v5956_v35 = vpop.f32.mrf.mxu1 }
 0x464   : > { %v10751_v9 = vmax.f32 %v10749_v62, %v10750_v14  ;;  %v10771_v53 = vrot.slane %v10770_v1, 2  ;;  %v10720_v24 = vrot.slane %v10719_v28, 4  ;;  %v10726_v48 = vsel %vm9390_vm0, %v9636_v2, -inf }
 0x465   : > { %v10758_v55 = vmax.f32 %v10756_v60, %v10757_v21  ;;  %v10765_v44 = vmax.f32 %v10763_v7, %v10764_v13  ;;  %v10727_v16 = vrot.slane %v10726_v48, 4  ;;  %v10733_v45 = vsel %vm9390_vm0, %v9639_v49, -inf }
 0x466   : > { %v10752_v18 = vrot.slane %v10751_v9, 1  ;;  %v10772_v59 = vmax.f32 %v10770_v1, %v10771_v53  ;;  %v10721_v36 = vmax.f32 %v10719_v28, %v10720_v24  ;;  %v10734_v41 = vrot.slane %v10733_v45, 4 }
 0x467   : > { %v7432_v31 = vcombine.high %v19115_v38, %v19115_v38  ;;  %v10759_v37 = vrot.slane %v10758_v55, 1  ;;  %v10728_v29 = vmax.f32 %v10726_v48, %v10727_v16  ;;  %v10740_v32 = vsel %vm9390_vm0, %v9642_v0, -inf  ;;  %v5119_v0 = vpop.f32.mrf.mxu0 }
 0x468   : > { %v19150_v63 = vsel %vm9390_vm0, %v7431_v56, -inf  ;;  %v10766_v6 = vrot.slane %v10765_v44, 1  ;;  %v10722_v5 = vrot.slane %v10721_v36, 2  ;;  %v10735_v23 = vmax.f32 %v10733_v45, %v10734_v41 }
 0x469   : > { %v19154_v42 = vsel %vm9390_vm0, %v19115_v38, -inf  ;;  %v10773_v12 = vrot.slane %v10772_v59, 1  ;;  %v10729_v57 = vrot.slane %v10728_v29, 2  ;;  %v10741_v8 = vrot.slane %v10740_v32, 4 }
 0x46a   : > { %v10753_v46 = vmax.f32 %v10751_v9, %v10752_v18  ;;  %v10723_v26 = vmax.f32 %v10721_v36, %v10722_v5  ;;  %v10736_v10 = vrot.slane %v10735_v23, 2  ;;  %v5963_v20 = vadd.f32 %v14672_v54, %v19064_v30 }
 0x46b   : > { %v10760_v17 = vmax.f32 %v10758_v55, %v10759_v37  ;;  %v10730_v52 = vmax.f32 %v10728_v29, %v10729_v57  ;;  %v10742_v56 = vmax.f32 %v10740_v32, %v10741_v8  ;;  %v5957_v19 = vadd.f32 %v5956_v35, %v19098_v47  ;;  %v14454_v32 = vpop.f32.mrf.mxu0 }
 0x46c   : > { %v10767_v51 = vmax.f32 %v10765_v44, %v10766_v6  ;;  %v10724_v39 = vrot.slane %v10723_v26, 1  ;;  %v10737_v58 = vmax.f32 %v10735_v23, %v10736_v10  ;;  %v6493_v34 = vmax.f32 %v5963_v20, 0.0  ;;  %v14675_v20 = vpop.f32.mrf.mxu1 }
 0x46d   : > { %v10774_v62 = vmax.f32 %v10772_v59, %v10773_v12  ;;  %v10731_v33 = vrot.slane %v10730_v52, 1  ;;  %v10743_v3 = vrot.slane %v10742_v56, 2  ;;  %v6492_v27 = vmax.f32 %v5957_v19, 0.0 }
 0x46e   : > { %v10725_v60 = vmax.f32 %v10723_v26, %v10724_v39  ;;  %v10738_v7 = vrot.slane %v10737_v58, 1  ;;  %v7501_v2 = vcombine.high %v6493_v34, %v6493_v34  ;;  %v7508_v61 = vrot.slane %v6493_v34, %v18149_v11 }
 0x46f   : > { %v10732_v14 = vmax.f32 %v10730_v52, %v10731_v33  ;;  %v10744_v30 = vmax.f32 %v10742_v56, %v10743_v3  ;;  %v7484_v1 = vcombine.high %v6492_v27, %v6492_v27  ;;  %v7491_v49 = vrot.slane %v6492_v27, %v18149_v11 }
 0x470   : > { %v10739_v43 = vmax.f32 %v10737_v58, %v10738_v7  ;;  %v7515_v47 = vrot.slane %v7501_v2, %v18149_v11  ;;  %v7516_v21 = vcombine.high %v7508_v61, %v7508_v61  ;;  %v9668_v13 = vsel %vm9390_vm0, %v7508_v61, -inf  ;;  %v5131_v58 = vpop.f32.mrf.mxu0  ;;  %v5968_v2 = vpop.f32.mrf.mxu1 }
 0x471   : > { %v10745_v28 = vrot.slane %v10744_v30, 1  ;;  %v12284_v9 = vsel %vm12207_vm1, %v10732_v14, %v10725_v60  ;;  %v9669_v53 = vmax.f32 %v19104_v22, %v9668_v13  ;;  %v7498_v24 = vrot.slane %v7484_v1, %v18149_v11 }
 0x472   : > { %v12285_v48 = vsel %vm12209_vm2, %v10739_v43, %v12284_v9  ;;  %v7517_v54 = vcombine.high %v7515_v47, %v7515_v47  ;;  %v9671_v55 = vsel %vm9390_vm0, %v7516_v21, -inf  ;;  %v9674_v44 = vsel %vm9390_vm0, %v7515_v47, -inf  ;;  %v14457_v43 = vpop.f32.mrf.mxu0  ;;  %v22403_v47 = vld [vmem:[#allocation214_spill] sm:$0xff] }
 0x473   : > { %v10746_v16 = vmax.f32 %v10744_v30, %v10745_v28  ;;  %v9672_v45 = vmax.f32 %v19107_v4, %v9671_v55  ;;  %v9675_v18 = vmax.f32 %v19111_v25, %v9674_v44  ;;  %v10803_v59 = vsel %vm9390_vm0, %v9669_v53, -inf  ;;  %v14678_v55 = vpop.f32.mrf.mxu1  ;;  %v22405_v44 = vld [vmem:[#allocation215_spill] sm:$0xff] }
 0x474   : > { %v9677_v36 = vsel %vm9390_vm0, %v7517_v54, -inf  ;;  %v10804_v41 = vrot.slane %v10803_v59, 4  ;;  %v7499_v22 = vcombine.high %v7491_v49, %v7491_v49  ;;  %v7500_v37 = vcombine.high %v7498_v24, %v7498_v24 }
 0x475   : > { %v12286_v29 = vsel %vm12211_vm3, %v10746_v16, %v12285_v48  ;;  %v9678_v6 = vmax.f32 %v19127_v50, %v9677_v36  ;;  %v10810_v5 = vsel %vm9390_vm0, %v9672_v45, -inf  ;;  %v10817_v23 = vsel %vm9390_vm0, %v9675_v18, -inf }
 0x476   : > { %v12287_v4 = vsel %vm12213_vm4, %v10753_v46, %v12286_v29  ;;  %v10805_v35 = vmax.f32 %v10803_v59, %v10804_v41  ;;  %v10811_v25 = vrot.slane %v10810_v5, 4  ;;  %v10818_v12 = vrot.slane %v10817_v23, 4 }
 0x477   : > { %v12288_v57 = vsel %vm12215_vm5, %v10760_v17, %v12287_v4  ;;  %v10824_v8 = vsel %vm9390_vm0, %v9678_v6, -inf  ;;  %v9656_v26 = vsel %vm9390_vm0, %v7491_v49, -inf  ;;  %v9659_v10 = vsel %vm9390_vm0, %v7499_v22, -inf }
 0x478   : > { %v12289_v50 = vsel %vm12217_vm6, %v10767_v51, %v12288_v57  ;;  %v10806_v52 = vrot.slane %v10805_v35, 2  ;;  %v10812_v56 = vmax.f32 %v10810_v5, %v10811_v25  ;;  %v10819_v19 = vmax.f32 %v10817_v23, %v10818_v12  ;;  %v5980_v25 = vpop.f32.mrf.mxu1 }
 0x479   : > { %v12290_v46 = vsel %vm12219_vm7, %v10774_v62, %v12289_v50  ;;  %v10825_v39 = vrot.slane %v10824_v8, 4  ;;  %v9657_v34 = vmax.f32 %v19121_v15, %v9656_v26  ;;  %v9660_v17 = vmax.f32 %v19150_v63, %v9659_v10 }
 0x47a   : > { %v9664_v33 = vsel %vm9390_vm0, %v7432_v31, -inf  ;;  %12481 = vst.msk [vmem:[%s18362_s24 + $0x50] sm:$0xff] %vm12470_vm8, %v12290_v46  ;;  %v10813_v3 = vrot.slane %v10812_v56, 2  ;;  %v10820_v51 = vrot.slane %v10819_v19, 2  ;;  %v9662_v27 = vsel %vm9390_vm0, %v7498_v24, -inf }
 0x47b   : > { %v10826_v60 = vmax.f32 %v10824_v8, %v10825_v39  ;;  %v9663_v62 = vmax.f32 %v19154_v42, %v9662_v27  ;;  %v9665_v7 = vsel %vm9390_vm0, %v7500_v37, -inf  ;;  %v10775_v15 = vsel %vm9390_vm0, %v9657_v34, -inf  ;;  %v22404_v42 = vld [vmem:[#allocation241_spill] sm:$0xff]  ;;  %v22406_v8 = vld [vmem:[#allocation242_spill] sm:$0xff] }
 0x47c   : > { %v10807_v63 = vmax.f32 %v10805_v35, %v10806_v52  ;;  %v10814_v61 = vmax.f32 %v10812_v56, %v10813_v3  ;;  %v9666_v14 = vmax.f32 %v9664_v33, %v9665_v7  ;;  %v5975_v38 = vadd.f32 %v14675_v20, %v19101_v40 }
 0x47d   : > { %v10827_v31 = vrot.slane %v10826_v60, 2  ;;  %v10776_v30 = vrot.slane %v10775_v15, 4  ;;  %v10782_v1 = vsel %vm9390_vm0, %v9660_v17, -inf  ;;  %v10789_v49 = vsel %vm9390_vm0, %v9663_v62, -inf }
 0x47e   : > { %v5120_v21 = vadd.f32 %v5119_v0, %v22403_v47  ;;  %v5138_v13 = vadd.f32 %v14454_v32, %v22404_v42  ;;  %v10821_v28 = vmax.f32 %v10819_v19, %v10820_v51  ;;  %v10783_v9 = vrot.slane %v10782_v1, 4  ;;  %v5143_v0 = vpop.f32.mrf.mxu0  ;;  %v22407_v51 = vld [vmem:[#allocation217_spill] sm:$0xff]  ;;  %v22408_v42 = vld [vmem:[#allocation247_spill] sm:$0xff] }
 0x47f   : > { %v10828_v53 = vmax.f32 %v10826_v60, %v10827_v31  ;;  %v10777_v24 = vmax.f32 %v10775_v15, %v10776_v30  ;;  %v10790_v48 = vrot.slane %v10789_v49, 4  ;;  %v10796_v54 = vsel %vm9390_vm0, %v9666_v14, -inf  ;;  %v14681_v60 = vpop.f32.mrf.mxu1 }
 0x480   : > { %v10808_v40 = vrot.slane %v10807_v63, 1  ;;  %v5132_v16 = vadd.f32 %v5131_v58, %v22405_v44  ;;  %v10784_v45 = vmax.f32 %v10782_v1, %v10783_v9  ;;  %v10797_v18 = vrot.slane %v10796_v54, 4  ;;  %v14460_v19 = vpop.f32.mrf.mxu0 }
 0x481   : > { %v10815_v59 = vrot.slane %v10814_v61, 1  ;;  %v10778_v36 = vrot.slane %v10777_v24, 2  ;;  %v10791_v41 = vmax.f32 %v10789_v49, %v10790_v48  ;;  %v6495_v22 = vmax.f32 %v5975_v38, 0.0 }
 0x482   : > { %v10822_v37 = vrot.slane %v10821_v28, 1  ;;  %v10785_v29 = vrot.slane %v10784_v45, 2  ;;  %v10798_v32 = vmax.f32 %v10796_v54, %v10797_v18  ;;  %v5969_v6 = vadd.f32 %v5968_v2, %v5120_v21 }
 0x483   : > { %v10829_v5 = vrot.slane %v10828_v53, 1  ;;  %v10779_v23 = vmax.f32 %v10777_v24, %v10778_v36  ;;  %v10792_v4 = vrot.slane %v10791_v41, 2  ;;  %v7535_v35 = vcombine.high %v6495_v22, %v6495_v22 }
 0x484   : > { %v10786_v12 = vmax.f32 %v10784_v45, %v10785_v29  ;;  %v10799_v57 = vrot.slane %v10798_v32, 2  ;;  %v5150_v26 = vadd.f32 %v14457_v43, %v22406_v8  ;;  %v6494_v10 = vmax.f32 %v5969_v6, 0.0  ;;  %v22409_v29 = vld [vmem:[#allocation219_spill] sm:$0xff] }
 0x485   : > { %v10809_v20 = vmax.f32 %v10807_v63, %v10808_v40  ;;  %v10780_v50 = vrot.slane %v10779_v23, 1  ;;  %v10793_v52 = vmax.f32 %v10791_v41, %v10792_v4  ;;  %v7542_v56 = vrot.slane %v6495_v22, %v18149_v11 }
 0x486   : > { %v10816_v46 = vmax.f32 %v10814_v61, %v10815_v59  ;;  %v10787_v39 = vrot.slane %v10786_v12, 1  ;;  %v10800_v58 = vmax.f32 %v10798_v32, %v10799_v57  ;;  %v7549_v34 = vrot.slane %v7535_v35, %v18149_v11  ;;  %v5155_v61 = vpop.f32.mrf.mxu0 }
 0x487   : > { %v10823_v17 = vmax.f32 %v10821_v28, %v10822_v37  ;;  %v10830_v33 = vmax.f32 %v10828_v53, %v10829_v5  ;;  %v10794_v3 = vrot.slane %v10793_v52, 1  ;;  %v5144_v27 = vadd.f32 %v5143_v0, %v22407_v51  ;;  %v5992_v53 = vpop.f32.mrf.mxu1  ;;  %v22411_v51 = vld [vmem:[#allocation221_spill] sm:$0xff] }
 0x488   : > { %v10781_v62 = vmax.f32 %v10779_v23, %v10780_v50  ;;  %v10788_v7 = vmax.f32 %v10786_v12, %v10787_v39  ;;  %v10801_v15 = vrot.slane %v10800_v58, 1  ;;  %v7518_v2 = vcombine.high %v6494_v10, %v6494_v10  ;;  %v14463_v18 = vpop.f32.mrf.mxu0 }
 0x489   : > { %v10795_v63 = vmax.f32 %v10793_v52, %v10794_v3  ;;  %v7550_v14 = vcombine.high %v7542_v56, %v7542_v56  ;;  %v7525_v38 = vrot.slane %v6494_v10, %v18149_v11  ;;  %v5987_v31 = vadd.f32 %v14678_v55, %v5138_v13  ;;  %v14684_v6 = vpop.f32.mrf.mxu1 }
 0x48a   : > { %v10802_v30 = vmax.f32 %v10800_v58, %v10801_v15  ;;  %v12291_v1 = vsel %vm12207_vm1, %v10788_v7, %v10781_v62  ;;  %v7551_v49 = vcombine.high %v7549_v34, %v7549_v34  ;;  %v7532_v43 = vrot.slane %v7518_v2, %v18149_v11  ;;  %v5167_v10 = vpop.f32.mrf.mxu0 }
 0x48b   : > { %v12292_v47 = vsel %vm12209_vm2, %v10795_v63, %v12291_v1  ;;  %v19211_v21 = vsel %vm9390_vm0, %v7542_v56, -inf  ;;  %v5162_v28 = vadd.f32 %v14460_v19, %v22408_v42  ;;  %v6497_v9 = vmax.f32 %v5987_v31, 0.0 }
 0x48c   : > { %v12293_v24 = vsel %vm12211_vm3, %v10802_v30, %v12292_v47  ;;  %v19216_v13 = vsel %vm9390_vm0, %v7549_v34, -inf  ;;  %v7533_v48 = vcombine.high %v7525_v38, %v7525_v38  ;;  %v5981_v54 = vadd.f32 %v5980_v25, %v5132_v16  ;;  %v6004_v34 = vpop.f32.mrf.mxu1 }
 0x48d   : > { %v12294_v55 = vsel %vm12213_vm4, %v10809_v20, %v12293_v24  ;;  %v7534_v40 = vcombine.high %v7532_v43, %v7532_v43  ;;  %v7569_v44 = vcombine.high %v6497_v9, %v6497_v9  ;;  %v7576_v45 = vrot.slane %v6497_v9, %v18149_v11 }
 0x48e   : > { %v12295_v59 = vsel %vm12215_vm5, %v10816_v46, %v12294_v55  ;;  %v9694_v36 = vsel %vm9390_vm0, %v7550_v14, -inf  ;;  %v19223_v41 = vsel %vm9390_vm0, %v7551_v49, -inf  ;;  %v6496_v22 = vmax.f32 %v5981_v54, 0.0 }
 0x48f   : > { %v12296_v0 = vsel %vm12217_vm6, %v10823_v17, %v12295_v59  ;;  %v7583_v16 = vrot.slane %v7569_v44, %v18149_v11  ;;  %v7584_v37 = vcombine.high %v7576_v45, %v7576_v45  ;;  %v5156_v32 = vadd.f32 %v5155_v61, %v22409_v29 }
 0x490   : > { %v12297_v5 = vsel %vm12219_vm7, %v10830_v33, %v12296_v0  ;;  %v7552_v23 = vcombine.high %v6496_v22, %v6496_v22  ;;  %v19230_v4 = vrot.slane %v6496_v22, %v18149_v11  ;;  %v5999_v35 = vadd.f32 %v14681_v60, %v5150_v26  ;;  %v22410_v26 = vld [vmem:[#allocation249_spill] sm:$0xff] }
 0x491   : > { %12482 = vst.msk [vmem:[%s18362_s24 + $0x58] sm:$0xff] %vm12470_vm8, %v12297_v5  ;;  %v19235_v25 = vsel %vm9390_vm0, %v7525_v38, -inf  ;;  %v19238_v12 = vsel %vm9390_vm0, %v7533_v48, -inf  ;;  %v19241_v57 = vsel %vm9390_vm0, %v7532_v43, -inf  ;;  %v19244_v8 = vsel %vm9390_vm0, %v7534_v40, -inf }
 0x492   : > { %v7585_v20 = vcombine.high %v7583_v16, %v7583_v16  ;;  %v19247_v50 = vrot.slane %v7552_v23, %v18149_v11  ;;  %v19250_v52 = vadd.f32 %v14463_v18, %v22410_v26  ;;  %v6499_v56 = vmax.f32 %v5999_v35, 0.0 }
 0x493   : > { %v19253_v19 = vsel %vm9390_vm0, %v7576_v45, -inf  ;;  %v19256_v46 = vsel %vm9390_vm0, %v7584_v37, -inf  ;;  %v5993_v39 = vadd.f32 %v5992_v53, %v5144_v27  ;;  %v6011_v58 = vadd.f32 %v14684_v6, %v5162_v28 }
 0x494   : > { %v19259_v17 = vsel %vm9390_vm0, %v7583_v16, -inf  ;;  %v7567_v33 = vcombine.high %v19230_v4, %v19230_v4  ;;  %v7603_v3 = vcombine.high %v6499_v56, %v6499_v56  ;;  %v19264_v60 = vadd.f32 %v5167_v10, %v22411_v51 }
 0x495   : > { %v19268_v62 = vsel %vm9390_vm0, %v19230_v4, -inf  ;;  %v7610_v7 = vrot.slane %v6499_v56, %v18149_v11  ;;  %v6498_v15 = vmax.f32 %v5993_v39, 0.0  ;;  %v19271_v27 = vmax.f32 %v6011_v58, 0.0  ;;  %v22412_v4 = vld [vmem:[#allocation253_spill] sm:$0xff] }
 0x496   : > { %v19274_v2 = vsel %vm9390_vm0, %v7585_v20, -inf  ;;  %v7568_v63 = vcombine.high %v19247_v50, %v19247_v50  ;;  %v7617_v14 = vrot.slane %v7603_v3, %v18149_v11  ;;  %v19279_v38 = vadd.f32 %v6004_v34, %v5156_v32 }
 0x497   : > { %v7618_v31 = vcombine.high %v7610_v7, %v7610_v7  ;;  %v9692_v61 = vsel %vm9390_vm0, %v7610_v7, -inf  ;;  %v7586_v30 = vcombine.high %v6498_v15, %v6498_v15  ;;  %v7593_v1 = vrot.slane %v6498_v15, %v18149_v11 }
 0x498   : > { %v7619_v49 = vcombine.high %v7617_v14, %v7617_v14  ;;  %v9693_v43 = vmax.f32 %v19211_v21, %v9692_v61  ;;  %v9698_v47 = vsel %vm9390_vm0, %v7617_v14, -inf  ;;  %v7637_v42 = vcombine.high %v19271_v27, %v19271_v27 }
 0x499   : > { %v9695_v28 = vsel %vm9390_vm0, %v7618_v31, -inf  ;;  %v9699_v9 = vmax.f32 %v19216_v13, %v9698_v47  ;;  %v7600_v53 = vrot.slane %v7586_v30, %v18149_v11  ;;  %v7601_v24 = vcombine.high %v7593_v1, %v7593_v1 }
 0x49a   : > { %v9696_v48 = vmax.f32 %v9694_v36, %v9695_v28  ;;  %v9701_v54 = vsel %vm9390_vm0, %v7619_v49, -inf  ;;  %v10859_v55 = vsel %vm9390_vm0, %v9693_v43, -inf  ;;  %v9680_v40 = vsel %vm9390_vm0, %v7593_v1, -inf }
 0x49b   : > { %v9702_v21 = vmax.f32 %v19223_v41, %v9701_v54  ;;  %v10860_v44 = vrot.slane %v10859_v55, 4  ;;  %v10873_v45 = vsel %vm9390_vm0, %v9699_v9, -inf  ;;  %v7602_v18 = vcombine.high %v7600_v53, %v7600_v53 }
 0x49c   : > { %v10866_v59 = vsel %vm9390_vm0, %v9696_v48, -inf  ;;  %v10874_v22 = vrot.slane %v10873_v45, 4  ;;  %v9681_v13 = vmax.f32 %v19235_v25, %v9680_v40  ;;  %v9683_v0 = vsel %vm9390_vm0, %v7601_v24, -inf }
 0x49d   : > { %v10861_v36 = vmax.f32 %v10859_v55, %v10860_v44  ;;  %v10867_v16 = vrot.slane %v10866_v59, 4  ;;  %v10880_v37 = vsel %vm9390_vm0, %v9702_v21, -inf  ;;  %v9684_v29 = vmax.f32 %v19238_v12, %v9683_v0 }
 0x49e   : > { %v10875_v32 = vmax.f32 %v10873_v45, %v10874_v22  ;;  %v10881_v6 = vrot.slane %v10880_v37, 4  ;;  %v9686_v41 = vsel %vm9390_vm0, %v7600_v53, -inf  ;;  %v9689_v5 = vsel %vm9390_vm0, %v7602_v18, -inf }
 0x49f   : > { %v10862_v23 = vrot.slane %v10861_v36, 2  ;;  %v10868_v35 = vmax.f32 %v10866_v59, %v10867_v16  ;;  %v9687_v10 = vmax.f32 %v19241_v57, %v9686_v41  ;;  %v9690_v25 = vmax.f32 %v19244_v8, %v9689_v5 }
 0x4a0   : > { %v10876_v20 = vrot.slane %v10875_v32, 2  ;;  %v10882_v26 = vmax.f32 %v10880_v37, %v10881_v6  ;;  %v10831_v56 = vsel %vm9390_vm0, %v9681_v13, -inf  ;;  %v10838_v39 = vsel %vm9390_vm0, %v9684_v29, -inf }
 0x4a1   : > { %v10863_v58 = vmax.f32 %v10861_v36, %v10862_v23  ;;  %v10869_v12 = vrot.slane %v10868_v35, 2  ;;  %v10832_v34 = vrot.slane %v10831_v56, 4  ;;  %v10839_v3 = vrot.slane %v10838_v39, 4 }
 0x4a2   : > { %v10877_v51 = vmax.f32 %v10875_v32, %v10876_v20  ;;  %v10883_v7 = vrot.slane %v10882_v26, 2  ;;  %v10845_v15 = vsel %vm9390_vm0, %v9687_v10, -inf  ;;  %v10852_v14 = vsel %vm9390_vm0, %v9690_v25, -inf }
 0x4a3   : > { %v10864_v31 = vrot.slane %v10863_v58, 1  ;;  %v10870_v57 = vmax.f32 %v10868_v35, %v10869_v12  ;;  %v10833_v61 = vmax.f32 %v10831_v56, %v10832_v34  ;;  %v10840_v8 = vmax.f32 %v10838_v39, %v10839_v3 }
 0x4a4   : > { %v10878_v30 = vrot.slane %v10877_v51, 1  ;;  %v10884_v1 = vmax.f32 %v10882_v26, %v10883_v7  ;;  %v10846_v49 = vrot.slane %v10845_v15, 4  ;;  %v10853_v43 = vrot.slane %v10852_v14, 4 }
 0x4a5   : > { %v10865_v47 = vmax.f32 %v10863_v58, %v10864_v31  ;;  %v10871_v28 = vrot.slane %v10870_v57, 1  ;;  %v10834_v9 = vrot.slane %v10833_v61, 2  ;;  %v10841_v53 = vrot.slane %v10840_v8, 2 }
 0x4a6   : > { %v10879_v24 = vmax.f32 %v10877_v51, %v10878_v30  ;;  %v10885_v48 = vrot.slane %v10884_v1, 1  ;;  %v10847_v54 = vmax.f32 %v10845_v15, %v10846_v49  ;;  %v10854_v55 = vmax.f32 %v10852_v14, %v10853_v43  ;;  %v14466_v51 = vpop.f32.mrf.mxu0 }
 0x4a7   : > { %v10872_v40 = vmax.f32 %v10870_v57, %v10871_v28  ;;  %v10835_v21 = vmax.f32 %v10833_v61, %v10834_v9  ;;  %v10842_v44 = vmax.f32 %v10840_v8, %v10841_v53  ;;  %v7644_v45 = vrot.slane %v19271_v27, %v18149_v11 }
 0x4a8   : > { %v10886_v18 = vmax.f32 %v10884_v1, %v10885_v48  ;;  %v10848_v59 = vrot.slane %v10847_v54, 2  ;;  %v10855_v22 = vrot.slane %v10854_v55, 2  ;;  %v7651_v13 = vrot.slane %v7637_v42, %v18149_v11  ;;  %v5179_v48 = vpop.f32.mrf.mxu0 }
 0x4a9   : > { %v10836_v0 = vrot.slane %v10835_v21, 1  ;;  %v10843_v36 = vrot.slane %v10842_v44, 1  ;;  %v7652_v16 = vcombine.high %v7644_v45, %v7644_v45  ;;  %v9716_v37 = vsel %vm9390_vm0, %v7644_v45, -inf }
 0x4aa   : > { %v10849_v29 = vmax.f32 %v10847_v54, %v10848_v59  ;;  %v10856_v32 = vmax.f32 %v10854_v55, %v10855_v22  ;;  %v7653_v6 = vcombine.high %v7651_v13, %v7651_v13  ;;  %v9717_v41 = vmax.f32 %v19253_v19, %v9716_v37  ;;  %v14687_v59 = vpop.f32.mrf.mxu1 }
 0x4ab   : > { %v10837_v5 = vmax.f32 %v10835_v21, %v10836_v0  ;;  %v10844_v23 = vmax.f32 %v10842_v44, %v10843_v36  ;;  %v9719_v35 = vsel %vm9390_vm0, %v7652_v16, -inf  ;;  %v9722_v10 = vsel %vm9390_vm0, %v7651_v13, -inf }
 0x4ac   : > { %v10850_v25 = vrot.slane %v10849_v29, 1  ;;  %v10857_v20 = vrot.slane %v10856_v32, 1  ;;  %v9720_v27 = vmax.f32 %v19256_v46, %v9719_v35  ;;  %v9723_v42 = vmax.f32 %v19259_v17, %v9722_v10  ;;  %v6016_v10 = vpop.f32.mrf.mxu1 }
 0x4ad   : > { %v12298_v26 = vsel %vm12207_vm1, %v10844_v23, %v10837_v5  ;;  %v9725_v56 = vsel %vm9390_vm0, %v7653_v6, -inf  ;;  %v10915_v39 = vsel %vm9390_vm0, %v9717_v41, -inf  ;;  %v6500_v19 = vmax.f32 %v19279_v38, 0.0  ;;  %v14469_v6 = vpop.f32.mrf.mxu0  ;;  %v22413_v5 = vld [vmem:[#allocation223_spill] sm:$0xff] }
 0x4ae   : > { %v10851_v58 = vmax.f32 %v10849_v29, %v10850_v25  ;;  %v10858_v12 = vmax.f32 %v10856_v32, %v10857_v20  ;;  %v9726_v34 = vmax.f32 %v19274_v2, %v9725_v56  ;;  %v10916_v3 = vrot.slane %v10915_v39, 4 }
 0x4af   : > { %v10922_v7 = vsel %vm9390_vm0, %v9720_v27, -inf  ;;  %v10929_v46 = vsel %vm9390_vm0, %v9723_v42, -inf  ;;  %v7620_v15 = vcombine.high %v6500_v19, %v6500_v19  ;;  %v7627_v17 = vrot.slane %v6500_v19, %v18149_v11  ;;  %v22414_v19 = vld [vmem:[#allocation256_spill] sm:$0xff] }
 0x4b0   : > { %v12299_v14 = vsel %vm12209_vm2, %v10851_v58, %v12298_v26  ;;  %v10917_v31 = vmax.f32 %v10915_v39, %v10916_v3  ;;  %v10923_v57 = vrot.slane %v10922_v7, 4  ;;  %v10930_v61 = vrot.slane %v10929_v46, 4 }
 0x4b1   : > { %v12300_v38 = vsel %vm12211_vm3, %v10858_v12, %v12299_v14  ;;  %v10936_v8 = vsel %vm9390_vm0, %v9726_v34, -inf  ;;  %v7634_v2 = vrot.slane %v7620_v15, %v18149_v11  ;;  %v7635_v30 = vcombine.high %v7627_v17, %v7627_v17  ;;  %v14690_v15 = vpop.f32.mrf.mxu1 }
 0x4b2   : > { %v12301_v1 = vsel %vm12213_vm4, %v10865_v47, %v12300_v38  ;;  %v10918_v49 = vrot.slane %v10917_v31, 2  ;;  %v10924_v43 = vmax.f32 %v10922_v7, %v10923_v57  ;;  %v10931_v28 = vmax.f32 %v10929_v46, %v10930_v61 }
 0x4b3   : > { %v12302_v9 = vsel %vm12215_vm5, %v10872_v40, %v12301_v1  ;;  %v10937_v53 = vrot.slane %v10936_v8, 4  ;;  %v7636_v54 = vcombine.high %v7634_v2, %v7634_v2  ;;  %v9704_v55 = vsel %vm9390_vm0, %v7627_v17, -inf }
 0x4b4   : > { %v9706_v21 = vsel %vm9390_vm0, %v7567_v33, -inf  ;;  %v12303_v44 = vsel %vm12217_vm6, %v10879_v24, %v12302_v9  ;;  %v10919_v45 = vmax.f32 %v10917_v31, %v10918_v49  ;;  %v10925_v47 = vrot.slane %v10924_v43, 2 }
 0x4b5   : > { %v12304_v22 = vsel %vm12219_vm7, %v10886_v18, %v12303_v44  ;;  %v10938_v13 = vmax.f32 %v10936_v8, %v10937_v53  ;;  %v9705_v40 = vmax.f32 %v19268_v62, %v9704_v55  ;;  %v9707_v0 = vsel %vm9390_vm0, %v7635_v30, -inf }
 0x4b6   : > { %v9709_v36 = vsel %vm9390_vm0, %v19247_v50, -inf  ;;  %12483 = vst.msk [vmem:[%s18362_s24 + $0x60] sm:$0xff] %vm12470_vm8, %v12304_v22  ;;  %v5186_v16 = vadd.f32 %v14466_v51, %v22412_v4  ;;  %v10932_v33 = vrot.slane %v10931_v28, 2  ;;  %v9708_v37 = vmax.f32 %v9706_v21, %v9707_v0 }
 0x4b7   : > { %v10926_v24 = vmax.f32 %v10924_v43, %v10925_v47  ;;  %v9710_v29 = vsel %vm9390_vm0, %v7634_v2, -inf  ;;  %v9713_v32 = vsel %vm9390_vm0, %v7636_v54, -inf  ;;  %v10887_v18 = vsel %vm9390_vm0, %v9705_v40, -inf  ;;  %v5191_v43 = vpop.f32.mrf.mxu0  ;;  %v6028_v54 = vpop.f32.mrf.mxu1 }
 0x4b8   : > { %v9712_v62 = vsel %vm9390_vm0, %v7568_v63, -inf  ;;  %v10920_v41 = vrot.slane %v10919_v45, 1  ;;  %v19356_v23 = vadd.f32 %v5179_v48, %v22413_v5  ;;  %v9711_v35 = vmax.f32 %v9709_v36, %v9710_v29 }
 0x4b9   : > { %v10939_v25 = vrot.slane %v10938_v13, 2  ;;  %v9714_v20 = vmax.f32 %v9712_v62, %v9713_v32  ;;  %v10888_v27 = vrot.slane %v10887_v18, 4  ;;  %v10894_v42 = vsel %vm9390_vm0, %v9708_v37, -inf  ;;  %v14472_v36 = vpop.f32.mrf.mxu0  ;;  %v14693_v32 = vpop.f32.mrf.mxu1 }
 0x4ba   : > { %v10933_v26 = vmax.f32 %v10931_v28, %v10932_v33  ;;  %v10895_v56 = vrot.slane %v10894_v42, 4  ;;  %v10901_v39 = vsel %vm9390_vm0, %v9711_v35, -inf  ;;  %v19361_v58 = vadd.f32 %v14469_v6, %v22414_v19 }
 0x4bb   : > { %v10927_v50 = vrot.slane %v10926_v24, 1  ;;  %v10889_v63 = vmax.f32 %v10887_v18, %v10888_v27  ;;  %v10902_v12 = vrot.slane %v10901_v39, 4  ;;  %v10908_v34 = vsel %vm9390_vm0, %v9714_v20, -inf  ;;  %v22416_v20 = vld [vmem:[#allocation259_spill] sm:$0xff] }
 0x4bc   : > { %v10921_v3 = vmax.f32 %v10919_v45, %v10920_v41  ;;  %v10896_v51 = vmax.f32 %v10894_v42, %v10895_v56  ;;  %v10909_v7 = vrot.slane %v10908_v34, 4  ;;  %v6023_v46 = vadd.f32 %v14687_v59, %v19250_v52  ;;  %v22415_v41 = vld [vmem:[#allocation226_spill] sm:$0xff] }
 0x4bd   : > { %v10940_v17 = vmax.f32 %v10938_v13, %v10939_v25  ;;  %v10890_v14 = vrot.slane %v10889_v63, 2  ;;  %v10903_v31 = vmax.f32 %v10901_v39, %v10902_v12  ;;  %v6017_v57 = vadd.f32 %v6016_v10, %v19264_v60  ;;  %v5203_v39 = vpop.f32.mrf.mxu0 }
 0x4be   : > { %v10934_v61 = vrot.slane %v10933_v26, 1  ;;  %v10897_v38 = vrot.slane %v10896_v51, 2  ;;  %v10910_v8 = vmax.f32 %v10908_v34, %v10909_v7  ;;  %v6503_v2 = vmax.f32 %v6023_v46, 0.0  ;;  %v6040_v34 = vpop.f32.mrf.mxu1 }
 0x4bf   : > { %v10928_v30 = vmax.f32 %v10926_v24, %v10927_v50  ;;  %v10891_v1 = vmax.f32 %v10889_v63, %v10890_v14  ;;  %v10904_v49 = vrot.slane %v10903_v31, 2  ;;  %v6502_v28 = vmax.f32 %v6017_v57, 0.0 }
 0x4c0   : > { %v10898_v9 = vmax.f32 %v10896_v51, %v10897_v38  ;;  %v10911_v53 = vrot.slane %v10910_v8, 2  ;;  %v7671_v48 = vcombine.high %v6503_v2, %v6503_v2  ;;  %v7678_v52 = vrot.slane %v6503_v2, %v18149_v11 }
 0x4c1   : > { %v10941_v55 = vrot.slane %v10940_v17, 1  ;;  %v10892_v21 = vrot.slane %v10891_v1, 1  ;;  %v10905_v44 = vmax.f32 %v10903_v31, %v10904_v49  ;;  %v7654_v45 = vcombine.high %v6502_v28, %v6502_v28 }
 0x4c2   : > { %v10935_v60 = vmax.f32 %v10933_v26, %v10934_v61  ;;  %v10899_v47 = vrot.slane %v10898_v9, 1  ;;  %v10912_v59 = vmax.f32 %v10910_v8, %v10911_v53  ;;  %v7685_v22 = vrot.slane %v7671_v48, %v18149_v11  ;;  %v22417_v48 = vld [vmem:[#allocation227_spill] sm:$0xff] }
 0x4c3   : > { %v10906_v13 = vrot.slane %v10905_v44, 1  ;;  %v7686_v40 = vcombine.high %v7678_v52, %v7678_v52  ;;  %v7661_v0 = vrot.slane %v6502_v28, %v18149_v11  ;;  %v6035_v4 = vadd.f32 %v14690_v15, %v5186_v16 }
 0x4c4   : > { %v10893_v33 = vmax.f32 %v10891_v1, %v10892_v21  ;;  %v10900_v37 = vmax.f32 %v10898_v9, %v10899_v47  ;;  %v10913_v24 = vrot.slane %v10912_v59, 1  ;;  %v7668_v29 = vrot.slane %v7654_v45, %v18149_v11 }
 0x4c5   : > { %v10942_v18 = vmax.f32 %v10940_v17, %v10941_v55  ;;  %v10907_v6 = vmax.f32 %v10905_v44, %v10906_v13  ;;  %v7687_v62 = vcombine.high %v7685_v22, %v7685_v22  ;;  %v5192_v5 = vadd.f32 %v5191_v43, %v22415_v41 }
 0x4c6   : > { %v10914_v35 = vmax.f32 %v10912_v59, %v10913_v24  ;;  %v12305_v10 = vsel %vm12207_vm1, %v10900_v37, %v10893_v33  ;;  %v9739_v25 = vsel %vm9390_vm0, %v7678_v52, -inf  ;;  %v19374_v27 = vadd.f32 %v14472_v36, %v22416_v20 }
 0x4c7   : > { %v12306_v16 = vsel %vm12209_vm2, %v10907_v6, %v12305_v10  ;;  %v9742_v42 = vsel %vm9390_vm0, %v7686_v40, -inf  ;;  %v9745_v26 = vsel %vm9390_vm0, %v7685_v22, -inf  ;;  %v7669_v56 = vcombine.high %v7661_v0, %v7661_v0 }
 0x4c8   : > { %v12307_v19 = vsel %vm12211_vm3, %v10914_v35, %v12306_v16  ;;  %v7670_v50 = vcombine.high %v7668_v29, %v7668_v29  ;;  %v6505_v63 = vmax.f32 %v6035_v4, 0.0  ;;  %v6029_v12 = vadd.f32 %v6028_v54, %v19356_v23  ;;  %v22418_v54 = vld [vmem:[#allocation262_spill] sm:$0xff] }
 0x4c9   : > { %v12308_v51 = vsel %vm12213_vm4, %v10921_v3, %v12307_v19  ;;  %v9748_v7 = vsel %vm9390_vm0, %v7687_v62, -inf  ;;  %v19384_v46 = vsel %vm9390_vm0, %v7661_v0, -inf  ;;  %v6047_v15 = vadd.f32 %v14693_v32, %v19361_v58  ;;  %v14475_v3 = vpop.f32.mrf.mxu0 }
 0x4ca   : > { %v12309_v17 = vsel %vm12215_vm5, %v10928_v30, %v12308_v51  ;;  %v7705_v14 = vcombine.high %v6505_v63, %v6505_v63  ;;  %v7712_v31 = vrot.slane %v6505_v63, %v18149_v11  ;;  %v6504_v57 = vmax.f32 %v6029_v12, 0.0 }
 0x4cb   : > { %v12310_v61 = vsel %vm12217_vm6, %v10935_v60, %v12309_v17  ;;  %v19391_v23 = vsel %vm9390_vm0, %v7669_v56, -inf  ;;  %v6507_v38 = vmax.f32 %v6047_v15, 0.0  ;;  %v6041_v8 = vadd.f32 %v6040_v34, %v5192_v5 }
 0x4cc   : > { %v12311_v2 = vsel %vm12219_vm7, %v10942_v18, %v12310_v61  ;;  %v19395_v1 = vsel %vm9390_vm0, %v7668_v29, -inf  ;;  %v7719_v58 = vrot.slane %v7705_v14, %v18149_v11  ;;  %v7720_v30 = vcombine.high %v7712_v31, %v7712_v31 }
 0x4cd   : > { %12484 = vst.msk [vmem:[%s18362_s24 + $0x68] sm:$0xff] %vm12470_vm8, %v12311_v2  ;;  %v7688_v49 = vcombine.high %v6504_v57, %v6504_v57  ;;  %v19401_v43 = vrot.slane %v6504_v57, %v18149_v11  ;;  %v7739_v28 = vcombine.high %v6507_v38, %v6507_v38  ;;  %v7746_v9 = vrot.slane %v6507_v38, %v18149_v11 }
 0x4ce   : > { %v19405_v53 = vsel %vm9390_vm0, %v7670_v50, -inf  ;;  %v19408_v52 = vadd.f32 %v5203_v39, %v22417_v48  ;;  %v19411_v55 = vadd.f32 %v14475_v3, %v22418_v54  ;;  %v6506_v21 = vmax.f32 %v6041_v8, 0.0 }
 0x4cf   : > { %v7721_v44 = vcombine.high %v7719_v58, %v7719_v58  ;;  %v19414_v45 = vsel %vm9390_vm0, %v7712_v31, -inf  ;;  %v19417_v60 = vsel %vm9390_vm0, %v7720_v30, -inf  ;;  %v7753_v47 = vrot.slane %v7739_v28, %v18149_v11 }
 0x4d0   : > { %v19421_v59 = vsel %vm9390_vm0, %v7719_v58, -inf  ;;  %v7754_v22 = vcombine.high %v7746_v9, %v7746_v9  ;;  %v9740_v13 = vsel %vm9390_vm0, %v7746_v9, -inf  ;;  %v7722_v40 = vcombine.high %v6506_v21, %v6506_v21 }
 0x4d1   : > { %v19425_v0 = vrot.slane %v7688_v49, %v18149_v11  ;;  %v7703_v36 = vcombine.high %v19401_v43, %v19401_v43  ;;  %v19431_v4 = vsel %vm9390_vm0, %v19401_v43, -inf  ;;  %v7755_v33 = vcombine.high %v7753_v47, %v7753_v47 }
 0x4d2   : > { %v9741_v37 = vmax.f32 %v9739_v25, %v9740_v13  ;;  %v9743_v24 = vsel %vm9390_vm0, %v7754_v22, -inf  ;;  %v9746_v29 = vsel %vm9390_vm0, %v7753_v47, -inf  ;;  %v7729_v32 = vrot.slane %v6506_v21, %v18149_v11 }
 0x4d3   : > { %v19437_v18 = vsel %vm9390_vm0, %v7721_v44, -inf  ;;  %v9744_v6 = vmax.f32 %v9742_v42, %v9743_v24  ;;  %v9747_v62 = vmax.f32 %v9745_v26, %v9746_v29  ;;  %v9749_v41 = vsel %vm9390_vm0, %v7755_v33, -inf }
 0x4d4   : > { %v9750_v5 = vmax.f32 %v9748_v7, %v9749_v41  ;;  %v10971_v35 = vsel %vm9390_vm0, %v9741_v37, -inf  ;;  %v7736_v10 = vrot.slane %v7722_v40, %v18149_v11  ;;  %v7737_v20 = vcombine.high %v7729_v32, %v7729_v32 }
 0x4d5   : > { %v10972_v25 = vrot.slane %v10971_v35, 4  ;;  %v10978_v16 = vsel %vm9390_vm0, %v9744_v6, -inf  ;;  %v10985_v56 = vsel %vm9390_vm0, %v9747_v62, -inf  ;;  %v9728_v39 = vsel %vm9390_vm0, %v7729_v32, -inf }
 0x4d6   : > { %v10979_v19 = vrot.slane %v10978_v16, 4  ;;  %v10986_v50 = vrot.slane %v10985_v56, 4  ;;  %v10992_v42 = vsel %vm9390_vm0, %v9750_v5, -inf  ;;  %v7738_v26 = vcombine.high %v7736_v10, %v7736_v10 }
 0x4d7   : > { %v10973_v63 = vmax.f32 %v10971_v35, %v10972_v25  ;;  %v10993_v12 = vrot.slane %v10992_v42, 4  ;;  %v9729_v34 = vmax.f32 %v19384_v46, %v9728_v39  ;;  %v9731_v51 = vsel %vm9390_vm0, %v7737_v20, -inf }
 0x4d8   : > { %v10980_v7 = vmax.f32 %v10978_v16, %v10979_v19  ;;  %v10987_v15 = vmax.f32 %v10985_v56, %v10986_v50  ;;  %v9732_v17 = vmax.f32 %v19391_v23, %v9731_v51  ;;  %v9734_v14 = vsel %vm9390_vm0, %v7736_v10, -inf  ;;  %v14696_v23 = vpop.f32.mrf.mxu1 }
 0x4d9   : > { %v10974_v31 = vrot.slane %v10973_v63, 2  ;;  %v10994_v57 = vmax.f32 %v10992_v42, %v10993_v12  ;;  %v9735_v61 = vmax.f32 %v19395_v1, %v9734_v14  ;;  %v9737_v3 = vsel %vm9390_vm0, %v7738_v26, -inf }
 0x4da   : > { %v10981_v38 = vrot.slane %v10980_v7, 2  ;;  %v10988_v8 = vrot.slane %v10987_v15, 2  ;;  %v9738_v2 = vmax.f32 %v19405_v53, %v9737_v3  ;;  %v10943_v46 = vsel %vm9390_vm0, %v9729_v34, -inf  ;;  %v6052_v32 = vpop.f32.mrf.mxu1 }
 0x4db   : > { %v10975_v58 = vmax.f32 %v10973_v63, %v10974_v31  ;;  %v10995_v30 = vrot.slane %v10994_v57, 2  ;;  %v10944_v49 = vrot.slane %v10943_v46, 4  ;;  %v10950_v43 = vsel %vm9390_vm0, %v9732_v17, -inf }
 0x4dc   : > { %v10982_v28 = vmax.f32 %v10980_v7, %v10981_v38  ;;  %v10989_v9 = vmax.f32 %v10987_v15, %v10988_v8  ;;  %v10951_v48 = vrot.slane %v10950_v43, 4  ;;  %v10957_v54 = vsel %vm9390_vm0, %v9735_v61, -inf }
 0x4dd   : > { %v10976_v1 = vrot.slane %v10975_v58, 1  ;;  %v10996_v21 = vmax.f32 %v10994_v57, %v10995_v30  ;;  %v10945_v44 = vmax.f32 %v10943_v46, %v10944_v49  ;;  %v10958_v47 = vrot.slane %v10957_v54, 4 }
 0x4de   : > { %v7704_v53 = vcombine.high %v19425_v0, %v19425_v0  ;;  %v10983_v22 = vrot.slane %v10982_v28, 1  ;;  %v10952_v13 = vmax.f32 %v10950_v43, %v10951_v48  ;;  %v10964_v40 = vsel %vm9390_vm0, %v9738_v2, -inf  ;;  %v5215_v2 = vpop.f32.mrf.mxu0 }
 0x4df   : > { %v19460_v33 = vsel %vm9390_vm0, %v7703_v36, -inf  ;;  %v10990_v37 = vrot.slane %v10989_v9, 1  ;;  %v10946_v24 = vrot.slane %v10945_v44, 2  ;;  %v10959_v29 = vmax.f32 %v10957_v54, %v10958_v47 }
 0x4e0   : > { %v19464_v6 = vsel %vm9390_vm0, %v19425_v0, -inf  ;;  %v10997_v62 = vrot.slane %v10996_v21, 1  ;;  %v10953_v41 = vrot.slane %v10952_v13, 2  ;;  %v10965_v5 = vrot.slane %v10964_v40, 4 }
 0x4e1   : > { %v10977_v35 = vmax.f32 %v10975_v58, %v10976_v1  ;;  %v10947_v10 = vmax.f32 %v10945_v44, %v10946_v24  ;;  %v10960_v20 = vrot.slane %v10959_v29, 2  ;;  %v6059_v25 = vadd.f32 %v14696_v23, %v19374_v27 }
 0x4e2   : > { %v10984_v16 = vmax.f32 %v10982_v28, %v10983_v22  ;;  %v10954_v56 = vmax.f32 %v10952_v13, %v10953_v41  ;;  %v10966_v36 = vmax.f32 %v10964_v40, %v10965_v5  ;;  %v6053_v39 = vadd.f32 %v6052_v32, %v19408_v52  ;;  %v14478_v40 = vpop.f32.mrf.mxu0 }
 0x4e3   : > { %v10991_v19 = vmax.f32 %v10989_v9, %v10990_v37  ;;  %v10948_v50 = vrot.slane %v10947_v10, 1  ;;  %v10961_v42 = vmax.f32 %v10959_v29, %v10960_v20  ;;  %v6509_v26 = vmax.f32 %v6059_v25, 0.0  ;;  %v14699_v25 = vpop.f32.mrf.mxu1 }
 0x4e4   : > { %v10998_v63 = vmax.f32 %v10996_v21, %v10997_v62  ;;  %v10955_v12 = vrot.slane %v10954_v56, 1  ;;  %v10967_v34 = vrot.slane %v10966_v36, 2  ;;  %v6508_v51 = vmax.f32 %v6053_v39, 0.0 }
 0x4e5   : > { %v10949_v7 = vmax.f32 %v10947_v10, %v10948_v50  ;;  %v10962_v15 = vrot.slane %v10961_v42, 1  ;;  %v7773_v17 = vcombine.high %v6509_v26, %v6509_v26  ;;  %v7780_v14 = vrot.slane %v6509_v26, %v18149_v11 }
 0x4e6   : > { %v10956_v31 = vmax.f32 %v10954_v56, %v10955_v12  ;;  %v10968_v27 = vmax.f32 %v10966_v36, %v10967_v34  ;;  %v7756_v57 = vcombine.high %v6508_v51, %v6508_v51  ;;  %v7763_v61 = vrot.slane %v6508_v51, %v18149_v11 }
 0x4e7   : > { %v10963_v3 = vmax.f32 %v10961_v42, %v10962_v15  ;;  %v7787_v52 = vrot.slane %v7773_v17, %v18149_v11  ;;  %v7788_v38 = vcombine.high %v7780_v14, %v7780_v14  ;;  %v9764_v8 = vsel %vm9390_vm0, %v7780_v14, -inf  ;;  %v5227_v42 = vpop.f32.mrf.mxu0  ;;  %v6064_v17 = vpop.f32.mrf.mxu1 }
 0x4e8   : > { %v10969_v46 = vrot.slane %v10968_v27, 1  ;;  %v12312_v58 = vsel %vm12207_vm1, %v10956_v31, %v10949_v7  ;;  %v9765_v30 = vmax.f32 %v19414_v45, %v9764_v8  ;;  %v7770_v49 = vrot.slane %v7756_v57, %v18149_v11 }
 0x4e9   : > { %v12313_v43 = vsel %vm12209_vm2, %v10963_v3, %v12312_v58  ;;  %v7789_v23 = vcombine.high %v7787_v52, %v7787_v52  ;;  %v9767_v28 = vsel %vm9390_vm0, %v7788_v38, -inf  ;;  %v9770_v9 = vsel %vm9390_vm0, %v7787_v52, -inf  ;;  %v14481_v3 = vpop.f32.mrf.mxu0  ;;  %v22419_v52 = vld [vmem:[#allocation229_spill] sm:$0xff] }
 0x4ea   : > { %v10970_v48 = vmax.f32 %v10968_v27, %v10969_v46  ;;  %v9768_v54 = vmax.f32 %v19417_v60, %v9767_v28  ;;  %v9771_v1 = vmax.f32 %v19421_v59, %v9770_v9  ;;  %v11027_v21 = vsel %vm9390_vm0, %v9765_v30, -inf  ;;  %v14702_v28 = vpop.f32.mrf.mxu1  ;;  %v22421_v9 = vld [vmem:[#allocation232_spill] sm:$0xff] }
 0x4eb   : > { %v9773_v44 = vsel %vm9390_vm0, %v7789_v23, -inf  ;;  %v11028_v47 = vrot.slane %v11027_v21, 4  ;;  %v7771_v45 = vcombine.high %v7763_v61, %v7763_v61  ;;  %v7772_v22 = vcombine.high %v7770_v49, %v7770_v49 }
 0x4ec   : > { %v12314_v13 = vsel %vm12211_vm3, %v10970_v48, %v12313_v43  ;;  %v9774_v37 = vmax.f32 %v19437_v18, %v9773_v44  ;;  %v11034_v24 = vsel %vm9390_vm0, %v9768_v54, -inf  ;;  %v11041_v29 = vsel %vm9390_vm0, %v9771_v1, -inf }
 0x4ed   : > { %v12315_v60 = vsel %vm12213_vm4, %v10977_v35, %v12314_v13  ;;  %v11029_v32 = vmax.f32 %v11027_v21, %v11028_v47  ;;  %v11035_v59 = vrot.slane %v11034_v24, 4  ;;  %v11042_v62 = vrot.slane %v11041_v29, 4 }
 0x4ee   : > { %v12316_v41 = vsel %vm12215_vm5, %v10984_v16, %v12315_v60  ;;  %v11048_v5 = vsel %vm9390_vm0, %v9774_v37, -inf  ;;  %v9752_v10 = vsel %vm9390_vm0, %v7763_v61, -inf  ;;  %v9755_v20 = vsel %vm9390_vm0, %v7771_v45, -inf }
 0x4ef   : > { %v12317_v18 = vsel %vm12217_vm6, %v10991_v19, %v12316_v41  ;;  %v11030_v56 = vrot.slane %v11029_v32, 2  ;;  %v11036_v36 = vmax.f32 %v11034_v24, %v11035_v59  ;;  %v11043_v39 = vmax.f32 %v11041_v29, %v11042_v62  ;;  %v6076_v59 = vpop.f32.mrf.mxu1 }
 0x4f0   : > { %v12318_v35 = vsel %vm12219_vm7, %v10998_v63, %v12317_v18  ;;  %v11049_v50 = vrot.slane %v11048_v5, 4  ;;  %v9753_v26 = vmax.f32 %v19431_v4, %v9752_v10  ;;  %v9756_v16 = vmax.f32 %v19460_v33, %v9755_v20 }
 0x4f1   : > { %v9760_v12 = vsel %vm9390_vm0, %v7704_v53, -inf  ;;  %12485 = vst.msk [vmem:[%s18362_s24 + $0x70] sm:$0xff] %vm12470_vm8, %v12318_v35  ;;  %v11037_v34 = vrot.slane %v11036_v36, 2  ;;  %v11044_v19 = vrot.slane %v11043_v39, 2  ;;  %v9758_v51 = vsel %vm9390_vm0, %v7770_v49, -inf }
 0x4f2   : > { %v11050_v7 = vmax.f32 %v11048_v5, %v11049_v50  ;;  %v9759_v63 = vmax.f32 %v19464_v6, %v9758_v51  ;;  %v9761_v15 = vsel %vm9390_vm0, %v7772_v22, -inf  ;;  %v10999_v4 = vsel %vm9390_vm0, %v9753_v26, -inf  ;;  %v22420_v6 = vld [vmem:[#allocation265_spill] sm:$0xff]  ;;  %v22422_v5 = vld [vmem:[#allocation267_spill] sm:$0xff] }
 0x4f3   : > { %v11031_v33 = vmax.f32 %v11029_v32, %v11030_v56  ;;  %v11038_v14 = vmax.f32 %v11036_v36, %v11037_v34  ;;  %v9762_v31 = vmax.f32 %v9760_v12, %v9761_v15  ;;  %v6071_v0 = vadd.f32 %v14699_v25, %v19411_v55 }
 0x4f4   : > { %v11051_v53 = vrot.slane %v11050_v7, 2  ;;  %v11000_v27 = vrot.slane %v10999_v4, 4  ;;  %v11006_v57 = vsel %vm9390_vm0, %v9756_v16, -inf  ;;  %v11013_v61 = vsel %vm9390_vm0, %v9759_v63, -inf }
 0x4f5   : > { %v5216_v38 = vadd.f32 %v5215_v2, %v22419_v52  ;;  %v5234_v8 = vadd.f32 %v14478_v40, %v22420_v6  ;;  %v11045_v46 = vmax.f32 %v11043_v39, %v11044_v19  ;;  %v11007_v58 = vrot.slane %v11006_v57, 4  ;;  %v5239_v2 = vpop.f32.mrf.mxu0  ;;  %v22423_v19 = vld [vmem:[#allocation233_spill] sm:$0xff]  ;;  %v22424_v6 = vld [vmem:[#allocation271_spill] sm:$0xff] }
 0x4f6   : > { %v11052_v30 = vmax.f32 %v11050_v7, %v11051_v53  ;;  %v11001_v49 = vmax.f32 %v10999_v4, %v11000_v27  ;;  %v11014_v43 = vrot.slane %v11013_v61, 4  ;;  %v11020_v23 = vsel %vm9390_vm0, %v9762_v31, -inf  ;;  %v14705_v7 = vpop.f32.mrf.mxu1 }
 0x4f7   : > { %v11032_v55 = vrot.slane %v11031_v33, 1  ;;  %v5228_v48 = vadd.f32 %v5227_v42, %v22421_v9  ;;  %v11008_v54 = vmax.f32 %v11006_v57, %v11007_v58  ;;  %v11021_v1 = vrot.slane %v11020_v23, 4  ;;  %v14484_v39 = vpop.f32.mrf.mxu0 }
 0x4f8   : > { %v11039_v21 = vrot.slane %v11038_v14, 1  ;;  %v11002_v44 = vrot.slane %v11001_v49, 2  ;;  %v11015_v47 = vmax.f32 %v11013_v61, %v11014_v43  ;;  %v6511_v45 = vmax.f32 %v6071_v0, 0.0 }
 0x4f9   : > { %v11046_v22 = vrot.slane %v11045_v46, 1  ;;  %v11009_v13 = vrot.slane %v11008_v54, 2  ;;  %v11022_v40 = vmax.f32 %v11020_v23, %v11021_v1  ;;  %v6065_v37 = vadd.f32 %v6064_v17, %v5216_v38 }
 0x4fa   : > { %v11053_v24 = vrot.slane %v11052_v30, 1  ;;  %v11003_v29 = vmax.f32 %v11001_v49, %v11002_v44  ;;  %v11016_v60 = vrot.slane %v11015_v47, 2  ;;  %v7807_v32 = vcombine.high %v6511_v45, %v6511_v45 }
 0x4fb   : > { %v11010_v62 = vmax.f32 %v11008_v54, %v11009_v13  ;;  %v11023_v41 = vrot.slane %v11022_v40, 2  ;;  %v5246_v10 = vadd.f32 %v14481_v3, %v22422_v5  ;;  %v6510_v20 = vmax.f32 %v6065_v37, 0.0  ;;  %v22425_v13 = vld [vmem:[#allocation235_spill] sm:$0xff] }
 0x4fc   : > { %v11033_v25 = vmax.f32 %v11031_v33, %v11032_v55  ;;  %v11004_v18 = vrot.slane %v11003_v29, 1  ;;  %v11017_v56 = vmax.f32 %v11015_v47, %v11016_v60  ;;  %v7814_v36 = vrot.slane %v6511_v45, %v18149_v11 }
 0x4fd   : > { %v11040_v35 = vmax.f32 %v11038_v14, %v11039_v21  ;;  %v11011_v50 = vrot.slane %v11010_v62, 1  ;;  %v11024_v42 = vmax.f32 %v11022_v40, %v11023_v41  ;;  %v7821_v26 = vrot.slane %v7807_v32, %v18149_v11  ;;  %v5251_v14 = vpop.f32.mrf.mxu0 }
 0x4fe   : > { %v11047_v16 = vmax.f32 %v11045_v46, %v11046_v22  ;;  %v11054_v12 = vmax.f32 %v11052_v30, %v11053_v24  ;;  %v11018_v34 = vrot.slane %v11017_v56, 1  ;;  %v5240_v51 = vadd.f32 %v5239_v2, %v22423_v19  ;;  %v6088_v30 = vpop.f32.mrf.mxu1  ;;  %v22427_v19 = vld [vmem:[#allocation237_spill] sm:$0xff] }
 0x4ff   : > { %v11005_v63 = vmax.f32 %v11003_v29, %v11004_v18  ;;  %v11012_v15 = vmax.f32 %v11010_v62, %v11011_v50  ;;  %v11025_v4 = vrot.slane %v11024_v42, 1  ;;  %v7790_v17 = vcombine.high %v6510_v20, %v6510_v20  ;;  %v14487_v1 = vpop.f32.mrf.mxu0 }
 0x500   : > { %v11019_v33 = vmax.f32 %v11017_v56, %v11018_v34  ;;  %v7822_v31 = vcombine.high %v7814_v36, %v7814_v36  ;;  %v7797_v0 = vrot.slane %v6510_v20, %v18149_v11  ;;  %v6083_v53 = vadd.f32 %v14702_v28, %v5234_v8  ;;  %v14708_v37 = vpop.f32.mrf.mxu1 }
 0x501   : > { %v11026_v27 = vmax.f32 %v11024_v42, %v11025_v4  ;;  %v12319_v57 = vsel %vm12207_vm1, %v11012_v15, %v11005_v63  ;;  %v7823_v61 = vcombine.high %v7821_v26, %v7821_v26  ;;  %v7804_v3 = vrot.slane %v7790_v17, %v18149_v11  ;;  %v5263_v20 = vpop.f32.mrf.mxu0 }
 0x502   : > { %v12320_v52 = vsel %vm12209_vm2, %v11019_v33, %v12319_v57  ;;  %v19521_v38 = vsel %vm9390_vm0, %v7814_v36, -inf  ;;  %v5258_v46 = vadd.f32 %v14484_v39, %v22424_v6  ;;  %v6513_v58 = vmax.f32 %v6083_v53, 0.0 }
 0x503   : > { %v12321_v49 = vsel %vm12211_vm3, %v11026_v27, %v12320_v52  ;;  %v19526_v8 = vsel %vm9390_vm0, %v7821_v26, -inf  ;;  %v7805_v43 = vcombine.high %v7797_v0, %v7797_v0  ;;  %v6077_v23 = vadd.f32 %v6076_v59, %v5228_v48  ;;  %v6100_v26 = vpop.f32.mrf.mxu1 }
 0x504   : > { %v12322_v28 = vsel %vm12213_vm4, %v11033_v25, %v12321_v49  ;;  %v7806_v55 = vcombine.high %v7804_v3, %v7804_v3  ;;  %v7841_v9 = vcombine.high %v6513_v58, %v6513_v58  ;;  %v7848_v54 = vrot.slane %v6513_v58, %v18149_v11 }
 0x505   : > { %v12323_v21 = vsel %vm12215_vm5, %v11040_v35, %v12322_v28  ;;  %v9790_v44 = vsel %vm9390_vm0, %v7822_v31, -inf  ;;  %v19533_v47 = vsel %vm9390_vm0, %v7823_v61, -inf  ;;  %v6512_v45 = vmax.f32 %v6077_v23, 0.0 }
 0x506   : > { %v12324_v2 = vsel %vm12217_vm6, %v11047_v16, %v12323_v21  ;;  %v7855_v48 = vrot.slane %v7841_v9, %v18149_v11  ;;  %v7856_v22 = vcombine.high %v7848_v54, %v7848_v54  ;;  %v5252_v40 = vadd.f32 %v5251_v14, %v22425_v13 }
 0x507   : > { %v12325_v24 = vsel %vm12219_vm7, %v11054_v12, %v12324_v2  ;;  %v7824_v29 = vcombine.high %v6512_v45, %v6512_v45  ;;  %v19540_v60 = vrot.slane %v6512_v45, %v18149_v11  ;;  %v6095_v32 = vadd.f32 %v14705_v7, %v5246_v10  ;;  %v22426_v10 = vld [vmem:[#allocation273_spill] sm:$0xff] }
 0x508   : > { %12486 = vst.msk [vmem:[%s18362_s24 + $0x78] sm:$0xff] %vm12470_vm8, %v12325_v24  ;;  %v19545_v59 = vsel %vm9390_vm0, %v7797_v0, -inf  ;;  %v19548_v62 = vsel %vm9390_vm0, %v7805_v43, -inf  ;;  %v19551_v41 = vsel %vm9390_vm0, %v7804_v3, -inf  ;;  %v19554_v5 = vsel %vm9390_vm0, %v7806_v55, -inf }
 0x509   : > { %v7857_v25 = vcombine.high %v7855_v48, %v7855_v48  ;;  %v19557_v18 = vrot.slane %v7824_v29, %v18149_v11  ;;  %v19560_v56 = vadd.f32 %v14487_v1, %v22426_v10  ;;  %v6515_v36 = vmax.f32 %v6095_v32, 0.0 }
 0x50a   : > { %v19563_v39 = vsel %vm9390_vm0, %v7848_v54, -inf  ;;  %v19566_v35 = vsel %vm9390_vm0, %v7856_v22, -inf  ;;  %v6089_v50 = vadd.f32 %v6088_v30, %v5240_v51  ;;  %v6107_v42 = vadd.f32 %v14708_v37, %v5258_v46 }
 0x50b   : > { %v19569_v16 = vsel %vm9390_vm0, %v7855_v48, -inf  ;;  %v7839_v12 = vcombine.high %v19540_v60, %v19540_v60  ;;  %v7875_v34 = vcombine.high %v6515_v36, %v6515_v36  ;;  %v19574_v7 = vadd.f32 %v5263_v20, %v22427_v19 }
 0x50c   : > { %v19578_v63 = vsel %vm9390_vm0, %v19540_v60, -inf  ;;  %v7882_v15 = vrot.slane %v6515_v36, %v18149_v11  ;;  %v6514_v4 = vmax.f32 %v6089_v50, 0.0  ;;  %v19581_v51 = vmax.f32 %v6107_v42, 0.0  ;;  %v22428_v60 = vld [vmem:[#allocation276_spill] sm:$0xff] }
 0x50d   : > { %v19584_v17 = vsel %vm9390_vm0, %v7857_v25, -inf  ;;  %v7840_v33 = vcombine.high %v19557_v18, %v19557_v18  ;;  %v7889_v31 = vrot.slane %v7875_v34, %v18149_v11  ;;  %v19589_v0 = vadd.f32 %v6100_v26, %v5252_v40 }
 0x50e   : > { %v7890_v53 = vcombine.high %v7882_v15, %v7882_v15  ;;  %v9788_v14 = vsel %vm9390_vm0, %v7882_v15, -inf  ;;  %v7858_v27 = vcombine.high %v6514_v4, %v6514_v4  ;;  %v7865_v57 = vrot.slane %v6514_v4, %v18149_v11 }
 0x50f   : > { %v7891_v61 = vcombine.high %v7889_v31, %v7889_v31  ;;  %v9789_v3 = vmax.f32 %v19521_v38, %v9788_v14  ;;  %v9794_v52 = vsel %vm9390_vm0, %v7889_v31, -inf  ;;  %v7909_v6 = vcombine.high %v19581_v51, %v19581_v51 }
 0x510   : > { %v9791_v46 = vsel %vm9390_vm0, %v7890_v53, -inf  ;;  %v9795_v58 = vmax.f32 %v19526_v8, %v9794_v52  ;;  %v7872_v30 = vrot.slane %v7858_v27, %v18149_v11  ;;  %v7873_v49 = vcombine.high %v7865_v57, %v7865_v57 }
 0x511   : > { %v9792_v43 = vmax.f32 %v9790_v44, %v9791_v46  ;;  %v9797_v23 = vsel %vm9390_vm0, %v7891_v61, -inf  ;;  %v11083_v28 = vsel %vm9390_vm0, %v9789_v3, -inf  ;;  %v9776_v55 = vsel %vm9390_vm0, %v7865_v57, -inf }
 0x512   : > { %v9798_v38 = vmax.f32 %v19533_v47, %v9797_v23  ;;  %v11084_v9 = vrot.slane %v11083_v28, 4  ;;  %v11097_v54 = vsel %vm9390_vm0, %v9795_v58, -inf  ;;  %v7874_v1 = vcombine.high %v7872_v30, %v7872_v30 }
 0x513   : > { %v11090_v21 = vsel %vm9390_vm0, %v9792_v43, -inf  ;;  %v11098_v45 = vrot.slane %v11097_v54, 4  ;;  %v9777_v8 = vmax.f32 %v19545_v59, %v9776_v55  ;;  %v9779_v2 = vsel %vm9390_vm0, %v7873_v49, -inf }
 0x514   : > { %v11085_v44 = vmax.f32 %v11083_v28, %v11084_v9  ;;  %v11091_v48 = vrot.slane %v11090_v21, 4  ;;  %v11104_v22 = vsel %vm9390_vm0, %v9798_v38, -inf  ;;  %v9780_v13 = vmax.f32 %v19548_v62, %v9779_v2 }
 0x515   : > { %v11099_v40 = vmax.f32 %v11097_v54, %v11098_v45  ;;  %v11105_v37 = vrot.slane %v11104_v22, 4  ;;  %v9782_v47 = vsel %vm9390_vm0, %v7872_v30, -inf  ;;  %v9785_v24 = vsel %vm9390_vm0, %v7874_v1, -inf }
 0x516   : > { %v11086_v29 = vrot.slane %v11085_v44, 2  ;;  %v11092_v32 = vmax.f32 %v11090_v21, %v11091_v48  ;;  %v9783_v20 = vmax.f32 %v19551_v41, %v9782_v47  ;;  %v9786_v59 = vmax.f32 %v19554_v5, %v9785_v24 }
 0x517   : > { %v11100_v25 = vrot.slane %v11099_v40, 2  ;;  %v11106_v10 = vmax.f32 %v11104_v22, %v11105_v37  ;;  %v11055_v36 = vsel %vm9390_vm0, %v9777_v8, -inf  ;;  %v11062_v50 = vsel %vm9390_vm0, %v9780_v13, -inf }
 0x518   : > { %v11087_v42 = vmax.f32 %v11085_v44, %v11086_v29  ;;  %v11093_v62 = vrot.slane %v11092_v32, 2  ;;  %v11056_v26 = vrot.slane %v11055_v36, 4  ;;  %v11063_v34 = vrot.slane %v11062_v50, 4 }
 0x519   : > { %v11101_v19 = vmax.f32 %v11099_v40, %v11100_v25  ;;  %v11107_v15 = vrot.slane %v11106_v10, 2  ;;  %v11069_v4 = vsel %vm9390_vm0, %v9783_v20, -inf  ;;  %v11076_v31 = vsel %vm9390_vm0, %v9786_v59, -inf }
 0x51a   : > { %v11088_v53 = vrot.slane %v11087_v42, 1  ;;  %v11094_v41 = vmax.f32 %v11092_v32, %v11093_v62  ;;  %v11057_v14 = vmax.f32 %v11055_v36, %v11056_v26  ;;  %v11064_v5 = vmax.f32 %v11062_v50, %v11063_v34 }
 0x51b   : > { %v11102_v27 = vrot.slane %v11101_v19, 1  ;;  %v11108_v57 = vmax.f32 %v11106_v10, %v11107_v15  ;;  %v11070_v61 = vrot.slane %v11069_v4, 4  ;;  %v11077_v3 = vrot.slane %v11076_v31, 4 }
 0x51c   : > { %v11089_v52 = vmax.f32 %v11087_v42, %v11088_v53  ;;  %v11095_v46 = vrot.slane %v11094_v41, 1  ;;  %v11058_v58 = vrot.slane %v11057_v14, 2  ;;  %v11065_v30 = vrot.slane %v11064_v5, 2 }
 0x51d   : > { %v11103_v49 = vmax.f32 %v11101_v19, %v11102_v27  ;;  %v11109_v43 = vrot.slane %v11108_v57, 1  ;;  %v11071_v23 = vmax.f32 %v11069_v4, %v11070_v61  ;;  %v11078_v28 = vmax.f32 %v11076_v31, %v11077_v3  ;;  %v14490_v19 = vpop.f32.mrf.mxu0 }
 0x51e   : > { %v11096_v55 = vmax.f32 %v11094_v41, %v11095_v46  ;;  %v11059_v38 = vmax.f32 %v11057_v14, %v11058_v58  ;;  %v11066_v9 = vmax.f32 %v11064_v5, %v11065_v30  ;;  %v7916_v54 = vrot.slane %v19581_v51, %v18149_v11 }
 0x51f   : > { %v11110_v1 = vmax.f32 %v11108_v57, %v11109_v43  ;;  %v11072_v21 = vrot.slane %v11071_v23, 2  ;;  %v11079_v45 = vrot.slane %v11078_v28, 2  ;;  %v7923_v8 = vrot.slane %v7909_v6, %v18149_v11  ;;  %v5275_v43 = vpop.f32.mrf.mxu0 }
 0x520   : > { %v11060_v2 = vrot.slane %v11059_v38, 1  ;;  %v11067_v44 = vrot.slane %v11066_v9, 1  ;;  %v7924_v48 = vcombine.high %v7916_v54, %v7916_v54  ;;  %v9812_v22 = vsel %vm9390_vm0, %v7916_v54, -inf }
 0x521   : > { %v11073_v13 = vmax.f32 %v11071_v23, %v11072_v21  ;;  %v11080_v40 = vmax.f32 %v11078_v28, %v11079_v45  ;;  %v7925_v37 = vcombine.high %v7923_v8, %v7923_v8  ;;  %v9813_v47 = vmax.f32 %v19563_v39, %v9812_v22  ;;  %v14711_v21 = vpop.f32.mrf.mxu1 }
 0x522   : > { %v11061_v24 = vmax.f32 %v11059_v38, %v11060_v2  ;;  %v11068_v29 = vmax.f32 %v11066_v9, %v11067_v44  ;;  %v9815_v32 = vsel %vm9390_vm0, %v7924_v48, -inf  ;;  %v9818_v20 = vsel %vm9390_vm0, %v7923_v8, -inf }
 0x523   : > { %v11074_v59 = vrot.slane %v11073_v13, 1  ;;  %v11081_v25 = vrot.slane %v11080_v40, 1  ;;  %v9816_v51 = vmax.f32 %v19566_v35, %v9815_v32  ;;  %v9819_v6 = vmax.f32 %v19569_v16, %v9818_v20  ;;  %v6112_v20 = vpop.f32.mrf.mxu1 }
 0x524   : > { %v12326_v10 = vsel %vm12207_vm1, %v11068_v29, %v11061_v24  ;;  %v9821_v36 = vsel %vm9390_vm0, %v7925_v37, -inf  ;;  %v11139_v50 = vsel %vm9390_vm0, %v9813_v47, -inf  ;;  %v6516_v39 = vmax.f32 %v19589_v0, 0.0  ;;  %v14493_v37 = vpop.f32.mrf.mxu0  ;;  %v22429_v24 = vld [vmem:[#allocation239_spill] sm:$0xff] }
 0x525   : > { %v11075_v42 = vmax.f32 %v11073_v13, %v11074_v59  ;;  %v11082_v62 = vmax.f32 %v11080_v40, %v11081_v25  ;;  %v9822_v26 = vmax.f32 %v19584_v17, %v9821_v36  ;;  %v11140_v34 = vrot.slane %v11139_v50, 4 }
 0x526   : > { %v11146_v15 = vsel %vm9390_vm0, %v9816_v51, -inf  ;;  %v11153_v35 = vsel %vm9390_vm0, %v9819_v6, -inf  ;;  %v7892_v4 = vcombine.high %v6516_v39, %v6516_v39  ;;  %v7899_v16 = vrot.slane %v6516_v39, %v18149_v11  ;;  %v22430_v39 = vld [vmem:[#allocation277_spill] sm:$0xff] }
 0x527   : > { %v12327_v31 = vsel %vm12209_vm2, %v11075_v42, %v12326_v10  ;;  %v11141_v53 = vmax.f32 %v11139_v50, %v11140_v34  ;;  %v11147_v41 = vrot.slane %v11146_v15, 4  ;;  %v11154_v14 = vrot.slane %v11153_v35, 4 }
 0x528   : > { %v12328_v0 = vsel %vm12211_vm3, %v11082_v62, %v12327_v31  ;;  %v11160_v5 = vsel %vm9390_vm0, %v9822_v26, -inf  ;;  %v7906_v17 = vrot.slane %v7892_v4, %v18149_v11  ;;  %v7907_v27 = vcombine.high %v7899_v16, %v7899_v16  ;;  %v14714_v4 = vpop.f32.mrf.mxu1 }
 0x529   : > { %v12329_v57 = vsel %vm12213_vm4, %v11089_v52, %v12328_v0  ;;  %v11142_v61 = vrot.slane %v11141_v53, 2  ;;  %v11148_v3 = vmax.f32 %v11146_v15, %v11147_v41  ;;  %v11155_v46 = vmax.f32 %v11153_v35, %v11154_v14 }
 0x52a   : > { %v12330_v58 = vsel %vm12215_vm5, %v11096_v55, %v12329_v57  ;;  %v11161_v30 = vrot.slane %v11160_v5, 4  ;;  %v7908_v23 = vcombine.high %v7906_v17, %v7906_v17  ;;  %v9800_v28 = vsel %vm9390_vm0, %v7899_v16, -inf }
 0x52b   : > { %v9802_v38 = vsel %vm9390_vm0, %v7839_v12, -inf  ;;  %v12331_v9 = vsel %vm12217_vm6, %v11103_v49, %v12330_v58  ;;  %v11143_v54 = vmax.f32 %v11141_v53, %v11142_v61  ;;  %v11149_v52 = vrot.slane %v11148_v3, 2 }
 0x52c   : > { %v12332_v45 = vsel %vm12219_vm7, %v11110_v1, %v12331_v9  ;;  %v11162_v8 = vmax.f32 %v11160_v5, %v11161_v30  ;;  %v9801_v55 = vmax.f32 %v19578_v63, %v9800_v28  ;;  %v9803_v2 = vsel %vm9390_vm0, %v7907_v27, -inf }
 0x52d   : > { %v9805_v44 = vsel %vm9390_vm0, %v19557_v18, -inf  ;;  %12487 = vst.msk [vmem:[%s18362_s24 + $0x80] sm:$0xff] %vm12470_vm8, %v12332_v45  ;;  %v5282_v48 = vadd.f32 %v14490_v19, %v22428_v60  ;;  %v11156_v12 = vrot.slane %v11155_v46, 2  ;;  %v9804_v22 = vmax.f32 %v9802_v38, %v9803_v2 }
 0x52e   : > { %v11150_v49 = vmax.f32 %v11148_v3, %v11149_v52  ;;  %v9806_v13 = vsel %vm9390_vm0, %v7906_v17, -inf  ;;  %v9809_v40 = vsel %vm9390_vm0, %v7908_v23, -inf  ;;  %v11111_v1 = vsel %vm9390_vm0, %v9801_v55, -inf  ;;  %v5287_v3 = vpop.f32.mrf.mxu0  ;;  %v6124_v23 = vpop.f32.mrf.mxu1 }
 0x52f   : > { %v9808_v63 = vsel %vm9390_vm0, %v7840_v33, -inf  ;;  %v11144_v47 = vrot.slane %v11143_v54, 1  ;;  %v19666_v29 = vadd.f32 %v5275_v43, %v22429_v24  ;;  %v9807_v32 = vmax.f32 %v9805_v44, %v9806_v13 }
 0x530   : > { %v11163_v59 = vrot.slane %v11162_v8, 2  ;;  %v9810_v25 = vmax.f32 %v9808_v63, %v9809_v40  ;;  %v11112_v51 = vrot.slane %v11111_v1, 4  ;;  %v11118_v6 = vsel %vm9390_vm0, %v9804_v22, -inf  ;;  %v14496_v44 = vpop.f32.mrf.mxu0  ;;  %v14717_v40 = vpop.f32.mrf.mxu1 }
 0x531   : > { %v11157_v10 = vmax.f32 %v11155_v46, %v11156_v12  ;;  %v11119_v36 = vrot.slane %v11118_v6, 4  ;;  %v11125_v50 = vsel %vm9390_vm0, %v9807_v32, -inf  ;;  %v19671_v42 = vadd.f32 %v14493_v37, %v22430_v39 }
 0x532   : > { %v11151_v18 = vrot.slane %v11150_v49, 1  ;;  %v11113_v33 = vmax.f32 %v11111_v1, %v11112_v51  ;;  %v11126_v62 = vrot.slane %v11125_v50, 4  ;;  %v11132_v26 = vsel %vm9390_vm0, %v9810_v25, -inf  ;;  %v22432_v25 = vld [vmem:[#allocation245_spill] sm:$0xff] }
 0x533   : > { %v11145_v34 = vmax.f32 %v11143_v54, %v11144_v47  ;;  %v11120_v19 = vmax.f32 %v11118_v6, %v11119_v36  ;;  %v11133_v15 = vrot.slane %v11132_v26, 4  ;;  %v6119_v35 = vadd.f32 %v14711_v21, %v19560_v56  ;;  %v22431_v47 = vld [vmem:[#allocation243_spill] sm:$0xff] }
 0x534   : > { %v11164_v16 = vmax.f32 %v11162_v8, %v11163_v59  ;;  %v11114_v31 = vrot.slane %v11113_v33, 2  ;;  %v11127_v53 = vmax.f32 %v11125_v50, %v11126_v62  ;;  %v6113_v41 = vadd.f32 %v6112_v20, %v19574_v7  ;;  %v5299_v50 = vpop.f32.mrf.mxu0 }
 0x535   : > { %v11158_v14 = vrot.slane %v11157_v10, 1  ;;  %v11121_v0 = vrot.slane %v11120_v19, 2  ;;  %v11134_v5 = vmax.f32 %v11132_v26, %v11133_v15  ;;  %v6519_v17 = vmax.f32 %v6119_v35, 0.0  ;;  %v6136_v26 = vpop.f32.mrf.mxu1 }
 0x536   : > { %v11152_v27 = vmax.f32 %v11150_v49, %v11151_v18  ;;  %v11115_v57 = vmax.f32 %v11113_v33, %v11114_v31  ;;  %v11128_v61 = vrot.slane %v11127_v53, 2  ;;  %v6518_v46 = vmax.f32 %v6113_v41, 0.0 }
 0x537   : > { %v11122_v58 = vmax.f32 %v11120_v19, %v11121_v0  ;;  %v11135_v30 = vrot.slane %v11134_v5, 2  ;;  %v7943_v43 = vcombine.high %v6519_v17, %v6519_v17  ;;  %v7950_v56 = vrot.slane %v6519_v17, %v18149_v11 }
 0x538   : > { %v11165_v28 = vrot.slane %v11164_v16, 1  ;;  %v11116_v38 = vrot.slane %v11115_v57, 1  ;;  %v11129_v9 = vmax.f32 %v11127_v53, %v11128_v61  ;;  %v7926_v54 = vcombine.high %v6518_v46, %v6518_v46 }
 0x539   : > { %v11159_v7 = vmax.f32 %v11157_v10, %v11158_v14  ;;  %v11123_v52 = vrot.slane %v11122_v58, 1  ;;  %v11136_v21 = vmax.f32 %v11134_v5, %v11135_v30  ;;  %v7957_v45 = vrot.slane %v7943_v43, %v18149_v11  ;;  %v22433_v43 = vld [vmem:[#allocation250_spill] sm:$0xff] }
 0x53a   : > { %v11130_v8 = vrot.slane %v11129_v9, 1  ;;  %v7958_v55 = vcombine.high %v7950_v56, %v7950_v56  ;;  %v7933_v2 = vrot.slane %v6518_v46, %v18149_v11  ;;  %v6131_v60 = vadd.f32 %v14714_v4, %v5282_v48 }
 0x53b   : > { %v11117_v12 = vmax.f32 %v11115_v57, %v11116_v38  ;;  %v11124_v22 = vmax.f32 %v11122_v58, %v11123_v52  ;;  %v11137_v49 = vrot.slane %v11136_v21, 1  ;;  %v7940_v13 = vrot.slane %v7926_v54, %v18149_v11 }
 0x53c   : > { %v11166_v1 = vmax.f32 %v11164_v16, %v11165_v28  ;;  %v11131_v37 = vmax.f32 %v11129_v9, %v11130_v8  ;;  %v7959_v63 = vcombine.high %v7957_v45, %v7957_v45  ;;  %v5288_v24 = vadd.f32 %v5287_v3, %v22431_v47 }
 0x53d   : > { %v11138_v32 = vmax.f32 %v11136_v21, %v11137_v49  ;;  %v12333_v20 = vsel %vm12207_vm1, %v11124_v22, %v11117_v12  ;;  %v9835_v59 = vsel %vm9390_vm0, %v7950_v56, -inf  ;;  %v19684_v51 = vadd.f32 %v14496_v44, %v22432_v25 }
 0x53e   : > { %v12334_v48 = vsel %vm12209_vm2, %v11131_v37, %v12333_v20  ;;  %v9838_v6 = vsel %vm9390_vm0, %v7958_v55, -inf  ;;  %v9841_v10 = vsel %vm9390_vm0, %v7957_v45, -inf  ;;  %v7941_v36 = vcombine.high %v7933_v2, %v7933_v2 }
 0x53f   : > { %v12335_v39 = vsel %vm12211_vm3, %v11138_v32, %v12334_v48  ;;  %v7942_v18 = vcombine.high %v7940_v13, %v7940_v13  ;;  %v6521_v33 = vmax.f32 %v6131_v60, 0.0  ;;  %v6125_v62 = vadd.f32 %v6124_v23, %v19666_v29  ;;  %v22434_v23 = vld [vmem:[#allocation251_spill] sm:$0xff] }
 0x540   : > { %v12336_v19 = vsel %vm12213_vm4, %v11145_v34, %v12335_v39  ;;  %v9844_v15 = vsel %vm9390_vm0, %v7959_v63, -inf  ;;  %v19694_v35 = vsel %vm9390_vm0, %v7933_v2, -inf  ;;  %v6143_v4 = vadd.f32 %v14717_v40, %v19671_v42  ;;  %v14499_v34 = vpop.f32.mrf.mxu0 }
 0x541   : > { %v12337_v16 = vsel %vm12215_vm5, %v11152_v27, %v12336_v19  ;;  %v7977_v31 = vcombine.high %v6521_v33, %v6521_v33  ;;  %v7984_v53 = vrot.slane %v6521_v33, %v18149_v11  ;;  %v6520_v41 = vmax.f32 %v6125_v62, 0.0 }
 0x542   : > { %v12338_v14 = vsel %vm12217_vm6, %v11159_v7, %v12337_v16  ;;  %v19701_v29 = vsel %vm9390_vm0, %v7941_v36, -inf  ;;  %v6523_v0 = vmax.f32 %v6143_v4, 0.0  ;;  %v6137_v5 = vadd.f32 %v6136_v26, %v5288_v24 }
 0x543   : > { %v12339_v17 = vsel %vm12219_vm7, %v11166_v1, %v12338_v14  ;;  %v19705_v57 = vsel %vm9390_vm0, %v7940_v13, -inf  ;;  %v7991_v42 = vrot.slane %v7977_v31, %v18149_v11  ;;  %v7992_v27 = vcombine.high %v7984_v53, %v7984_v53 }
 0x544   : > { %12488 = vst.msk [vmem:[%s18362_s24 + $0x88] sm:$0xff] %vm12470_vm8, %v12339_v17  ;;  %v7960_v61 = vcombine.high %v6520_v41, %v6520_v41  ;;  %v19711_v3 = vrot.slane %v6520_v41, %v18149_v11  ;;  %v8011_v46 = vcombine.high %v6523_v0, %v6523_v0  ;;  %v8018_v58 = vrot.slane %v6523_v0, %v18149_v11 }
 0x545   : > { %v19715_v30 = vsel %vm9390_vm0, %v7942_v18, -inf  ;;  %v19718_v56 = vadd.f32 %v5299_v50, %v22433_v43  ;;  %v19721_v28 = vadd.f32 %v14499_v34, %v22434_v23  ;;  %v6522_v38 = vmax.f32 %v6137_v5, 0.0 }
 0x546   : > { %v7993_v9 = vcombine.high %v7991_v42, %v7991_v42  ;;  %v19724_v54 = vsel %vm9390_vm0, %v7984_v53, -inf  ;;  %v19727_v7 = vsel %vm9390_vm0, %v7992_v27, -inf  ;;  %v8025_v52 = vrot.slane %v8011_v46, %v18149_v11 }
 0x547   : > { %v19731_v21 = vsel %vm9390_vm0, %v7991_v42, -inf  ;;  %v8026_v45 = vcombine.high %v8018_v58, %v8018_v58  ;;  %v9836_v8 = vsel %vm9390_vm0, %v8018_v58, -inf  ;;  %v7994_v55 = vcombine.high %v6522_v38, %v6522_v38 }
 0x548   : > { %v19735_v2 = vrot.slane %v7960_v61, %v18149_v11  ;;  %v7975_v44 = vcombine.high %v19711_v3, %v19711_v3  ;;  %v19741_v60 = vsel %vm9390_vm0, %v19711_v3, -inf  ;;  %v8027_v12 = vcombine.high %v8025_v52, %v8025_v52 }
 0x549   : > { %v9837_v22 = vmax.f32 %v9835_v59, %v9836_v8  ;;  %v9839_v49 = vsel %vm9390_vm0, %v8026_v45, -inf  ;;  %v9842_v13 = vsel %vm9390_vm0, %v8025_v52, -inf  ;;  %v8001_v40 = vrot.slane %v6522_v38, %v18149_v11 }
 0x54a   : > { %v19747_v1 = vsel %vm9390_vm0, %v7993_v9, -inf  ;;  %v9840_v37 = vmax.f32 %v9838_v6, %v9839_v49  ;;  %v9843_v63 = vmax.f32 %v9841_v10, %v9842_v13  ;;  %v9845_v47 = vsel %vm9390_vm0, %v8027_v12, -inf }
 0x54b   : > { %v9846_v24 = vmax.f32 %v9844_v15, %v9845_v47  ;;  %v11195_v32 = vsel %vm9390_vm0, %v9837_v22, -inf  ;;  %v8008_v20 = vrot.slane %v7994_v55, %v18149_v11  ;;  %v8009_v25 = vcombine.high %v8001_v40, %v8001_v40 }
 0x54c   : > { %v11196_v59 = vrot.slane %v11195_v32, 4  ;;  %v11202_v48 = vsel %vm9390_vm0, %v9840_v37, -inf  ;;  %v11209_v36 = vsel %vm9390_vm0, %v9843_v63, -inf  ;;  %v9824_v50 = vsel %vm9390_vm0, %v8001_v40, -inf }
 0x54d   : > { %v11203_v39 = vrot.slane %v11202_v48, 4  ;;  %v11210_v18 = vrot.slane %v11209_v36, 4  ;;  %v11216_v6 = vsel %vm9390_vm0, %v9846_v24, -inf  ;;  %v8010_v10 = vcombine.high %v8008_v20, %v8008_v20 }
 0x54e   : > { %v11197_v33 = vmax.f32 %v11195_v32, %v11196_v59  ;;  %v11217_v62 = vrot.slane %v11216_v6, 4  ;;  %v9825_v26 = vmax.f32 %v19694_v35, %v9824_v50  ;;  %v9827_v19 = vsel %vm9390_vm0, %v8009_v25, -inf }
 0x54f   : > { %v11204_v15 = vmax.f32 %v11202_v48, %v11203_v39  ;;  %v11211_v4 = vmax.f32 %v11209_v36, %v11210_v18  ;;  %v9828_v16 = vmax.f32 %v19701_v29, %v9827_v19  ;;  %v9830_v31 = vsel %vm9390_vm0, %v8008_v20, -inf  ;;  %v14720_v29 = vpop.f32.mrf.mxu1 }
 0x550   : > { %v11198_v53 = vrot.slane %v11197_v33, 2  ;;  %v11218_v41 = vmax.f32 %v11216_v6, %v11217_v62  ;;  %v9831_v14 = vmax.f32 %v19705_v57, %v9830_v31  ;;  %v9833_v34 = vsel %vm9390_vm0, %v8010_v10, -inf }
 0x551   : > { %v11205_v0 = vrot.slane %v11204_v15, 2  ;;  %v11212_v5 = vrot.slane %v11211_v4, 2  ;;  %v9834_v17 = vmax.f32 %v19715_v30, %v9833_v34  ;;  %v11167_v35 = vsel %vm9390_vm0, %v9825_v26, -inf  ;;  %v6148_v40 = vpop.f32.mrf.mxu1 }
 0x552   : > { %v11199_v42 = vmax.f32 %v11197_v33, %v11198_v53  ;;  %v11219_v27 = vrot.slane %v11218_v41, 2  ;;  %v11168_v61 = vrot.slane %v11167_v35, 4  ;;  %v11174_v3 = vsel %vm9390_vm0, %v9828_v16, -inf }
 0x553   : > { %v11206_v46 = vmax.f32 %v11204_v15, %v11205_v0  ;;  %v11213_v58 = vmax.f32 %v11211_v4, %v11212_v5  ;;  %v11175_v43 = vrot.slane %v11174_v3, 4  ;;  %v11181_v23 = vsel %vm9390_vm0, %v9831_v14, -inf }
 0x554   : > { %v11200_v57 = vrot.slane %v11199_v42, 1  ;;  %v11220_v38 = vmax.f32 %v11218_v41, %v11219_v27  ;;  %v11169_v9 = vmax.f32 %v11167_v35, %v11168_v61  ;;  %v11182_v52 = vrot.slane %v11181_v23, 4 }
 0x555   : > { %v7976_v30 = vcombine.high %v19735_v2, %v19735_v2  ;;  %v11207_v45 = vrot.slane %v11206_v46, 1  ;;  %v11176_v8 = vmax.f32 %v11174_v3, %v11175_v43  ;;  %v11188_v55 = vsel %vm9390_vm0, %v9834_v17, -inf  ;;  %v5311_v17 = vpop.f32.mrf.mxu0 }
 0x556   : > { %v19770_v12 = vsel %vm9390_vm0, %v7975_v44, -inf  ;;  %v11214_v22 = vrot.slane %v11213_v58, 1  ;;  %v11170_v49 = vrot.slane %v11169_v9, 2  ;;  %v11183_v13 = vmax.f32 %v11181_v23, %v11182_v52 }
 0x557   : > { %v19774_v37 = vsel %vm9390_vm0, %v19735_v2, -inf  ;;  %v11221_v63 = vrot.slane %v11220_v38, 1  ;;  %v11177_v47 = vrot.slane %v11176_v8, 2  ;;  %v11189_v24 = vrot.slane %v11188_v55, 4 }
 0x558   : > { %v11201_v32 = vmax.f32 %v11199_v42, %v11200_v57  ;;  %v11171_v20 = vmax.f32 %v11169_v9, %v11170_v49  ;;  %v11184_v25 = vrot.slane %v11183_v13, 2  ;;  %v6155_v59 = vadd.f32 %v14720_v29, %v19684_v51 }
 0x559   : > { %v11208_v48 = vmax.f32 %v11206_v46, %v11207_v45  ;;  %v11178_v36 = vmax.f32 %v11176_v8, %v11177_v47  ;;  %v11190_v44 = vmax.f32 %v11188_v55, %v11189_v24  ;;  %v6149_v50 = vadd.f32 %v6148_v40, %v19718_v56  ;;  %v14502_v55 = vpop.f32.mrf.mxu0 }
 0x55a   : > { %v11215_v39 = vmax.f32 %v11213_v58, %v11214_v22  ;;  %v11172_v18 = vrot.slane %v11171_v20, 1  ;;  %v11185_v6 = vmax.f32 %v11183_v13, %v11184_v25  ;;  %v6525_v10 = vmax.f32 %v6155_v59, 0.0  ;;  %v14723_v59 = vpop.f32.mrf.mxu1 }
 0x55b   : > { %v11222_v33 = vmax.f32 %v11220_v38, %v11221_v63  ;;  %v11179_v62 = vrot.slane %v11178_v36, 1  ;;  %v11191_v26 = vrot.slane %v11190_v44, 2  ;;  %v6524_v19 = vmax.f32 %v6149_v50, 0.0 }
 0x55c   : > { %v11173_v15 = vmax.f32 %v11171_v20, %v11172_v18  ;;  %v11186_v4 = vrot.slane %v11185_v6, 1  ;;  %v8045_v16 = vcombine.high %v6525_v10, %v6525_v10  ;;  %v8052_v31 = vrot.slane %v6525_v10, %v18149_v11 }
 0x55d   : > { %v11180_v53 = vmax.f32 %v11178_v36, %v11179_v62  ;;  %v11192_v51 = vmax.f32 %v11190_v44, %v11191_v26  ;;  %v8028_v41 = vcombine.high %v6524_v19, %v6524_v19  ;;  %v8035_v14 = vrot.slane %v6524_v19, %v18149_v11 }
 0x55e   : > { %v11187_v34 = vmax.f32 %v11185_v6, %v11186_v4  ;;  %v8059_v56 = vrot.slane %v8045_v16, %v18149_v11  ;;  %v8060_v0 = vcombine.high %v8052_v31, %v8052_v31  ;;  %v9860_v5 = vsel %vm9390_vm0, %v8052_v31, -inf  ;;  %v5323_v6 = vpop.f32.mrf.mxu0  ;;  %v6160_v16 = vpop.f32.mrf.mxu1 }
 0x55f   : > { %v11193_v35 = vrot.slane %v11192_v51, 1  ;;  %v12340_v42 = vsel %vm12207_vm1, %v11180_v53, %v11173_v15  ;;  %v9861_v27 = vmax.f32 %v19724_v54, %v9860_v5  ;;  %v8042_v61 = vrot.slane %v8028_v41, %v18149_v11 }
 0x560   : > { %v12341_v3 = vsel %vm12209_vm2, %v11187_v34, %v12340_v42  ;;  %v8061_v29 = vcombine.high %v8059_v56, %v8059_v56  ;;  %v9863_v46 = vsel %vm9390_vm0, %v8060_v0, -inf  ;;  %v9866_v58 = vsel %vm9390_vm0, %v8059_v56, -inf  ;;  %v14505_v34 = vpop.f32.mrf.mxu0  ;;  %v22435_v56 = vld [vmem:[#allocation254_spill] sm:$0xff] }
 0x561   : > { %v11194_v43 = vmax.f32 %v11192_v51, %v11193_v35  ;;  %v9864_v23 = vmax.f32 %v19727_v7, %v9863_v46  ;;  %v9867_v57 = vmax.f32 %v19731_v21, %v9866_v58  ;;  %v11251_v38 = vsel %vm9390_vm0, %v9861_v27, -inf  ;;  %v14726_v46 = vpop.f32.mrf.mxu1  ;;  %v22437_v58 = vld [vmem:[#allocation260_spill] sm:$0xff] }
 0x562   : > { %v9869_v9 = vsel %vm9390_vm0, %v8061_v29, -inf  ;;  %v11252_v52 = vrot.slane %v11251_v38, 4  ;;  %v8043_v54 = vcombine.high %v8035_v14, %v8035_v14  ;;  %v8044_v45 = vcombine.high %v8042_v61, %v8042_v61 }
 0x563   : > { %v12342_v8 = vsel %vm12211_vm3, %v11194_v43, %v12341_v3  ;;  %v9870_v22 = vmax.f32 %v19747_v1, %v9869_v9  ;;  %v11258_v49 = vsel %vm9390_vm0, %v9864_v23, -inf  ;;  %v11265_v13 = vsel %vm9390_vm0, %v9867_v57, -inf }
 0x564   : > { %v12343_v7 = vsel %vm12213_vm4, %v11201_v32, %v12342_v8  ;;  %v11253_v40 = vmax.f32 %v11251_v38, %v11252_v52  ;;  %v11259_v21 = vrot.slane %v11258_v49, 4  ;;  %v11266_v63 = vrot.slane %v11265_v13, 4 }
 0x565   : > { %v12344_v47 = vsel %vm12215_vm5, %v11208_v48, %v12343_v7  ;;  %v11272_v24 = vsel %vm9390_vm0, %v9870_v22, -inf  ;;  %v9848_v20 = vsel %vm9390_vm0, %v8035_v14, -inf  ;;  %v9851_v25 = vsel %vm9390_vm0, %v8043_v54, -inf }
 0x566   : > { %v12345_v1 = vsel %vm12217_vm6, %v11215_v39, %v12344_v47  ;;  %v11254_v36 = vrot.slane %v11253_v40, 2  ;;  %v11260_v44 = vmax.f32 %v11258_v49, %v11259_v21  ;;  %v11267_v50 = vmax.f32 %v11265_v13, %v11266_v63  ;;  %v6172_v21 = vpop.f32.mrf.mxu1 }
 0x567   : > { %v12346_v32 = vsel %vm12219_vm7, %v11222_v33, %v12345_v1  ;;  %v11273_v18 = vrot.slane %v11272_v24, 4  ;;  %v9849_v10 = vmax.f32 %v19741_v60, %v9848_v20  ;;  %v9852_v48 = vmax.f32 %v19770_v12, %v9851_v25 }
 0x568   : > { %v9856_v62 = vsel %vm9390_vm0, %v7976_v30, -inf  ;;  %12489 = vst.msk [vmem:[%s18362_s24 + $0x90] sm:$0xff] %vm12470_vm8, %v12346_v32  ;;  %v11261_v26 = vrot.slane %v11260_v44, 2  ;;  %v11268_v39 = vrot.slane %v11267_v50, 2  ;;  %v9854_v19 = vsel %vm9390_vm0, %v8042_v61, -inf }
 0x569   : > { %v11274_v15 = vmax.f32 %v11272_v24, %v11273_v18  ;;  %v9855_v33 = vmax.f32 %v19774_v37, %v9854_v19  ;;  %v9857_v4 = vsel %vm9390_vm0, %v8044_v45, -inf  ;;  %v11223_v60 = vsel %vm9390_vm0, %v9849_v10, -inf  ;;  %v22436_v37 = vld [vmem:[#allocation258_spill] sm:$0xff]  ;;  %v22438_v24 = vld [vmem:[#allocation263_spill] sm:$0xff] }
 0x56a   : > { %v11255_v12 = vmax.f32 %v11253_v40, %v11254_v36  ;;  %v11262_v31 = vmax.f32 %v11260_v44, %v11261_v26  ;;  %v9858_v53 = vmax.f32 %v9856_v62, %v9857_v4  ;;  %v6167_v2 = vadd.f32 %v14723_v59, %v19721_v28 }
 0x56b   : > { %v11275_v30 = vrot.slane %v11274_v15, 2  ;;  %v11224_v51 = vrot.slane %v11223_v60, 4  ;;  %v11230_v41 = vsel %vm9390_vm0, %v9852_v48, -inf  ;;  %v11237_v14 = vsel %vm9390_vm0, %v9855_v33, -inf }
 0x56c   : > { %v5312_v0 = vadd.f32 %v5311_v17, %v22435_v56  ;;  %v5330_v5 = vadd.f32 %v14502_v55, %v22436_v37  ;;  %v11269_v35 = vmax.f32 %v11267_v50, %v11268_v39  ;;  %v11231_v42 = vrot.slane %v11230_v41, 4  ;;  %v5335_v17 = vpop.f32.mrf.mxu0  ;;  %v22439_v39 = vld [vmem:[#allocation266_spill] sm:$0xff]  ;;  %v22440_v37 = vld [vmem:[#allocation269_spill] sm:$0xff] }
 0x56d   : > { %v11276_v27 = vmax.f32 %v11274_v15, %v11275_v30  ;;  %v11225_v61 = vmax.f32 %v11223_v60, %v11224_v51  ;;  %v11238_v3 = vrot.slane %v11237_v14, 4  ;;  %v11244_v29 = vsel %vm9390_vm0, %v9858_v53, -inf  ;;  %v14729_v15 = vpop.f32.mrf.mxu1 }
 0x56e   : > { %v11256_v28 = vrot.slane %v11255_v12, 1  ;;  %v5324_v43 = vadd.f32 %v5323_v6, %v22437_v58  ;;  %v11232_v23 = vmax.f32 %v11230_v41, %v11231_v42  ;;  %v11245_v57 = vrot.slane %v11244_v29, 4  ;;  %v14508_v50 = vpop.f32.mrf.mxu0 }
 0x56f   : > { %v11263_v38 = vrot.slane %v11262_v31, 1  ;;  %v11226_v9 = vrot.slane %v11225_v61, 2  ;;  %v11239_v52 = vmax.f32 %v11237_v14, %v11238_v3  ;;  %v6527_v54 = vmax.f32 %v6167_v2, 0.0 }
 0x570   : > { %v11270_v45 = vrot.slane %v11269_v35, 1  ;;  %v11233_v8 = vrot.slane %v11232_v23, 2  ;;  %v11246_v55 = vmax.f32 %v11244_v29, %v11245_v57  ;;  %v6161_v22 = vadd.f32 %v6160_v16, %v5312_v0 }
 0x571   : > { %v11277_v49 = vrot.slane %v11276_v27, 1  ;;  %v11227_v13 = vmax.f32 %v11225_v61, %v11226_v9  ;;  %v11240_v7 = vrot.slane %v11239_v52, 2  ;;  %v8079_v40 = vcombine.high %v6527_v54, %v6527_v54 }
 0x572   : > { %v11234_v63 = vmax.f32 %v11232_v23, %v11233_v8  ;;  %v11247_v47 = vrot.slane %v11246_v55, 2  ;;  %v5342_v20 = vadd.f32 %v14505_v34, %v22438_v24  ;;  %v6526_v25 = vmax.f32 %v6161_v22, 0.0  ;;  %v22441_v8 = vld [vmem:[#allocation274_spill] sm:$0xff] }
 0x573   : > { %v11257_v59 = vmax.f32 %v11255_v12, %v11256_v28  ;;  %v11228_v1 = vrot.slane %v11227_v13, 1  ;;  %v11241_v36 = vmax.f32 %v11239_v52, %v11240_v7  ;;  %v8086_v44 = vrot.slane %v6527_v54, %v18149_v11 }
 0x574   : > { %v11264_v32 = vmax.f32 %v11262_v31, %v11263_v38  ;;  %v11235_v18 = vrot.slane %v11234_v63, 1  ;;  %v11248_v6 = vmax.f32 %v11246_v55, %v11247_v47  ;;  %v8093_v10 = vrot.slane %v8079_v40, %v18149_v11  ;;  %v5347_v31 = vpop.f32.mrf.mxu0 }
 0x575   : > { %v11271_v48 = vmax.f32 %v11269_v35, %v11270_v45  ;;  %v11278_v62 = vmax.f32 %v11276_v27, %v11277_v49  ;;  %v11242_v26 = vrot.slane %v11241_v36, 1  ;;  %v5336_v19 = vadd.f32 %v5335_v17, %v22439_v39  ;;  %v6184_v27 = vpop.f32.mrf.mxu1  ;;  %v22443_v39 = vld [vmem:[#allocation20_spill] sm:$0xff] }
 0x576   : > { %v11229_v33 = vmax.f32 %v11227_v13, %v11228_v1  ;;  %v11236_v4 = vmax.f32 %v11234_v63, %v11235_v18  ;;  %v11249_v60 = vrot.slane %v11248_v6, 1  ;;  %v8062_v16 = vcombine.high %v6526_v25, %v6526_v25  ;;  %v14511_v57 = vpop.f32.mrf.mxu0 }
 0x577   : > { %v11243_v12 = vmax.f32 %v11241_v36, %v11242_v26  ;;  %v8094_v53 = vcombine.high %v8086_v44, %v8086_v44  ;;  %v8069_v2 = vrot.slane %v6526_v25, %v18149_v11  ;;  %v6179_v30 = vadd.f32 %v14726_v46, %v5330_v5  ;;  %v14732_v22 = vpop.f32.mrf.mxu1 }
 0x578   : > { %v11250_v51 = vmax.f32 %v11248_v6, %v11249_v60  ;;  %v12347_v41 = vsel %vm12207_vm1, %v11236_v4, %v11229_v33  ;;  %v8095_v14 = vcombine.high %v8093_v10, %v8093_v10  ;;  %v8076_v34 = vrot.slane %v8062_v16, %v18149_v11  ;;  %v5359_v25 = vpop.f32.mrf.mxu0 }
 0x579   : > { %v12348_v56 = vsel %vm12209_vm2, %v11243_v12, %v12347_v41  ;;  %v19831_v0 = vsel %vm9390_vm0, %v8086_v44, -inf  ;;  %v5354_v35 = vadd.f32 %v14508_v50, %v22440_v37  ;;  %v6529_v42 = vmax.f32 %v6179_v30, 0.0 }
 0x57a   : > { %v12349_v61 = vsel %vm12211_vm3, %v11250_v51, %v12348_v56  ;;  %v19836_v5 = vsel %vm9390_vm0, %v8093_v10, -inf  ;;  %v8077_v3 = vcombine.high %v8069_v2, %v8069_v2  ;;  %v6173_v29 = vadd.f32 %v6172_v21, %v5324_v43  ;;  %v6196_v10 = vpop.f32.mrf.mxu1 }
 0x57b   : > { %v12350_v46 = vsel %vm12213_vm4, %v11257_v59, %v12349_v61  ;;  %v8078_v28 = vcombine.high %v8076_v34, %v8076_v34  ;;  %v8113_v58 = vcombine.high %v6529_v42, %v6529_v42  ;;  %v8120_v23 = vrot.slane %v6529_v42, %v18149_v11 }
 0x57c   : > { %v12351_v38 = vsel %vm12215_vm5, %v11264_v32, %v12350_v46  ;;  %v9886_v9 = vsel %vm9390_vm0, %v8094_v53, -inf  ;;  %v19843_v52 = vsel %vm9390_vm0, %v8095_v14, -inf  ;;  %v6528_v54 = vmax.f32 %v6173_v29, 0.0 }
 0x57d   : > { %v12352_v17 = vsel %vm12217_vm6, %v11271_v48, %v12351_v38  ;;  %v8127_v43 = vrot.slane %v8113_v58, %v18149_v11  ;;  %v8128_v45 = vcombine.high %v8120_v23, %v8120_v23  ;;  %v5348_v55 = vadd.f32 %v5347_v31, %v22441_v8 }
 0x57e   : > { %v12353_v49 = vsel %vm12219_vm7, %v11278_v62, %v12352_v17  ;;  %v8096_v13 = vcombine.high %v6528_v54, %v6528_v54  ;;  %v19850_v7 = vrot.slane %v6528_v54, %v18149_v11  ;;  %v6191_v40 = vadd.f32 %v14729_v15, %v5342_v20  ;;  %v22442_v20 = vld [vmem:[#allocation18_spill] sm:$0xff] }
 0x57f   : > { %12490 = vst.msk [vmem:[%s18362_s24 + $0x98] sm:$0xff] %vm12470_vm8, %v12353_v49  ;;  %v19855_v21 = vsel %vm9390_vm0, %v8069_v2, -inf  ;;  %v19858_v63 = vsel %vm9390_vm0, %v8077_v3, -inf  ;;  %v19861_v47 = vsel %vm9390_vm0, %v8076_v34, -inf  ;;  %v19864_v24 = vsel %vm9390_vm0, %v8078_v28, -inf }
 0x580   : > { %v8129_v59 = vcombine.high %v8127_v43, %v8127_v43  ;;  %v19867_v1 = vrot.slane %v8096_v13, %v18149_v11  ;;  %v19870_v36 = vadd.f32 %v14511_v57, %v22442_v20  ;;  %v6531_v44 = vmax.f32 %v6191_v40, 0.0 }
 0x581   : > { %v19873_v50 = vsel %vm9390_vm0, %v8120_v23, -inf  ;;  %v19876_v32 = vsel %vm9390_vm0, %v8128_v45, -inf  ;;  %v6185_v18 = vadd.f32 %v6184_v27, %v5336_v19  ;;  %v6203_v6 = vadd.f32 %v14732_v22, %v5354_v35 }
 0x582   : > { %v19879_v48 = vsel %vm9390_vm0, %v8127_v43, -inf  ;;  %v8111_v62 = vcombine.high %v19850_v7, %v19850_v7  ;;  %v8147_v26 = vcombine.high %v6531_v44, %v6531_v44  ;;  %v19884_v15 = vadd.f32 %v5359_v25, %v22443_v39 }
 0x583   : > { %v19888_v33 = vsel %vm9390_vm0, %v19850_v7, -inf  ;;  %v8154_v4 = vrot.slane %v6531_v44, %v18149_v11  ;;  %v6530_v60 = vmax.f32 %v6185_v18, 0.0  ;;  %v19891_v19 = vmax.f32 %v6203_v6, 0.0  ;;  %v22444_v7 = vld [vmem:[#allocation26_spill] sm:$0xff] }
 0x584   : > { %v19894_v16 = vsel %vm9390_vm0, %v8129_v59, -inf  ;;  %v8112_v12 = vcombine.high %v19867_v1, %v19867_v1  ;;  %v8161_v53 = vrot.slane %v8147_v26, %v18149_v11  ;;  %v19899_v2 = vadd.f32 %v6196_v10, %v5348_v55 }
 0x585   : > { %v8162_v30 = vcombine.high %v8154_v4, %v8154_v4  ;;  %v9884_v31 = vsel %vm9390_vm0, %v8154_v4, -inf  ;;  %v8130_v51 = vcombine.high %v6530_v60, %v6530_v60  ;;  %v8137_v41 = vrot.slane %v6530_v60, %v18149_v11 }
 0x586   : > { %v8163_v14 = vcombine.high %v8161_v53, %v8161_v53  ;;  %v9885_v34 = vmax.f32 %v19831_v0, %v9884_v31  ;;  %v9890_v56 = vsel %vm9390_vm0, %v8161_v53, -inf  ;;  %v8181_v37 = vcombine.high %v19891_v19, %v19891_v19 }
 0x587   : > { %v9887_v35 = vsel %vm9390_vm0, %v8162_v30, -inf  ;;  %v9891_v42 = vmax.f32 %v19836_v5, %v9890_v56  ;;  %v8144_v27 = vrot.slane %v8130_v51, %v18149_v11  ;;  %v8145_v61 = vcombine.high %v8137_v41, %v8137_v41 }
 0x588   : > { %v9888_v3 = vmax.f32 %v9886_v9, %v9887_v35  ;;  %v9893_v29 = vsel %vm9390_vm0, %v8163_v14, -inf  ;;  %v11307_v46 = vsel %vm9390_vm0, %v9885_v34, -inf  ;;  %v9872_v28 = vsel %vm9390_vm0, %v8137_v41, -inf }
 0x589   : > { %v9894_v0 = vmax.f32 %v19843_v52, %v9893_v29  ;;  %v11308_v58 = vrot.slane %v11307_v46, 4  ;;  %v11321_v23 = vsel %vm9390_vm0, %v9891_v42, -inf  ;;  %v8146_v57 = vcombine.high %v8144_v27, %v8144_v27 }
 0x58a   : > { %v11314_v38 = vsel %vm9390_vm0, %v9888_v3, -inf  ;;  %v11322_v54 = vrot.slane %v11321_v23, 4  ;;  %v9873_v5 = vmax.f32 %v19855_v21, %v9872_v28  ;;  %v9875_v17 = vsel %vm9390_vm0, %v8145_v61, -inf }
 0x58b   : > { %v11309_v9 = vmax.f32 %v11307_v46, %v11308_v58  ;;  %v11315_v43 = vrot.slane %v11314_v38, 4  ;;  %v11328_v45 = vsel %vm9390_vm0, %v9894_v0, -inf  ;;  %v9876_v8 = vmax.f32 %v19858_v63, %v9875_v17 }
 0x58c   : > { %v11323_v55 = vmax.f32 %v11321_v23, %v11322_v54  ;;  %v11329_v22 = vrot.slane %v11328_v45, 4  ;;  %v9878_v52 = vsel %vm9390_vm0, %v8144_v27, -inf  ;;  %v9881_v49 = vsel %vm9390_vm0, %v8146_v57, -inf }
 0x58d   : > { %v11310_v13 = vrot.slane %v11309_v9, 2  ;;  %v11316_v40 = vmax.f32 %v11314_v38, %v11315_v43  ;;  %v9879_v25 = vmax.f32 %v19861_v47, %v9878_v52  ;;  %v9882_v21 = vmax.f32 %v19864_v24, %v9881_v49 }
 0x58e   : > { %v11324_v59 = vrot.slane %v11323_v55, 2  ;;  %v11330_v20 = vmax.f32 %v11328_v45, %v11329_v22  ;;  %v11279_v44 = vsel %vm9390_vm0, %v9873_v5, -inf  ;;  %v11286_v18 = vsel %vm9390_vm0, %v9876_v8, -inf }
 0x58f   : > { %v11311_v6 = vmax.f32 %v11309_v9, %v11310_v13  ;;  %v11317_v63 = vrot.slane %v11316_v40, 2  ;;  %v11280_v10 = vrot.slane %v11279_v44, 4  ;;  %v11287_v26 = vrot.slane %v11286_v18, 4 }
 0x590   : > { %v11325_v39 = vmax.f32 %v11323_v55, %v11324_v59  ;;  %v11331_v4 = vrot.slane %v11330_v20, 2  ;;  %v11293_v60 = vsel %vm9390_vm0, %v9879_v25, -inf  ;;  %v11300_v53 = vsel %vm9390_vm0, %v9882_v21, -inf }
 0x591   : > { %v11312_v30 = vrot.slane %v11311_v6, 1  ;;  %v11318_v47 = vmax.f32 %v11316_v40, %v11317_v63  ;;  %v11281_v31 = vmax.f32 %v11279_v44, %v11280_v10  ;;  %v11288_v24 = vmax.f32 %v11286_v18, %v11287_v26 }
 0x592   : > { %v11326_v51 = vrot.slane %v11325_v39, 1  ;;  %v11332_v41 = vmax.f32 %v11330_v20, %v11331_v4  ;;  %v11294_v14 = vrot.slane %v11293_v60, 4  ;;  %v11301_v34 = vrot.slane %v11300_v53, 4 }
 0x593   : > { %v11313_v56 = vmax.f32 %v11311_v6, %v11312_v30  ;;  %v11319_v35 = vrot.slane %v11318_v47, 1  ;;  %v11282_v42 = vrot.slane %v11281_v31, 2  ;;  %v11289_v27 = vrot.slane %v11288_v24, 2 }
 0x594   : > { %v11327_v61 = vmax.f32 %v11325_v39, %v11326_v51  ;;  %v11333_v3 = vrot.slane %v11332_v41, 1  ;;  %v11295_v29 = vmax.f32 %v11293_v60, %v11294_v14  ;;  %v11302_v46 = vmax.f32 %v11300_v53, %v11301_v34  ;;  %v14514_v39 = vpop.f32.mrf.mxu0 }
 0x595   : > { %v11320_v28 = vmax.f32 %v11318_v47, %v11319_v35  ;;  %v11283_v0 = vmax.f32 %v11281_v31, %v11282_v42  ;;  %v11290_v58 = vmax.f32 %v11288_v24, %v11289_v27  ;;  %v8188_v23 = vrot.slane %v19891_v19, %v18149_v11 }
 0x596   : > { %v11334_v57 = vmax.f32 %v11332_v41, %v11333_v3  ;;  %v11296_v38 = vrot.slane %v11295_v29, 2  ;;  %v11303_v54 = vrot.slane %v11302_v46, 2  ;;  %v8195_v5 = vrot.slane %v8181_v37, %v18149_v11  ;;  %v5371_v3 = vpop.f32.mrf.mxu0 }
 0x597   : > { %v11284_v17 = vrot.slane %v11283_v0, 1  ;;  %v11291_v9 = vrot.slane %v11290_v58, 1  ;;  %v8196_v43 = vcombine.high %v8188_v23, %v8188_v23  ;;  %v9908_v45 = vsel %vm9390_vm0, %v8188_v23, -inf }
 0x598   : > { %v11297_v8 = vmax.f32 %v11295_v29, %v11296_v38  ;;  %v11304_v55 = vmax.f32 %v11302_v46, %v11303_v54  ;;  %v8197_v22 = vcombine.high %v8195_v5, %v8195_v5  ;;  %v9909_v52 = vmax.f32 %v19873_v50, %v9908_v45  ;;  %v14735_v38 = vpop.f32.mrf.mxu1 }
 0x599   : > { %v11285_v49 = vmax.f32 %v11283_v0, %v11284_v17  ;;  %v11292_v13 = vmax.f32 %v11290_v58, %v11291_v9  ;;  %v9911_v40 = vsel %vm9390_vm0, %v8196_v43, -inf  ;;  %v9914_v25 = vsel %vm9390_vm0, %v8195_v5, -inf }
 0x59a   : > { %v11298_v21 = vrot.slane %v11297_v8, 1  ;;  %v11305_v59 = vrot.slane %v11304_v55, 1  ;;  %v9912_v19 = vmax.f32 %v19876_v32, %v9911_v40  ;;  %v9915_v37 = vmax.f32 %v19879_v48, %v9914_v25  ;;  %v6208_v25 = vpop.f32.mrf.mxu1 }
 0x59b   : > { %v12354_v20 = vsel %vm12207_vm1, %v11292_v13, %v11285_v49  ;;  %v9917_v44 = vsel %vm9390_vm0, %v8197_v22, -inf  ;;  %v11363_v18 = vsel %vm9390_vm0, %v9909_v52, -inf  ;;  %v6532_v50 = vmax.f32 %v19899_v2, 0.0  ;;  %v14517_v22 = vpop.f32.mrf.mxu0  ;;  %v22445_v49 = vld [vmem:[#allocation29_spill] sm:$0xff] }
 0x59c   : > { %v11299_v6 = vmax.f32 %v11297_v8, %v11298_v21  ;;  %v11306_v63 = vmax.f32 %v11304_v55, %v11305_v59  ;;  %v9918_v10 = vmax.f32 %v19894_v16, %v9917_v44  ;;  %v11364_v26 = vrot.slane %v11363_v18, 4 }
 0x59d   : > { %v11370_v4 = vsel %vm9390_vm0, %v9912_v19, -inf  ;;  %v11377_v32 = vsel %vm9390_vm0, %v9915_v37, -inf  ;;  %v8164_v60 = vcombine.high %v6532_v50, %v6532_v50  ;;  %v8171_v48 = vrot.slane %v6532_v50, %v18149_v11  ;;  %v22446_v50 = vld [vmem:[#allocation35_spill] sm:$0xff] }
 0x59e   : > { %v12355_v53 = vsel %vm12209_vm2, %v11299_v6, %v12354_v20  ;;  %v11365_v30 = vmax.f32 %v11363_v18, %v11364_v26  ;;  %v11371_v47 = vrot.slane %v11370_v4, 4  ;;  %v11378_v31 = vrot.slane %v11377_v32, 4 }
 0x59f   : > { %v12356_v2 = vsel %vm12211_vm3, %v11306_v63, %v12355_v53  ;;  %v11384_v24 = vsel %vm9390_vm0, %v9918_v10, -inf  ;;  %v8178_v16 = vrot.slane %v8164_v60, %v18149_v11  ;;  %v8179_v51 = vcombine.high %v8171_v48, %v8171_v48  ;;  %v14738_v60 = vpop.f32.mrf.mxu1 }
 0x5a0   : > { %v12357_v41 = vsel %vm12213_vm4, %v11313_v56, %v12356_v2  ;;  %v11366_v14 = vrot.slane %v11365_v30, 2  ;;  %v11372_v34 = vmax.f32 %v11370_v4, %v11371_v47  ;;  %v11379_v35 = vmax.f32 %v11377_v32, %v11378_v31 }
 0x5a1   : > { %v12358_v42 = vsel %vm12215_vm5, %v11320_v28, %v12357_v41  ;;  %v11385_v27 = vrot.slane %v11384_v24, 4  ;;  %v8180_v29 = vcombine.high %v8178_v16, %v8178_v16  ;;  %v9896_v46 = vsel %vm9390_vm0, %v8171_v48, -inf }
 0x5a2   : > { %v9898_v0 = vsel %vm9390_vm0, %v8111_v62, -inf  ;;  %v12359_v58 = vsel %vm12217_vm6, %v11327_v61, %v12358_v42  ;;  %v11367_v23 = vmax.f32 %v11365_v30, %v11366_v14  ;;  %v11373_v56 = vrot.slane %v11372_v34, 2 }
 0x5a3   : > { %v12360_v54 = vsel %vm12219_vm7, %v11334_v57, %v12359_v58  ;;  %v11386_v5 = vmax.f32 %v11384_v24, %v11385_v27  ;;  %v9897_v28 = vmax.f32 %v19888_v33, %v9896_v46  ;;  %v9899_v17 = vsel %vm9390_vm0, %v8179_v51, -inf }
 0x5a4   : > { %v9901_v9 = vsel %vm9390_vm0, %v19867_v1, -inf  ;;  %12491 = vst.msk [vmem:[%s18362_s24 + $0xa0] sm:$0xff] %vm12470_vm8, %v12360_v54  ;;  %v5378_v43 = vadd.f32 %v14514_v39, %v22444_v7  ;;  %v11380_v62 = vrot.slane %v11379_v35, 2  ;;  %v9900_v45 = vmax.f32 %v9898_v0, %v9899_v17 }
 0x5a5   : > { %v11374_v61 = vmax.f32 %v11372_v34, %v11373_v56  ;;  %v9902_v8 = vsel %vm9390_vm0, %v8178_v16, -inf  ;;  %v9905_v55 = vsel %vm9390_vm0, %v8180_v29, -inf  ;;  %v11335_v57 = vsel %vm9390_vm0, %v9897_v28, -inf  ;;  %v5383_v34 = vpop.f32.mrf.mxu0  ;;  %v6220_v29 = vpop.f32.mrf.mxu1 }
 0x5a6   : > { %v9904_v33 = vsel %vm9390_vm0, %v8112_v12, -inf  ;;  %v11368_v52 = vrot.slane %v11367_v23, 1  ;;  %v19976_v13 = vadd.f32 %v5371_v3, %v22445_v49  ;;  %v9903_v40 = vmax.f32 %v9901_v9, %v9902_v8 }
 0x5a7   : > { %v11387_v21 = vrot.slane %v11386_v5, 2  ;;  %v9906_v59 = vmax.f32 %v9904_v33, %v9905_v55  ;;  %v11336_v19 = vrot.slane %v11335_v57, 4  ;;  %v11342_v37 = vsel %vm9390_vm0, %v9900_v45, -inf  ;;  %v14520_v9 = vpop.f32.mrf.mxu0  ;;  %v14741_v55 = vpop.f32.mrf.mxu1 }
 0x5a8   : > { %v11381_v20 = vmax.f32 %v11379_v35, %v11380_v62  ;;  %v11343_v44 = vrot.slane %v11342_v37, 4  ;;  %v11349_v18 = vsel %vm9390_vm0, %v9903_v40, -inf  ;;  %v19981_v6 = vadd.f32 %v14517_v22, %v22446_v50 }
 0x5a9   : > { %v11375_v1 = vrot.slane %v11374_v61, 1  ;;  %v11337_v12 = vmax.f32 %v11335_v57, %v11336_v19  ;;  %v11350_v63 = vrot.slane %v11349_v18, 4  ;;  %v11356_v10 = vsel %vm9390_vm0, %v9906_v59, -inf  ;;  %v22448_v59 = vld [vmem:[#allocation38_spill] sm:$0xff] }
 0x5aa   : > { %v11369_v26 = vmax.f32 %v11367_v23, %v11368_v52  ;;  %v11344_v39 = vmax.f32 %v11342_v37, %v11343_v44  ;;  %v11357_v4 = vrot.slane %v11356_v10, 4  ;;  %v6215_v32 = vadd.f32 %v14735_v38, %v19870_v36  ;;  %v22447_v52 = vld [vmem:[#allocation36_spill] sm:$0xff] }
 0x5ab   : > { %v11388_v48 = vmax.f32 %v11386_v5, %v11387_v21  ;;  %v11338_v53 = vrot.slane %v11337_v12, 2  ;;  %v11351_v30 = vmax.f32 %v11349_v18, %v11350_v63  ;;  %v6209_v47 = vadd.f32 %v6208_v25, %v19884_v15  ;;  %v5395_v18 = vpop.f32.mrf.mxu0 }
 0x5ac   : > { %v11382_v31 = vrot.slane %v11381_v20, 1  ;;  %v11345_v2 = vrot.slane %v11344_v39, 2  ;;  %v11358_v24 = vmax.f32 %v11356_v10, %v11357_v4  ;;  %v6535_v16 = vmax.f32 %v6215_v32, 0.0  ;;  %v6232_v10 = vpop.f32.mrf.mxu1 }
 0x5ad   : > { %v11376_v51 = vmax.f32 %v11374_v61, %v11375_v1  ;;  %v11339_v41 = vmax.f32 %v11337_v12, %v11338_v53  ;;  %v11352_v14 = vrot.slane %v11351_v30, 2  ;;  %v6534_v35 = vmax.f32 %v6209_v47, 0.0 }
 0x5ae   : > { %v11346_v42 = vmax.f32 %v11344_v39, %v11345_v2  ;;  %v11359_v27 = vrot.slane %v11358_v24, 2  ;;  %v8215_v3 = vcombine.high %v6535_v16, %v6535_v16  ;;  %v8222_v36 = vrot.slane %v6535_v16, %v18149_v11 }
 0x5af   : > { %v11389_v46 = vrot.slane %v11388_v48, 1  ;;  %v11340_v0 = vrot.slane %v11339_v41, 1  ;;  %v11353_v58 = vmax.f32 %v11351_v30, %v11352_v14  ;;  %v8198_v23 = vcombine.high %v6534_v35, %v6534_v35 }
 0x5b0   : > { %v11383_v15 = vmax.f32 %v11381_v20, %v11382_v31  ;;  %v11347_v56 = vrot.slane %v11346_v42, 1  ;;  %v11360_v38 = vmax.f32 %v11358_v24, %v11359_v27  ;;  %v8229_v54 = vrot.slane %v8215_v3, %v18149_v11  ;;  %v22449_v3 = vld [vmem:[#allocation40_spill] sm:$0xff] }
 0x5b1   : > { %v11354_v5 = vrot.slane %v11353_v58, 1  ;;  %v8230_v28 = vcombine.high %v8222_v36, %v8222_v36  ;;  %v8205_v17 = vrot.slane %v6534_v35, %v18149_v11  ;;  %v6227_v7 = vadd.f32 %v14738_v60, %v5378_v43 }
 0x5b2   : > { %v11341_v62 = vmax.f32 %v11339_v41, %v11340_v0  ;;  %v11348_v45 = vmax.f32 %v11346_v42, %v11347_v56  ;;  %v11361_v61 = vrot.slane %v11360_v38, 1  ;;  %v8212_v8 = vrot.slane %v8198_v23, %v18149_v11 }
 0x5b3   : > { %v11390_v57 = vmax.f32 %v11388_v48, %v11389_v46  ;;  %v11355_v22 = vmax.f32 %v11353_v58, %v11354_v5  ;;  %v8231_v33 = vcombine.high %v8229_v54, %v8229_v54  ;;  %v5384_v49 = vadd.f32 %v5383_v34, %v22447_v52 }
 0x5b4   : > { %v11362_v40 = vmax.f32 %v11360_v38, %v11361_v61  ;;  %v12361_v25 = vsel %vm12207_vm1, %v11348_v45, %v11341_v62  ;;  %v9931_v21 = vsel %vm9390_vm0, %v8222_v36, -inf  ;;  %v19994_v19 = vadd.f32 %v14520_v9, %v22448_v59 }
 0x5b5   : > { %v12362_v43 = vsel %vm12209_vm2, %v11355_v22, %v12361_v25  ;;  %v9934_v37 = vsel %vm9390_vm0, %v8230_v28, -inf  ;;  %v9937_v20 = vsel %vm9390_vm0, %v8229_v54, -inf  ;;  %v8213_v44 = vcombine.high %v8205_v17, %v8205_v17 }
 0x5b6   : > { %v12363_v50 = vsel %vm12211_vm3, %v11362_v40, %v12362_v43  ;;  %v8214_v1 = vcombine.high %v8212_v8, %v8212_v8  ;;  %v6537_v12 = vmax.f32 %v6227_v7, 0.0  ;;  %v6221_v63 = vadd.f32 %v6220_v29, %v19976_v13  ;;  %v22450_v29 = vld [vmem:[#allocation42_spill] sm:$0xff] }
 0x5b7   : > { %v12364_v39 = vsel %vm12213_vm4, %v11369_v26, %v12363_v50  ;;  %v9940_v4 = vsel %vm9390_vm0, %v8231_v33, -inf  ;;  %v20004_v32 = vsel %vm9390_vm0, %v8205_v17, -inf  ;;  %v6239_v60 = vadd.f32 %v14741_v55, %v19981_v6  ;;  %v14523_v26 = vpop.f32.mrf.mxu0 }
 0x5b8   : > { %v12365_v48 = vsel %vm12215_vm5, %v11376_v51, %v12364_v39  ;;  %v8249_v53 = vcombine.high %v6537_v12, %v6537_v12  ;;  %v8256_v30 = vrot.slane %v6537_v12, %v18149_v11  ;;  %v6536_v47 = vmax.f32 %v6221_v63, 0.0 }
 0x5b9   : > { %v12366_v31 = vsel %vm12217_vm6, %v11383_v15, %v12365_v48  ;;  %v20011_v13 = vsel %vm9390_vm0, %v8213_v44, -inf  ;;  %v6539_v2 = vmax.f32 %v6239_v60, 0.0  ;;  %v6233_v24 = vadd.f32 %v6232_v10, %v5384_v49 }
 0x5ba   : > { %v12367_v16 = vsel %vm12219_vm7, %v11390_v57, %v12366_v31  ;;  %v20015_v41 = vsel %vm9390_vm0, %v8212_v8, -inf  ;;  %v8263_v6 = vrot.slane %v8249_v53, %v18149_v11  ;;  %v8264_v51 = vcombine.high %v8256_v30, %v8256_v30 }
 0x5bb   : > { %12492 = vst.msk [vmem:[%s18362_s24 + $0xa8] sm:$0xff] %vm12470_vm8, %v12367_v16  ;;  %v8232_v14 = vcombine.high %v6536_v47, %v6536_v47  ;;  %v20021_v34 = vrot.slane %v6536_v47, %v18149_v11  ;;  %v8283_v35 = vcombine.high %v6539_v2, %v6539_v2  ;;  %v8290_v42 = vrot.slane %v6539_v2, %v18149_v11 }
 0x5bc   : > { %v20025_v27 = vsel %vm9390_vm0, %v8214_v1, -inf  ;;  %v20028_v36 = vadd.f32 %v5395_v18, %v22449_v3  ;;  %v20031_v46 = vadd.f32 %v14523_v26, %v22450_v29  ;;  %v6538_v0 = vmax.f32 %v6233_v24, 0.0 }
 0x5bd   : > { %v8265_v58 = vcombine.high %v8263_v6, %v8263_v6  ;;  %v20034_v23 = vsel %vm9390_vm0, %v8256_v30, -inf  ;;  %v20037_v15 = vsel %vm9390_vm0, %v8264_v51, -inf  ;;  %v8297_v56 = vrot.slane %v8283_v35, %v18149_v11 }
 0x5be   : > { %v20041_v38 = vsel %vm9390_vm0, %v8263_v6, -inf  ;;  %v8298_v54 = vcombine.high %v8290_v42, %v8290_v42  ;;  %v9932_v5 = vsel %vm9390_vm0, %v8290_v42, -inf  ;;  %v8266_v28 = vcombine.high %v6538_v0, %v6538_v0 }
 0x5bf   : > { %v20045_v17 = vrot.slane %v8232_v14, %v18149_v11  ;;  %v8247_v9 = vcombine.high %v20021_v34, %v20021_v34  ;;  %v20051_v7 = vsel %vm9390_vm0, %v20021_v34, -inf  ;;  %v8299_v62 = vcombine.high %v8297_v56, %v8297_v56 }
 0x5c0   : > { %v9933_v45 = vmax.f32 %v9931_v21, %v9932_v5  ;;  %v9935_v61 = vsel %vm9390_vm0, %v8298_v54, -inf  ;;  %v9938_v8 = vsel %vm9390_vm0, %v8297_v56, -inf  ;;  %v8273_v55 = vrot.slane %v6538_v0, %v18149_v11 }
 0x5c1   : > { %v20057_v57 = vsel %vm9390_vm0, %v8265_v58, -inf  ;;  %v9936_v22 = vmax.f32 %v9934_v37, %v9935_v61  ;;  %v9939_v33 = vmax.f32 %v9937_v20, %v9938_v8  ;;  %v9941_v52 = vsel %vm9390_vm0, %v8299_v62, -inf }
 0x5c2   : > { %v9942_v49 = vmax.f32 %v9940_v4, %v9941_v52  ;;  %v11419_v40 = vsel %vm9390_vm0, %v9933_v45, -inf  ;;  %v8280_v25 = vrot.slane %v8266_v28, %v18149_v11  ;;  %v8281_v59 = vcombine.high %v8273_v55, %v8273_v55 }
 0x5c3   : > { %v11420_v21 = vrot.slane %v11419_v40, 4  ;;  %v11426_v43 = vsel %vm9390_vm0, %v9936_v22, -inf  ;;  %v11433_v44 = vsel %vm9390_vm0, %v9939_v33, -inf  ;;  %v9920_v18 = vsel %vm9390_vm0, %v8273_v55, -inf }
 0x5c4   : > { %v11427_v50 = vrot.slane %v11426_v43, 4  ;;  %v11434_v1 = vrot.slane %v11433_v44, 4  ;;  %v11440_v37 = vsel %vm9390_vm0, %v9942_v49, -inf  ;;  %v8282_v20 = vcombine.high %v8280_v25, %v8280_v25 }
 0x5c5   : > { %v11421_v12 = vmax.f32 %v11419_v40, %v11420_v21  ;;  %v11441_v63 = vrot.slane %v11440_v37, 4  ;;  %v9921_v10 = vmax.f32 %v20004_v32, %v9920_v18  ;;  %v9923_v39 = vsel %vm9390_vm0, %v8281_v59, -inf }
 0x5c6   : > { %v11428_v4 = vmax.f32 %v11426_v43, %v11427_v50  ;;  %v11435_v60 = vmax.f32 %v11433_v44, %v11434_v1  ;;  %v9924_v48 = vmax.f32 %v20011_v13, %v9923_v39  ;;  %v9926_v53 = vsel %vm9390_vm0, %v8280_v25, -inf  ;;  %v14744_v13 = vpop.f32.mrf.mxu1 }
 0x5c7   : > { %v11422_v30 = vrot.slane %v11421_v12, 2  ;;  %v11442_v47 = vmax.f32 %v11440_v37, %v11441_v63  ;;  %v9927_v31 = vmax.f32 %v20015_v41, %v9926_v53  ;;  %v9929_v26 = vsel %vm9390_vm0, %v8282_v20, -inf }
 0x5c8   : > { %v11429_v2 = vrot.slane %v11428_v4, 2  ;;  %v11436_v24 = vrot.slane %v11435_v60, 2  ;;  %v9930_v16 = vmax.f32 %v20025_v27, %v9929_v26  ;;  %v11391_v32 = vsel %vm9390_vm0, %v9921_v10, -inf  ;;  %v6244_v55 = vpop.f32.mrf.mxu1 }
 0x5c9   : > { %v11423_v6 = vmax.f32 %v11421_v12, %v11422_v30  ;;  %v11443_v51 = vrot.slane %v11442_v47, 2  ;;  %v11392_v14 = vrot.slane %v11391_v32, 4  ;;  %v11398_v34 = vsel %vm9390_vm0, %v9924_v48, -inf }
 0x5ca   : > { %v11430_v35 = vmax.f32 %v11428_v4, %v11429_v2  ;;  %v11437_v42 = vmax.f32 %v11435_v60, %v11436_v24  ;;  %v11399_v3 = vrot.slane %v11398_v34, 4  ;;  %v11405_v29 = vsel %vm9390_vm0, %v9927_v31, -inf }
 0x5cb   : > { %v11424_v41 = vrot.slane %v11423_v6, 1  ;;  %v11444_v0 = vmax.f32 %v11442_v47, %v11443_v51  ;;  %v11393_v58 = vmax.f32 %v11391_v32, %v11392_v14  ;;  %v11406_v56 = vrot.slane %v11405_v29, 4 }
 0x5cc   : > { %v8248_v27 = vcombine.high %v20045_v17, %v20045_v17  ;;  %v11431_v54 = vrot.slane %v11430_v35, 1  ;;  %v11400_v5 = vmax.f32 %v11398_v34, %v11399_v3  ;;  %v11412_v28 = vsel %vm9390_vm0, %v9930_v16, -inf  ;;  %v5407_v16 = vpop.f32.mrf.mxu0 }
 0x5cd   : > { %v20080_v62 = vsel %vm9390_vm0, %v8247_v9, -inf  ;;  %v11438_v45 = vrot.slane %v11437_v42, 1  ;;  %v11394_v61 = vrot.slane %v11393_v58, 2  ;;  %v11407_v8 = vmax.f32 %v11405_v29, %v11406_v56 }
 0x5ce   : > { %v20084_v22 = vsel %vm9390_vm0, %v20045_v17, -inf  ;;  %v11445_v33 = vrot.slane %v11444_v0, 1  ;;  %v11401_v52 = vrot.slane %v11400_v5, 2  ;;  %v11413_v49 = vrot.slane %v11412_v28, 4 }
 0x5cf   : > { %v11425_v40 = vmax.f32 %v11423_v6, %v11424_v41  ;;  %v11395_v25 = vmax.f32 %v11393_v58, %v11394_v61  ;;  %v11408_v59 = vrot.slane %v11407_v8, 2  ;;  %v6251_v21 = vadd.f32 %v14744_v13, %v19994_v19 }
 0x5d0   : > { %v11432_v43 = vmax.f32 %v11430_v35, %v11431_v54  ;;  %v11402_v44 = vmax.f32 %v11400_v5, %v11401_v52  ;;  %v11414_v9 = vmax.f32 %v11412_v28, %v11413_v49  ;;  %v6245_v18 = vadd.f32 %v6244_v55, %v20028_v36  ;;  %v14526_v28 = vpop.f32.mrf.mxu0 }
 0x5d1   : > { %v11439_v50 = vmax.f32 %v11437_v42, %v11438_v45  ;;  %v11396_v1 = vrot.slane %v11395_v25, 1  ;;  %v11409_v37 = vmax.f32 %v11407_v8, %v11408_v59  ;;  %v6541_v20 = vmax.f32 %v6251_v21, 0.0  ;;  %v14747_v21 = vpop.f32.mrf.mxu1 }
 0x5d2   : > { %v11446_v12 = vmax.f32 %v11444_v0, %v11445_v33  ;;  %v11403_v63 = vrot.slane %v11402_v44, 1  ;;  %v11415_v10 = vrot.slane %v11414_v9, 2  ;;  %v6540_v39 = vmax.f32 %v6245_v18, 0.0 }
 0x5d3   : > { %v11397_v4 = vmax.f32 %v11395_v25, %v11396_v1  ;;  %v11410_v60 = vrot.slane %v11409_v37, 1  ;;  %v8317_v48 = vcombine.high %v6541_v20, %v6541_v20  ;;  %v8324_v53 = vrot.slane %v6541_v20, %v18149_v11 }
 0x5d4   : > { %v11404_v30 = vmax.f32 %v11402_v44, %v11403_v63  ;;  %v11416_v19 = vmax.f32 %v11414_v9, %v11415_v10  ;;  %v8300_v47 = vcombine.high %v6540_v39, %v6540_v39  ;;  %v8307_v31 = vrot.slane %v6540_v39, %v18149_v11 }
 0x5d5   : > { %v11411_v26 = vmax.f32 %v11409_v37, %v11410_v60  ;;  %v8331_v36 = vrot.slane %v8317_v48, %v18149_v11  ;;  %v8332_v2 = vcombine.high %v8324_v53, %v8324_v53  ;;  %v9956_v24 = vsel %vm9390_vm0, %v8324_v53, -inf  ;;  %v5419_v37 = vpop.f32.mrf.mxu0  ;;  %v6256_v48 = vpop.f32.mrf.mxu1 }
 0x5d6   : > { %v11417_v32 = vrot.slane %v11416_v19, 1  ;;  %v12368_v6 = vsel %vm12207_vm1, %v11404_v30, %v11397_v4  ;;  %v9957_v51 = vmax.f32 %v20034_v23, %v9956_v24  ;;  %v8314_v14 = vrot.slane %v8300_v47, %v18149_v11 }
 0x5d7   : > { %v12369_v34 = vsel %vm12209_vm2, %v11411_v26, %v12368_v6  ;;  %v8333_v13 = vcombine.high %v8331_v36, %v8331_v36  ;;  %v9959_v35 = vsel %vm9390_vm0, %v8332_v2, -inf  ;;  %v9962_v42 = vsel %vm9390_vm0, %v8331_v36, -inf  ;;  %v22451_v26 = vld [vmem:[#allocation44_spill] sm:$0xff]  ;;  %v22452_v2 = vld [vmem:[#allocation45_spill] sm:$0xff] }
 0x5d8   : > { %v11418_v3 = vmax.f32 %v11416_v19, %v11417_v32  ;;  %v9960_v29 = vmax.f32 %v20037_v15, %v9959_v35  ;;  %v9963_v41 = vmax.f32 %v20041_v38, %v9962_v42  ;;  %v11475_v0 = vsel %vm9390_vm0, %v9957_v51, -inf  ;;  %v22453_v35 = vld [vmem:[#allocation47_spill] sm:$0xff] }
 0x5d9   : > { %v9965_v58 = vsel %vm9390_vm0, %v8333_v13, -inf  ;;  %v11476_v56 = vrot.slane %v11475_v0, 4  ;;  %v8315_v23 = vcombine.high %v8307_v31, %v8307_v31  ;;  %v8316_v54 = vcombine.high %v8314_v14, %v8314_v14  ;;  %v14750_v13 = vpop.f32.mrf.mxu1 }
 0x5da   : > { %v12370_v5 = vsel %vm12211_vm3, %v11418_v3, %v12369_v34  ;;  %v9966_v45 = vmax.f32 %v20057_v57, %v9965_v58  ;;  %v11482_v61 = vsel %vm9390_vm0, %v9960_v29, -inf  ;;  %v11489_v8 = vsel %vm9390_vm0, %v9963_v41, -inf }
 0x5db   : > { %v12371_v15 = vsel %vm12213_vm4, %v11425_v40, %v12370_v5  ;;  %v11477_v55 = vmax.f32 %v11475_v0, %v11476_v56  ;;  %v11483_v38 = vrot.slane %v11482_v61, 4  ;;  %v11490_v33 = vrot.slane %v11489_v8, 4 }
 0x5dc   : > { %v12372_v52 = vsel %vm12215_vm5, %v11432_v43, %v12371_v15  ;;  %v11496_v49 = vsel %vm9390_vm0, %v9966_v45, -inf  ;;  %v9944_v25 = vsel %vm9390_vm0, %v8307_v31, -inf  ;;  %v9947_v59 = vsel %vm9390_vm0, %v8315_v23, -inf  ;;  %v14529_v31 = vpop.f32.mrf.mxu0 }
 0x5dd   : > { %v12373_v57 = vsel %vm12217_vm6, %v11439_v50, %v12372_v52  ;;  %v11478_v44 = vrot.slane %v11477_v55, 2  ;;  %v11484_v9 = vmax.f32 %v11482_v61, %v11483_v38  ;;  %v11491_v18 = vmax.f32 %v11489_v8, %v11490_v33  ;;  %v22454_v52 = vld [vmem:[#allocation49_spill] sm:$0xff] }
 0x5de   : > { %v12374_v40 = vsel %vm12219_vm7, %v11446_v12, %v12373_v57  ;;  %v11497_v1 = vrot.slane %v11496_v49, 4  ;;  %v9945_v20 = vmax.f32 %v20051_v7, %v9944_v25  ;;  %v9948_v43 = vmax.f32 %v20080_v62, %v9947_v59 }
 0x5df   : > { %v9952_v63 = vsel %vm9390_vm0, %v8248_v27, -inf  ;;  %12493 = vst.msk [vmem:[%s18362_s24 + $0xb0] sm:$0xff] %vm12470_vm8, %v12374_v40  ;;  %v11485_v10 = vrot.slane %v11484_v9, 2  ;;  %v11492_v50 = vrot.slane %v11491_v18, 2  ;;  %v9950_v39 = vsel %vm9390_vm0, %v8314_v14, -inf }
 0x5e0   : > { %v11498_v4 = vmax.f32 %v11496_v49, %v11497_v1  ;;  %v9951_v12 = vmax.f32 %v20084_v22, %v9950_v39  ;;  %v9953_v60 = vsel %vm9390_vm0, %v8316_v54, -inf  ;;  %v11447_v7 = vsel %vm9390_vm0, %v9945_v20, -inf }
 0x5e1   : > { %v11479_v62 = vmax.f32 %v11477_v55, %v11478_v44  ;;  %v9954_v53 = vmax.f32 %v9952_v63, %v9953_v60  ;;  %v6263_v17 = vadd.f32 %v14747_v21, %v20031_v46  ;;  %v11448_v27 = vrot.slane %v11447_v7, 4  ;;  %v6268_v55 = vpop.f32.mrf.mxu1 }
 0x5e2   : > { %v11499_v30 = vrot.slane %v11498_v4, 2  ;;  %v11454_v19 = vsel %vm9390_vm0, %v9948_v43, -inf  ;;  %v11461_v47 = vsel %vm9390_vm0, %v9951_v12, -inf  ;;  %v5408_v36 = vadd.f32 %v5407_v16, %v22451_v26  ;;  %v5431_v16 = vpop.f32.mrf.mxu0 }
 0x5e3   : > { %v5426_v22 = vadd.f32 %v14526_v28, %v22452_v2  ;;  %v11486_v24 = vmax.f32 %v11484_v9, %v11485_v10  ;;  %v11455_v32 = vrot.slane %v11454_v19, 4  ;;  %v11493_v6 = vmax.f32 %v11491_v18, %v11492_v50  ;;  %v22455_v10 = vld [vmem:[#allocation51_spill] sm:$0xff]  ;;  %v14753_v39 = vpop.f32.mrf.mxu1  ;;  %v22456_v2 = vld [vmem:[#allocation52_spill] sm:$0xff] }
 0x5e4   : > { %v11449_v51 = vmax.f32 %v11447_v7, %v11448_v27  ;;  %v11462_v14 = vrot.slane %v11461_v47, 4  ;;  %v11468_v34 = vsel %vm9390_vm0, %v9954_v53, -inf  ;;  %v11480_v46 = vrot.slane %v11479_v62, 1  ;;  %v14532_v9 = vpop.f32.mrf.mxu0 }
 0x5e5   : > { %v5420_v42 = vadd.f32 %v5419_v37, %v22453_v35  ;;  %v11456_v3 = vmax.f32 %v11454_v19, %v11455_v32  ;;  %v11469_v29 = vrot.slane %v11468_v34, 4  ;;  %v11500_v41 = vmax.f32 %v11498_v4, %v11499_v30 }
 0x5e6   : > { %v11450_v0 = vrot.slane %v11449_v51, 2  ;;  %v11463_v58 = vmax.f32 %v11461_v47, %v11462_v14  ;;  %v6543_v56 = vmax.f32 %v6263_v17, 0.0  ;;  %v11487_v23 = vrot.slane %v11486_v24, 1  ;;  %v5443_v30 = vpop.f32.mrf.mxu0 }
 0x5e7   : > { %v11457_v54 = vrot.slane %v11456_v3, 2  ;;  %v11470_v5 = vmax.f32 %v11468_v34, %v11469_v29  ;;  %v6257_v28 = vadd.f32 %v6256_v48, %v5408_v36  ;;  %v11494_v45 = vrot.slane %v11493_v6, 1 }
 0x5e8   : > { %v11451_v61 = vmax.f32 %v11449_v51, %v11450_v0  ;;  %v11464_v8 = vrot.slane %v11463_v58, 2  ;;  %v8351_v15 = vcombine.high %v6543_v56, %v6543_v56  ;;  %v5438_v49 = vadd.f32 %v14529_v31, %v22454_v52  ;;  %v14535_v29 = vpop.f32.mrf.mxu0 }
 0x5e9   : > { %v11458_v38 = vmax.f32 %v11456_v3, %v11457_v54  ;;  %v11471_v33 = vrot.slane %v11470_v5, 2  ;;  %v6542_v25 = vmax.f32 %v6257_v28, 0.0  ;;  %v11481_v59 = vmax.f32 %v11479_v62, %v11480_v46 }
 0x5ea   : > { %v11501_v21 = vrot.slane %v11500_v41, 1  ;;  %v11452_v57 = vrot.slane %v11451_v61, 1  ;;  %v11465_v44 = vmax.f32 %v11463_v58, %v11464_v8  ;;  %v11488_v18 = vmax.f32 %v11486_v24, %v11487_v23 }
 0x5eb   : > { %v11459_v40 = vrot.slane %v11458_v38, 1  ;;  %v11472_v1 = vmax.f32 %v11470_v5, %v11471_v33  ;;  %v8358_v37 = vrot.slane %v6543_v56, %v18149_v11  ;;  %v11495_v20 = vmax.f32 %v11493_v6, %v11494_v45  ;;  %v6280_v6 = vpop.f32.mrf.mxu1  ;;  %v22457_v45 = vld [vmem:[#allocation53_spill] sm:$0xff] }
 0x5ec   : > { %v11466_v43 = vrot.slane %v11465_v44, 1  ;;  %v8365_v63 = vrot.slane %v8351_v15, %v18149_v11  ;;  %v5432_v50 = vadd.f32 %v5431_v16, %v22455_v10  ;;  %v11453_v4 = vmax.f32 %v11451_v61, %v11452_v57  ;;  %v22459_v10 = vld [vmem:[#allocation55_spill] sm:$0xff] }
 0x5ed   : > { %v11460_v12 = vmax.f32 %v11458_v38, %v11459_v40  ;;  %v11473_v60 = vrot.slane %v11472_v1, 1  ;;  %v8334_v7 = vcombine.high %v6542_v25, %v6542_v25  ;;  %v11502_v48 = vmax.f32 %v11500_v41, %v11501_v21  ;;  %v14756_v5 = vpop.f32.mrf.mxu1 }
 0x5ee   : > { %v11467_v62 = vmax.f32 %v11465_v44, %v11466_v43  ;;  %v8341_v53 = vrot.slane %v6542_v25, %v18149_v11  ;;  %v6275_v17 = vadd.f32 %v14750_v13, %v5426_v22  ;;  %v8366_v47 = vcombine.high %v8358_v37, %v8358_v37  ;;  %v5455_v25 = vpop.f32.mrf.mxu0 }
 0x5ef   : > { %v11474_v27 = vmax.f32 %v11472_v1, %v11473_v60  ;;  %v12375_v19 = vsel %vm12207_vm1, %v11460_v12, %v11453_v4  ;;  %v8348_v31 = vrot.slane %v8334_v7, %v18149_v11  ;;  %v8367_v36 = vcombine.high %v8365_v63, %v8365_v63 }
 0x5f0   : > { %v12376_v26 = vsel %vm12209_vm2, %v11467_v62, %v12375_v19  ;;  %v5450_v24 = vadd.f32 %v14532_v9, %v22456_v2  ;;  %v6545_v32 = vmax.f32 %v6275_v17, 0.0  ;;  %v20143_v14 = vsel %vm9390_vm0, %v8358_v37, -inf  ;;  %v6292_v37 = vpop.f32.mrf.mxu1 }
 0x5f1   : > { %v12377_v51 = vsel %vm12211_vm3, %v11474_v27, %v12376_v26  ;;  %v20146_v22 = vsel %vm9390_vm0, %v8365_v63, -inf  ;;  %v6269_v34 = vadd.f32 %v6268_v55, %v5420_v42  ;;  %v8349_v46 = vcombine.high %v8341_v53, %v8341_v53 }
 0x5f2   : > { %v12378_v13 = vsel %vm12213_vm4, %v11481_v59, %v12377_v51  ;;  %v8385_v35 = vcombine.high %v6545_v32, %v6545_v32  ;;  %v8392_v3 = vrot.slane %v6545_v32, %v18149_v11  ;;  %v9982_v0 = vsel %vm9390_vm0, %v8366_v47, -inf }
 0x5f3   : > { %v12379_v41 = vsel %vm12215_vm5, %v11488_v18, %v12378_v13  ;;  %v8350_v58 = vcombine.high %v8348_v31, %v8348_v31  ;;  %v6544_v56 = vmax.f32 %v6269_v34, 0.0  ;;  %v9988_v23 = vsel %vm9390_vm0, %v8367_v36, -inf }
 0x5f4   : > { %v12380_v16 = vsel %vm12217_vm6, %v11495_v20, %v12379_v41  ;;  %v8399_v42 = vrot.slane %v8385_v35, %v18149_v11  ;;  %v8400_v54 = vcombine.high %v8392_v3, %v8392_v3  ;;  %v5444_v61 = vadd.f32 %v5443_v30, %v22457_v45 }
 0x5f5   : > { %v12381_v28 = vsel %vm12219_vm7, %v11502_v48, %v12380_v16  ;;  %v8368_v8 = vcombine.high %v6544_v56, %v6544_v56  ;;  %v6287_v15 = vadd.f32 %v14753_v39, %v5438_v49  ;;  %v20160_v55 = vsel %vm9390_vm0, %v8341_v53, -inf  ;;  %v22458_v49 = vld [vmem:[#allocation21_spill] sm:$0xff] }
 0x5f6   : > { %12494 = vst.msk [vmem:[%s18362_s24 + $0xb8] sm:$0xff] %vm12470_vm8, %v12381_v28  ;;  %v20163_v38 = vsel %vm9390_vm0, %v8349_v46, -inf  ;;  %v20166_v33 = vsel %vm9390_vm0, %v8348_v31, -inf  ;;  %v20169_v52 = vrot.slane %v6544_v56, %v18149_v11  ;;  %v20172_v59 = vsel %vm9390_vm0, %v8350_v58, -inf }
 0x5f7   : > { %v8401_v21 = vcombine.high %v8399_v42, %v8399_v42  ;;  %v20175_v57 = vadd.f32 %v14535_v29, %v22458_v49  ;;  %v6547_v44 = vmax.f32 %v6287_v15, 0.0  ;;  %v20178_v9 = vsel %vm9390_vm0, %v8392_v3, -inf }
 0x5f8   : > { %v20181_v18 = vsel %vm9390_vm0, %v8400_v54, -inf  ;;  %v6281_v40 = vadd.f32 %v6280_v6, %v5432_v50  ;;  %v6299_v1 = vadd.f32 %v14756_v5, %v5450_v24  ;;  %v20184_v20 = vsel %vm9390_vm0, %v8399_v42, -inf }
 0x5f9   : > { %v20187_v43 = vrot.slane %v8368_v8, %v18149_v11  ;;  %v8419_v63 = vcombine.high %v6547_v44, %v6547_v44  ;;  %v20190_v39 = vadd.f32 %v5455_v25, %v22459_v10  ;;  %v8383_v4 = vcombine.high %v20169_v52, %v20169_v52 }
 0x5fa   : > { %v8426_v12 = vrot.slane %v6547_v44, %v18149_v11  ;;  %v6546_v60 = vmax.f32 %v6281_v40, 0.0  ;;  %v20195_v7 = vmax.f32 %v6299_v1, 0.0  ;;  %v20198_v50 = vsel %vm9390_vm0, %v8401_v21, -inf }
 0x5fb   : > { %v20202_v48 = vsel %vm9390_vm0, %v20169_v52, -inf  ;;  %v8433_v62 = vrot.slane %v8419_v63, %v18149_v11  ;;  %v20205_v53 = vadd.f32 %v6292_v37, %v5444_v61 }
 0x5fc   : > { %v8434_v17 = vcombine.high %v8426_v12, %v8426_v12  ;;  %v9980_v30 = vsel %vm9390_vm0, %v8426_v12, -inf  ;;  %v8402_v27 = vcombine.high %v6546_v60, %v6546_v60  ;;  %v8409_v19 = vrot.slane %v6546_v60, %v18149_v11 }
 0x5fd   : > { %v8435_v47 = vcombine.high %v8433_v62, %v8433_v62  ;;  %v9981_v31 = vmax.f32 %v20143_v14, %v9980_v30  ;;  %v9986_v26 = vsel %vm9390_vm0, %v8433_v62, -inf  ;;  %v8453_v36 = vcombine.high %v20195_v7, %v20195_v7 }
 0x5fe   : > { %v9983_v2 = vsel %vm9390_vm0, %v8434_v17, -inf  ;;  %v9987_v24 = vmax.f32 %v20146_v22, %v9986_v26  ;;  %v8416_v32 = vrot.slane %v8402_v27, %v18149_v11  ;;  %v8417_v6 = vcombine.high %v8409_v19, %v8409_v19 }
 0x5ff   : > { %v9984_v51 = vmax.f32 %v9982_v0, %v9983_v2  ;;  %v9989_v34 = vsel %vm9390_vm0, %v8435_v47, -inf  ;;  %v11531_v13 = vsel %vm9390_vm0, %v9981_v31, -inf  ;;  %v9968_v46 = vsel %vm9390_vm0, %v8409_v19, -inf }
 0x600   : > { %v9990_v14 = vmax.f32 %v9988_v23, %v9989_v34  ;;  %v11532_v35 = vrot.slane %v11531_v13, 4  ;;  %v11545_v3 = vsel %vm9390_vm0, %v9987_v24, -inf  ;;  %v8418_v29 = vcombine.high %v8416_v32, %v8416_v32 }
 0x601   : > { %v11538_v41 = vsel %vm9390_vm0, %v9984_v51, -inf  ;;  %v11546_v58 = vrot.slane %v11545_v3, 4  ;;  %v9969_v22 = vmax.f32 %v20160_v55, %v9968_v46  ;;  %v9971_v56 = vsel %vm9390_vm0, %v8417_v6, -inf }
 0x602   : > { %v11533_v16 = vmax.f32 %v11531_v13, %v11532_v35  ;;  %v11539_v0 = vrot.slane %v11538_v41, 4  ;;  %v11552_v42 = vsel %vm9390_vm0, %v9990_v14, -inf  ;;  %v9972_v54 = vmax.f32 %v20163_v38, %v9971_v56 }
 0x603   : > { %v11547_v5 = vmax.f32 %v11545_v3, %v11546_v58  ;;  %v11553_v28 = vrot.slane %v11552_v42, 4  ;;  %v9974_v23 = vsel %vm9390_vm0, %v8416_v32, -inf  ;;  %v9977_v45 = vsel %vm9390_vm0, %v8418_v29, -inf }
 0x604   : > { %v11534_v61 = vrot.slane %v11533_v16, 2  ;;  %v11540_v8 = vmax.f32 %v11538_v41, %v11539_v0  ;;  %v9975_v15 = vmax.f32 %v20166_v33, %v9974_v23  ;;  %v9978_v55 = vmax.f32 %v20172_v59, %v9977_v45 }
 0x605   : > { %v11548_v25 = vrot.slane %v11547_v5, 2  ;;  %v11554_v21 = vmax.f32 %v11552_v42, %v11553_v28  ;;  %v11503_v49 = vsel %vm9390_vm0, %v9969_v22, -inf  ;;  %v11510_v44 = vsel %vm9390_vm0, %v9972_v54, -inf }
 0x606   : > { %v11535_v40 = vmax.f32 %v11533_v16, %v11534_v61  ;;  %v11541_v38 = vrot.slane %v11540_v8, 2  ;;  %v11504_v1 = vrot.slane %v11503_v49, 4  ;;  %v11511_v37 = vrot.slane %v11510_v44, 4 }
 0x607   : > { %v11549_v63 = vmax.f32 %v11547_v5, %v11548_v25  ;;  %v11555_v10 = vrot.slane %v11554_v21, 2  ;;  %v11517_v12 = vsel %vm9390_vm0, %v9975_v15, -inf  ;;  %v11524_v60 = vsel %vm9390_vm0, %v9978_v55, -inf }
 0x608   : > { %v11536_v62 = vrot.slane %v11535_v40, 1  ;;  %v11542_v33 = vmax.f32 %v11540_v8, %v11541_v38  ;;  %v11505_v17 = vmax.f32 %v11503_v49, %v11504_v1  ;;  %v11512_v59 = vmax.f32 %v11510_v44, %v11511_v37  ;;  %v14538_v37 = vpop.f32.mrf.mxu0 }
 0x609   : > { %v11550_v30 = vrot.slane %v11549_v63, 1  ;;  %v11556_v27 = vmax.f32 %v11554_v21, %v11555_v10  ;;  %v11518_v19 = vrot.slane %v11517_v12, 4  ;;  %v11525_v47 = vrot.slane %v11524_v60, 4 }
 0x60a   : > { %v11537_v31 = vmax.f32 %v11535_v40, %v11536_v62  ;;  %v11543_v26 = vrot.slane %v11542_v33, 1  ;;  %v11506_v2 = vrot.slane %v11505_v17, 2  ;;  %v11513_v24 = vrot.slane %v11512_v59, 2 }
 0x60b   : > { %v11551_v32 = vmax.f32 %v11549_v63, %v11550_v30  ;;  %v11557_v6 = vrot.slane %v11556_v27, 1  ;;  %v11519_v51 = vmax.f32 %v11517_v12, %v11518_v19  ;;  %v11526_v34 = vmax.f32 %v11524_v60, %v11525_v47 }
 0x60c   : > { %v11544_v13 = vmax.f32 %v11542_v33, %v11543_v26  ;;  %v11507_v46 = vmax.f32 %v11505_v17, %v11506_v2  ;;  %v11514_v14 = vmax.f32 %v11512_v59, %v11513_v24  ;;  %v8460_v35 = vrot.slane %v20195_v7, %v18149_v11  ;;  %v5467_v24 = vpop.f32.mrf.mxu0 }
 0x60d   : > { %v11558_v3 = vmax.f32 %v11556_v27, %v11557_v6  ;;  %v11520_v29 = vrot.slane %v11519_v51, 2  ;;  %v11527_v41 = vrot.slane %v11526_v34, 2  ;;  %v8467_v58 = vrot.slane %v8453_v36, %v18149_v11 }
 0x60e   : > { %v11508_v22 = vrot.slane %v11507_v46, 1  ;;  %v11515_v56 = vrot.slane %v11514_v14, 1  ;;  %v8468_v16 = vcombine.high %v8460_v35, %v8460_v35  ;;  %v10004_v0 = vsel %vm9390_vm0, %v8460_v35, -inf  ;;  %v14759_v35 = vpop.f32.mrf.mxu1 }
 0x60f   : > { %v11521_v42 = vmax.f32 %v11519_v51, %v11520_v29  ;;  %v11528_v54 = vmax.f32 %v11526_v34, %v11527_v41  ;;  %v8469_v5 = vcombine.high %v8467_v58, %v8467_v58  ;;  %v10005_v28 = vmax.f32 %v20178_v9, %v10004_v0 }
 0x610   : > { %v11509_v23 = vmax.f32 %v11507_v46, %v11508_v22  ;;  %v11516_v45 = vmax.f32 %v11514_v14, %v11515_v56  ;;  %v10007_v61 = vsel %vm9390_vm0, %v8468_v16, -inf  ;;  %v10010_v8 = vsel %vm9390_vm0, %v8467_v58, -inf  ;;  %v22460_v56 = vld [vmem:[#allocation24_spill] sm:$0xff] }
 0x611   : > { %v11522_v15 = vrot.slane %v11521_v42, 1  ;;  %v11529_v55 = vrot.slane %v11528_v54, 1  ;;  %v10008_v7 = vmax.f32 %v20181_v18, %v10007_v61  ;;  %v10011_v36 = vmax.f32 %v20184_v20, %v10010_v8 }
 0x612   : > { %v12382_v25 = vsel %vm12207_vm1, %v11516_v45, %v11509_v23  ;;  %v10013_v21 = vsel %vm9390_vm0, %v8469_v5, -inf  ;;  %v11587_v49 = vsel %vm9390_vm0, %v10005_v28, -inf  ;;  %v6548_v9 = vmax.f32 %v20205_v53, 0.0  ;;  %v22461_v28 = vld [vmem:[#allocation56_spill] sm:$0xff]  ;;  %v6304_v45 = vpop.f32.mrf.mxu1 }
 0x613   : > { %v11523_v44 = vmax.f32 %v11521_v42, %v11522_v15  ;;  %v11530_v40 = vmax.f32 %v11528_v54, %v11529_v55  ;;  %v10014_v38 = vmax.f32 %v20198_v50, %v10013_v21  ;;  %v11588_v1 = vrot.slane %v11587_v49, 4  ;;  %v14541_v54 = vpop.f32.mrf.mxu0  ;;  %v22462_v21 = vld [vmem:[#allocation31_spill] sm:$0xff] }
 0x614   : > { %v11594_v63 = vsel %vm9390_vm0, %v10008_v7, -inf  ;;  %v11601_v18 = vsel %vm9390_vm0, %v10011_v36, -inf  ;;  %v8436_v10 = vcombine.high %v6548_v9, %v6548_v9  ;;  %v8443_v20 = vrot.slane %v6548_v9, %v18149_v11 }
 0x615   : > { %v12383_v12 = vsel %vm12209_vm2, %v11523_v44, %v12382_v25  ;;  %v11589_v60 = vmax.f32 %v11587_v49, %v11588_v1  ;;  %v11595_v62 = vrot.slane %v11594_v63, 4  ;;  %v11602_v33 = vrot.slane %v11601_v18, 4 }
 0x616   : > { %v12384_v53 = vsel %vm12211_vm3, %v11530_v40, %v12383_v12  ;;  %v11608_v17 = vsel %vm9390_vm0, %v10014_v38, -inf  ;;  %v8450_v50 = vrot.slane %v8436_v10, %v18149_v11  ;;  %v8451_v59 = vcombine.high %v8443_v20, %v8443_v20  ;;  %v14762_v10 = vpop.f32.mrf.mxu1 }
 0x617   : > { %v12385_v30 = vsel %vm12213_vm4, %v11537_v31, %v12384_v53  ;;  %v11590_v27 = vrot.slane %v11589_v60, 2  ;;  %v11596_v19 = vmax.f32 %v11594_v63, %v11595_v62  ;;  %v11603_v47 = vmax.f32 %v11601_v18, %v11602_v33 }
 0x618   : > { %v12386_v26 = vsel %vm12215_vm5, %v11544_v13, %v12385_v30  ;;  %v11609_v2 = vrot.slane %v11608_v17, 4  ;;  %v8452_v6 = vcombine.high %v8450_v50, %v8450_v50  ;;  %v9992_v51 = vsel %vm9390_vm0, %v8443_v20, -inf }
 0x619   : > { %v8384_v34 = vcombine.high %v20187_v43, %v20187_v43  ;;  %v9994_v46 = vsel %vm9390_vm0, %v8383_v4, -inf  ;;  %v12387_v31 = vsel %vm12217_vm6, %v11551_v32, %v12386_v26  ;;  %v11591_v14 = vmax.f32 %v11589_v60, %v11590_v27 }
 0x61a   : > { %v12388_v29 = vsel %vm12219_vm7, %v11558_v3, %v12387_v31  ;;  %v11597_v13 = vrot.slane %v11596_v19, 2  ;;  %v9993_v41 = vmax.f32 %v20202_v48, %v9992_v51  ;;  %v9995_v58 = vsel %vm9390_vm0, %v8451_v59, -inf }
 0x61b   : > { %v9997_v22 = vsel %vm9390_vm0, %v20187_v43, -inf  ;;  %12495 = vst.msk [vmem:[%s18362_s24 + $0xc0] sm:$0xff] %vm12470_vm8, %v12388_v29  ;;  %v5474_v52 = vadd.f32 %v14538_v37, %v22460_v56  ;;  %v11610_v16 = vmax.f32 %v11608_v17, %v11609_v2  ;;  %v9996_v4 = vmax.f32 %v9994_v46, %v9995_v58 }
 0x61c   : > { %v11604_v0 = vrot.slane %v11603_v47, 2  ;;  %v9998_v32 = vsel %vm9390_vm0, %v8450_v50, -inf  ;;  %v10001_v42 = vsel %vm9390_vm0, %v8452_v6, -inf  ;;  %v11559_v3 = vsel %vm9390_vm0, %v9993_v41, -inf  ;;  %v6316_v6 = vpop.f32.mrf.mxu1 }
 0x61d   : > { %v10000_v48 = vsel %vm9390_vm0, %v8384_v34, -inf  ;;  %v11592_v5 = vrot.slane %v11591_v14, 1  ;;  %v20280_v23 = vadd.f32 %v5467_v24, %v22461_v28  ;;  %v9999_v43 = vmax.f32 %v9997_v22, %v9998_v32 }
 0x61e   : > { %v11598_v61 = vmax.f32 %v11596_v19, %v11597_v13  ;;  %v10002_v8 = vmax.f32 %v10000_v48, %v10001_v42  ;;  %v11560_v15 = vrot.slane %v11559_v3, 4  ;;  %v11566_v55 = vsel %vm9390_vm0, %v9996_v4, -inf  ;;  %v5479_v19 = vpop.f32.mrf.mxu0  ;;  %v14765_v42 = vpop.f32.mrf.mxu1  ;;  %v22463_v48 = vld [vmem:[#allocation57_spill] sm:$0xff] }
 0x61f   : > { %v11611_v7 = vrot.slane %v11610_v16, 2  ;;  %v11567_v36 = vrot.slane %v11566_v55, 4  ;;  %v11573_v25 = vsel %vm9390_vm0, %v9999_v43, -inf  ;;  %v20285_v49 = vadd.f32 %v14541_v54, %v22462_v21 }
 0x620   : > { %v11605_v9 = vmax.f32 %v11603_v47, %v11604_v0  ;;  %v11561_v44 = vmax.f32 %v11559_v3, %v11560_v15  ;;  %v11574_v40 = vrot.slane %v11573_v25, 4  ;;  %v11580_v38 = vsel %vm9390_vm0, %v10002_v8, -inf  ;;  %v14544_v22 = vpop.f32.mrf.mxu0  ;;  %v22464_v8 = vld [vmem:[#allocation6_spill] sm:$0xff] }
 0x621   : > { %v11593_v1 = vmax.f32 %v11591_v14, %v11592_v5  ;;  %v11568_v37 = vmax.f32 %v11566_v55, %v11567_v36  ;;  %v11581_v63 = vrot.slane %v11580_v38, 4  ;;  %v6311_v18 = vadd.f32 %v14759_v35, %v20175_v57 }
 0x622   : > { %v11599_v20 = vrot.slane %v11598_v61, 1  ;;  %v11562_v12 = vrot.slane %v11561_v44, 2  ;;  %v11575_v60 = vmax.f32 %v11573_v25, %v11574_v40  ;;  %v6305_v62 = vadd.f32 %v6304_v45, %v20190_v39 }
 0x623   : > { %v11612_v33 = vmax.f32 %v11610_v16, %v11611_v7  ;;  %v11569_v53 = vrot.slane %v11568_v37, 2  ;;  %v11582_v17 = vmax.f32 %v11580_v38, %v11581_v63  ;;  %v6551_v50 = vmax.f32 %v6311_v18, 0.0  ;;  %v6328_v38 = vpop.f32.mrf.mxu1 }
 0x624   : > { %v11606_v59 = vrot.slane %v11605_v9, 1  ;;  %v11563_v30 = vmax.f32 %v11561_v44, %v11562_v12  ;;  %v11576_v27 = vrot.slane %v11575_v60, 2  ;;  %v6550_v47 = vmax.f32 %v6305_v62, 0.0  ;;  %v5491_v44 = vpop.f32.mrf.mxu0 }
 0x625   : > { %v11570_v26 = vmax.f32 %v11568_v37, %v11569_v53  ;;  %v11583_v2 = vrot.slane %v11582_v17, 2  ;;  %v8487_v24 = vcombine.high %v6551_v50, %v6551_v50  ;;  %v8494_v57 = vrot.slane %v6551_v50, %v18149_v11 }
 0x626   : > { %v11600_v51 = vmax.f32 %v11598_v61, %v11599_v20  ;;  %v11564_v34 = vrot.slane %v11563_v30, 1  ;;  %v11577_v46 = vmax.f32 %v11575_v60, %v11576_v27  ;;  %v8470_v31 = vcombine.high %v6550_v47, %v6550_v47 }
 0x627   : > { %v11613_v39 = vrot.slane %v11612_v33, 1  ;;  %v11571_v14 = vrot.slane %v11570_v26, 1  ;;  %v11584_v35 = vmax.f32 %v11582_v17, %v11583_v2  ;;  %v8501_v29 = vrot.slane %v8487_v24, %v18149_v11 }
 0x628   : > { %v11607_v13 = vmax.f32 %v11605_v9, %v11606_v59  ;;  %v11578_v41 = vrot.slane %v11577_v46, 1  ;;  %v8502_v58 = vcombine.high %v8494_v57, %v8494_v57  ;;  %v6323_v56 = vadd.f32 %v14762_v10, %v5474_v52 }
 0x629   : > { %v11565_v16 = vmax.f32 %v11563_v30, %v11564_v34  ;;  %v11572_v4 = vmax.f32 %v11570_v26, %v11571_v14  ;;  %v11585_v0 = vrot.slane %v11584_v35, 1  ;;  %v8477_v32 = vrot.slane %v6550_v47, %v18149_v11  ;;  %v14547_v30 = vpop.f32.mrf.mxu0 }
 0x62a   : > { %v11579_v3 = vmax.f32 %v11577_v46, %v11578_v41  ;;  %v8503_v54 = vcombine.high %v8501_v29, %v8501_v29  ;;  %v5480_v5 = vadd.f32 %v5479_v19, %v22463_v48  ;;  %v8484_v28 = vrot.slane %v8470_v31, %v18149_v11  ;;  %v22466_v31 = vld [vmem:[#allocation34_spill] sm:$0xff] }
 0x62b   : > { %v11614_v43 = vmax.f32 %v11612_v33, %v11613_v39  ;;  %v11586_v45 = vmax.f32 %v11584_v35, %v11585_v0  ;;  %v12389_v61 = vsel %vm12207_vm1, %v11572_v4, %v11565_v16  ;;  %v20297_v15 = vadd.f32 %v14544_v22, %v22464_v8 }
 0x62c   : > { %v12390_v52 = vsel %vm12209_vm2, %v11579_v3, %v12389_v61  ;;  %v10027_v55 = vsel %vm9390_vm0, %v8494_v57, -inf  ;;  %v10030_v7 = vsel %vm9390_vm0, %v8502_v58, -inf  ;;  %v10033_v36 = vsel %vm9390_vm0, %v8501_v29, -inf  ;;  %v22465_v57 = vld [vmem:[#allocation58_spill] sm:$0xff] }
 0x62d   : > { %v12391_v25 = vsel %vm12211_vm3, %v11586_v45, %v12390_v52  ;;  %v8485_v21 = vcombine.high %v8477_v32, %v8477_v32  ;;  %v6553_v9 = vmax.f32 %v6323_v56, 0.0  ;;  %v6317_v40 = vadd.f32 %v6316_v6, %v20280_v23 }
 0x62e   : > { %v12392_v37 = vsel %vm12213_vm4, %v11593_v1, %v12391_v25  ;;  %v10036_v63 = vsel %vm9390_vm0, %v8503_v54, -inf  ;;  %v8486_v18 = vcombine.high %v8484_v28, %v8484_v28  ;;  %v6335_v10 = vadd.f32 %v14765_v42, %v20285_v49 }
 0x62f   : > { %v12393_v20 = vsel %vm12215_vm5, %v11600_v51, %v12392_v37  ;;  %v8521_v12 = vcombine.high %v6553_v9, %v6553_v9  ;;  %v8528_v60 = vrot.slane %v6553_v9, %v18149_v11  ;;  %v6552_v62 = vmax.f32 %v6317_v40, 0.0 }
 0x630   : > { %v12394_v33 = vsel %vm12217_vm6, %v11607_v13, %v12393_v20  ;;  %v20312_v53 = vsel %vm9390_vm0, %v8477_v32, -inf  ;;  %v6555_v23 = vmax.f32 %v6335_v10, 0.0  ;;  %v6329_v17 = vadd.f32 %v6328_v38, %v5480_v5 }
 0x631   : > { %v12395_v1 = vsel %vm12219_vm7, %v11614_v43, %v12394_v33  ;;  %v20316_v50 = vsel %vm9390_vm0, %v8485_v21, -inf  ;;  %v20319_v49 = vrot.slane %v8521_v12, %v18149_v11  ;;  %v8536_v59 = vcombine.high %v8528_v60, %v8528_v60 }
 0x632   : > { %12496 = vst.msk [vmem:[%s18362_s24 + $0xc8] sm:$0xff] %vm12470_vm8, %v12395_v1  ;;  %v8504_v27 = vcombine.high %v6552_v62, %v6552_v62  ;;  %v20324_v19 = vrot.slane %v6552_v62, %v18149_v11  ;;  %v8555_v47 = vcombine.high %v6555_v23, %v6555_v23  ;;  %v8562_v26 = vrot.slane %v6555_v23, %v18149_v11 }
 0x633   : > { %v10021_v2 = vsel %vm9390_vm0, %v8484_v28, -inf  ;;  %v20329_v24 = vsel %vm9390_vm0, %v8486_v18, -inf  ;;  %v20332_v6 = vadd.f32 %v5491_v44, %v22465_v57  ;;  %v6554_v51 = vmax.f32 %v6329_v17, 0.0 }
 0x634   : > { %v8537_v34 = vcombine.high %v20319_v49, %v20319_v49  ;;  %v20337_v46 = vsel %vm9390_vm0, %v8528_v60, -inf  ;;  %v20340_v39 = vadd.f32 %v14547_v30, %v22466_v31  ;;  %v8569_v14 = vrot.slane %v8555_v47, %v18149_v11 }
 0x635   : > { %v20344_v35 = vsel %vm9390_vm0, %v8536_v59, -inf  ;;  %v8570_v29 = vcombine.high %v8562_v26, %v8562_v26  ;;  %v10028_v13 = vsel %vm9390_vm0, %v8562_v26, -inf  ;;  %v8538_v41 = vcombine.high %v6554_v51, %v6554_v51 }
 0x636   : > { %v20349_v58 = vsel %vm9390_vm0, %v20319_v49, -inf  ;;  %v20352_v22 = vrot.slane %v8504_v27, %v18149_v11  ;;  %v8519_v56 = vcombine.high %v20324_v19, %v20324_v19  ;;  %v8571_v16 = vcombine.high %v8569_v14, %v8569_v14 }
 0x637   : > { %v10029_v4 = vmax.f32 %v10027_v55, %v10028_v13  ;;  %v10031_v0 = vsel %vm9390_vm0, %v8570_v29, -inf  ;;  %v10034_v32 = vsel %vm9390_vm0, %v8569_v14, -inf  ;;  %v8545_v42 = vrot.slane %v6554_v51, %v18149_v11 }
 0x638   : > { %v20361_v3 = vsel %vm9390_vm0, %v20324_v19, -inf  ;;  %v10032_v54 = vmax.f32 %v10030_v7, %v10031_v0  ;;  %v10035_v48 = vmax.f32 %v10033_v36, %v10034_v32  ;;  %v10037_v5 = vsel %vm9390_vm0, %v8571_v16, -inf  ;;  %v14768_v19 = vpop.f32.mrf.mxu1 }
 0x639   : > { %v10038_v28 = vmax.f32 %v10036_v63, %v10037_v5  ;;  %v11643_v43 = vsel %vm9390_vm0, %v10029_v4, -inf  ;;  %v8552_v45 = vrot.slane %v8538_v41, %v18149_v11  ;;  %v8553_v61 = vcombine.high %v8545_v42, %v8545_v42 }
 0x63a   : > { %v11644_v8 = vrot.slane %v11643_v43, 4  ;;  %v11650_v52 = vsel %vm9390_vm0, %v10032_v54, -inf  ;;  %v11657_v55 = vsel %vm9390_vm0, %v10035_v48, -inf  ;;  %v10016_v25 = vsel %vm9390_vm0, %v8545_v42, -inf  ;;  %v6340_v42 = vpop.f32.mrf.mxu1 }
 0x63b   : > { %v11651_v21 = vrot.slane %v11650_v52, 4  ;;  %v11658_v9 = vrot.slane %v11657_v55, 4  ;;  %v11664_v7 = vsel %vm9390_vm0, %v10038_v28, -inf  ;;  %v8554_v36 = vcombine.high %v8552_v45, %v8552_v45 }
 0x63c   : > { %v11645_v44 = vmax.f32 %v11643_v43, %v11644_v8  ;;  %v11665_v40 = vrot.slane %v11664_v7, 4  ;;  %v10017_v38 = vmax.f32 %v20312_v53, %v10016_v25  ;;  %v10019_v37 = vsel %vm9390_vm0, %v8553_v61, -inf }
 0x63d   : > { %v11652_v63 = vmax.f32 %v11650_v52, %v11651_v21  ;;  %v11659_v18 = vmax.f32 %v11657_v55, %v11658_v9  ;;  %v10020_v10 = vmax.f32 %v20316_v50, %v10019_v37  ;;  %v10022_v20 = vsel %vm9390_vm0, %v8552_v45, -inf }
 0x63e   : > { %v11646_v12 = vrot.slane %v11645_v44, 2  ;;  %v11666_v60 = vmax.f32 %v11664_v7, %v11665_v40  ;;  %v10023_v62 = vmax.f32 %v10021_v2, %v10022_v20  ;;  %v10025_v33 = vsel %vm9390_vm0, %v8554_v36, -inf }
 0x63f   : > { %v11653_v23 = vrot.slane %v11652_v63, 2  ;;  %v11660_v17 = vrot.slane %v11659_v18, 2  ;;  %v10026_v1 = vmax.f32 %v20329_v24, %v10025_v33  ;;  %v11615_v49 = vsel %vm9390_vm0, %v10017_v38, -inf }
 0x640   : > { %v11647_v53 = vmax.f32 %v11645_v44, %v11646_v12  ;;  %v11667_v59 = vrot.slane %v11666_v60, 2  ;;  %v11616_v30 = vrot.slane %v11615_v49, 4  ;;  %v11622_v27 = vsel %vm9390_vm0, %v10020_v10, -inf }
 0x641   : > { %v11654_v50 = vmax.f32 %v11652_v63, %v11653_v23  ;;  %v11661_v47 = vmax.f32 %v11659_v18, %v11660_v17  ;;  %v11623_v26 = vrot.slane %v11622_v27, 4  ;;  %v11629_v57 = vsel %vm9390_vm0, %v10023_v62, -inf }
 0x642   : > { %v11648_v2 = vrot.slane %v11647_v53, 1  ;;  %v11668_v51 = vmax.f32 %v11666_v60, %v11667_v59  ;;  %v11617_v31 = vmax.f32 %v11615_v49, %v11616_v30  ;;  %v11630_v14 = vrot.slane %v11629_v57, 4  ;;  %v5503_v59 = vpop.f32.mrf.mxu0 }
 0x643   : > { %v20380_v29 = vsel %vm9390_vm0, %v8537_v34, -inf  ;;  %v11655_v24 = vrot.slane %v11654_v50, 1  ;;  %v11624_v13 = vmax.f32 %v11622_v27, %v11623_v26  ;;  %v11636_v41 = vsel %vm9390_vm0, %v10026_v1, -inf }
 0x644   : > { %v8520_v16 = vcombine.high %v20352_v22, %v20352_v22  ;;  %v11662_v4 = vrot.slane %v11661_v47, 1  ;;  %v11618_v0 = vrot.slane %v11617_v31, 2  ;;  %v11631_v32 = vmax.f32 %v11629_v57, %v11630_v14 }
 0x645   : > { %v20386_v54 = vsel %vm9390_vm0, %v8519_v56, -inf  ;;  %v11669_v48 = vrot.slane %v11668_v51, 1  ;;  %v11625_v5 = vrot.slane %v11624_v13, 2  ;;  %v11637_v28 = vrot.slane %v11636_v41, 4 }
 0x646   : > { %v11649_v43 = vmax.f32 %v11647_v53, %v11648_v2  ;;  %v11619_v34 = vmax.f32 %v11617_v31, %v11618_v0  ;;  %v11632_v45 = vrot.slane %v11631_v32, 2  ;;  %v6347_v61 = vadd.f32 %v14768_v19, %v20297_v15 }
 0x647   : > { %v11656_v8 = vmax.f32 %v11654_v50, %v11655_v24  ;;  %v11626_v52 = vmax.f32 %v11624_v13, %v11625_v5  ;;  %v11638_v55 = vmax.f32 %v11636_v41, %v11637_v28  ;;  %v6341_v25 = vadd.f32 %v6340_v42, %v20332_v6 }
 0x648   : > { %v11663_v21 = vmax.f32 %v11661_v47, %v11662_v4  ;;  %v11620_v9 = vrot.slane %v11619_v34, 1  ;;  %v11633_v7 = vmax.f32 %v11631_v32, %v11632_v45  ;;  %v6557_v36 = vmax.f32 %v6347_v61, 0.0 }
 0x649   : > { %v11670_v44 = vmax.f32 %v11668_v51, %v11669_v48  ;;  %v11627_v56 = vrot.slane %v11626_v52, 1  ;;  %v11639_v40 = vrot.slane %v11638_v55, 2  ;;  %v6556_v38 = vmax.f32 %v6341_v25, 0.0 }
 0x64a   : > { %v11621_v37 = vmax.f32 %v11619_v34, %v11620_v9  ;;  %v11634_v63 = vrot.slane %v11633_v7, 1  ;;  %v8589_v18 = vcombine.high %v6557_v36, %v6557_v36  ;;  %v8596_v10 = vrot.slane %v6557_v36, %v18149_v11  ;;  %v14771_v9 = vpop.f32.mrf.mxu1 }
 0x64b   : > { %v11628_v20 = vmax.f32 %v11626_v52, %v11627_v56  ;;  %v11640_v15 = vmax.f32 %v11638_v55, %v11639_v40  ;;  %v8572_v12 = vcombine.high %v6556_v38, %v6556_v38  ;;  %v8579_v60 = vrot.slane %v6556_v38, %v18149_v11 }
 0x64c   : > { %v11635_v62 = vmax.f32 %v11633_v7, %v11634_v63  ;;  %v8603_v6 = vrot.slane %v8589_v18, %v18149_v11  ;;  %v8604_v33 = vcombine.high %v8596_v10, %v8596_v10  ;;  %v10052_v23 = vsel %vm9390_vm0, %v8596_v10, -inf }
 0x64d   : > { %v11641_v17 = vrot.slane %v11640_v15, 1  ;;  %v12396_v1 = vsel %vm12207_vm1, %v11628_v20, %v11621_v37  ;;  %v10053_v49 = vmax.f32 %v20337_v46, %v10052_v23  ;;  %v8586_v53 = vrot.slane %v8572_v12, %v18149_v11  ;;  %v6352_v20 = vpop.f32.mrf.mxu1 }
 0x64e   : > { %v12397_v30 = vsel %vm12209_vm2, %v11635_v62, %v12396_v1  ;;  %v8605_v27 = vcombine.high %v8603_v6, %v8603_v6  ;;  %v10055_v19 = vsel %vm9390_vm0, %v8604_v33, -inf  ;;  %v10058_v50 = vsel %vm9390_vm0, %v8603_v6, -inf  ;;  %v22467_v1 = vld [vmem:[#allocation61_spill] sm:$0xff] }
 0x64f   : > { %v11642_v47 = vmax.f32 %v11640_v15, %v11641_v17  ;;  %v10056_v26 = vmax.f32 %v20344_v35, %v10055_v19  ;;  %v10059_v57 = vmax.f32 %v20349_v58, %v10058_v50  ;;  %v11699_v2 = vsel %vm9390_vm0, %v10053_v49, -inf  ;;  %v14550_v35 = vpop.f32.mrf.mxu0 }
 0x650   : > { %v10061_v51 = vsel %vm9390_vm0, %v8605_v27, -inf  ;;  %v11700_v46 = vrot.slane %v11699_v2, 4  ;;  %v8587_v31 = vcombine.high %v8579_v60, %v8579_v60  ;;  %v8588_v14 = vcombine.high %v8586_v53, %v8586_v53 }
 0x651   : > { %v12398_v24 = vsel %vm12211_vm3, %v11642_v47, %v12397_v30  ;;  %v10062_v13 = vmax.f32 %v20380_v29, %v10061_v51  ;;  %v11706_v41 = vsel %vm9390_vm0, %v10056_v26, -inf  ;;  %v11713_v4 = vsel %vm9390_vm0, %v10059_v57, -inf  ;;  %v14774_v57 = vpop.f32.mrf.mxu1 }
 0x652   : > { %v12399_v0 = vsel %vm12213_vm4, %v11649_v43, %v12398_v24  ;;  %v11701_v32 = vmax.f32 %v11699_v2, %v11700_v46  ;;  %v11707_v58 = vrot.slane %v11706_v41, 4  ;;  %v11714_v42 = vrot.slane %v11713_v4, 4 }
 0x653   : > { %v12400_v48 = vsel %vm12215_vm5, %v11656_v8, %v12399_v0  ;;  %v11720_v5 = vsel %vm9390_vm0, %v10062_v13, -inf  ;;  %v10040_v28 = vsel %vm9390_vm0, %v8579_v60, -inf  ;;  %v10043_v34 = vsel %vm9390_vm0, %v8587_v31, -inf  ;;  %v22469_v0 = vld [vmem:[#allocation63_spill] sm:$0xff] }
 0x654   : > { %v10045_v29 = vsel %vm9390_vm0, %v20352_v22, -inf  ;;  %v12401_v45 = vsel %vm12217_vm6, %v11663_v21, %v12400_v48  ;;  %v11708_v61 = vmax.f32 %v11706_v41, %v11707_v58  ;;  %v11715_v43 = vmax.f32 %v11713_v4, %v11714_v42  ;;  %v5515_v21 = vpop.f32.mrf.mxu0 }
 0x655   : > { %v12402_v52 = vsel %vm12219_vm7, %v11670_v44, %v12401_v45  ;;  %v11721_v55 = vrot.slane %v11720_v5, 4  ;;  %v10041_v25 = vmax.f32 %v20361_v3, %v10040_v28  ;;  %v10044_v8 = vmax.f32 %v20386_v54, %v10043_v34  ;;  %v6364_v34 = vpop.f32.mrf.mxu1 }
 0x656   : > { %v10048_v7 = vsel %vm9390_vm0, %v8520_v16, -inf  ;;  %12497 = vst.msk [vmem:[%s18362_s24 + $0xd0] sm:$0xff] %vm12470_vm8, %v12402_v52  ;;  %v11702_v36 = vrot.slane %v11701_v32, 2  ;;  %v11709_v56 = vrot.slane %v11708_v61, 2  ;;  %v10046_v40 = vsel %vm9390_vm0, %v8586_v53, -inf  ;;  %v14553_v62 = vpop.f32.mrf.mxu0  ;;  %v22468_v53 = vld [vmem:[#allocation37_spill] sm:$0xff] }
 0x657   : > { %v11722_v38 = vmax.f32 %v11720_v5, %v11721_v55  ;;  %v10047_v44 = vmax.f32 %v10045_v29, %v10046_v40  ;;  %v10049_v37 = vsel %vm9390_vm0, %v8588_v14, -inf  ;;  %v11671_v3 = vsel %vm9390_vm0, %v10041_v25, -inf }
 0x658   : > { %v10050_v54 = vmax.f32 %v10048_v7, %v10049_v37  ;;  %v6359_v63 = vadd.f32 %v14771_v9, %v20340_v39  ;;  %v11716_v18 = vrot.slane %v11715_v43, 2  ;;  %v11672_v22 = vrot.slane %v11671_v3, 4  ;;  %v5527_v31 = vpop.f32.mrf.mxu0 }
 0x659   : > { %v11678_v16 = vsel %vm9390_vm0, %v10044_v8, -inf  ;;  %v11685_v10 = vsel %vm9390_vm0, %v10047_v44, -inf  ;;  %v11703_v15 = vmax.f32 %v11701_v32, %v11702_v36  ;;  %v11710_v12 = vmax.f32 %v11708_v61, %v11709_v56 }
 0x65a   : > { %v11679_v60 = vrot.slane %v11678_v16, 4  ;;  %v11723_v6 = vrot.slane %v11722_v38, 2  ;;  %v11673_v33 = vmax.f32 %v11671_v3, %v11672_v22  ;;  %v11686_v23 = vrot.slane %v11685_v10, 4  ;;  %v14556_v55 = vpop.f32.mrf.mxu0  ;;  %v22471_v22 = vld [vmem:[#allocation64_spill] sm:$0xff] }
 0x65b   : > { %v11692_v17 = vsel %vm9390_vm0, %v10050_v54, -inf  ;;  %v5504_v49 = vadd.f32 %v5503_v59, %v22467_v1  ;;  %v5522_v39 = vadd.f32 %v14550_v35, %v22468_v53  ;;  %v11717_v19 = vmax.f32 %v11715_v43, %v11716_v18  ;;  %v22470_v43 = vld [vmem:[#allocation7_spill] sm:$0xff]  ;;  %v14777_v54 = vpop.f32.mrf.mxu1 }
 0x65c   : > { %v11680_v30 = vmax.f32 %v11678_v16, %v11679_v60  ;;  %v11693_v27 = vrot.slane %v11692_v17, 4  ;;  %v11674_v50 = vrot.slane %v11673_v33, 2  ;;  %v11687_v47 = vmax.f32 %v11685_v10, %v11686_v23  ;;  %v22472_v23 = vld [vmem:[#allocation8_spill] sm:$0xff] }
 0x65d   : > { %v6559_v26 = vmax.f32 %v6359_v63, 0.0  ;;  %v11704_v2 = vrot.slane %v11703_v15, 1  ;;  %v6353_v14 = vadd.f32 %v6352_v20, %v5504_v49  ;;  %v11711_v24 = vrot.slane %v11710_v12, 1  ;;  %v5539_v20 = vpop.f32.mrf.mxu0 }
 0x65e   : > { %v11681_v51 = vrot.slane %v11680_v30, 2  ;;  %v11694_v46 = vmax.f32 %v11692_v17, %v11693_v27  ;;  %v11724_v13 = vmax.f32 %v11722_v38, %v11723_v6  ;;  %v11675_v41 = vmax.f32 %v11673_v33, %v11674_v50  ;;  %v6376_v27 = vpop.f32.mrf.mxu1 }
 0x65f   : > { %v11688_v4 = vrot.slane %v11687_v47, 2  ;;  %v5516_v59 = vadd.f32 %v5515_v21, %v22469_v0  ;;  %v6558_v58 = vmax.f32 %v6353_v14, 0.0  ;;  %v11718_v42 = vrot.slane %v11717_v19, 1 }
 0x660   : > { %v11682_v32 = vmax.f32 %v11680_v30, %v11681_v51  ;;  %v11695_v35 = vrot.slane %v11694_v46, 2  ;;  %v11676_v48 = vrot.slane %v11675_v41, 1  ;;  %v8623_v28 = vcombine.high %v6559_v26, %v6559_v26 }
 0x661   : > { %v11689_v5 = vmax.f32 %v11687_v47, %v11688_v4  ;;  %v11705_v29 = vmax.f32 %v11703_v15, %v11704_v2  ;;  %v5534_v52 = vadd.f32 %v14553_v62, %v22470_v43  ;;  %v11712_v25 = vmax.f32 %v11710_v12, %v11711_v24 }
 0x662   : > { %v11683_v45 = vrot.slane %v11682_v32, 1  ;;  %v11696_v61 = vmax.f32 %v11694_v46, %v11695_v35  ;;  %v11725_v8 = vrot.slane %v11724_v13, 1  ;;  %v8630_v7 = vrot.slane %v6559_v26, %v18149_v11 }
 0x663   : > { %v11690_v9 = vrot.slane %v11689_v5, 1  ;;  %v11677_v36 = vmax.f32 %v11675_v41, %v11676_v48  ;;  %v8606_v40 = vcombine.high %v6558_v58, %v6558_v58  ;;  %v11719_v38 = vmax.f32 %v11717_v19, %v11718_v42 }
 0x664   : > { %v11684_v56 = vmax.f32 %v11682_v32, %v11683_v45  ;;  %v11697_v21 = vrot.slane %v11696_v61, 1  ;;  %v8637_v37 = vrot.slane %v8623_v28, %v18149_v11  ;;  %v6371_v3 = vadd.f32 %v14774_v57, %v5522_v39  ;;  %v14559_v57 = vpop.f32.mrf.mxu0  ;;  %v22473_v32 = vld [vmem:[#allocation65_spill] sm:$0xff] }
 0x665   : > { %v11691_v44 = vmax.f32 %v11689_v5, %v11690_v9  ;;  %v5528_v16 = vadd.f32 %v5527_v31, %v22471_v22  ;;  %v8613_v10 = vrot.slane %v6558_v58, %v18149_v11  ;;  %v8638_v12 = vcombine.high %v8630_v7, %v8630_v7  ;;  %v14780_v58 = vpop.f32.mrf.mxu1 }
 0x666   : > { %v11698_v63 = vmax.f32 %v11696_v61, %v11697_v21  ;;  %v12403_v18 = vsel %vm12207_vm1, %v11684_v56, %v11677_v36  ;;  %v8620_v60 = vrot.slane %v8606_v40, %v18149_v11  ;;  %v6561_v62 = vmax.f32 %v6371_v3, 0.0  ;;  %v22474_v61 = vld [vmem:[#allocation46_spill] sm:$0xff]  ;;  %v22475_v56 = vld [vmem:[#allocation67_spill] sm:$0xff] }
 0x667   : > { %v12404_v15 = vsel %vm12209_vm2, %v11691_v44, %v12403_v18  ;;  %v11726_v6 = vmax.f32 %v11724_v13, %v11725_v8  ;;  %v5546_v17 = vadd.f32 %v14556_v55, %v22472_v23  ;;  %v6365_v1 = vadd.f32 %v6364_v34, %v5516_v59  ;;  %v5551_v34 = vpop.f32.mrf.mxu0 }
 0x668   : > { %v12405_v33 = vsel %vm12211_vm3, %v11698_v63, %v12404_v15  ;;  %v8639_v53 = vcombine.high %v8637_v37, %v8637_v37  ;;  %v8657_v39 = vcombine.high %v6561_v62, %v6561_v62  ;;  %v8664_v30 = vrot.slane %v6561_v62, %v18149_v11 }
 0x669   : > { %v12406_v49 = vsel %vm12213_vm4, %v11705_v29, %v12405_v33  ;;  %v10075_v50 = vsel %vm9390_vm0, %v8630_v7, -inf  ;;  %v8621_v47 = vcombine.high %v8613_v10, %v8613_v10  ;;  %v6560_v26 = vmax.f32 %v6365_v1, 0.0 }
 0x66a   : > { %v12407_v19 = vsel %vm12215_vm5, %v11712_v25, %v12406_v49  ;;  %v10078_v51 = vsel %vm9390_vm0, %v8638_v12, -inf  ;;  %v10081_v46 = vsel %vm9390_vm0, %v8637_v37, -inf  ;;  %v8622_v31 = vcombine.high %v8620_v60, %v8620_v60 }
 0x66b   : > { %v12408_v2 = vsel %vm12217_vm6, %v11719_v38, %v12407_v19  ;;  %v20454_v24 = vrot.slane %v8657_v39, %v18149_v11  ;;  %v8672_v13 = vcombine.high %v8664_v30, %v8664_v30  ;;  %v6383_v41 = vadd.f32 %v14777_v54, %v5534_v52 }
 0x66c   : > { %v12409_v14 = vsel %vm12219_vm7, %v11726_v6, %v12408_v2  ;;  %v10084_v4 = vsel %vm9390_vm0, %v8639_v53, -inf  ;;  %v20460_v0 = vsel %vm9390_vm0, %v8613_v10, -inf  ;;  %v20463_v59 = vsel %vm9390_vm0, %v8620_v60, -inf }
 0x66d   : > { %12498 = vst.msk [vmem:[%s18362_s24 + $0xd8] sm:$0xff] %vm12470_vm8, %v12409_v14  ;;  %v20466_v35 = vadd.f32 %v5539_v20, %v22473_v32  ;;  %v10066_v42 = vsel %vm9390_vm0, %v8621_v47, -inf  ;;  %v8640_v48 = vcombine.high %v6560_v26, %v6560_v26  ;;  %v20470_v5 = vrot.slane %v6560_v26, %v18149_v11 }
 0x66e   : > { %v6563_v28 = vmax.f32 %v6383_v41, 0.0  ;;  %v20473_v29 = vsel %vm9390_vm0, %v8622_v31, -inf  ;;  %v20476_v45 = vsel %vm9390_vm0, %v8664_v30, -inf  ;;  %v20479_v43 = vadd.f32 %v14559_v57, %v22474_v61 }
 0x66f   : > { %v6377_v52 = vadd.f32 %v6376_v27, %v5528_v16  ;;  %v8673_v55 = vcombine.high %v20454_v24, %v20454_v24  ;;  %v20484_v25 = vsel %vm9390_vm0, %v8672_v13, -inf  ;;  %v6395_v9 = vadd.f32 %v14780_v58, %v5546_v17 }
 0x670   : > { %v8691_v8 = vcombine.high %v6563_v28, %v6563_v28  ;;  %v20488_v7 = vsel %vm9390_vm0, %v20454_v24, -inf  ;;  %v8698_v36 = vrot.slane %v6563_v28, %v18149_v11  ;;  %v20492_v21 = vadd.f32 %v5551_v34, %v22475_v56 }
 0x671   : > { %v6562_v40 = vmax.f32 %v6377_v52, 0.0  ;;  %v20495_v38 = vrot.slane %v8640_v48, %v18149_v11  ;;  %v8655_v44 = vcombine.high %v20470_v5, %v20470_v5  ;;  %v20501_v37 = vsel %vm9390_vm0, %v20470_v5, -inf }
 0x672   : > { %v8705_v3 = vrot.slane %v8691_v8, %v18149_v11  ;;  %v8706_v54 = vcombine.high %v8698_v36, %v8698_v36  ;;  %v10076_v63 = vsel %vm9390_vm0, %v8698_v36, -inf  ;;  %v20507_v15 = vmax.f32 %v6395_v9, 0.0 }
 0x673   : > { %v8674_v18 = vcombine.high %v6562_v40, %v6562_v40  ;;  %v8681_v22 = vrot.slane %v6562_v40, %v18149_v11  ;;  %v10077_v10 = vmax.f32 %v10075_v50, %v10076_v63 }
 0x674   : > { %v8707_v16 = vcombine.high %v8705_v3, %v8705_v3  ;;  %v10082_v20 = vsel %vm9390_vm0, %v8705_v3, -inf  ;;  %v10079_v12 = vsel %vm9390_vm0, %v8706_v54, -inf }
 0x675   : > { %v10083_v60 = vmax.f32 %v10081_v46, %v10082_v20  ;;  %v8688_v62 = vrot.slane %v8674_v18, %v18149_v11  ;;  %v8689_v6 = vcombine.high %v8681_v22, %v8681_v22  ;;  %v10080_v33 = vmax.f32 %v10078_v51, %v10079_v12 }
 0x676   : > { %v10085_v23 = vsel %vm9390_vm0, %v8707_v16, -inf  ;;  %v11755_v17 = vsel %vm9390_vm0, %v10077_v10, -inf  ;;  %v10064_v1 = vsel %vm9390_vm0, %v8681_v22, -inf  ;;  %v8725_v10 = vcombine.high %v20507_v15, %v20507_v15 }
 0x677   : > { %v10086_v49 = vmax.f32 %v10084_v4, %v10085_v23  ;;  %v11756_v53 = vrot.slane %v11755_v17, 4  ;;  %v11769_v39 = vsel %vm9390_vm0, %v10083_v60, -inf  ;;  %v8690_v30 = vcombine.high %v8688_v62, %v8688_v62 }
 0x678   : > { %v11762_v27 = vsel %vm9390_vm0, %v10080_v33, -inf  ;;  %v11770_v19 = vrot.slane %v11769_v39, 4  ;;  %v10065_v50 = vmax.f32 %v20460_v0, %v10064_v1  ;;  %v10067_v47 = vsel %vm9390_vm0, %v8689_v6, -inf }
 0x679   : > { %v11757_v26 = vmax.f32 %v11755_v17, %v11756_v53  ;;  %v11763_v57 = vrot.slane %v11762_v27, 4  ;;  %v11776_v2 = vsel %vm9390_vm0, %v10086_v49, -inf  ;;  %v10068_v51 = vmax.f32 %v10066_v42, %v10067_v47 }
 0x67a   : > { %v11771_v46 = vmax.f32 %v11769_v39, %v11770_v19  ;;  %v11777_v31 = vrot.slane %v11776_v2, 4  ;;  %v10070_v14 = vsel %vm9390_vm0, %v8688_v62, -inf  ;;  %v10073_v13 = vsel %vm9390_vm0, %v8690_v30, -inf }
 0x67b   : > { %v11758_v41 = vrot.slane %v11757_v26, 2  ;;  %v11764_v4 = vmax.f32 %v11762_v27, %v11763_v57  ;;  %v10071_v32 = vmax.f32 %v20463_v59, %v10070_v14  ;;  %v10074_v58 = vmax.f32 %v20473_v29, %v10073_v13  ;;  %v6388_v59 = vpop.f32.mrf.mxu1 }
 0x67c   : > { %v11772_v0 = vrot.slane %v11771_v46, 2  ;;  %v11778_v48 = vmax.f32 %v11776_v2, %v11777_v31  ;;  %v11727_v28 = vsel %vm9390_vm0, %v10065_v50, -inf  ;;  %v11734_v34 = vsel %vm9390_vm0, %v10068_v51, -inf }
 0x67d   : > { %v11759_v61 = vmax.f32 %v11757_v26, %v11758_v41  ;;  %v11765_v42 = vrot.slane %v11764_v4, 2  ;;  %v11728_v52 = vrot.slane %v11727_v28, 4  ;;  %v11735_v8 = vrot.slane %v11734_v34, 4 }
 0x67e   : > { %v20525_v9 = vmax.f32 %v11771_v46, %v11772_v0  ;;  %v11779_v36 = vrot.slane %v11778_v48, 2  ;;  %v11741_v56 = vsel %vm9390_vm0, %v10071_v32, -inf  ;;  %v11748_v40 = vsel %vm9390_vm0, %v10074_v58, -inf }
 0x67f   : > { %v11760_v3 = vrot.slane %v11759_v61, 1  ;;  %v11766_v29 = vmax.f32 %v11764_v4, %v11765_v42  ;;  %v11729_v54 = vmax.f32 %v11727_v28, %v11728_v52  ;;  %v11736_v63 = vmax.f32 %v11734_v34, %v11735_v8  ;;  %v14562_v52 = vpop.f32.mrf.mxu0 }
 0x680   : > { %v11780_v18 = vmax.f32 %v11778_v48, %v11779_v36  ;;  %v11742_v22 = vrot.slane %v11741_v56, 4  ;;  %v11749_v16 = vrot.slane %v11748_v40, 4  ;;  %v10108_v20 = vsel %vm9390_vm0, %v8673_v55, -inf }
 0x681   : > { %v11730_v12 = vrot.slane %v11729_v54, 2  ;;  %v11737_v60 = vrot.slane %v11736_v63, 2  ;;  %v6389_v62 = vadd.f32 %v6388_v59, %v20466_v35  ;;  %v11761_v6 = vmax.f32 %v11759_v61, %v11760_v3 }
 0x682   : > { %v11774_v33 = vrot.slane %v20525_v9, 1  ;;  %v11743_v23 = vmax.f32 %v11741_v56, %v11742_v22  ;;  %v11750_v17 = vmax.f32 %v11748_v40, %v11749_v16  ;;  %v11767_v1 = vrot.slane %v11766_v29, 1 }
 0x683   : > { %v11731_v49 = vmax.f32 %v11729_v54, %v11730_v12  ;;  %v11738_v53 = vmax.f32 %v11736_v63, %v11737_v60  ;;  %v8732_v39 = vrot.slane %v20507_v15, %v18149_v11  ;;  %v11781_v30 = vrot.slane %v11780_v18, 1 }
 0x684   : > { %v11744_v27 = vrot.slane %v11743_v23, 2  ;;  %v11751_v24 = vrot.slane %v11750_v17, 2  ;;  %v8739_v55 = vrot.slane %v8725_v10, %v18149_v11  ;;  %v6564_v28 = vmax.f32 %v6389_v62, 0.0 }
 0x685   : > { %v11732_v19 = vrot.slane %v11731_v49, 1  ;;  %v11739_v50 = vrot.slane %v11738_v53, 1  ;;  %v8740_v47 = vcombine.high %v8732_v39, %v8732_v39  ;;  %v10100_v35 = vsel %vm9390_vm0, %v8732_v39, -inf }
 0x686   : > { %v11745_v26 = vmax.f32 %v11743_v23, %v11744_v27  ;;  %v11752_v57 = vmax.f32 %v11750_v17, %v11751_v24  ;;  %v8741_v2 = vcombine.high %v8739_v55, %v8739_v55  ;;  %v10101_v51 = vmax.f32 %v20476_v45, %v10100_v35  ;;  %v5563_v17 = vpop.f32.mrf.mxu0 }
 0x687   : > { %v11733_v46 = vmax.f32 %v11731_v49, %v11732_v19  ;;  %v11740_v31 = vmax.f32 %v11738_v53, %v11739_v50  ;;  %v10103_v14 = vsel %vm9390_vm0, %v8740_v47, -inf  ;;  %v10106_v15 = vsel %vm9390_vm0, %v8739_v55, -inf  ;;  %v22476_v19 = vld [vmem:[#allocation48_spill] sm:$0xff] }
 0x688   : > { %v11746_v13 = vrot.slane %v11745_v26, 1  ;;  %v11753_v41 = vrot.slane %v11752_v57, 1  ;;  %v10104_v4 = vmax.f32 %v20484_v25, %v10103_v14  ;;  %v10107_v32 = vmax.f32 %v20488_v7, %v10106_v15  ;;  %v14783_v7 = vpop.f32.mrf.mxu1 }
 0x689   : > { %v12410_v58 = vsel %vm12207_vm1, %v11740_v31, %v11733_v46  ;;  %v10109_v0 = vsel %vm9390_vm0, %v8741_v2, -inf  ;;  %v11811_v48 = vsel %vm9390_vm0, %v10101_v51, -inf  ;;  %v8708_v56 = vcombine.high %v6564_v28, %v6564_v28  ;;  %v14565_v2 = vpop.f32.mrf.mxu0  ;;  %v22477_v31 = vld [vmem:[#allocation69_spill] sm:$0xff] }
 0x68a   : > { %v11747_v45 = vmax.f32 %v11745_v26, %v11746_v13  ;;  %v11754_v34 = vmax.f32 %v11752_v57, %v11753_v41  ;;  %v10110_v61 = vmax.f32 %v10108_v20, %v10109_v0  ;;  %v11812_v42 = vrot.slane %v11811_v48, 4  ;;  %v6400_v53 = vpop.f32.mrf.mxu1 }
 0x68b   : > { %v11818_v8 = vsel %vm9390_vm0, %v10104_v4, -inf  ;;  %v11825_v36 = vsel %vm9390_vm0, %v10107_v32, -inf  ;;  %v8715_v25 = vrot.slane %v6564_v28, %v18149_v11  ;;  %v11768_v40 = vmax.f32 %v11766_v29, %v11767_v1 }
 0x68c   : > { %v12411_v59 = vsel %vm12209_vm2, %v11747_v45, %v12410_v58  ;;  %v11819_v3 = vrot.slane %v11818_v8, 4  ;;  %v11826_v54 = vrot.slane %v11825_v36, 4  ;;  %v11832_v22 = vsel %vm9390_vm0, %v10110_v61, -inf }
 0x68d   : > { %v12412_v63 = vsel %vm12211_vm3, %v11754_v34, %v12411_v59  ;;  %v8722_v16 = vrot.slane %v8708_v56, %v18149_v11  ;;  %v8723_v10 = vcombine.high %v8715_v25, %v8715_v25  ;;  %v11775_v20 = vmax.f32 %v20525_v9, %v11774_v33 }
 0x68e   : > { %v11782_v12 = vmax.f32 %v11780_v18, %v11781_v30  ;;  %v12413_v60 = vsel %vm12213_vm4, %v11761_v6, %v12412_v63  ;;  %v11813_v62 = vmax.f32 %v11811_v48, %v11812_v42  ;;  %v11833_v23 = vrot.slane %v11832_v22, 4  ;;  %v22478_v48 = vld [vmem:[#allocation9_spill] sm:$0xff] }
 0x68f   : > { %v12414_v29 = vsel %vm12215_vm5, %v11768_v40, %v12413_v60  ;;  %v8724_v1 = vcombine.high %v8722_v16, %v8722_v16  ;;  %v10088_v49 = vsel %vm9390_vm0, %v8715_v25, -inf  ;;  %v8656_v39 = vcombine.high %v20495_v38, %v20495_v38 }
 0x690   : > { %v10090_v9 = vsel %vm9390_vm0, %v8655_v44, -inf  ;;  %v12415_v18 = vsel %vm12217_vm6, %v11775_v20, %v12414_v29  ;;  %v11820_v6 = vmax.f32 %v11818_v8, %v11819_v3  ;;  %v11827_v30 = vmax.f32 %v11825_v36, %v11826_v54 }
 0x691   : > { %v12416_v33 = vsel %vm12219_vm7, %v11782_v12, %v12415_v18  ;;  %v10089_v27 = vmax.f32 %v20501_v37, %v10088_v49  ;;  %v10091_v24 = vsel %vm9390_vm0, %v8723_v10, -inf  ;;  %v10093_v55 = vsel %vm9390_vm0, %v20495_v38, -inf  ;;  %v14786_v37 = vpop.f32.mrf.mxu1 }
 0x692   : > { %12499 = vst.msk [vmem:[%s18362_s24 + $0xe0] sm:$0xff] %vm12470_vm8, %v12416_v33  ;;  %v5570_v50 = vadd.f32 %v14562_v52, %v22476_v19  ;;  %v11814_v5 = vrot.slane %v11813_v62, 2  ;;  %v10092_v47 = vmax.f32 %v10090_v9, %v10091_v24  ;;  %v11834_v44 = vmax.f32 %v11832_v22, %v11833_v23 }
 0x693   : > { %v10094_v35 = vsel %vm9390_vm0, %v8722_v16, -inf  ;;  %v10097_v26 = vsel %vm9390_vm0, %v8724_v1, -inf  ;;  %v11783_v57 = vsel %vm9390_vm0, %v10089_v27, -inf  ;;  %v10096_v51 = vsel %vm9390_vm0, %v8656_v39, -inf  ;;  %v6412_v52 = vpop.f32.mrf.mxu1 }
 0x694   : > { %v11821_v46 = vrot.slane %v11820_v6, 2  ;;  %v20580_v38 = vadd.f32 %v5563_v17, %v22477_v31  ;;  %v10095_v14 = vmax.f32 %v10093_v55, %v10094_v35  ;;  %v11828_v15 = vrot.slane %v11827_v30, 2 }
 0x695   : > { %v10098_v13 = vmax.f32 %v10096_v51, %v10097_v26  ;;  %v11784_v41 = vrot.slane %v11783_v57, 4  ;;  %v11790_v4 = vsel %vm9390_vm0, %v10092_v47, -inf  ;;  %v11815_v32 = vmax.f32 %v11813_v62, %v11814_v5  ;;  %v14789_v29 = vpop.f32.mrf.mxu1 }
 0x696   : > { %v11791_v58 = vrot.slane %v11790_v4, 4  ;;  %v11797_v0 = vsel %vm9390_vm0, %v10095_v14, -inf  ;;  %v20585_v28 = vadd.f32 %v14565_v2, %v22478_v48  ;;  %v11835_v45 = vrot.slane %v11834_v44, 2 }
 0x697   : > { %v11785_v34 = vmax.f32 %v11783_v57, %v11784_v41  ;;  %v11798_v61 = vrot.slane %v11797_v0, 4  ;;  %v11804_v42 = vsel %vm9390_vm0, %v10098_v13, -inf  ;;  %v11822_v8 = vmax.f32 %v11820_v6, %v11821_v46  ;;  %v6424_v19 = vpop.f32.mrf.mxu1  ;;  %v22479_v46 = vld [vmem:[#allocation70_spill] sm:$0xff] }
 0x698   : > { %v11792_v36 = vmax.f32 %v11790_v4, %v11791_v58  ;;  %v11805_v56 = vrot.slane %v11804_v42, 4  ;;  %v6407_v25 = vadd.f32 %v14783_v7, %v20479_v43  ;;  %v11829_v40 = vmax.f32 %v11827_v30, %v11828_v15  ;;  %v5575_v43 = vpop.f32.mrf.mxu0 }
 0x699   : > { %v11786_v59 = vrot.slane %v11785_v34, 2  ;;  %v11799_v3 = vmax.f32 %v11797_v0, %v11798_v61  ;;  %v6401_v54 = vadd.f32 %v6400_v53, %v20492_v21  ;;  %v11816_v63 = vrot.slane %v11815_v32, 1  ;;  %v14792_v0 = vpop.f32.mrf.mxu1 }
 0x69a   : > { %v11793_v22 = vrot.slane %v11792_v36, 2  ;;  %v11806_v16 = vmax.f32 %v11804_v42, %v11805_v56  ;;  %v6567_v10 = vmax.f32 %v6407_v25, 0.0  ;;  %v11836_v20 = vmax.f32 %v11834_v44, %v11835_v45  ;;  %v14568_v26 = vpop.f32.mrf.mxu0 }
 0x69b   : > { %v11787_v12 = vmax.f32 %v11785_v34, %v11786_v59  ;;  %v11800_v60 = vrot.slane %v11799_v3, 2  ;;  %v6566_v62 = vmax.f32 %v6401_v54, 0.0  ;;  %v11823_v7 = vrot.slane %v11822_v8, 1 }
 0x69c   : > { %v11794_v23 = vmax.f32 %v11792_v36, %v11793_v22  ;;  %v11807_v17 = vrot.slane %v11806_v16, 2  ;;  %v8759_v1 = vcombine.high %v6567_v10, %v6567_v10  ;;  %v8766_v49 = vrot.slane %v6567_v10, %v18149_v11 }
 0x69d   : > { %v11830_v39 = vrot.slane %v11829_v40, 1  ;;  %v11788_v9 = vrot.slane %v11787_v12, 1  ;;  %v11801_v18 = vmax.f32 %v11799_v3, %v11800_v60  ;;  %v11817_v21 = vmax.f32 %v11815_v32, %v11816_v63  ;;  %v22480_v32 = vld [vmem:[#allocation50_spill] sm:$0xff] }
 0x69e   : > { %v11795_v53 = vrot.slane %v11794_v23, 1  ;;  %v11808_v6 = vmax.f32 %v11806_v16, %v11807_v17  ;;  %v8742_v33 = vcombine.high %v6566_v62, %v6566_v62  ;;  %v11837_v30 = vrot.slane %v11836_v20, 1 }
 0x69f   : > { %v11802_v27 = vrot.slane %v11801_v18, 1  ;;  %v8773_v24 = vrot.slane %v8759_v1, %v18149_v11  ;;  %v6419_v55 = vadd.f32 %v14786_v37, %v5570_v50  ;;  %v11789_v5 = vmax.f32 %v11787_v12, %v11788_v9 }
 0x6a0   : > { %v11796_v47 = vmax.f32 %v11794_v23, %v11795_v53  ;;  %v11809_v44 = vrot.slane %v11808_v6, 1  ;;  %v8774_v35 = vcombine.high %v8766_v49, %v8766_v49  ;;  %v11824_v57 = vmax.f32 %v11822_v8, %v11823_v7  ;;  %v22481_v7 = vld [vmem:[#allocation72_spill] sm:$0xff] }
 0x6a1   : > { %v11831_v2 = vmax.f32 %v11829_v40, %v11830_v39  ;;  %v11803_v51 = vmax.f32 %v11801_v18, %v11802_v27  ;;  %v5576_v31 = vadd.f32 %v5575_v43, %v22479_v46  ;;  %v8749_v13 = vrot.slane %v6566_v62, %v18149_v11 }
 0x6a2   : > { %v11810_v14 = vmax.f32 %v11808_v6, %v11809_v44  ;;  %v12417_v15 = vsel %vm12207_vm1, %v11796_v47, %v11789_v5  ;;  %v8756_v41 = vrot.slane %v8742_v33, %v18149_v11  ;;  %v11838_v4 = vmax.f32 %v11836_v20, %v11837_v30 }
 0x6a3   : > { %v12418_v50 = vsel %vm12209_vm2, %v11803_v51, %v12417_v15  ;;  %v10123_v37 = vsel %vm9390_vm0, %v8766_v49, -inf  ;;  %v5594_v58 = vadd.f32 %v14568_v26, %v22480_v32  ;;  %v8775_v45 = vcombine.high %v8773_v24, %v8773_v24 }
 0x6a4   : > { %v12419_v48 = vsel %vm12211_vm3, %v11810_v14, %v12418_v50  ;;  %v10126_v34 = vsel %vm9390_vm0, %v8774_v35, -inf  ;;  %v6569_v61 = vmax.f32 %v6419_v55, 0.0  ;;  %v6413_v8 = vadd.f32 %v6412_v52, %v20580_v38 }
 0x6a5   : > { %v12420_v42 = vsel %vm12213_vm4, %v11817_v21, %v12419_v48  ;;  %v6431_v36 = vadd.f32 %v14789_v29, %v20585_v28  ;;  %v6425_v56 = vadd.f32 %v6424_v19, %v5576_v31  ;;  %v8757_v40 = vcombine.high %v8749_v13, %v8749_v13  ;;  %v5587_v28 = vpop.f32.mrf.mxu0 }
 0x6a6   : > { %v12421_v25 = vsel %vm12215_vm5, %v11824_v57, %v12420_v42  ;;  %v8758_v59 = vcombine.high %v8756_v41, %v8756_v41  ;;  %v6443_v3 = vadd.f32 %v14792_v0, %v5594_v58  ;;  %v8793_v63 = vcombine.high %v6569_v61, %v6569_v61 }
 0x6a7   : > { %v12422_v54 = vsel %vm12217_vm6, %v11831_v2, %v12421_v25  ;;  %v6571_v22 = vmax.f32 %v6431_v36, 0.0  ;;  %v6570_v16 = vmax.f32 %v6425_v56, 0.0  ;;  %v10129_v20 = vsel %vm9390_vm0, %v8773_v24, -inf }
 0x6a8   : > { %v12423_v10 = vsel %vm12219_vm7, %v11838_v4, %v12422_v54  ;;  %v10132_v38 = vsel %vm9390_vm0, %v8775_v45, -inf  ;;  %v8800_v52 = vrot.slane %v6569_v61, %v18149_v11  ;;  %v10111_v12 = vsel %vm9390_vm0, %v8749_v13, -inf }
 0x6a9   : > { %12500 = vst.msk [vmem:[%s18362_s24 + $0xe8] sm:$0xff] %vm12470_vm8, %v12423_v10  ;;  %v20613_v60 = vmax.f32 %v6413_v8, 0.0  ;;  %v8827_v62 = vcombine.high %v6571_v22, %v6571_v22  ;;  %v8834_v29 = vrot.slane %v6571_v22, %v18149_v11  ;;  %v10114_v23 = vsel %vm9390_vm0, %v8757_v40, -inf }
 0x6aa   : > { %v10117_v17 = vsel %vm9390_vm0, %v8756_v41, -inf  ;;  %v10120_v1 = vsel %vm9390_vm0, %v8758_v59, -inf  ;;  %v8810_v49 = vcombine.high %v6570_v16, %v6570_v16  ;;  %v20620_v43 = vrot.slane %v8793_v63, %v18149_v11 }
 0x6ab   : > { %v20623_v39 = vadd.f32 %v5587_v28, %v22481_v7  ;;  %v8841_v9 = vrot.slane %v8827_v62, %v18149_v11  ;;  %v20626_v18 = vmax.f32 %v6443_v3, 0.0  ;;  %v8808_v21 = vcombine.high %v8800_v52, %v8800_v52 }
 0x6ac   : > { %v8842_v53 = vcombine.high %v8834_v29, %v8834_v29  ;;  %v10124_v6 = vsel %vm9390_vm0, %v8834_v29, -inf  ;;  %v8817_v33 = vrot.slane %v6570_v16, %v18149_v11  ;;  %v20631_v30 = vsel %vm9390_vm0, %v8800_v52, -inf }
 0x6ad   : > { %v8776_v27 = vcombine.high %v20613_v60, %v20613_v60  ;;  %v20637_v24 = vrot.slane %v20613_v60, %v18149_v11  ;;  %v8843_v55 = vcombine.high %v8841_v9, %v8841_v9  ;;  %v10125_v19 = vmax.f32 %v10123_v37, %v10124_v6 }
 0x6ae   : > { %v10127_v5 = vsel %vm9390_vm0, %v8842_v53, -inf  ;;  %v10130_v47 = vsel %vm9390_vm0, %v8841_v9, -inf  ;;  %v8824_v44 = vrot.slane %v8810_v49, %v18149_v11  ;;  %v8809_v35 = vcombine.high %v20620_v43, %v20620_v43 }
 0x6af   : > { %v10128_v26 = vmax.f32 %v10126_v34, %v10127_v5  ;;  %v10131_v57 = vmax.f32 %v10129_v20, %v10130_v47  ;;  %v10133_v2 = vsel %vm9390_vm0, %v8843_v55, -inf  ;;  %v11867_v46 = vsel %vm9390_vm0, %v10125_v19, -inf }
 0x6b0   : > { %v10134_v51 = vmax.f32 %v10132_v38, %v10133_v2  ;;  %v8825_v31 = vcombine.high %v8817_v33, %v8817_v33  ;;  %v8826_v14 = vcombine.high %v8824_v44, %v8824_v44  ;;  %v11868_v15 = vrot.slane %v11867_v46, 4 }
 0x6b1   : > { %v11874_v13 = vsel %vm9390_vm0, %v10128_v26, -inf  ;;  %v11881_v41 = vsel %vm9390_vm0, %v10131_v57, -inf  ;;  %v10112_v4 = vsel %vm9390_vm0, %v8817_v33, -inf  ;;  %v10118_v34 = vsel %vm9390_vm0, %v8824_v44, -inf  ;;  %v6436_v33 = vpop.f32.mrf.mxu1 }
 0x6b2   : > { %v11875_v50 = vrot.slane %v11874_v13, 4  ;;  %v11882_v37 = vrot.slane %v11881_v41, 4  ;;  %v11888_v32 = vsel %vm9390_vm0, %v10134_v51, -inf  ;;  %v10113_v58 = vmax.f32 %v10111_v12, %v10112_v4 }
 0x6b3   : > { %v11869_v0 = vmax.f32 %v11867_v46, %v11868_v15  ;;  %v11889_v48 = vrot.slane %v11888_v32, 4  ;;  %v10115_v45 = vsel %vm9390_vm0, %v8825_v31, -inf  ;;  %v10119_v36 = vmax.f32 %v10117_v17, %v10118_v34 }
 0x6b4   : > { %v11876_v61 = vmax.f32 %v11874_v13, %v11875_v50  ;;  %v11883_v42 = vmax.f32 %v11881_v41, %v11882_v37  ;;  %v10116_v8 = vmax.f32 %v10114_v23, %v10115_v45  ;;  %v10121_v40 = vsel %vm9390_vm0, %v8826_v14, -inf }
 0x6b5   : > { %v11870_v56 = vrot.slane %v11869_v0, 2  ;;  %v11890_v25 = vmax.f32 %v11888_v32, %v11889_v48  ;;  %v11839_v59 = vsel %vm9390_vm0, %v10113_v58, -inf  ;;  %v20655_v3 = vsel %vm9390_vm0, %v8808_v21, -inf }
 0x6b6   : > { %v11877_v54 = vrot.slane %v11876_v61, 2  ;;  %v10122_v63 = vmax.f32 %v10120_v1, %v10121_v40  ;;  %v11840_v22 = vrot.slane %v11839_v59, 4  ;;  %v20659_v16 = vsel %vm9390_vm0, %v20620_v43, -inf }
 0x6b7   : > { %v11884_v10 = vrot.slane %v11883_v42, 2  ;;  %v11846_v20 = vsel %vm9390_vm0, %v10116_v8, -inf  ;;  %v11853_v38 = vsel %vm9390_vm0, %v10119_v36, -inf  ;;  %v11871_v52 = vmax.f32 %v11869_v0, %v11870_v56 }
 0x6b8   : > { %v11891_v28 = vrot.slane %v11890_v25, 2  ;;  %v11841_v12 = vmax.f32 %v11839_v59, %v11840_v22  ;;  %v11847_v60 = vrot.slane %v11846_v20, 4  ;;  %v20664_v62 = vrot.slane %v8776_v27, %v18149_v11 }
 0x6b9   : > { %v11878_v29 = vmax.f32 %v11876_v61, %v11877_v54  ;;  %v11854_v23 = vrot.slane %v11853_v38, 4  ;;  %v11860_v17 = vsel %vm9390_vm0, %v10122_v63, -inf  ;;  %v8791_v1 = vcombine.high %v20637_v24, %v20637_v24 }
 0x6ba   : > { %v20671_v49 = vsel %vm9390_vm0, %v20637_v24, -inf  ;;  %v11842_v43 = vrot.slane %v11841_v12, 2  ;;  %v11848_v7 = vmax.f32 %v11846_v20, %v11847_v60  ;;  %v10156_v9 = vsel %vm9390_vm0, %v8809_v35, -inf }
 0x6bb   : > { %v11885_v21 = vmax.f32 %v11883_v42, %v11884_v10  ;;  %v11855_v53 = vmax.f32 %v11853_v38, %v11854_v23  ;;  %v11861_v6 = vrot.slane %v11860_v17, 4  ;;  %v11872_v27 = vrot.slane %v11871_v52, 1 }
 0x6bc   : > { %v11892_v55 = vmax.f32 %v11890_v25, %v11891_v28  ;;  %v11843_v19 = vmax.f32 %v11841_v12, %v11842_v43  ;;  %v11849_v5 = vrot.slane %v11848_v7, 2  ;;  %v11879_v47 = vrot.slane %v11878_v29, 1 }
 0x6bd   : > { %v11856_v44 = vrot.slane %v11855_v53, 2  ;;  %v11862_v26 = vmax.f32 %v11860_v17, %v11861_v6  ;;  %v8861_v57 = vcombine.high %v20626_v18, %v20626_v18  ;;  %v8868_v46 = vrot.slane %v20626_v18, %v18149_v11 }
 0x6be   : > { %v11844_v2 = vrot.slane %v11843_v19, 1  ;;  %v11850_v51 = vmax.f32 %v11848_v7, %v11849_v5  ;;  %v6437_v35 = vadd.f32 %v6436_v33, %v20623_v39  ;;  %v11886_v31 = vrot.slane %v11885_v21, 1 }
 0x6bf   : > { %v11857_v14 = vmax.f32 %v11855_v53, %v11856_v44  ;;  %v11863_v15 = vrot.slane %v11862_v26, 2  ;;  %v8875_v13 = vrot.slane %v8861_v57, %v18149_v11  ;;  %v8876_v50 = vcombine.high %v8868_v46, %v8868_v46 }
 0x6c0   : > { %v11845_v41 = vmax.f32 %v11843_v19, %v11844_v2  ;;  %v11851_v4 = vrot.slane %v11850_v51, 1  ;;  %v10148_v37 = vsel %vm9390_vm0, %v8868_v46, -inf  ;;  %v6572_v34 = vmax.f32 %v6437_v35, 0.0 }
 0x6c1   : > { %v11858_v32 = vrot.slane %v11857_v14, 1  ;;  %v11864_v58 = vmax.f32 %v11862_v26, %v11863_v15  ;;  %v8877_v0 = vcombine.high %v8875_v13, %v8875_v13  ;;  %v10149_v48 = vmax.f32 %v20631_v30, %v10148_v37 }
 0x6c2   : > { %v11852_v45 = vmax.f32 %v11850_v51, %v11851_v4  ;;  %v10151_v18 = vsel %vm9390_vm0, %v8876_v50, -inf  ;;  %v10154_v39 = vsel %vm9390_vm0, %v8875_v13, -inf  ;;  %v11893_v56 = vrot.slane %v11892_v55, 1 }
 0x6c3   : > { %v11859_v61 = vmax.f32 %v11857_v14, %v11858_v32  ;;  %v11865_v42 = vrot.slane %v11864_v58, 1  ;;  %v10152_v8 = vmax.f32 %v20655_v3, %v10151_v18  ;;  %v10155_v36 = vmax.f32 %v20659_v16, %v10154_v39 }
 0x6c4   : > { %v12424_v25 = vsel %vm12207_vm1, %v11852_v45, %v11845_v41  ;;  %v10157_v40 = vsel %vm9390_vm0, %v8877_v0, -inf  ;;  %v8844_v59 = vcombine.high %v6572_v34, %v6572_v34  ;;  %v11873_v54 = vmax.f32 %v11871_v52, %v11872_v27 }
 0x6c5   : > { %v11866_v30 = vmax.f32 %v11864_v58, %v11865_v42  ;;  %v12425_v63 = vsel %vm12209_vm2, %v11859_v61, %v12424_v25  ;;  %v10158_v22 = vmax.f32 %v10156_v9, %v10157_v40  ;;  %v11923_v10 = vsel %vm9390_vm0, %v10149_v48, -inf }
 0x6c6   : > { %v11930_v20 = vsel %vm9390_vm0, %v10152_v8, -inf  ;;  %v8851_v38 = vrot.slane %v6572_v34, %v18149_v11  ;;  %v8858_v3 = vrot.slane %v8844_v59, %v18149_v11  ;;  %v8792_v16 = vcombine.high %v20664_v62, %v20664_v62 }
 0x6c7   : > { %v11880_v28 = vmax.f32 %v11878_v29, %v11879_v47  ;;  %v11887_v12 = vmax.f32 %v11885_v21, %v11886_v31  ;;  %v12426_v60 = vsel %vm12211_vm3, %v11866_v30, %v12425_v63  ;;  %v11894_v52 = vmax.f32 %v11892_v55, %v11893_v56 }
 0x6c8   : > { %v12427_v23 = vsel %vm12213_vm4, %v11873_v54, %v12426_v60  ;;  %v11937_v17 = vsel %vm9390_vm0, %v10155_v36, -inf  ;;  %v8859_v43 = vcombine.high %v8851_v38, %v8851_v38  ;;  %v11924_v9 = vrot.slane %v11923_v10, 4 }
 0x6c9   : > { %v12428_v7 = vsel %vm12215_vm5, %v11880_v28, %v12427_v23  ;;  %v11931_v53 = vrot.slane %v11930_v20, 4  ;;  %v11944_v11 = vsel %vm9390_vm0, %v10158_v22, -inf  ;;  %v8860_v33 = vcombine.high %v8858_v3, %v8858_v3 }
 0x6ca   : > { %v12429_v6 = vsel %vm12217_vm6, %v11887_v12, %v12428_v7  ;;  %v10136_v29 = vsel %vm9390_vm0, %v8851_v38, -inf  ;;  %v10139_v21 = vsel %vm9390_vm0, %v8859_v43, -inf  ;;  %v10138_v27 = vsel %vm9390_vm0, %v8791_v1, -inf }
 0x6cb   : > { %v10141_v55 = vsel %vm9390_vm0, %v20664_v62, -inf  ;;  %v12430_v19 = vsel %vm12219_vm7, %v11894_v52, %v12429_v6  ;;  %v11938_v5 = vrot.slane %v11937_v17, 4  ;;  %v11945_v47 = vrot.slane %v11944_v11, 4 }
 0x6cc   : > { %12501 = vst.msk [vmem:[%s18362_s24 + $0xf0] sm:$0xff] %vm12470_vm8, %v12430_v19  ;;  %v10137_v44 = vmax.f32 %v20671_v49, %v10136_v29  ;;  %v10140_v26 = vmax.f32 %v10138_v27, %v10139_v21  ;;  %v10142_v57 = vsel %vm9390_vm0, %v8858_v3, -inf  ;;  %v10144_v2 = vsel %vm9390_vm0, %v8792_v16, -inf }
 0x6cd   : > { %v11925_v51 = vmax.f32 %v11923_v10, %v11924_v9  ;;  %v10143_v24 = vmax.f32 %v10141_v55, %v10142_v57  ;;  %v11932_v46 = vmax.f32 %v11930_v20, %v11931_v53  ;;  %v10145_v1 = vsel %vm9390_vm0, %v8860_v33, -inf }
 0x6ce   : > { %v11895_v62 = vsel %vm9390_vm0, %v10137_v44, -inf  ;;  %v11902_v35 = vsel %vm9390_vm0, %v10140_v26, -inf  ;;  %v11939_v31 = vmax.f32 %v11937_v17, %v11938_v5  ;;  %v10146_v14 = vmax.f32 %v10144_v2, %v10145_v1 }
 0x6cf   : > { %v11946_v15 = vmax.f32 %v11944_v11, %v11945_v47  ;;  %v11896_v13 = vrot.slane %v11895_v62, 4  ;;  %v11903_v41 = vrot.slane %v11902_v35, 4  ;;  %v11909_v49 = vsel %vm9390_vm0, %v10143_v24, -inf }
 0x6d0   : > { %v11926_v4 = vrot.slane %v11925_v51, 2  ;;  %v11910_v50 = vrot.slane %v11909_v49, 4  ;;  %v11916_v37 = vsel %vm9390_vm0, %v10146_v14, -inf  ;;  %v11933_v32 = vrot.slane %v11932_v46, 2 }
 0x6d1   : > { %v11897_v58 = vmax.f32 %v11895_v62, %v11896_v13  ;;  %v11904_v0 = vmax.f32 %v11902_v35, %v11903_v41  ;;  %v11917_v48 = vrot.slane %v11916_v37, 4  ;;  %v11940_v45 = vrot.slane %v11939_v31, 2 }
 0x6d2   : > { %v11911_v18 = vmax.f32 %v11909_v49, %v11910_v50  ;;  %v11947_v39 = vrot.slane %v11946_v15, 2  ;;  %v11927_v8 = vmax.f32 %v11925_v51, %v11926_v4  ;;  %v11934_v56 = vmax.f32 %v11932_v46, %v11933_v32 }
 0x6d3   : > { %v11898_v34 = vrot.slane %v11897_v58, 2  ;;  %v11905_v61 = vrot.slane %v11904_v0, 2  ;;  %v11918_v42 = vmax.f32 %v11916_v37, %v11917_v48  ;;  %v11941_v54 = vmax.f32 %v11939_v31, %v11940_v45 }
 0x6d4   : > { %v11912_v36 = vrot.slane %v11911_v18, 2  ;;  %v11948_v63 = vmax.f32 %v11946_v15, %v11947_v39  ;;  %v11928_v38 = vrot.slane %v11927_v8, 1  ;;  %v11935_v16 = vrot.slane %v11934_v56, 1 }
 0x6d5   : > { %v11899_v25 = vmax.f32 %v11897_v58, %v11898_v34  ;;  %v11906_v40 = vmax.f32 %v11904_v0, %v11905_v61  ;;  %v11919_v59 = vrot.slane %v11918_v42, 2  ;;  %v11942_v52 = vrot.slane %v11941_v54, 1 }
 0x6d6   : > { %v11913_v30 = vmax.f32 %v11911_v18, %v11912_v36  ;;  %v11949_v17 = vrot.slane %v11948_v63, 1  ;;  %v11929_v9 = vmax.f32 %v11927_v8, %v11928_v38  ;;  %v11936_v11 = vmax.f32 %v11934_v56, %v11935_v16 }
 0x6d7   : > { %v11900_v22 = vrot.slane %v11899_v25, 1  ;;  %v11907_v10 = vrot.slane %v11906_v40, 1  ;;  %v11920_v20 = vmax.f32 %v11918_v42, %v11919_v59  ;;  %v11943_v33 = vmax.f32 %v11941_v54, %v11942_v52 }
 0x6d8   : > { %v11914_v3 = vrot.slane %v11913_v30, 1  ;;  %v11950_v21 = vmax.f32 %v11948_v63, %v11949_v17 }
 0x6d9   : > { %v11901_v28 = vmax.f32 %v11899_v25, %v11900_v22  ;;  %v11908_v12 = vmax.f32 %v11906_v40, %v11907_v10  ;;  %v11921_v60 = vrot.slane %v11920_v20, 1 }
 0x6da   : > { %v11915_v23 = vmax.f32 %v11913_v30, %v11914_v3 }
 0x6db   : > { %v11922_v43 = vmax.f32 %v11920_v20, %v11921_v60  ;;  %v12431_v7 = vsel %vm12207_vm1, %v11908_v12, %v11901_v28 }
 0x6dc   : > { %v12432_v53 = vsel %vm12209_vm2, %v11915_v23, %v12431_v7 }
 0x6dd   : > { %v12433_v6 = vsel %vm12211_vm3, %v11922_v43, %v12432_v53 }
 0x6de   : > { %v12434_v29 = vsel %vm12213_vm4, %v11929_v9, %v12433_v6 }
 0x6df   : > { %v12435_v27 = vsel %vm12215_vm5, %v11936_v11, %v12434_v29 }
 0x6e0   : > { %v12436_v55 = vsel %vm12217_vm6, %v11943_v33, %v12435_v27 }
 0x6e1   : > { %v12437_v19 = vsel %vm12219_vm7, %v11950_v21, %v12436_v55 }
 0x6e2   : > { %12502 = vst.msk [vmem:[%s18362_s24 + $0xf8] sm:$0xff] %vm12470_vm8, %v12437_v19 }
 0x6e3 PF: > { %p13_p9 = scmp.ge.s32.totalorder %s14944_s17, 4   ;;  %s22482_s12 = smov %s14890_s13 }
 0x6e4   : > { %s22483_s13 = smov %s14894_s14  ;;  %s22484_s14 = smov %s14954_s20 }
 0x6e5   : > { %s22485_s15 = smov %s14944_s17  ;;  %15 = sbr.rel (!%p13_p9) target bundleno = 3 (0x3), region = 72 }
 0x6ea   :  { %12525 = vsyncpa [#allocation3], 1 }
 0x6eb   :  { %12527 = vsyncpa [#allocation3 + $0x1], 1 }

</bundles_post_ra>
